<compile_context>
chip_gen: v7x
topology: tpu7x:2x2x1
jax: 0.10.0
libtpu: 0.0.40
codegen_flags: <defaults>
</compile_context>

<pallas_src>
import math

import jax
import jax.numpy as jnp
from jax.experimental import pallas as pl
from jax.experimental.pallas import tpu as pltpu

# ---- hyper-params implied by the module (small, synthetic) ----
T = 8                       # sequence length (forward loops over T-1 steps)
B = 8                       # batch
N_AGENTS = 4
X_DIM = 2                   # per-agent (x, y) position
Y_DIM = 2 * N_AGENTS        # full state feature dim
Z_DIM = 16
H_DIM = 32
RNN_DIM = 32
N_LAYERS = 1

TM1 = T - 1
A = N_AGENTS
AH = A * H_DIM              # 128
AR = A * RNN_DIM            # 128
AZ = A * Z_DIM              # 64
AX = A * X_DIM              # 8
G3 = 3 * AR                 # 384

LOG_2PI = math.log(2.0 * math.pi)

WEIGHT_NAMES = (
    "enc_w1", "enc_b1", "enc_w2", "enc_b2",
    "enc_mean_w", "enc_mean_b", "enc_std_w", "enc_std_b",
    "prior_w1", "prior_b1", "prior_w2", "prior_b2",
    "prior_mean_w", "prior_mean_b", "prior_std_w", "prior_std_b",
    "dec_w1", "dec_b1", "dec_w2", "dec_b2",
    "dec_mean_w", "dec_mean_b", "dec_std_w", "dec_std_b",
    "gru_wi", "gru_wh", "gru_bi", "gru_bh",
)
N_WEIGHTS = len(WEIGHT_NAMES)


def softplus(x):
    # numerically-stable softplus, identical formula in kernel and reference
    return jnp.maximum(x, 0.0) + jnp.log(1.0 + jnp.exp(-jnp.abs(x)))


def init_params(key):
    shapes = {
        "enc_w1": (N_AGENTS, X_DIM + Y_DIM + RNN_DIM, H_DIM),
        "enc_b1": (N_AGENTS, 1, H_DIM),
        "enc_w2": (N_AGENTS, H_DIM, H_DIM),
        "enc_b2": (N_AGENTS, 1, H_DIM),
        "enc_mean_w": (N_AGENTS, H_DIM, Z_DIM),
        "enc_mean_b": (N_AGENTS, 1, Z_DIM),
        "enc_std_w": (N_AGENTS, H_DIM, Z_DIM),
        "enc_std_b": (N_AGENTS, 1, Z_DIM),
        "prior_w1": (N_AGENTS, Y_DIM + RNN_DIM, H_DIM),
        "prior_b1": (N_AGENTS, 1, H_DIM),
        "prior_w2": (N_AGENTS, H_DIM, H_DIM),
        "prior_b2": (N_AGENTS, 1, H_DIM),
        "prior_mean_w": (N_AGENTS, H_DIM, Z_DIM),
        "prior_mean_b": (N_AGENTS, 1, Z_DIM),
        "prior_std_w": (N_AGENTS, H_DIM, Z_DIM),
        "prior_std_b": (N_AGENTS, 1, Z_DIM),
        "dec_w1": (N_AGENTS, Y_DIM + Z_DIM + RNN_DIM, H_DIM),
        "dec_b1": (N_AGENTS, 1, H_DIM),
        "dec_w2": (N_AGENTS, H_DIM, H_DIM),
        "dec_b2": (N_AGENTS, 1, H_DIM),
        "dec_mean_w": (N_AGENTS, H_DIM, X_DIM),
        "dec_mean_b": (N_AGENTS, 1, X_DIM),
        "dec_std_w": (N_AGENTS, H_DIM, X_DIM),
        "dec_std_b": (N_AGENTS, 1, X_DIM),
        # GRU (single layer), stored transposed so gi = x @ W_ih^T + b_ih.
        # PyTorch gate ordering [r, z, n].
        "gru_wi": (N_AGENTS, X_DIM + Z_DIM, 3 * RNN_DIM),
        "gru_wh": (N_AGENTS, RNN_DIM, 3 * RNN_DIM),
        "gru_bi": (N_AGENTS, 1, 3 * RNN_DIM),
        "gru_bh": (N_AGENTS, 1, 3 * RNN_DIM),
    }
    params = {}
    keys = jax.random.split(key, N_WEIGHTS)
    for k, name in zip(keys, WEIGHT_NAMES):
        params[name] = 0.1 * jax.random.normal(k, shapes[name], dtype=jnp.float32)
    return params


# ----------------------------- Pallas kernel -----------------------------
def vrnn_kernel(tp_ref, eps_ref, x_ref, wsq_ref, b_ref, wz_ref, gwh_ref, gbh_ref,
                kl_ref, rec_ref):
    # tp_ref : (TM1, B, 3*AH + G3)  = [enc_xy | prior_y | dec_y | gru_x] per t
    # eps_ref: (TM1, B, AZ)         lane-packed per-agent standard-normal noise
    # x_ref  : (TM1, B, AX)         lane-packed x_{t+1}
    # wsq_ref: (9, 128, 128)        block-diag / fused-head square weights
    # b_ref  : (6, 128)             packed biases for layer2 / heads
    # wz_ref : (64, 512)            [dec_w1_z_bd (64,128) | gru_wi_z (64,384)]
    # gwh_ref: (128, 384)           gru hidden weight, gates packed [r|z|n]
    # gbh_ref: (1, 384)             gru hidden bias
    # kl_ref, rec_ref: (1, 1) SMEM scalars
    mm = lambda a, w: jnp.dot(a, w, preferred_element_type=jnp.float32)

    h = jnp.zeros((B, AR), jnp.float32)          # all agents packed along lanes
    kl_acc = jnp.zeros((B, AZ), jnp.float32)
    rec_acc = jnp.zeros((B, AX), jnp.float32)

    for t in range(TM1):                         # static unroll: 7 steps
        tp_t = tp_ref[t]                         # (B, 768)
        enc_xy = tp_t[:, 0:AH]
        pri_y = tp_t[:, AH:2 * AH]
        dec_y = tp_t[:, 2 * AH:3 * AH]
        gru_x = tp_t[:, 3 * AH:3 * AH + G3]      # (B, 384)
        eps_t = eps_ref[t]                       # (B, 64)
        x_t = x_ref[t]                           # (B, 8)

        # ---- encoder (x/y part + bias precomputed in enc_xy) ----
        e1 = jax.nn.relu(enc_xy + mm(h, wsq_ref[0]))
        e2 = jax.nn.relu(mm(e1, wsq_ref[1]) + b_ref[0:1, :])
        ems = mm(e2, wsq_ref[2]) + b_ref[1:2, :]          # [means(64) | stds(64)]
        enc_mean = ems[:, 0:AZ]
        enc_std = softplus(ems[:, AZ:2 * AZ])

        # ---- prior ----
        p1 = jax.nn.relu(pri_y + mm(h, wsq_ref[3]))
        p2 = jax.nn.relu(mm(p1, wsq_ref[4]) + b_ref[2:3, :])
        pms = mm(p2, wsq_ref[5]) + b_ref[3:4, :]
        pri_mean = pms[:, 0:AZ]
        pri_std = softplus(pms[:, AZ:2 * AZ])

        # ---- reparameterised sample (sample_gauss with precomputed eps) ----
        z = enc_mean + enc_std * eps_t                    # (B, 64)

        # ---- decoder ----
        d1 = jax.nn.relu(dec_y + mm(z, wz_ref[:, 0:AH]) + mm(h, wsq_ref[6]))
        d2 = jax.nn.relu(mm(d1, wsq_ref[7]) + b_ref[4:5, :])
        dms = mm(d2, wsq_ref[8]) + b_ref[5:6, :]          # lanes 0:16 meaningful
        dec_mean = dms[:, 0:AX]
        dec_std = softplus(dms[:, AX:2 * AX])

        # ---- single-layer GRU step (PyTorch gate order [r, z, n]) ----
        gi = gru_x + mm(z, wz_ref[:, AH:AH + G3])         # (B, 384)
        gh = mm(h, gwh_ref[...]) + gbh_ref[...]           # (B, 384)
        r_g = jax.nn.sigmoid(gi[:, 0:AR] + gh[:, 0:AR])
        z_g = jax.nn.sigmoid(gi[:, AR:2 * AR] + gh[:, AR:2 * AR])
        n_g = jnp.tanh(gi[:, 2 * AR:3 * AR] + r_g * gh[:, 2 * AR:3 * AR])
        h = (1.0 - z_g) * n_g + z_g * h

        # ---- losses (elementwise accumulation; one reduction at the end) ----
        kl_acc = kl_acc + 0.5 * (
            2.0 * jnp.log(pri_std) - 2.0 * jnp.log(enc_std)
            + (enc_std * enc_std + (enc_mean - pri_mean) ** 2)
            / (pri_std * pri_std) - 1.0)
        rec_acc = rec_acc + 0.5 * (
            (x_t - dec_mean) ** 2 / (dec_std * dec_std)
            + 2.0 * jnp.log(dec_std) + LOG_2PI)

    kl_ref[0, 0] = jnp.sum(kl_acc)
    rec_ref[0, 0] = jnp.sum(rec_acc)


# ------------------------ weight / input packing helpers ------------------------
def _pack_lanes(x):
    # (T, A, B, F) -> (T, B, A*F), agents packed (agent-major) along lanes
    t, a, b, f = x.shape
    return jnp.transpose(x, (0, 2, 1, 3)).reshape(t, b, a * f)


def _block_diag(w):
    # (A, K, N) -> (A*K, A*N) block-diagonal (agent-major blocks)
    a, k, n = w.shape
    out = jnp.zeros((a * k, a * n), w.dtype)
    for i in range(a):
        out = out.at[i * k:(i + 1) * k, i * n:(i + 1) * n].set(w[i])
    return out


def _head_bd(mean_w, std_w):
    # (A, H, D) x2 -> (A*H, 2*A*D); output lanes = [all means | all stds]
    a, hh, d = mean_w.shape
    out = jnp.zeros((a * hh, 2 * a * d), mean_w.dtype)
    for i in range(a):
        out = out.at[i * hh:(i + 1) * hh, i * d:(i + 1) * d].set(mean_w[i])
        out = out.at[i * hh:(i + 1) * hh,
                     a * d + i * d:a * d + (i + 1) * d].set(std_w[i])
    return out


def _head_bias(mean_b, std_b):
    # (A, 1, D) x2 -> (1, 2*A*D)
    return jnp.concatenate([mean_b[:, 0, :].reshape(1, -1),
                            std_b[:, 0, :].reshape(1, -1)], axis=-1)


def _gru_w(w):
    # (A, K, 3R) -> (A*K, 3*A*R); output lanes = [r_all | z_all | n_all]
    a, k, _ = w.shape
    out = jnp.zeros((a * k, G3), w.dtype)
    for i in range(a):
        for g in range(3):
            out = out.at[i * k:(i + 1) * k,
                         g * AR + i * RNN_DIM:g * AR + (i + 1) * RNN_DIM].set(
                             w[i, :, g * RNN_DIM:(g + 1) * RNN_DIM])
    return out


def _gru_b(b):
    # (A, 1, 3R) -> (1, 3*A*R)
    out = jnp.zeros((1, G3), b.dtype)
    for i in range(A):
        for g in range(3):
            out = out.at[0, g * AR + i * RNN_DIM:g * AR + (i + 1) * RNN_DIM].set(
                b[i, 0, g * RNN_DIM:(g + 1) * RNN_DIM])
    return out


# --------------------------------- wrapper ---------------------------------
def vrnn_indep_forward(states, eps, params):
    hp = jax.lax.Precision.HIGHEST

    y_t = states[:TM1]                                                  # (Tm1, B, Y)
    x_next = jnp.transpose(states[1:].reshape(TM1, B, A, X_DIM),
                           (0, 2, 1, 3))                                # (Tm1, A, B, X)

    # ---- hoisted first-layer contributions (x / y parts, layer-1 bias folded in) ----
    xy_in = jnp.concatenate(
        [x_next, jnp.broadcast_to(y_t[:, None], (TM1, A, B, Y_DIM))], axis=-1)
    enc_xy = jnp.einsum("tabk,akh->tabh", xy_in,
                        params["enc_w1"][:, :X_DIM + Y_DIM, :],
                        precision=hp) + params["enc_b1"][None]
    pri_y = jnp.einsum("tbk,akh->tabh", y_t,
                       params["prior_w1"][:, :Y_DIM, :],
                       precision=hp) + params["prior_b1"][None]
    dec_y = jnp.einsum("tbk,akh->tabh", y_t,
                       params["dec_w1"][:, :Y_DIM, :],
                       precision=hp) + params["dec_b1"][None]
    gix = jnp.einsum("tabk,akg->tabg", x_next,
                     params["gru_wi"][:, :X_DIM, :],
                     precision=hp) + params["gru_bi"][None]              # (Tm1,A,B,3R)
    gix = jnp.transpose(gix.reshape(TM1, A, B, 3, RNN_DIM),
                        (0, 2, 3, 1, 4)).reshape(TM1, B, G3)             # [r_all|z_all|n_all]

    tparts = jnp.concatenate(
        [_pack_lanes(enc_xy), _pack_lanes(pri_y), _pack_lanes(dec_y), gix],
        axis=-1)                                                         # (Tm1, B, 768)
    eps_p = _pack_lanes(eps)                                             # (Tm1, B, 64)
    x_p = _pack_lanes(x_next)                                            # (Tm1, B, 8)

    # ---- packed / block-diagonal weights (agents folded into one matmul per layer) ----
    dec_head = jnp.pad(_head_bd(params["dec_mean_w"], params["dec_std_w"]),
                       ((0, 0), (0, AH - 2 * AX)))
    w_sq = jnp.stack([
        _block_diag(params["enc_w1"][:, X_DIM + Y_DIM:, :]),   # 0: enc w1 (h part)
        _block_diag(params["enc_w2"]),                         # 1: enc w2
        _head_bd(params["enc_mean_w"], params["enc_std_w"]),   # 2: enc head
        _block_diag(params["prior_w1"][:, Y_DIM:, :]),         # 3: prior w1 (h part)
        _block_diag(params["prior_w2"]),                       # 4: prior w2
        _head_bd(params["prior_mean_w"], params["prior_std_w"]),  # 5: prior head
        _block_diag(params["dec_w1"][:, Y_DIM + Z_DIM:, :]),   # 6: dec w1 (h part)
        _block_diag(params["dec_w2"]),                         # 7: dec w2
        dec_head,                                              # 8: dec head (padded)
    ])                                                         # (9, 128, 128)

    b128 = jnp.concatenate([
        params["enc_b2"][:, 0, :].reshape(1, AH),
        _head_bias(params["enc_mean_b"], params["enc_std_b"]),
        params["prior_b2"][:, 0, :].reshape(1, AH),
        _head_bias(params["prior_mean_b"], params["prior_std_b"]),
        params["dec_b2"][:, 0, :].reshape(1, AH),
        jnp.pad(_head_bias(params["dec_mean_b"], params["dec_std_b"]),
                ((0, 0), (0, AH - 2 * AX))),
    ], axis=0)                                                 # (6, 128)

    w_z = jnp.concatenate([
        _block_diag(params["dec_w1"][:, Y_DIM:Y_DIM + Z_DIM, :]),   # (64, 128)
        _gru_w(params["gru_wi"][:, X_DIM:, :]),                     # (64, 384)
    ], axis=-1)                                                # (64, 512)

    gru_wh = _gru_w(params["gru_wh"])                          # (128, 384)
    gru_bh = _gru_b(params["gru_bh"])                          # (1, 384)

    kl, rec = pl.pallas_call(
        vrnn_kernel,
        out_shape=(jax.ShapeDtypeStruct((1, 1), jnp.float32),
                   jax.ShapeDtypeStruct((1, 1), jnp.float32)),
        in_specs=[pl.BlockSpec(memory_space=pltpu.MemorySpace.VMEM)] * 8,
        out_specs=(pl.BlockSpec(memory_space=pltpu.MemorySpace.SMEM),
                   pl.BlockSpec(memory_space=pltpu.MemorySpace.SMEM)),
    )(tparts, eps_p, x_p, w_sq, b128, w_z, gru_wh, gru_bh)

    return {"kl_loss": kl[0, 0], "recon_loss": rec[0, 0]}


# --------------------- pure-JAX reference (for checking) ---------------------
def vrnn_indep_reference(states, eps, params):
    Tn, Bn, _ = states.shape
    h = [jnp.zeros((Bn, RNN_DIM), jnp.float32) for _ in range(N_AGENTS)]
    kl = jnp.float32(0.0)
    rec = jnp.float32(0.0)
    dot = lambda a, b: jnp.dot(a, b, precision=jax.lax.Precision.HIGHEST)
    for t in range(Tn - 1):
        y_t = states[t]
        for i in range(N_AGENTS):
            x_t = states[t + 1][:, 2 * i:2 * i + 2]
            w = {n: params[n][i] for n in WEIGHT_NAMES}
            enc_in = jnp.concatenate([x_t, y_t, h[i]], axis=1)
            enc_h = jax.nn.relu(dot(enc_in, w["enc_w1"]) + w["enc_b1"])
            enc_h = jax.nn.relu(dot(enc_h, w["enc_w2"]) + w["enc_b2"])
            enc_mean = dot(enc_h, w["enc_mean_w"]) + w["enc_mean_b"]
            enc_std = softplus(dot(enc_h, w["enc_std_w"]) + w["enc_std_b"])
            prior_in = jnp.concatenate([y_t, h[i]], axis=1)
            pri_h = jax.nn.relu(dot(prior_in, w["prior_w1"]) + w["prior_b1"])
            pri_h = jax.nn.relu(dot(pri_h, w["prior_w2"]) + w["prior_b2"])
            prior_mean = dot(pri_h, w["prior_mean_w"]) + w["prior_mean_b"]
            prior_std = softplus(dot(pri_h, w["prior_std_w"]) + w["prior_std_b"])
            z_t = enc_mean + enc_std * eps[t, i]
            dec_in = jnp.concatenate([y_t, z_t, h[i]], axis=1)
            dec_h = jax.nn.relu(dot(dec_in, w["dec_w1"]) + w["dec_b1"])
            dec_h = jax.nn.relu(dot(dec_h, w["dec_w2"]) + w["dec_b2"])
            dec_mean = dot(dec_h, w["dec_mean_w"]) + w["dec_mean_b"]
            dec_std = softplus(dot(dec_h, w["dec_std_w"]) + w["dec_std_b"])
            gi = dot(jnp.concatenate([x_t, z_t], axis=1), w["gru_wi"]) + w["gru_bi"]
            gh = dot(h[i], w["gru_wh"]) + w["gru_bh"]
            R = RNN_DIM
            r_g = jax.nn.sigmoid(gi[:, :R] + gh[:, :R])
            z_g = jax.nn.sigmoid(gi[:, R:2 * R] + gh[:, R:2 * R])
            n_g = jnp.tanh(gi[:, 2 * R:] + r_g * gh[:, 2 * R:])
            h[i] = (1.0 - z_g) * n_g + z_g * h[i]
            kl = kl + 0.5 * jnp.sum(
                2.0 * jnp.log(prior_std) - 2.0 * jnp.log(enc_std)
                + (enc_std ** 2 + (enc_mean - prior_mean) ** 2) / (prior_std ** 2)
                - 1.0)
            rec = rec + 0.5 * jnp.sum(
                (x_t - dec_mean) ** 2 / (dec_std ** 2)
                + 2.0 * jnp.log(dec_std) + LOG_2PI)
    return {"kl_loss": kl, "recon_loss": rec}


if __name__ == "__main__":
    key = jax.random.PRNGKey(0)
    k_param, k_states, k_eps = jax.random.split(key, 3)

    params = init_params(k_param)
    states = 0.5 * jax.random.normal(k_states, (T, B, Y_DIM), dtype=jnp.float32)
    # deterministic replacement for torch's in-forward normal_() sampling
    eps = jax.random.normal(k_eps, (T - 1, N_AGENTS, B, Z_DIM), dtype=jnp.float32)

    out = jax.jit(vrnn_indep_forward)(states, eps, params)
    out = jax.block_until_ready(out)

    ref = vrnn_indep_reference(states, eps, params)
    assert jnp.allclose(out["kl_loss"], ref["kl_loss"], rtol=2e-2, atol=1e-2), (
        out["kl_loss"], ref["kl_loss"])
    assert jnp.allclose(out["recon_loss"], ref["recon_loss"], rtol=2e-2, atol=1e-2), (
        out["recon_loss"], ref["recon_loss"])

    print("KERNEL_OK")
</pallas_src>

<mosaic_0001>
module attributes {stable_mosaic.version = 11 : i64} {
  func.func @vrnn_kernel(%arg0: memref<7x8x768xf32, #tpu.memory_space<vmem>>, %arg1: memref<7x8x64xf32, #tpu.memory_space<vmem>>, %arg2: memref<7x8x8xf32, #tpu.memory_space<vmem>>, %arg3: memref<9x128x128xf32, #tpu.memory_space<vmem>>, %arg4: memref<6x128xf32, #tpu.memory_space<vmem>>, %arg5: memref<64x512xf32, #tpu.memory_space<vmem>>, %arg6: memref<128x384xf32, #tpu.memory_space<vmem>>, %arg7: memref<1x384xf32, #tpu.memory_space<vmem>>, %arg8: memref<1x1xf32, #tpu.memory_space<smem>>, %arg9: memref<1x1xf32, #tpu.memory_space<smem>>) attributes {dimension_semantics = [], scalar_prefetch = 0 : i64, scratch_operands = 0 : i64, tpu.core_type = #tpu.core_type<tc>} {
    %cst = arith.constant 0.000000e+00 : f32
    %0 = vector.broadcast %cst : f32 to vector<8x128xf32>
    %cst_0 = arith.constant 0.000000e+00 : f32
    %1 = vector.broadcast %cst_0 : f32 to vector<8x64xf32>
    %cst_1 = arith.constant 0.000000e+00 : f32
    %2 = vector.broadcast %cst_1 : f32 to vector<8x8xf32>
    %c0 = arith.constant 0 : index
    %c0_2 = arith.constant 0 : index
    %c0_3 = arith.constant 0 : index
    %3 = vector.load %arg0[%c0, %c0_2, %c0_3] : memref<7x8x768xf32, #tpu.memory_space<vmem>>, vector<1x8x768xf32>
    %4 = vector.shape_cast %3 : vector<1x8x768xf32> to vector<8x768xf32>
    %5 = vector.extract_strided_slice %4 {offsets = [0, 0], sizes = [8, 128], strides = [1, 1]} : vector<8x768xf32> to vector<8x128xf32>
    %6 = vector.extract_strided_slice %4 {offsets = [0, 128], sizes = [8, 128], strides = [1, 1]} : vector<8x768xf32> to vector<8x128xf32>
    %7 = vector.extract_strided_slice %4 {offsets = [0, 256], sizes = [8, 128], strides = [1, 1]} : vector<8x768xf32> to vector<8x128xf32>
    %8 = vector.extract_strided_slice %4 {offsets = [0, 384], sizes = [8, 384], strides = [1, 1]} : vector<8x768xf32> to vector<8x384xf32>
    %c0_4 = arith.constant 0 : index
    %c0_5 = arith.constant 0 : index
    %c0_6 = arith.constant 0 : index
    %9 = vector.load %arg1[%c0_4, %c0_5, %c0_6] : memref<7x8x64xf32, #tpu.memory_space<vmem>>, vector<1x8x64xf32>
    %10 = vector.shape_cast %9 : vector<1x8x64xf32> to vector<8x64xf32>
    %c0_7 = arith.constant 0 : index
    %c0_8 = arith.constant 0 : index
    %c0_9 = arith.constant 0 : index
    %11 = vector.load %arg2[%c0_7, %c0_8, %c0_9] : memref<7x8x8xf32, #tpu.memory_space<vmem>>, vector<1x8x8xf32>
    %12 = vector.shape_cast %11 : vector<1x8x8xf32> to vector<8x8xf32>
    %c0_10 = arith.constant 0 : index
    %c0_11 = arith.constant 0 : index
    %c0_12 = arith.constant 0 : index
    %13 = vector.load %arg3[%c0_10, %c0_11, %c0_12] : memref<9x128x128xf32, #tpu.memory_space<vmem>>, vector<1x128x128xf32>
    %14 = vector.shape_cast %13 : vector<1x128x128xf32> to vector<128x128xf32>
    %cst_13 = arith.constant dense<0.000000e+00> : vector<8x128xf32>
    %15 = tpu.matmul %0, %14, %cst_13 {dimension_numbers = #tpu.dot_dimension_numbers<[1], [0], [0], [1], [0, 0, 1, 1], [], []>} : vector<8x128xf32>, vector<128x128xf32>, vector<8x128xf32> -> vector<8x128xf32>
    %16 = arith.addf %5, %15 : vector<8x128xf32>
    %cst_14 = arith.constant 0.000000e+00 : f32
    %17 = vector.broadcast %cst_14 : f32 to vector<8x128xf32>
    %18 = arith.maximumf %16, %17 : vector<8x128xf32>
    %c1 = arith.constant 1 : index
    %c0_15 = arith.constant 0 : index
    %c0_16 = arith.constant 0 : index
    %19 = vector.load %arg3[%c1, %c0_15, %c0_16] : memref<9x128x128xf32, #tpu.memory_space<vmem>>, vector<1x128x128xf32>
    %20 = vector.shape_cast %19 : vector<1x128x128xf32> to vector<128x128xf32>
    %cst_17 = arith.constant dense<0.000000e+00> : vector<8x128xf32>
    %21 = tpu.matmul %18, %20, %cst_17 {dimension_numbers = #tpu.dot_dimension_numbers<[1], [0], [0], [1], [0, 0, 1, 1], [], []>} : vector<8x128xf32>, vector<128x128xf32>, vector<8x128xf32> -> vector<8x128xf32>
    %c0_18 = arith.constant 0 : index
    %c0_19 = arith.constant 0 : index
    %22 = vector.load %arg4[%c0_18, %c0_19] : memref<6x128xf32, #tpu.memory_space<vmem>>, vector<1x128xf32>
    %23 = vector.broadcast %22 : vector<1x128xf32> to vector<8x128xf32>
    %24 = arith.addf %21, %23 : vector<8x128xf32>
    %cst_20 = arith.constant 0.000000e+00 : f32
    %25 = vector.broadcast %cst_20 : f32 to vector<8x128xf32>
    %26 = arith.maximumf %24, %25 : vector<8x128xf32>
    %c2 = arith.constant 2 : index
    %c0_21 = arith.constant 0 : index
    %c0_22 = arith.constant 0 : index
    %27 = vector.load %arg3[%c2, %c0_21, %c0_22] : memref<9x128x128xf32, #tpu.memory_space<vmem>>, vector<1x128x128xf32>
    %28 = vector.shape_cast %27 : vector<1x128x128xf32> to vector<128x128xf32>
    %cst_23 = arith.constant dense<0.000000e+00> : vector<8x128xf32>
    %29 = tpu.matmul %26, %28, %cst_23 {dimension_numbers = #tpu.dot_dimension_numbers<[1], [0], [0], [1], [0, 0, 1, 1], [], []>} : vector<8x128xf32>, vector<128x128xf32>, vector<8x128xf32> -> vector<8x128xf32>
    %c1_24 = arith.constant 1 : index
    %c0_25 = arith.constant 0 : index
    %30 = vector.load %arg4[%c1_24, %c0_25] : memref<6x128xf32, #tpu.memory_space<vmem>>, vector<1x128xf32>
    %31 = vector.broadcast %30 : vector<1x128xf32> to vector<8x128xf32>
    %32 = arith.addf %29, %31 : vector<8x128xf32>
    %33 = vector.extract_strided_slice %32 {offsets = [0, 0], sizes = [8, 64], strides = [1, 1]} : vector<8x128xf32> to vector<8x64xf32>
    %34 = vector.extract_strided_slice %32 {offsets = [0, 64], sizes = [8, 64], strides = [1, 1]} : vector<8x128xf32> to vector<8x64xf32>
    %cst_26 = arith.constant 0.000000e+00 : f32
    %35 = vector.broadcast %cst_26 : f32 to vector<8x64xf32>
    %36 = arith.maximumf %34, %35 : vector<8x64xf32>
    %37 = math.absf %34 : vector<8x64xf32>
    %cst_27 = arith.constant 0.000000e+00 : f32
    %38 = vector.broadcast %cst_27 : f32 to vector<8x64xf32>
    %39 = arith.subf %38, %37 : vector<8x64xf32>
    %40 = math.exp %39 : vector<8x64xf32>
    %cst_28 = arith.constant 1.000000e+00 : f32
    %41 = vector.broadcast %cst_28 : f32 to vector<8x64xf32>
    %42 = arith.addf %41, %40 : vector<8x64xf32>
    %43 = math.log %42 : vector<8x64xf32>
    %44 = arith.addf %36, %43 : vector<8x64xf32>
    %c3 = arith.constant 3 : index
    %c0_29 = arith.constant 0 : index
    %c0_30 = arith.constant 0 : index
    %45 = vector.load %arg3[%c3, %c0_29, %c0_30] : memref<9x128x128xf32, #tpu.memory_space<vmem>>, vector<1x128x128xf32>
    %46 = vector.shape_cast %45 : vector<1x128x128xf32> to vector<128x128xf32>
    %cst_31 = arith.constant dense<0.000000e+00> : vector<8x128xf32>
    %47 = tpu.matmul %0, %46, %cst_31 {dimension_numbers = #tpu.dot_dimension_numbers<[1], [0], [0], [1], [0, 0, 1, 1], [], []>} : vector<8x128xf32>, vector<128x128xf32>, vector<8x128xf32> -> vector<8x128xf32>
    %48 = arith.addf %6, %47 : vector<8x128xf32>
    %cst_32 = arith.constant 0.000000e+00 : f32
    %49 = vector.broadcast %cst_32 : f32 to vector<8x128xf32>
    %50 = arith.maximumf %48, %49 : vector<8x128xf32>
    %c4 = arith.constant 4 : index
    %c0_33 = arith.constant 0 : index
    %c0_34 = arith.constant 0 : index
    %51 = vector.load %arg3[%c4, %c0_33, %c0_34] : memref<9x128x128xf32, #tpu.memory_space<vmem>>, vector<1x128x128xf32>
    %52 = vector.shape_cast %51 : vector<1x128x128xf32> to vector<128x128xf32>
    %cst_35 = arith.constant dense<0.000000e+00> : vector<8x128xf32>
    %53 = tpu.matmul %50, %52, %cst_35 {dimension_numbers = #tpu.dot_dimension_numbers<[1], [0], [0], [1], [0, 0, 1, 1], [], []>} : vector<8x128xf32>, vector<128x128xf32>, vector<8x128xf32> -> vector<8x128xf32>
    %c2_36 = arith.constant 2 : index
    %c0_37 = arith.constant 0 : index
    %54 = vector.load %arg4[%c2_36, %c0_37] : memref<6x128xf32, #tpu.memory_space<vmem>>, vector<1x128xf32>
    %55 = vector.broadcast %54 : vector<1x128xf32> to vector<8x128xf32>
    %56 = arith.addf %53, %55 : vector<8x128xf32>
    %cst_38 = arith.constant 0.000000e+00 : f32
    %57 = vector.broadcast %cst_38 : f32 to vector<8x128xf32>
    %58 = arith.maximumf %56, %57 : vector<8x128xf32>
    %c5 = arith.constant 5 : index
    %c0_39 = arith.constant 0 : index
    %c0_40 = arith.constant 0 : index
    %59 = vector.load %arg3[%c5, %c0_39, %c0_40] : memref<9x128x128xf32, #tpu.memory_space<vmem>>, vector<1x128x128xf32>
    %60 = vector.shape_cast %59 : vector<1x128x128xf32> to vector<128x128xf32>
    %cst_41 = arith.constant dense<0.000000e+00> : vector<8x128xf32>
    %61 = tpu.matmul %58, %60, %cst_41 {dimension_numbers = #tpu.dot_dimension_numbers<[1], [0], [0], [1], [0, 0, 1, 1], [], []>} : vector<8x128xf32>, vector<128x128xf32>, vector<8x128xf32> -> vector<8x128xf32>
    %c3_42 = arith.constant 3 : index
    %c0_43 = arith.constant 0 : index
    %62 = vector.load %arg4[%c3_42, %c0_43] : memref<6x128xf32, #tpu.memory_space<vmem>>, vector<1x128xf32>
    %63 = vector.broadcast %62 : vector<1x128xf32> to vector<8x128xf32>
    %64 = arith.addf %61, %63 : vector<8x128xf32>
    %65 = vector.extract_strided_slice %64 {offsets = [0, 0], sizes = [8, 64], strides = [1, 1]} : vector<8x128xf32> to vector<8x64xf32>
    %66 = vector.extract_strided_slice %64 {offsets = [0, 64], sizes = [8, 64], strides = [1, 1]} : vector<8x128xf32> to vector<8x64xf32>
    %cst_44 = arith.constant 0.000000e+00 : f32
    %67 = vector.broadcast %cst_44 : f32 to vector<8x64xf32>
    %68 = arith.maximumf %66, %67 : vector<8x64xf32>
    %69 = math.absf %66 : vector<8x64xf32>
    %cst_45 = arith.constant 0.000000e+00 : f32
    %70 = vector.broadcast %cst_45 : f32 to vector<8x64xf32>
    %71 = arith.subf %70, %69 : vector<8x64xf32>
    %72 = math.exp %71 : vector<8x64xf32>
    %cst_46 = arith.constant 1.000000e+00 : f32
    %73 = vector.broadcast %cst_46 : f32 to vector<8x64xf32>
    %74 = arith.addf %73, %72 : vector<8x64xf32>
    %75 = math.log %74 : vector<8x64xf32>
    %76 = arith.addf %68, %75 : vector<8x64xf32>
    %77 = arith.mulf %44, %10 : vector<8x64xf32>
    %78 = arith.addf %33, %77 : vector<8x64xf32>
    %c0_47 = arith.constant 0 : index
    %c0_48 = arith.constant 0 : index
    %79 = vector.load %arg5[%c0_47, %c0_48] : memref<64x512xf32, #tpu.memory_space<vmem>>, vector<64x128xf32>
    %cst_49 = arith.constant dense<0.000000e+00> : vector<8x128xf32>
    %80 = tpu.matmul %78, %79, %cst_49 {dimension_numbers = #tpu.dot_dimension_numbers<[1], [0], [0], [1], [0, 0, 1, 1], [], []>} : vector<8x64xf32>, vector<64x128xf32>, vector<8x128xf32> -> vector<8x128xf32>
    %81 = arith.addf %7, %80 : vector<8x128xf32>
    %c6 = arith.constant 6 : index
    %c0_50 = arith.constant 0 : index
    %c0_51 = arith.constant 0 : index
    %82 = vector.load %arg3[%c6, %c0_50, %c0_51] : memref<9x128x128xf32, #tpu.memory_space<vmem>>, vector<1x128x128xf32>
    %83 = vector.shape_cast %82 : vector<1x128x128xf32> to vector<128x128xf32>
    %cst_52 = arith.constant dense<0.000000e+00> : vector<8x128xf32>
    %84 = tpu.matmul %0, %83, %cst_52 {dimension_numbers = #tpu.dot_dimension_numbers<[1], [0], [0], [1], [0, 0, 1, 1], [], []>} : vector<8x128xf32>, vector<128x128xf32>, vector<8x128xf32> -> vector<8x128xf32>
    %85 = arith.addf %81, %84 : vector<8x128xf32>
    %cst_53 = arith.constant 0.000000e+00 : f32
    %86 = vector.broadcast %cst_53 : f32 to vector<8x128xf32>
    %87 = arith.maximumf %85, %86 : vector<8x128xf32>
    %c7 = arith.constant 7 : index
    %c0_54 = arith.constant 0 : index
    %c0_55 = arith.constant 0 : index
    %88 = vector.load %arg3[%c7, %c0_54, %c0_55] : memref<9x128x128xf32, #tpu.memory_space<vmem>>, vector<1x128x128xf32>
    %89 = vector.shape_cast %88 : vector<1x128x128xf32> to vector<128x128xf32>
    %cst_56 = arith.constant dense<0.000000e+00> : vector<8x128xf32>
    %90 = tpu.matmul %87, %89, %cst_56 {dimension_numbers = #tpu.dot_dimension_numbers<[1], [0], [0], [1], [0, 0, 1, 1], [], []>} : vector<8x128xf32>, vector<128x128xf32>, vector<8x128xf32> -> vector<8x128xf32>
    %c4_57 = arith.constant 4 : index
    %c0_58 = arith.constant 0 : index
    %91 = vector.load %arg4[%c4_57, %c0_58] : memref<6x128xf32, #tpu.memory_space<vmem>>, vector<1x128xf32>
    %92 = vector.broadcast %91 : vector<1x128xf32> to vector<8x128xf32>
    %93 = arith.addf %90, %92 : vector<8x128xf32>
    %cst_59 = arith.constant 0.000000e+00 : f32
    %94 = vector.broadcast %cst_59 : f32 to vector<8x128xf32>
    %95 = arith.maximumf %93, %94 : vector<8x128xf32>
    %c8 = arith.constant 8 : index
    %c0_60 = arith.constant 0 : index
    %c0_61 = arith.constant 0 : index
    %96 = vector.load %arg3[%c8, %c0_60, %c0_61] : memref<9x128x128xf32, #tpu.memory_space<vmem>>, vector<1x128x128xf32>
    %97 = vector.shape_cast %96 : vector<1x128x128xf32> to vector<128x128xf32>
    %cst_62 = arith.constant dense<0.000000e+00> : vector<8x128xf32>
    %98 = tpu.matmul %95, %97, %cst_62 {dimension_numbers = #tpu.dot_dimension_numbers<[1], [0], [0], [1], [0, 0, 1, 1], [], []>} : vector<8x128xf32>, vector<128x128xf32>, vector<8x128xf32> -> vector<8x128xf32>
    %c5_63 = arith.constant 5 : index
    %c0_64 = arith.constant 0 : index
    %99 = vector.load %arg4[%c5_63, %c0_64] : memref<6x128xf32, #tpu.memory_space<vmem>>, vector<1x128xf32>
    %100 = vector.broadcast %99 : vector<1x128xf32> to vector<8x128xf32>
    %101 = arith.addf %98, %100 : vector<8x128xf32>
    %102 = vector.extract_strided_slice %101 {offsets = [0, 0], sizes = [8, 8], strides = [1, 1]} : vector<8x128xf32> to vector<8x8xf32>
    %103 = vector.extract_strided_slice %101 {offsets = [0, 8], sizes = [8, 8], strides = [1, 1]} : vector<8x128xf32> to vector<8x8xf32>
    %cst_65 = arith.constant 0.000000e+00 : f32
    %104 = vector.broadcast %cst_65 : f32 to vector<8x8xf32>
    %105 = arith.maximumf %103, %104 : vector<8x8xf32>
    %106 = math.absf %103 : vector<8x8xf32>
    %cst_66 = arith.constant 0.000000e+00 : f32
    %107 = vector.broadcast %cst_66 : f32 to vector<8x8xf32>
    %108 = arith.subf %107, %106 : vector<8x8xf32>
    %109 = math.exp %108 : vector<8x8xf32>
    %cst_67 = arith.constant 1.000000e+00 : f32
    %110 = vector.broadcast %cst_67 : f32 to vector<8x8xf32>
    %111 = arith.addf %110, %109 : vector<8x8xf32>
    %112 = math.log %111 : vector<8x8xf32>
    %113 = arith.addf %105, %112 : vector<8x8xf32>
    %c0_68 = arith.constant 0 : index
    %c128 = arith.constant 128 : index
    %114 = vector.load %arg5[%c0_68, %c128] : memref<64x512xf32, #tpu.memory_space<vmem>>, vector<64x384xf32>
    %cst_69 = arith.constant dense<0.000000e+00> : vector<8x384xf32>
    %115 = tpu.matmul %78, %114, %cst_69 {dimension_numbers = #tpu.dot_dimension_numbers<[1], [0], [0], [1], [0, 0, 1, 1], [], []>} : vector<8x64xf32>, vector<64x384xf32>, vector<8x384xf32> -> vector<8x384xf32>
    %116 = arith.addf %8, %115 : vector<8x384xf32>
    %c0_70 = arith.constant 0 : index
    %c0_71 = arith.constant 0 : index
    %117 = vector.load %arg6[%c0_70, %c0_71] : memref<128x384xf32, #tpu.memory_space<vmem>>, vector<128x384xf32>
    %cst_72 = arith.constant dense<0.000000e+00> : vector<8x384xf32>
    %118 = tpu.matmul %0, %117, %cst_72 {dimension_numbers = #tpu.dot_dimension_numbers<[1], [0], [0], [1], [0, 0, 1, 1], [], []>} : vector<8x128xf32>, vector<128x384xf32>, vector<8x384xf32> -> vector<8x384xf32>
    %c0_73 = arith.constant 0 : index
    %c0_74 = arith.constant 0 : index
    %119 = vector.load %arg7[%c0_73, %c0_74] : memref<1x384xf32, #tpu.memory_space<vmem>>, vector<1x384xf32>
    %120 = vector.broadcast %119 : vector<1x384xf32> to vector<8x384xf32>
    %121 = arith.addf %118, %120 : vector<8x384xf32>
    %122 = vector.extract_strided_slice %116 {offsets = [0, 0], sizes = [8, 128], strides = [1, 1]} : vector<8x384xf32> to vector<8x128xf32>
    %123 = vector.extract_strided_slice %121 {offsets = [0, 0], sizes = [8, 128], strides = [1, 1]} : vector<8x384xf32> to vector<8x128xf32>
    %124 = arith.addf %122, %123 : vector<8x128xf32>
    %125 = arith.negf %124 : vector<8x128xf32>
    %126 = math.exp %125 : vector<8x128xf32>
    %cst_75 = arith.constant 1.000000e+00 : f32
    %127 = vector.broadcast %cst_75 : f32 to vector<8x128xf32>
    %128 = arith.addf %127, %126 : vector<8x128xf32>
    %129 = arith.divf %127, %128 : vector<8x128xf32>
    %130 = vector.extract_strided_slice %116 {offsets = [0, 128], sizes = [8, 128], strides = [1, 1]} : vector<8x384xf32> to vector<8x128xf32>
    %131 = vector.extract_strided_slice %121 {offsets = [0, 128], sizes = [8, 128], strides = [1, 1]} : vector<8x384xf32> to vector<8x128xf32>
    %132 = arith.addf %130, %131 : vector<8x128xf32>
    %133 = arith.negf %132 : vector<8x128xf32>
    %134 = math.exp %133 : vector<8x128xf32>
    %cst_76 = arith.constant 1.000000e+00 : f32
    %135 = vector.broadcast %cst_76 : f32 to vector<8x128xf32>
    %136 = arith.addf %135, %134 : vector<8x128xf32>
    %137 = arith.divf %135, %136 : vector<8x128xf32>
    %138 = vector.extract_strided_slice %116 {offsets = [0, 256], sizes = [8, 128], strides = [1, 1]} : vector<8x384xf32> to vector<8x128xf32>
    %139 = vector.extract_strided_slice %121 {offsets = [0, 256], sizes = [8, 128], strides = [1, 1]} : vector<8x384xf32> to vector<8x128xf32>
    %140 = arith.mulf %129, %139 : vector<8x128xf32>
    %141 = arith.addf %138, %140 : vector<8x128xf32>
    %142 = math.tanh %141 : vector<8x128xf32>
    %cst_77 = arith.constant 1.000000e+00 : f32
    %143 = vector.broadcast %cst_77 : f32 to vector<8x128xf32>
    %144 = arith.subf %143, %137 : vector<8x128xf32>
    %145 = arith.mulf %144, %142 : vector<8x128xf32>
    %146 = arith.mulf %137, %0 : vector<8x128xf32>
    %147 = arith.addf %145, %146 : vector<8x128xf32>
    %148 = math.log %76 : vector<8x64xf32>
    %cst_78 = arith.constant 2.000000e+00 : f32
    %149 = vector.broadcast %cst_78 : f32 to vector<8x64xf32>
    %150 = arith.mulf %149, %148 : vector<8x64xf32>
    %151 = math.log %44 : vector<8x64xf32>
    %cst_79 = arith.constant 2.000000e+00 : f32
    %152 = vector.broadcast %cst_79 : f32 to vector<8x64xf32>
    %153 = arith.mulf %152, %151 : vector<8x64xf32>
    %154 = arith.subf %150, %153 : vector<8x64xf32>
    %155 = arith.mulf %44, %44 : vector<8x64xf32>
    %156 = arith.subf %33, %65 : vector<8x64xf32>
    %157 = arith.mulf %156, %156 : vector<8x64xf32>
    %158 = arith.addf %155, %157 : vector<8x64xf32>
    %159 = arith.mulf %76, %76 : vector<8x64xf32>
    %160 = arith.divf %158, %159 : vector<8x64xf32>
    %161 = arith.addf %154, %160 : vector<8x64xf32>
    %cst_80 = arith.constant 1.000000e+00 : f32
    %162 = vector.broadcast %cst_80 : f32 to vector<8x64xf32>
    %163 = arith.subf %161, %162 : vector<8x64xf32>
    %cst_81 = arith.constant 5.000000e-01 : f32
    %164 = vector.broadcast %cst_81 : f32 to vector<8x64xf32>
    %165 = arith.mulf %164, %163 : vector<8x64xf32>
    %166 = arith.addf %1, %165 : vector<8x64xf32>
    %167 = arith.subf %12, %102 : vector<8x8xf32>
    %168 = arith.mulf %167, %167 : vector<8x8xf32>
    %169 = arith.mulf %113, %113 : vector<8x8xf32>
    %170 = arith.divf %168, %169 : vector<8x8xf32>
    %171 = math.log %113 : vector<8x8xf32>
    %cst_82 = arith.constant 2.000000e+00 : f32
    %172 = vector.broadcast %cst_82 : f32 to vector<8x8xf32>
    %173 = arith.mulf %172, %171 : vector<8x8xf32>
    %174 = arith.addf %170, %173 : vector<8x8xf32>
    %cst_83 = arith.constant 1.83787704 : f32
    %175 = vector.broadcast %cst_83 : f32 to vector<8x8xf32>
    %176 = arith.addf %174, %175 : vector<8x8xf32>
    %cst_84 = arith.constant 5.000000e-01 : f32
    %177 = vector.broadcast %cst_84 : f32 to vector<8x8xf32>
    %178 = arith.mulf %177, %176 : vector<8x8xf32>
    %179 = arith.addf %2, %178 : vector<8x8xf32>
    %c1_85 = arith.constant 1 : index
    %c0_86 = arith.constant 0 : index
    %c0_87 = arith.constant 0 : index
    %180 = vector.load %arg0[%c1_85, %c0_86, %c0_87] : memref<7x8x768xf32, #tpu.memory_space<vmem>>, vector<1x8x768xf32>
    %181 = vector.shape_cast %180 : vector<1x8x768xf32> to vector<8x768xf32>
    %182 = vector.extract_strided_slice %181 {offsets = [0, 0], sizes = [8, 128], strides = [1, 1]} : vector<8x768xf32> to vector<8x128xf32>
    %183 = vector.extract_strided_slice %181 {offsets = [0, 128], sizes = [8, 128], strides = [1, 1]} : vector<8x768xf32> to vector<8x128xf32>
    %184 = vector.extract_strided_slice %181 {offsets = [0, 256], sizes = [8, 128], strides = [1, 1]} : vector<8x768xf32> to vector<8x128xf32>
    %185 = vector.extract_strided_slice %181 {offsets = [0, 384], sizes = [8, 384], strides = [1, 1]} : vector<8x768xf32> to vector<8x384xf32>
    %c1_88 = arith.constant 1 : index
    %c0_89 = arith.constant 0 : index
    %c0_90 = arith.constant 0 : index
    %186 = vector.load %arg1[%c1_88, %c0_89, %c0_90] : memref<7x8x64xf32, #tpu.memory_space<vmem>>, vector<1x8x64xf32>
    %187 = vector.shape_cast %186 : vector<1x8x64xf32> to vector<8x64xf32>
    %c1_91 = arith.constant 1 : index
    %c0_92 = arith.constant 0 : index
    %c0_93 = arith.constant 0 : index
    %188 = vector.load %arg2[%c1_91, %c0_92, %c0_93] : memref<7x8x8xf32, #tpu.memory_space<vmem>>, vector<1x8x8xf32>
    %189 = vector.shape_cast %188 : vector<1x8x8xf32> to vector<8x8xf32>
    %c0_94 = arith.constant 0 : index
    %c0_95 = arith.constant 0 : index
    %c0_96 = arith.constant 0 : index
    %190 = vector.load %arg3[%c0_94, %c0_95, %c0_96] : memref<9x128x128xf32, #tpu.memory_space<vmem>>, vector<1x128x128xf32>
    %191 = vector.shape_cast %190 : vector<1x128x128xf32> to vector<128x128xf32>
    %cst_97 = arith.constant dense<0.000000e+00> : vector<8x128xf32>
    %192 = tpu.matmul %147, %191, %cst_97 {dimension_numbers = #tpu.dot_dimension_numbers<[1], [0], [0], [1], [0, 0, 1, 1], [], []>} : vector<8x128xf32>, vector<128x128xf32>, vector<8x128xf32> -> vector<8x128xf32>
    %193 = arith.addf %182, %192 : vector<8x128xf32>
    %cst_98 = arith.constant 0.000000e+00 : f32
    %194 = vector.broadcast %cst_98 : f32 to vector<8x128xf32>
    %195 = arith.maximumf %193, %194 : vector<8x128xf32>
    %c1_99 = arith.constant 1 : index
    %c0_100 = arith.constant 0 : index
    %c0_101 = arith.constant 0 : index
    %196 = vector.load %arg3[%c1_99, %c0_100, %c0_101] : memref<9x128x128xf32, #tpu.memory_space<vmem>>, vector<1x128x128xf32>
    %197 = vector.shape_cast %196 : vector<1x128x128xf32> to vector<128x128xf32>
    %cst_102 = arith.constant dense<0.000000e+00> : vector<8x128xf32>
    %198 = tpu.matmul %195, %197, %cst_102 {dimension_numbers = #tpu.dot_dimension_numbers<[1], [0], [0], [1], [0, 0, 1, 1], [], []>} : vector<8x128xf32>, vector<128x128xf32>, vector<8x128xf32> -> vector<8x128xf32>
    %c0_103 = arith.constant 0 : index
    %c0_104 = arith.constant 0 : index
    %199 = vector.load %arg4[%c0_103, %c0_104] : memref<6x128xf32, #tpu.memory_space<vmem>>, vector<1x128xf32>
    %200 = vector.broadcast %199 : vector<1x128xf32> to vector<8x128xf32>
    %201 = arith.addf %198, %200 : vector<8x128xf32>
    %cst_105 = arith.constant 0.000000e+00 : f32
    %202 = vector.broadcast %cst_105 : f32 to vector<8x128xf32>
    %203 = arith.maximumf %201, %202 : vector<8x128xf32>
    %c2_106 = arith.constant 2 : index
    %c0_107 = arith.constant 0 : index
    %c0_108 = arith.constant 0 : index
    %204 = vector.load %arg3[%c2_106, %c0_107, %c0_108] : memref<9x128x128xf32, #tpu.memory_space<vmem>>, vector<1x128x128xf32>
    %205 = vector.shape_cast %204 : vector<1x128x128xf32> to vector<128x128xf32>
    %cst_109 = arith.constant dense<0.000000e+00> : vector<8x128xf32>
    %206 = tpu.matmul %203, %205, %cst_109 {dimension_numbers = #tpu.dot_dimension_numbers<[1], [0], [0], [1], [0, 0, 1, 1], [], []>} : vector<8x128xf32>, vector<128x128xf32>, vector<8x128xf32> -> vector<8x128xf32>
    %c1_110 = arith.constant 1 : index
    %c0_111 = arith.constant 0 : index
    %207 = vector.load %arg4[%c1_110, %c0_111] : memref<6x128xf32, #tpu.memory_space<vmem>>, vector<1x128xf32>
    %208 = vector.broadcast %207 : vector<1x128xf32> to vector<8x128xf32>
    %209 = arith.addf %206, %208 : vector<8x128xf32>
    %210 = vector.extract_strided_slice %209 {offsets = [0, 0], sizes = [8, 64], strides = [1, 1]} : vector<8x128xf32> to vector<8x64xf32>
    %211 = vector.extract_strided_slice %209 {offsets = [0, 64], sizes = [8, 64], strides = [1, 1]} : vector<8x128xf32> to vector<8x64xf32>
    %cst_112 = arith.constant 0.000000e+00 : f32
    %212 = vector.broadcast %cst_112 : f32 to vector<8x64xf32>
    %213 = arith.maximumf %211, %212 : vector<8x64xf32>
    %214 = math.absf %211 : vector<8x64xf32>
    %cst_113 = arith.constant 0.000000e+00 : f32
    %215 = vector.broadcast %cst_113 : f32 to vector<8x64xf32>
    %216 = arith.subf %215, %214 : vector<8x64xf32>
    %217 = math.exp %216 : vector<8x64xf32>
    %cst_114 = arith.constant 1.000000e+00 : f32
    %218 = vector.broadcast %cst_114 : f32 to vector<8x64xf32>
    %219 = arith.addf %218, %217 : vector<8x64xf32>
    %220 = math.log %219 : vector<8x64xf32>
    %221 = arith.addf %213, %220 : vector<8x64xf32>
    %c3_115 = arith.constant 3 : index
    %c0_116 = arith.constant 0 : index
    %c0_117 = arith.constant 0 : index
    %222 = vector.load %arg3[%c3_115, %c0_116, %c0_117] : memref<9x128x128xf32, #tpu.memory_space<vmem>>, vector<1x128x128xf32>
    %223 = vector.shape_cast %222 : vector<1x128x128xf32> to vector<128x128xf32>
    %cst_118 = arith.constant dense<0.000000e+00> : vector<8x128xf32>
    %224 = tpu.matmul %147, %223, %cst_118 {dimension_numbers = #tpu.dot_dimension_numbers<[1], [0], [0], [1], [0, 0, 1, 1], [], []>} : vector<8x128xf32>, vector<128x128xf32>, vector<8x128xf32> -> vector<8x128xf32>
    %225 = arith.addf %183, %224 : vector<8x128xf32>
    %cst_119 = arith.constant 0.000000e+00 : f32
    %226 = vector.broadcast %cst_119 : f32 to vector<8x128xf32>
    %227 = arith.maximumf %225, %226 : vector<8x128xf32>
    %c4_120 = arith.constant 4 : index
    %c0_121 = arith.constant 0 : index
    %c0_122 = arith.constant 0 : index
    %228 = vector.load %arg3[%c4_120, %c0_121, %c0_122] : memref<9x128x128xf32, #tpu.memory_space<vmem>>, vector<1x128x128xf32>
    %229 = vector.shape_cast %228 : vector<1x128x128xf32> to vector<128x128xf32>
    %cst_123 = arith.constant dense<0.000000e+00> : vector<8x128xf32>
    %230 = tpu.matmul %227, %229, %cst_123 {dimension_numbers = #tpu.dot_dimension_numbers<[1], [0], [0], [1], [0, 0, 1, 1], [], []>} : vector<8x128xf32>, vector<128x128xf32>, vector<8x128xf32> -> vector<8x128xf32>
    %c2_124 = arith.constant 2 : index
    %c0_125 = arith.constant 0 : index
    %231 = vector.load %arg4[%c2_124, %c0_125] : memref<6x128xf32, #tpu.memory_space<vmem>>, vector<1x128xf32>
    %232 = vector.broadcast %231 : vector<1x128xf32> to vector<8x128xf32>
    %233 = arith.addf %230, %232 : vector<8x128xf32>
    %cst_126 = arith.constant 0.000000e+00 : f32
    %234 = vector.broadcast %cst_126 : f32 to vector<8x128xf32>
    %235 = arith.maximumf %233, %234 : vector<8x128xf32>
    %c5_127 = arith.constant 5 : index
    %c0_128 = arith.constant 0 : index
    %c0_129 = arith.constant 0 : index
    %236 = vector.load %arg3[%c5_127, %c0_128, %c0_129] : memref<9x128x128xf32, #tpu.memory_space<vmem>>, vector<1x128x128xf32>
    %237 = vector.shape_cast %236 : vector<1x128x128xf32> to vector<128x128xf32>
    %cst_130 = arith.constant dense<0.000000e+00> : vector<8x128xf32>
    %238 = tpu.matmul %235, %237, %cst_130 {dimension_numbers = #tpu.dot_dimension_numbers<[1], [0], [0], [1], [0, 0, 1, 1], [], []>} : vector<8x128xf32>, vector<128x128xf32>, vector<8x128xf32> -> vector<8x128xf32>
    %c3_131 = arith.constant 3 : index
    %c0_132 = arith.constant 0 : index
    %239 = vector.load %arg4[%c3_131, %c0_132] : memref<6x128xf32, #tpu.memory_space<vmem>>, vector<1x128xf32>
    %240 = vector.broadcast %239 : vector<1x128xf32> to vector<8x128xf32>
    %241 = arith.addf %238, %240 : vector<8x128xf32>
    %242 = vector.extract_strided_slice %241 {offsets = [0, 0], sizes = [8, 64], strides = [1, 1]} : vector<8x128xf32> to vector<8x64xf32>
    %243 = vector.extract_strided_slice %241 {offsets = [0, 64], sizes = [8, 64], strides = [1, 1]} : vector<8x128xf32> to vector<8x64xf32>
    %cst_133 = arith.constant 0.000000e+00 : f32
    %244 = vector.broadcast %cst_133 : f32 to vector<8x64xf32>
    %245 = arith.maximumf %243, %244 : vector<8x64xf32>
    %246 = math.absf %243 : vector<8x64xf32>
    %cst_134 = arith.constant 0.000000e+00 : f32
    %247 = vector.broadcast %cst_134 : f32 to vector<8x64xf32>
    %248 = arith.subf %247, %246 : vector<8x64xf32>
    %249 = math.exp %248 : vector<8x64xf32>
    %cst_135 = arith.constant 1.000000e+00 : f32
    %250 = vector.broadcast %cst_135 : f32 to vector<8x64xf32>
    %251 = arith.addf %250, %249 : vector<8x64xf32>
    %252 = math.log %251 : vector<8x64xf32>
    %253 = arith.addf %245, %252 : vector<8x64xf32>
    %254 = arith.mulf %221, %187 : vector<8x64xf32>
    %255 = arith.addf %210, %254 : vector<8x64xf32>
    %c0_136 = arith.constant 0 : index
    %c0_137 = arith.constant 0 : index
    %256 = vector.load %arg5[%c0_136, %c0_137] : memref<64x512xf32, #tpu.memory_space<vmem>>, vector<64x128xf32>
    %cst_138 = arith.constant dense<0.000000e+00> : vector<8x128xf32>
    %257 = tpu.matmul %255, %256, %cst_138 {dimension_numbers = #tpu.dot_dimension_numbers<[1], [0], [0], [1], [0, 0, 1, 1], [], []>} : vector<8x64xf32>, vector<64x128xf32>, vector<8x128xf32> -> vector<8x128xf32>
    %258 = arith.addf %184, %257 : vector<8x128xf32>
    %c6_139 = arith.constant 6 : index
    %c0_140 = arith.constant 0 : index
    %c0_141 = arith.constant 0 : index
    %259 = vector.load %arg3[%c6_139, %c0_140, %c0_141] : memref<9x128x128xf32, #tpu.memory_space<vmem>>, vector<1x128x128xf32>
    %260 = vector.shape_cast %259 : vector<1x128x128xf32> to vector<128x128xf32>
    %cst_142 = arith.constant dense<0.000000e+00> : vector<8x128xf32>
    %261 = tpu.matmul %147, %260, %cst_142 {dimension_numbers = #tpu.dot_dimension_numbers<[1], [0], [0], [1], [0, 0, 1, 1], [], []>} : vector<8x128xf32>, vector<128x128xf32>, vector<8x128xf32> -> vector<8x128xf32>
    %262 = arith.addf %258, %261 : vector<8x128xf32>
    %cst_143 = arith.constant 0.000000e+00 : f32
    %263 = vector.broadcast %cst_143 : f32 to vector<8x128xf32>
    %264 = arith.maximumf %262, %263 : vector<8x128xf32>
    %c7_144 = arith.constant 7 : index
    %c0_145 = arith.constant 0 : index
    %c0_146 = arith.constant 0 : index
    %265 = vector.load %arg3[%c7_144, %c0_145, %c0_146] : memref<9x128x128xf32, #tpu.memory_space<vmem>>, vector<1x128x128xf32>
    %266 = vector.shape_cast %265 : vector<1x128x128xf32> to vector<128x128xf32>
    %cst_147 = arith.constant dense<0.000000e+00> : vector<8x128xf32>
    %267 = tpu.matmul %264, %266, %cst_147 {dimension_numbers = #tpu.dot_dimension_numbers<[1], [0], [0], [1], [0, 0, 1, 1], [], []>} : vector<8x128xf32>, vector<128x128xf32>, vector<8x128xf32> -> vector<8x128xf32>
    %c4_148 = arith.constant 4 : index
    %c0_149 = arith.constant 0 : index
    %268 = vector.load %arg4[%c4_148, %c0_149] : memref<6x128xf32, #tpu.memory_space<vmem>>, vector<1x128xf32>
    %269 = vector.broadcast %268 : vector<1x128xf32> to vector<8x128xf32>
    %270 = arith.addf %267, %269 : vector<8x128xf32>
    %cst_150 = arith.constant 0.000000e+00 : f32
    %271 = vector.broadcast %cst_150 : f32 to vector<8x128xf32>
    %272 = arith.maximumf %270, %271 : vector<8x128xf32>
    %c8_151 = arith.constant 8 : index
    %c0_152 = arith.constant 0 : index
    %c0_153 = arith.constant 0 : index
    %273 = vector.load %arg3[%c8_151, %c0_152, %c0_153] : memref<9x128x128xf32, #tpu.memory_space<vmem>>, vector<1x128x128xf32>
    %274 = vector.shape_cast %273 : vector<1x128x128xf32> to vector<128x128xf32>
    %cst_154 = arith.constant dense<0.000000e+00> : vector<8x128xf32>
    %275 = tpu.matmul %272, %274, %cst_154 {dimension_numbers = #tpu.dot_dimension_numbers<[1], [0], [0], [1], [0, 0, 1, 1], [], []>} : vector<8x128xf32>, vector<128x128xf32>, vector<8x128xf32> -> vector<8x128xf32>
    %c5_155 = arith.constant 5 : index
    %c0_156 = arith.constant 0 : index
    %276 = vector.load %arg4[%c5_155, %c0_156] : memref<6x128xf32, #tpu.memory_space<vmem>>, vector<1x128xf32>
    %277 = vector.broadcast %276 : vector<1x128xf32> to vector<8x128xf32>
    %278 = arith.addf %275, %277 : vector<8x128xf32>
    %279 = vector.extract_strided_slice %278 {offsets = [0, 0], sizes = [8, 8], strides = [1, 1]} : vector<8x128xf32> to vector<8x8xf32>
    %280 = vector.extract_strided_slice %278 {offsets = [0, 8], sizes = [8, 8], strides = [1, 1]} : vector<8x128xf32> to vector<8x8xf32>
    %cst_157 = arith.constant 0.000000e+00 : f32
    %281 = vector.broadcast %cst_157 : f32 to vector<8x8xf32>
    %282 = arith.maximumf %280, %281 : vector<8x8xf32>
    %283 = math.absf %280 : vector<8x8xf32>
    %cst_158 = arith.constant 0.000000e+00 : f32
    %284 = vector.broadcast %cst_158 : f32 to vector<8x8xf32>
    %285 = arith.subf %284, %283 : vector<8x8xf32>
    %286 = math.exp %285 : vector<8x8xf32>
    %cst_159 = arith.constant 1.000000e+00 : f32
    %287 = vector.broadcast %cst_159 : f32 to vector<8x8xf32>
    %288 = arith.addf %287, %286 : vector<8x8xf32>
    %289 = math.log %288 : vector<8x8xf32>
    %290 = arith.addf %282, %289 : vector<8x8xf32>
    %c0_160 = arith.constant 0 : index
    %c128_161 = arith.constant 128 : index
    %291 = vector.load %arg5[%c0_160, %c128_161] : memref<64x512xf32, #tpu.memory_space<vmem>>, vector<64x384xf32>
    %cst_162 = arith.constant dense<0.000000e+00> : vector<8x384xf32>
    %292 = tpu.matmul %255, %291, %cst_162 {dimension_numbers = #tpu.dot_dimension_numbers<[1], [0], [0], [1], [0, 0, 1, 1], [], []>} : vector<8x64xf32>, vector<64x384xf32>, vector<8x384xf32> -> vector<8x384xf32>
    %293 = arith.addf %185, %292 : vector<8x384xf32>
    %c0_163 = arith.constant 0 : index
    %c0_164 = arith.constant 0 : index
    %294 = vector.load %arg6[%c0_163, %c0_164] : memref<128x384xf32, #tpu.memory_space<vmem>>, vector<128x384xf32>
    %cst_165 = arith.constant dense<0.000000e+00> : vector<8x384xf32>
    %295 = tpu.matmul %147, %294, %cst_165 {dimension_numbers = #tpu.dot_dimension_numbers<[1], [0], [0], [1], [0, 0, 1, 1], [], []>} : vector<8x128xf32>, vector<128x384xf32>, vector<8x384xf32> -> vector<8x384xf32>
    %c0_166 = arith.constant 0 : index
    %c0_167 = arith.constant 0 : index
    %296 = vector.load %arg7[%c0_166, %c0_167] : memref<1x384xf32, #tpu.memory_space<vmem>>, vector<1x384xf32>
    %297 = vector.broadcast %296 : vector<1x384xf32> to vector<8x384xf32>
    %298 = arith.addf %295, %297 : vector<8x384xf32>
    %299 = vector.extract_strided_slice %293 {offsets = [0, 0], sizes = [8, 128], strides = [1, 1]} : vector<8x384xf32> to vector<8x128xf32>
    %300 = vector.extract_strided_slice %298 {offsets = [0, 0], sizes = [8, 128], strides = [1, 1]} : vector<8x384xf32> to vector<8x128xf32>
    %301 = arith.addf %299, %300 : vector<8x128xf32>
    %302 = arith.negf %301 : vector<8x128xf32>
    %303 = math.exp %302 : vector<8x128xf32>
    %cst_168 = arith.constant 1.000000e+00 : f32
    %304 = vector.broadcast %cst_168 : f32 to vector<8x128xf32>
    %305 = arith.addf %304, %303 : vector<8x128xf32>
    %306 = arith.divf %304, %305 : vector<8x128xf32>
    %307 = vector.extract_strided_slice %293 {offsets = [0, 128], sizes = [8, 128], strides = [1, 1]} : vector<8x384xf32> to vector<8x128xf32>
    %308 = vector.extract_strided_slice %298 {offsets = [0, 128], sizes = [8, 128], strides = [1, 1]} : vector<8x384xf32> to vector<8x128xf32>
    %309 = arith.addf %307, %308 : vector<8x128xf32>
    %310 = arith.negf %309 : vector<8x128xf32>
    %311 = math.exp %310 : vector<8x128xf32>
    %cst_169 = arith.constant 1.000000e+00 : f32
    %312 = vector.broadcast %cst_169 : f32 to vector<8x128xf32>
    %313 = arith.addf %312, %311 : vector<8x128xf32>
    %314 = arith.divf %312, %313 : vector<8x128xf32>
    %315 = vector.extract_strided_slice %293 {offsets = [0, 256], sizes = [8, 128], strides = [1, 1]} : vector<8x384xf32> to vector<8x128xf32>
    %316 = vector.extract_strided_slice %298 {offsets = [0, 256], sizes = [8, 128], strides = [1, 1]} : vector<8x384xf32> to vector<8x128xf32>
    %317 = arith.mulf %306, %316 : vector<8x128xf32>
    %318 = arith.addf %315, %317 : vector<8x128xf32>
    %319 = math.tanh %318 : vector<8x128xf32>
    %cst_170 = arith.constant 1.000000e+00 : f32
    %320 = vector.broadcast %cst_170 : f32 to vector<8x128xf32>
    %321 = arith.subf %320, %314 : vector<8x128xf32>
    %322 = arith.mulf %321, %319 : vector<8x128xf32>
    %323 = arith.mulf %314, %147 : vector<8x128xf32>
    %324 = arith.addf %322, %323 : vector<8x128xf32>
    %325 = math.log %253 : vector<8x64xf32>
    %cst_171 = arith.constant 2.000000e+00 : f32
    %326 = vector.broadcast %cst_171 : f32 to vector<8x64xf32>
    %327 = arith.mulf %326, %325 : vector<8x64xf32>
    %328 = math.log %221 : vector<8x64xf32>
    %cst_172 = arith.constant 2.000000e+00 : f32
    %329 = vector.broadcast %cst_172 : f32 to vector<8x64xf32>
    %330 = arith.mulf %329, %328 : vector<8x64xf32>
    %331 = arith.subf %327, %330 : vector<8x64xf32>
    %332 = arith.mulf %221, %221 : vector<8x64xf32>
    %333 = arith.subf %210, %242 : vector<8x64xf32>
    %334 = arith.mulf %333, %333 : vector<8x64xf32>
    %335 = arith.addf %332, %334 : vector<8x64xf32>
    %336 = arith.mulf %253, %253 : vector<8x64xf32>
    %337 = arith.divf %335, %336 : vector<8x64xf32>
    %338 = arith.addf %331, %337 : vector<8x64xf32>
    %cst_173 = arith.constant 1.000000e+00 : f32
    %339 = vector.broadcast %cst_173 : f32 to vector<8x64xf32>
    %340 = arith.subf %338, %339 : vector<8x64xf32>
    %cst_174 = arith.constant 5.000000e-01 : f32
    %341 = vector.broadcast %cst_174 : f32 to vector<8x64xf32>
    %342 = arith.mulf %341, %340 : vector<8x64xf32>
    %343 = arith.addf %166, %342 : vector<8x64xf32>
    %344 = arith.subf %189, %279 : vector<8x8xf32>
    %345 = arith.mulf %344, %344 : vector<8x8xf32>
    %346 = arith.mulf %290, %290 : vector<8x8xf32>
    %347 = arith.divf %345, %346 : vector<8x8xf32>
    %348 = math.log %290 : vector<8x8xf32>
    %cst_175 = arith.constant 2.000000e+00 : f32
    %349 = vector.broadcast %cst_175 : f32 to vector<8x8xf32>
    %350 = arith.mulf %349, %348 : vector<8x8xf32>
    %351 = arith.addf %347, %350 : vector<8x8xf32>
    %cst_176 = arith.constant 1.83787704 : f32
    %352 = vector.broadcast %cst_176 : f32 to vector<8x8xf32>
    %353 = arith.addf %351, %352 : vector<8x8xf32>
    %cst_177 = arith.constant 5.000000e-01 : f32
    %354 = vector.broadcast %cst_177 : f32 to vector<8x8xf32>
    %355 = arith.mulf %354, %353 : vector<8x8xf32>
    %356 = arith.addf %179, %355 : vector<8x8xf32>
    %c2_178 = arith.constant 2 : index
    %c0_179 = arith.constant 0 : index
    %c0_180 = arith.constant 0 : index
    %357 = vector.load %arg0[%c2_178, %c0_179, %c0_180] : memref<7x8x768xf32, #tpu.memory_space<vmem>>, vector<1x8x768xf32>
    %358 = vector.shape_cast %357 : vector<1x8x768xf32> to vector<8x768xf32>
    %359 = vector.extract_strided_slice %358 {offsets = [0, 0], sizes = [8, 128], strides = [1, 1]} : vector<8x768xf32> to vector<8x128xf32>
    %360 = vector.extract_strided_slice %358 {offsets = [0, 128], sizes = [8, 128], strides = [1, 1]} : vector<8x768xf32> to vector<8x128xf32>
    %361 = vector.extract_strided_slice %358 {offsets = [0, 256], sizes = [8, 128], strides = [1, 1]} : vector<8x768xf32> to vector<8x128xf32>
    %362 = vector.extract_strided_slice %358 {offsets = [0, 384], sizes = [8, 384], strides = [1, 1]} : vector<8x768xf32> to vector<8x384xf32>
    %c2_181 = arith.constant 2 : index
    %c0_182 = arith.constant 0 : index
    %c0_183 = arith.constant 0 : index
    %363 = vector.load %arg1[%c2_181, %c0_182, %c0_183] : memref<7x8x64xf32, #tpu.memory_space<vmem>>, vector<1x8x64xf32>
    %364 = vector.shape_cast %363 : vector<1x8x64xf32> to vector<8x64xf32>
    %c2_184 = arith.constant 2 : index
    %c0_185 = arith.constant 0 : index
    %c0_186 = arith.constant 0 : index
    %365 = vector.load %arg2[%c2_184, %c0_185, %c0_186] : memref<7x8x8xf32, #tpu.memory_space<vmem>>, vector<1x8x8xf32>
    %366 = vector.shape_cast %365 : vector<1x8x8xf32> to vector<8x8xf32>
    %c0_187 = arith.constant 0 : index
    %c0_188 = arith.constant 0 : index
    %c0_189 = arith.constant 0 : index
    %367 = vector.load %arg3[%c0_187, %c0_188, %c0_189] : memref<9x128x128xf32, #tpu.memory_space<vmem>>, vector<1x128x128xf32>
    %368 = vector.shape_cast %367 : vector<1x128x128xf32> to vector<128x128xf32>
    %cst_190 = arith.constant dense<0.000000e+00> : vector<8x128xf32>
    %369 = tpu.matmul %324, %368, %cst_190 {dimension_numbers = #tpu.dot_dimension_numbers<[1], [0], [0], [1], [0, 0, 1, 1], [], []>} : vector<8x128xf32>, vector<128x128xf32>, vector<8x128xf32> -> vector<8x128xf32>
    %370 = arith.addf %359, %369 : vector<8x128xf32>
    %cst_191 = arith.constant 0.000000e+00 : f32
    %371 = vector.broadcast %cst_191 : f32 to vector<8x128xf32>
    %372 = arith.maximumf %370, %371 : vector<8x128xf32>
    %c1_192 = arith.constant 1 : index
    %c0_193 = arith.constant 0 : index
    %c0_194 = arith.constant 0 : index
    %373 = vector.load %arg3[%c1_192, %c0_193, %c0_194] : memref<9x128x128xf32, #tpu.memory_space<vmem>>, vector<1x128x128xf32>
    %374 = vector.shape_cast %373 : vector<1x128x128xf32> to vector<128x128xf32>
    %cst_195 = arith.constant dense<0.000000e+00> : vector<8x128xf32>
    %375 = tpu.matmul %372, %374, %cst_195 {dimension_numbers = #tpu.dot_dimension_numbers<[1], [0], [0], [1], [0, 0, 1, 1], [], []>} : vector<8x128xf32>, vector<128x128xf32>, vector<8x128xf32> -> vector<8x128xf32>
    %c0_196 = arith.constant 0 : index
    %c0_197 = arith.constant 0 : index
    %376 = vector.load %arg4[%c0_196, %c0_197] : memref<6x128xf32, #tpu.memory_space<vmem>>, vector<1x128xf32>
    %377 = vector.broadcast %376 : vector<1x128xf32> to vector<8x128xf32>
    %378 = arith.addf %375, %377 : vector<8x128xf32>
    %cst_198 = arith.constant 0.000000e+00 : f32
    %379 = vector.broadcast %cst_198 : f32 to vector<8x128xf32>
    %380 = arith.maximumf %378, %379 : vector<8x128xf32>
    %c2_199 = arith.constant 2 : index
    %c0_200 = arith.constant 0 : index
    %c0_201 = arith.constant 0 : index
    %381 = vector.load %arg3[%c2_199, %c0_200, %c0_201] : memref<9x128x128xf32, #tpu.memory_space<vmem>>, vector<1x128x128xf32>
    %382 = vector.shape_cast %381 : vector<1x128x128xf32> to vector<128x128xf32>
    %cst_202 = arith.constant dense<0.000000e+00> : vector<8x128xf32>
    %383 = tpu.matmul %380, %382, %cst_202 {dimension_numbers = #tpu.dot_dimension_numbers<[1], [0], [0], [1], [0, 0, 1, 1], [], []>} : vector<8x128xf32>, vector<128x128xf32>, vector<8x128xf32> -> vector<8x128xf32>
    %c1_203 = arith.constant 1 : index
    %c0_204 = arith.constant 0 : index
    %384 = vector.load %arg4[%c1_203, %c0_204] : memref<6x128xf32, #tpu.memory_space<vmem>>, vector<1x128xf32>
    %385 = vector.broadcast %384 : vector<1x128xf32> to vector<8x128xf32>
    %386 = arith.addf %383, %385 : vector<8x128xf32>
    %387 = vector.extract_strided_slice %386 {offsets = [0, 0], sizes = [8, 64], strides = [1, 1]} : vector<8x128xf32> to vector<8x64xf32>
    %388 = vector.extract_strided_slice %386 {offsets = [0, 64], sizes = [8, 64], strides = [1, 1]} : vector<8x128xf32> to vector<8x64xf32>
    %cst_205 = arith.constant 0.000000e+00 : f32
    %389 = vector.broadcast %cst_205 : f32 to vector<8x64xf32>
    %390 = arith.maximumf %388, %389 : vector<8x64xf32>
    %391 = math.absf %388 : vector<8x64xf32>
    %cst_206 = arith.constant 0.000000e+00 : f32
    %392 = vector.broadcast %cst_206 : f32 to vector<8x64xf32>
    %393 = arith.subf %392, %391 : vector<8x64xf32>
    %394 = math.exp %393 : vector<8x64xf32>
    %cst_207 = arith.constant 1.000000e+00 : f32
    %395 = vector.broadcast %cst_207 : f32 to vector<8x64xf32>
    %396 = arith.addf %395, %394 : vector<8x64xf32>
    %397 = math.log %396 : vector<8x64xf32>
    %398 = arith.addf %390, %397 : vector<8x64xf32>
    %c3_208 = arith.constant 3 : index
    %c0_209 = arith.constant 0 : index
    %c0_210 = arith.constant 0 : index
    %399 = vector.load %arg3[%c3_208, %c0_209, %c0_210] : memref<9x128x128xf32, #tpu.memory_space<vmem>>, vector<1x128x128xf32>
    %400 = vector.shape_cast %399 : vector<1x128x128xf32> to vector<128x128xf32>
    %cst_211 = arith.constant dense<0.000000e+00> : vector<8x128xf32>
    %401 = tpu.matmul %324, %400, %cst_211 {dimension_numbers = #tpu.dot_dimension_numbers<[1], [0], [0], [1], [0, 0, 1, 1], [], []>} : vector<8x128xf32>, vector<128x128xf32>, vector<8x128xf32> -> vector<8x128xf32>
    %402 = arith.addf %360, %401 : vector<8x128xf32>
    %cst_212 = arith.constant 0.000000e+00 : f32
    %403 = vector.broadcast %cst_212 : f32 to vector<8x128xf32>
    %404 = arith.maximumf %402, %403 : vector<8x128xf32>
    %c4_213 = arith.constant 4 : index
    %c0_214 = arith.constant 0 : index
    %c0_215 = arith.constant 0 : index
    %405 = vector.load %arg3[%c4_213, %c0_214, %c0_215] : memref<9x128x128xf32, #tpu.memory_space<vmem>>, vector<1x128x128xf32>
    %406 = vector.shape_cast %405 : vector<1x128x128xf32> to vector<128x128xf32>
    %cst_216 = arith.constant dense<0.000000e+00> : vector<8x128xf32>
    %407 = tpu.matmul %404, %406, %cst_216 {dimension_numbers = #tpu.dot_dimension_numbers<[1], [0], [0], [1], [0, 0, 1, 1], [], []>} : vector<8x128xf32>, vector<128x128xf32>, vector<8x128xf32> -> vector<8x128xf32>
    %c2_217 = arith.constant 2 : index
    %c0_218 = arith.constant 0 : index
    %408 = vector.load %arg4[%c2_217, %c0_218] : memref<6x128xf32, #tpu.memory_space<vmem>>, vector<1x128xf32>
    %409 = vector.broadcast %408 : vector<1x128xf32> to vector<8x128xf32>
    %410 = arith.addf %407, %409 : vector<8x128xf32>
    %cst_219 = arith.constant 0.000000e+00 : f32
    %411 = vector.broadcast %cst_219 : f32 to vector<8x128xf32>
    %412 = arith.maximumf %410, %411 : vector<8x128xf32>
    %c5_220 = arith.constant 5 : index
    %c0_221 = arith.constant 0 : index
    %c0_222 = arith.constant 0 : index
    %413 = vector.load %arg3[%c5_220, %c0_221, %c0_222] : memref<9x128x128xf32, #tpu.memory_space<vmem>>, vector<1x128x128xf32>
    %414 = vector.shape_cast %413 : vector<1x128x128xf32> to vector<128x128xf32>
    %cst_223 = arith.constant dense<0.000000e+00> : vector<8x128xf32>
    %415 = tpu.matmul %412, %414, %cst_223 {dimension_numbers = #tpu.dot_dimension_numbers<[1], [0], [0], [1], [0, 0, 1, 1], [], []>} : vector<8x128xf32>, vector<128x128xf32>, vector<8x128xf32> -> vector<8x128xf32>
    %c3_224 = arith.constant 3 : index
    %c0_225 = arith.constant 0 : index
    %416 = vector.load %arg4[%c3_224, %c0_225] : memref<6x128xf32, #tpu.memory_space<vmem>>, vector<1x128xf32>
    %417 = vector.broadcast %416 : vector<1x128xf32> to vector<8x128xf32>
    %418 = arith.addf %415, %417 : vector<8x128xf32>
    %419 = vector.extract_strided_slice %418 {offsets = [0, 0], sizes = [8, 64], strides = [1, 1]} : vector<8x128xf32> to vector<8x64xf32>
    %420 = vector.extract_strided_slice %418 {offsets = [0, 64], sizes = [8, 64], strides = [1, 1]} : vector<8x128xf32> to vector<8x64xf32>
    %cst_226 = arith.constant 0.000000e+00 : f32
    %421 = vector.broadcast %cst_226 : f32 to vector<8x64xf32>
    %422 = arith.maximumf %420, %421 : vector<8x64xf32>
    %423 = math.absf %420 : vector<8x64xf32>
    %cst_227 = arith.constant 0.000000e+00 : f32
    %424 = vector.broadcast %cst_227 : f32 to vector<8x64xf32>
    %425 = arith.subf %424, %423 : vector<8x64xf32>
    %426 = math.exp %425 : vector<8x64xf32>
    %cst_228 = arith.constant 1.000000e+00 : f32
    %427 = vector.broadcast %cst_228 : f32 to vector<8x64xf32>
    %428 = arith.addf %427, %426 : vector<8x64xf32>
    %429 = math.log %428 : vector<8x64xf32>
    %430 = arith.addf %422, %429 : vector<8x64xf32>
    %431 = arith.mulf %398, %364 : vector<8x64xf32>
    %432 = arith.addf %387, %431 : vector<8x64xf32>
    %c0_229 = arith.constant 0 : index
    %c0_230 = arith.constant 0 : index
    %433 = vector.load %arg5[%c0_229, %c0_230] : memref<64x512xf32, #tpu.memory_space<vmem>>, vector<64x128xf32>
    %cst_231 = arith.constant dense<0.000000e+00> : vector<8x128xf32>
    %434 = tpu.matmul %432, %433, %cst_231 {dimension_numbers = #tpu.dot_dimension_numbers<[1], [0], [0], [1], [0, 0, 1, 1], [], []>} : vector<8x64xf32>, vector<64x128xf32>, vector<8x128xf32> -> vector<8x128xf32>
    %435 = arith.addf %361, %434 : vector<8x128xf32>
    %c6_232 = arith.constant 6 : index
    %c0_233 = arith.constant 0 : index
    %c0_234 = arith.constant 0 : index
    %436 = vector.load %arg3[%c6_232, %c0_233, %c0_234] : memref<9x128x128xf32, #tpu.memory_space<vmem>>, vector<1x128x128xf32>
    %437 = vector.shape_cast %436 : vector<1x128x128xf32> to vector<128x128xf32>
    %cst_235 = arith.constant dense<0.000000e+00> : vector<8x128xf32>
    %438 = tpu.matmul %324, %437, %cst_235 {dimension_numbers = #tpu.dot_dimension_numbers<[1], [0], [0], [1], [0, 0, 1, 1], [], []>} : vector<8x128xf32>, vector<128x128xf32>, vector<8x128xf32> -> vector<8x128xf32>
    %439 = arith.addf %435, %438 : vector<8x128xf32>
    %cst_236 = arith.constant 0.000000e+00 : f32
    %440 = vector.broadcast %cst_236 : f32 to vector<8x128xf32>
    %441 = arith.maximumf %439, %440 : vector<8x128xf32>
    %c7_237 = arith.constant 7 : index
    %c0_238 = arith.constant 0 : index
    %c0_239 = arith.constant 0 : index
    %442 = vector.load %arg3[%c7_237, %c0_238, %c0_239] : memref<9x128x128xf32, #tpu.memory_space<vmem>>, vector<1x128x128xf32>
    %443 = vector.shape_cast %442 : vector<1x128x128xf32> to vector<128x128xf32>
    %cst_240 = arith.constant dense<0.000000e+00> : vector<8x128xf32>
    %444 = tpu.matmul %441, %443, %cst_240 {dimension_numbers = #tpu.dot_dimension_numbers<[1], [0], [0], [1], [0, 0, 1, 1], [], []>} : vector<8x128xf32>, vector<128x128xf32>, vector<8x128xf32> -> vector<8x128xf32>
    %c4_241 = arith.constant 4 : index
    %c0_242 = arith.constant 0 : index
    %445 = vector.load %arg4[%c4_241, %c0_242] : memref<6x128xf32, #tpu.memory_space<vmem>>, vector<1x128xf32>
    %446 = vector.broadcast %445 : vector<1x128xf32> to vector<8x128xf32>
    %447 = arith.addf %444, %446 : vector<8x128xf32>
    %cst_243 = arith.constant 0.000000e+00 : f32
    %448 = vector.broadcast %cst_243 : f32 to vector<8x128xf32>
    %449 = arith.maximumf %447, %448 : vector<8x128xf32>
    %c8_244 = arith.constant 8 : index
    %c0_245 = arith.constant 0 : index
    %c0_246 = arith.constant 0 : index
    %450 = vector.load %arg3[%c8_244, %c0_245, %c0_246] : memref<9x128x128xf32, #tpu.memory_space<vmem>>, vector<1x128x128xf32>
    %451 = vector.shape_cast %450 : vector<1x128x128xf32> to vector<128x128xf32>
    %cst_247 = arith.constant dense<0.000000e+00> : vector<8x128xf32>
    %452 = tpu.matmul %449, %451, %cst_247 {dimension_numbers = #tpu.dot_dimension_numbers<[1], [0], [0], [1], [0, 0, 1, 1], [], []>} : vector<8x128xf32>, vector<128x128xf32>, vector<8x128xf32> -> vector<8x128xf32>
    %c5_248 = arith.constant 5 : index
    %c0_249 = arith.constant 0 : index
    %453 = vector.load %arg4[%c5_248, %c0_249] : memref<6x128xf32, #tpu.memory_space<vmem>>, vector<1x128xf32>
    %454 = vector.broadcast %453 : vector<1x128xf32> to vector<8x128xf32>
    %455 = arith.addf %452, %454 : vector<8x128xf32>
    %456 = vector.extract_strided_slice %455 {offsets = [0, 0], sizes = [8, 8], strides = [1, 1]} : vector<8x128xf32> to vector<8x8xf32>
    %457 = vector.extract_strided_slice %455 {offsets = [0, 8], sizes = [8, 8], strides = [1, 1]} : vector<8x128xf32> to vector<8x8xf32>
    %cst_250 = arith.constant 0.000000e+00 : f32
    %458 = vector.broadcast %cst_250 : f32 to vector<8x8xf32>
    %459 = arith.maximumf %457, %458 : vector<8x8xf32>
    %460 = math.absf %457 : vector<8x8xf32>
    %cst_251 = arith.constant 0.000000e+00 : f32
    %461 = vector.broadcast %cst_251 : f32 to vector<8x8xf32>
    %462 = arith.subf %461, %460 : vector<8x8xf32>
    %463 = math.exp %462 : vector<8x8xf32>
    %cst_252 = arith.constant 1.000000e+00 : f32
    %464 = vector.broadcast %cst_252 : f32 to vector<8x8xf32>
    %465 = arith.addf %464, %463 : vector<8x8xf32>
    %466 = math.log %465 : vector<8x8xf32>
    %467 = arith.addf %459, %466 : vector<8x8xf32>
    %c0_253 = arith.constant 0 : index
    %c128_254 = arith.constant 128 : index
    %468 = vector.load %arg5[%c0_253, %c128_254] : memref<64x512xf32, #tpu.memory_space<vmem>>, vector<64x384xf32>
    %cst_255 = arith.constant dense<0.000000e+00> : vector<8x384xf32>
    %469 = tpu.matmul %432, %468, %cst_255 {dimension_numbers = #tpu.dot_dimension_numbers<[1], [0], [0], [1], [0, 0, 1, 1], [], []>} : vector<8x64xf32>, vector<64x384xf32>, vector<8x384xf32> -> vector<8x384xf32>
    %470 = arith.addf %362, %469 : vector<8x384xf32>
    %c0_256 = arith.constant 0 : index
    %c0_257 = arith.constant 0 : index
    %471 = vector.load %arg6[%c0_256, %c0_257] : memref<128x384xf32, #tpu.memory_space<vmem>>, vector<128x384xf32>
    %cst_258 = arith.constant dense<0.000000e+00> : vector<8x384xf32>
    %472 = tpu.matmul %324, %471, %cst_258 {dimension_numbers = #tpu.dot_dimension_numbers<[1], [0], [0], [1], [0, 0, 1, 1], [], []>} : vector<8x128xf32>, vector<128x384xf32>, vector<8x384xf32> -> vector<8x384xf32>
    %c0_259 = arith.constant 0 : index
    %c0_260 = arith.constant 0 : index
    %473 = vector.load %arg7[%c0_259, %c0_260] : memref<1x384xf32, #tpu.memory_space<vmem>>, vector<1x384xf32>
    %474 = vector.broadcast %473 : vector<1x384xf32> to vector<8x384xf32>
    %475 = arith.addf %472, %474 : vector<8x384xf32>
    %476 = vector.extract_strided_slice %470 {offsets = [0, 0], sizes = [8, 128], strides = [1, 1]} : vector<8x384xf32> to vector<8x128xf32>
    %477 = vector.extract_strided_slice %475 {offsets = [0, 0], sizes = [8, 128], strides = [1, 1]} : vector<8x384xf32> to vector<8x128xf32>
    %478 = arith.addf %476, %477 : vector<8x128xf32>
    %479 = arith.negf %478 : vector<8x128xf32>
    %480 = math.exp %479 : vector<8x128xf32>
    %cst_261 = arith.constant 1.000000e+00 : f32
    %481 = vector.broadcast %cst_261 : f32 to vector<8x128xf32>
    %482 = arith.addf %481, %480 : vector<8x128xf32>
    %483 = arith.divf %481, %482 : vector<8x128xf32>
    %484 = vector.extract_strided_slice %470 {offsets = [0, 128], sizes = [8, 128], strides = [1, 1]} : vector<8x384xf32> to vector<8x128xf32>
    %485 = vector.extract_strided_slice %475 {offsets = [0, 128], sizes = [8, 128], strides = [1, 1]} : vector<8x384xf32> to vector<8x128xf32>
    %486 = arith.addf %484, %485 : vector<8x128xf32>
    %487 = arith.negf %486 : vector<8x128xf32>
    %488 = math.exp %487 : vector<8x128xf32>
    %cst_262 = arith.constant 1.000000e+00 : f32
    %489 = vector.broadcast %cst_262 : f32 to vector<8x128xf32>
    %490 = arith.addf %489, %488 : vector<8x128xf32>
    %491 = arith.divf %489, %490 : vector<8x128xf32>
    %492 = vector.extract_strided_slice %470 {offsets = [0, 256], sizes = [8, 128], strides = [1, 1]} : vector<8x384xf32> to vector<8x128xf32>
    %493 = vector.extract_strided_slice %475 {offsets = [0, 256], sizes = [8, 128], strides = [1, 1]} : vector<8x384xf32> to vector<8x128xf32>
    %494 = arith.mulf %483, %493 : vector<8x128xf32>
    %495 = arith.addf %492, %494 : vector<8x128xf32>
    %496 = math.tanh %495 : vector<8x128xf32>
    %cst_263 = arith.constant 1.000000e+00 : f32
    %497 = vector.broadcast %cst_263 : f32 to vector<8x128xf32>
    %498 = arith.subf %497, %491 : vector<8x128xf32>
    %499 = arith.mulf %498, %496 : vector<8x128xf32>
    %500 = arith.mulf %491, %324 : vector<8x128xf32>
    %501 = arith.addf %499, %500 : vector<8x128xf32>
    %502 = math.log %430 : vector<8x64xf32>
    %cst_264 = arith.constant 2.000000e+00 : f32
    %503 = vector.broadcast %cst_264 : f32 to vector<8x64xf32>
    %504 = arith.mulf %503, %502 : vector<8x64xf32>
    %505 = math.log %398 : vector<8x64xf32>
    %cst_265 = arith.constant 2.000000e+00 : f32
    %506 = vector.broadcast %cst_265 : f32 to vector<8x64xf32>
    %507 = arith.mulf %506, %505 : vector<8x64xf32>
    %508 = arith.subf %504, %507 : vector<8x64xf32>
    %509 = arith.mulf %398, %398 : vector<8x64xf32>
    %510 = arith.subf %387, %419 : vector<8x64xf32>
    %511 = arith.mulf %510, %510 : vector<8x64xf32>
    %512 = arith.addf %509, %511 : vector<8x64xf32>
    %513 = arith.mulf %430, %430 : vector<8x64xf32>
    %514 = arith.divf %512, %513 : vector<8x64xf32>
    %515 = arith.addf %508, %514 : vector<8x64xf32>
    %cst_266 = arith.constant 1.000000e+00 : f32
    %516 = vector.broadcast %cst_266 : f32 to vector<8x64xf32>
    %517 = arith.subf %515, %516 : vector<8x64xf32>
    %cst_267 = arith.constant 5.000000e-01 : f32
    %518 = vector.broadcast %cst_267 : f32 to vector<8x64xf32>
    %519 = arith.mulf %518, %517 : vector<8x64xf32>
    %520 = arith.addf %343, %519 : vector<8x64xf32>
    %521 = arith.subf %366, %456 : vector<8x8xf32>
    %522 = arith.mulf %521, %521 : vector<8x8xf32>
    %523 = arith.mulf %467, %467 : vector<8x8xf32>
    %524 = arith.divf %522, %523 : vector<8x8xf32>
    %525 = math.log %467 : vector<8x8xf32>
    %cst_268 = arith.constant 2.000000e+00 : f32
    %526 = vector.broadcast %cst_268 : f32 to vector<8x8xf32>
    %527 = arith.mulf %526, %525 : vector<8x8xf32>
    %528 = arith.addf %524, %527 : vector<8x8xf32>
    %cst_269 = arith.constant 1.83787704 : f32
    %529 = vector.broadcast %cst_269 : f32 to vector<8x8xf32>
    %530 = arith.addf %528, %529 : vector<8x8xf32>
    %cst_270 = arith.constant 5.000000e-01 : f32
    %531 = vector.broadcast %cst_270 : f32 to vector<8x8xf32>
    %532 = arith.mulf %531, %530 : vector<8x8xf32>
    %533 = arith.addf %356, %532 : vector<8x8xf32>
    %c3_271 = arith.constant 3 : index
    %c0_272 = arith.constant 0 : index
    %c0_273 = arith.constant 0 : index
    %534 = vector.load %arg0[%c3_271, %c0_272, %c0_273] : memref<7x8x768xf32, #tpu.memory_space<vmem>>, vector<1x8x768xf32>
    %535 = vector.shape_cast %534 : vector<1x8x768xf32> to vector<8x768xf32>
    %536 = vector.extract_strided_slice %535 {offsets = [0, 0], sizes = [8, 128], strides = [1, 1]} : vector<8x768xf32> to vector<8x128xf32>
    %537 = vector.extract_strided_slice %535 {offsets = [0, 128], sizes = [8, 128], strides = [1, 1]} : vector<8x768xf32> to vector<8x128xf32>
    %538 = vector.extract_strided_slice %535 {offsets = [0, 256], sizes = [8, 128], strides = [1, 1]} : vector<8x768xf32> to vector<8x128xf32>
    %539 = vector.extract_strided_slice %535 {offsets = [0, 384], sizes = [8, 384], strides = [1, 1]} : vector<8x768xf32> to vector<8x384xf32>
    %c3_274 = arith.constant 3 : index
    %c0_275 = arith.constant 0 : index
    %c0_276 = arith.constant 0 : index
    %540 = vector.load %arg1[%c3_274, %c0_275, %c0_276] : memref<7x8x64xf32, #tpu.memory_space<vmem>>, vector<1x8x64xf32>
    %541 = vector.shape_cast %540 : vector<1x8x64xf32> to vector<8x64xf32>
    %c3_277 = arith.constant 3 : index
    %c0_278 = arith.constant 0 : index
    %c0_279 = arith.constant 0 : index
    %542 = vector.load %arg2[%c3_277, %c0_278, %c0_279] : memref<7x8x8xf32, #tpu.memory_space<vmem>>, vector<1x8x8xf32>
    %543 = vector.shape_cast %542 : vector<1x8x8xf32> to vector<8x8xf32>
    %c0_280 = arith.constant 0 : index
    %c0_281 = arith.constant 0 : index
    %c0_282 = arith.constant 0 : index
    %544 = vector.load %arg3[%c0_280, %c0_281, %c0_282] : memref<9x128x128xf32, #tpu.memory_space<vmem>>, vector<1x128x128xf32>
    %545 = vector.shape_cast %544 : vector<1x128x128xf32> to vector<128x128xf32>
    %cst_283 = arith.constant dense<0.000000e+00> : vector<8x128xf32>
    %546 = tpu.matmul %501, %545, %cst_283 {dimension_numbers = #tpu.dot_dimension_numbers<[1], [0], [0], [1], [0, 0, 1, 1], [], []>} : vector<8x128xf32>, vector<128x128xf32>, vector<8x128xf32> -> vector<8x128xf32>
    %547 = arith.addf %536, %546 : vector<8x128xf32>
    %cst_284 = arith.constant 0.000000e+00 : f32
    %548 = vector.broadcast %cst_284 : f32 to vector<8x128xf32>
    %549 = arith.maximumf %547, %548 : vector<8x128xf32>
    %c1_285 = arith.constant 1 : index
    %c0_286 = arith.constant 0 : index
    %c0_287 = arith.constant 0 : index
    %550 = vector.load %arg3[%c1_285, %c0_286, %c0_287] : memref<9x128x128xf32, #tpu.memory_space<vmem>>, vector<1x128x128xf32>
    %551 = vector.shape_cast %550 : vector<1x128x128xf32> to vector<128x128xf32>
    %cst_288 = arith.constant dense<0.000000e+00> : vector<8x128xf32>
    %552 = tpu.matmul %549, %551, %cst_288 {dimension_numbers = #tpu.dot_dimension_numbers<[1], [0], [0], [1], [0, 0, 1, 1], [], []>} : vector<8x128xf32>, vector<128x128xf32>, vector<8x128xf32> -> vector<8x128xf32>
    %c0_289 = arith.constant 0 : index
    %c0_290 = arith.constant 0 : index
    %553 = vector.load %arg4[%c0_289, %c0_290] : memref<6x128xf32, #tpu.memory_space<vmem>>, vector<1x128xf32>
    %554 = vector.broadcast %553 : vector<1x128xf32> to vector<8x128xf32>
    %555 = arith.addf %552, %554 : vector<8x128xf32>
    %cst_291 = arith.constant 0.000000e+00 : f32
    %556 = vector.broadcast %cst_291 : f32 to vector<8x128xf32>
    %557 = arith.maximumf %555, %556 : vector<8x128xf32>
    %c2_292 = arith.constant 2 : index
    %c0_293 = arith.constant 0 : index
    %c0_294 = arith.constant 0 : index
    %558 = vector.load %arg3[%c2_292, %c0_293, %c0_294] : memref<9x128x128xf32, #tpu.memory_space<vmem>>, vector<1x128x128xf32>
    %559 = vector.shape_cast %558 : vector<1x128x128xf32> to vector<128x128xf32>
    %cst_295 = arith.constant dense<0.000000e+00> : vector<8x128xf32>
    %560 = tpu.matmul %557, %559, %cst_295 {dimension_numbers = #tpu.dot_dimension_numbers<[1], [0], [0], [1], [0, 0, 1, 1], [], []>} : vector<8x128xf32>, vector<128x128xf32>, vector<8x128xf32> -> vector<8x128xf32>
    %c1_296 = arith.constant 1 : index
    %c0_297 = arith.constant 0 : index
    %561 = vector.load %arg4[%c1_296, %c0_297] : memref<6x128xf32, #tpu.memory_space<vmem>>, vector<1x128xf32>
    %562 = vector.broadcast %561 : vector<1x128xf32> to vector<8x128xf32>
    %563 = arith.addf %560, %562 : vector<8x128xf32>
    %564 = vector.extract_strided_slice %563 {offsets = [0, 0], sizes = [8, 64], strides = [1, 1]} : vector<8x128xf32> to vector<8x64xf32>
    %565 = vector.extract_strided_slice %563 {offsets = [0, 64], sizes = [8, 64], strides = [1, 1]} : vector<8x128xf32> to vector<8x64xf32>
    %cst_298 = arith.constant 0.000000e+00 : f32
    %566 = vector.broadcast %cst_298 : f32 to vector<8x64xf32>
    %567 = arith.maximumf %565, %566 : vector<8x64xf32>
    %568 = math.absf %565 : vector<8x64xf32>
    %cst_299 = arith.constant 0.000000e+00 : f32
    %569 = vector.broadcast %cst_299 : f32 to vector<8x64xf32>
    %570 = arith.subf %569, %568 : vector<8x64xf32>
    %571 = math.exp %570 : vector<8x64xf32>
    %cst_300 = arith.constant 1.000000e+00 : f32
    %572 = vector.broadcast %cst_300 : f32 to vector<8x64xf32>
    %573 = arith.addf %572, %571 : vector<8x64xf32>
    %574 = math.log %573 : vector<8x64xf32>
    %575 = arith.addf %567, %574 : vector<8x64xf32>
    %c3_301 = arith.constant 3 : index
    %c0_302 = arith.constant 0 : index
    %c0_303 = arith.constant 0 : index
    %576 = vector.load %arg3[%c3_301, %c0_302, %c0_303] : memref<9x128x128xf32, #tpu.memory_space<vmem>>, vector<1x128x128xf32>
    %577 = vector.shape_cast %576 : vector<1x128x128xf32> to vector<128x128xf32>
    %cst_304 = arith.constant dense<0.000000e+00> : vector<8x128xf32>
    %578 = tpu.matmul %501, %577, %cst_304 {dimension_numbers = #tpu.dot_dimension_numbers<[1], [0], [0], [1], [0, 0, 1, 1], [], []>} : vector<8x128xf32>, vector<128x128xf32>, vector<8x128xf32> -> vector<8x128xf32>
    %579 = arith.addf %537, %578 : vector<8x128xf32>
    %cst_305 = arith.constant 0.000000e+00 : f32
    %580 = vector.broadcast %cst_305 : f32 to vector<8x128xf32>
    %581 = arith.maximumf %579, %580 : vector<8x128xf32>
    %c4_306 = arith.constant 4 : index
    %c0_307 = arith.constant 0 : index
    %c0_308 = arith.constant 0 : index
    %582 = vector.load %arg3[%c4_306, %c0_307, %c0_308] : memref<9x128x128xf32, #tpu.memory_space<vmem>>, vector<1x128x128xf32>
    %583 = vector.shape_cast %582 : vector<1x128x128xf32> to vector<128x128xf32>
    %cst_309 = arith.constant dense<0.000000e+00> : vector<8x128xf32>
    %584 = tpu.matmul %581, %583, %cst_309 {dimension_numbers = #tpu.dot_dimension_numbers<[1], [0], [0], [1], [0, 0, 1, 1], [], []>} : vector<8x128xf32>, vector<128x128xf32>, vector<8x128xf32> -> vector<8x128xf32>
    %c2_310 = arith.constant 2 : index
    %c0_311 = arith.constant 0 : index
    %585 = vector.load %arg4[%c2_310, %c0_311] : memref<6x128xf32, #tpu.memory_space<vmem>>, vector<1x128xf32>
    %586 = vector.broadcast %585 : vector<1x128xf32> to vector<8x128xf32>
    %587 = arith.addf %584, %586 : vector<8x128xf32>
    %cst_312 = arith.constant 0.000000e+00 : f32
    %588 = vector.broadcast %cst_312 : f32 to vector<8x128xf32>
    %589 = arith.maximumf %587, %588 : vector<8x128xf32>
    %c5_313 = arith.constant 5 : index
    %c0_314 = arith.constant 0 : index
    %c0_315 = arith.constant 0 : index
    %590 = vector.load %arg3[%c5_313, %c0_314, %c0_315] : memref<9x128x128xf32, #tpu.memory_space<vmem>>, vector<1x128x128xf32>
    %591 = vector.shape_cast %590 : vector<1x128x128xf32> to vector<128x128xf32>
    %cst_316 = arith.constant dense<0.000000e+00> : vector<8x128xf32>
    %592 = tpu.matmul %589, %591, %cst_316 {dimension_numbers = #tpu.dot_dimension_numbers<[1], [0], [0], [1], [0, 0, 1, 1], [], []>} : vector<8x128xf32>, vector<128x128xf32>, vector<8x128xf32> -> vector<8x128xf32>
    %c3_317 = arith.constant 3 : index
    %c0_318 = arith.constant 0 : index
    %593 = vector.load %arg4[%c3_317, %c0_318] : memref<6x128xf32, #tpu.memory_space<vmem>>, vector<1x128xf32>
    %594 = vector.broadcast %593 : vector<1x128xf32> to vector<8x128xf32>
    %595 = arith.addf %592, %594 : vector<8x128xf32>
    %596 = vector.extract_strided_slice %595 {offsets = [0, 0], sizes = [8, 64], strides = [1, 1]} : vector<8x128xf32> to vector<8x64xf32>
    %597 = vector.extract_strided_slice %595 {offsets = [0, 64], sizes = [8, 64], strides = [1, 1]} : vector<8x128xf32> to vector<8x64xf32>
    %cst_319 = arith.constant 0.000000e+00 : f32
    %598 = vector.broadcast %cst_319 : f32 to vector<8x64xf32>
    %599 = arith.maximumf %597, %598 : vector<8x64xf32>
    %600 = math.absf %597 : vector<8x64xf32>
    %cst_320 = arith.constant 0.000000e+00 : f32
    %601 = vector.broadcast %cst_320 : f32 to vector<8x64xf32>
    %602 = arith.subf %601, %600 : vector<8x64xf32>
    %603 = math.exp %602 : vector<8x64xf32>
    %cst_321 = arith.constant 1.000000e+00 : f32
    %604 = vector.broadcast %cst_321 : f32 to vector<8x64xf32>
    %605 = arith.addf %604, %603 : vector<8x64xf32>
    %606 = math.log %605 : vector<8x64xf32>
    %607 = arith.addf %599, %606 : vector<8x64xf32>
    %608 = arith.mulf %575, %541 : vector<8x64xf32>
    %609 = arith.addf %564, %608 : vector<8x64xf32>
    %c0_322 = arith.constant 0 : index
    %c0_323 = arith.constant 0 : index
    %610 = vector.load %arg5[%c0_322, %c0_323] : memref<64x512xf32, #tpu.memory_space<vmem>>, vector<64x128xf32>
    %cst_324 = arith.constant dense<0.000000e+00> : vector<8x128xf32>
    %611 = tpu.matmul %609, %610, %cst_324 {dimension_numbers = #tpu.dot_dimension_numbers<[1], [0], [0], [1], [0, 0, 1, 1], [], []>} : vector<8x64xf32>, vector<64x128xf32>, vector<8x128xf32> -> vector<8x128xf32>
    %612 = arith.addf %538, %611 : vector<8x128xf32>
    %c6_325 = arith.constant 6 : index
    %c0_326 = arith.constant 0 : index
    %c0_327 = arith.constant 0 : index
    %613 = vector.load %arg3[%c6_325, %c0_326, %c0_327] : memref<9x128x128xf32, #tpu.memory_space<vmem>>, vector<1x128x128xf32>
    %614 = vector.shape_cast %613 : vector<1x128x128xf32> to vector<128x128xf32>
    %cst_328 = arith.constant dense<0.000000e+00> : vector<8x128xf32>
    %615 = tpu.matmul %501, %614, %cst_328 {dimension_numbers = #tpu.dot_dimension_numbers<[1], [0], [0], [1], [0, 0, 1, 1], [], []>} : vector<8x128xf32>, vector<128x128xf32>, vector<8x128xf32> -> vector<8x128xf32>
    %616 = arith.addf %612, %615 : vector<8x128xf32>
    %cst_329 = arith.constant 0.000000e+00 : f32
    %617 = vector.broadcast %cst_329 : f32 to vector<8x128xf32>
    %618 = arith.maximumf %616, %617 : vector<8x128xf32>
    %c7_330 = arith.constant 7 : index
    %c0_331 = arith.constant 0 : index
    %c0_332 = arith.constant 0 : index
    %619 = vector.load %arg3[%c7_330, %c0_331, %c0_332] : memref<9x128x128xf32, #tpu.memory_space<vmem>>, vector<1x128x128xf32>
    %620 = vector.shape_cast %619 : vector<1x128x128xf32> to vector<128x128xf32>
    %cst_333 = arith.constant dense<0.000000e+00> : vector<8x128xf32>
    %621 = tpu.matmul %618, %620, %cst_333 {dimension_numbers = #tpu.dot_dimension_numbers<[1], [0], [0], [1], [0, 0, 1, 1], [], []>} : vector<8x128xf32>, vector<128x128xf32>, vector<8x128xf32> -> vector<8x128xf32>
    %c4_334 = arith.constant 4 : index
    %c0_335 = arith.constant 0 : index
    %622 = vector.load %arg4[%c4_334, %c0_335] : memref<6x128xf32, #tpu.memory_space<vmem>>, vector<1x128xf32>
    %623 = vector.broadcast %622 : vector<1x128xf32> to vector<8x128xf32>
    %624 = arith.addf %621, %623 : vector<8x128xf32>
    %cst_336 = arith.constant 0.000000e+00 : f32
    %625 = vector.broadcast %cst_336 : f32 to vector<8x128xf32>
    %626 = arith.maximumf %624, %625 : vector<8x128xf32>
    %c8_337 = arith.constant 8 : index
    %c0_338 = arith.constant 0 : index
    %c0_339 = arith.constant 0 : index
    %627 = vector.load %arg3[%c8_337, %c0_338, %c0_339] : memref<9x128x128xf32, #tpu.memory_space<vmem>>, vector<1x128x128xf32>
    %628 = vector.shape_cast %627 : vector<1x128x128xf32> to vector<128x128xf32>
    %cst_340 = arith.constant dense<0.000000e+00> : vector<8x128xf32>
    %629 = tpu.matmul %626, %628, %cst_340 {dimension_numbers = #tpu.dot_dimension_numbers<[1], [0], [0], [1], [0, 0, 1, 1], [], []>} : vector<8x128xf32>, vector<128x128xf32>, vector<8x128xf32> -> vector<8x128xf32>
    %c5_341 = arith.constant 5 : index
    %c0_342 = arith.constant 0 : index
    %630 = vector.load %arg4[%c5_341, %c0_342] : memref<6x128xf32, #tpu.memory_space<vmem>>, vector<1x128xf32>
    %631 = vector.broadcast %630 : vector<1x128xf32> to vector<8x128xf32>
    %632 = arith.addf %629, %631 : vector<8x128xf32>
    %633 = vector.extract_strided_slice %632 {offsets = [0, 0], sizes = [8, 8], strides = [1, 1]} : vector<8x128xf32> to vector<8x8xf32>
    %634 = vector.extract_strided_slice %632 {offsets = [0, 8], sizes = [8, 8], strides = [1, 1]} : vector<8x128xf32> to vector<8x8xf32>
    %cst_343 = arith.constant 0.000000e+00 : f32
    %635 = vector.broadcast %cst_343 : f32 to vector<8x8xf32>
    %636 = arith.maximumf %634, %635 : vector<8x8xf32>
    %637 = math.absf %634 : vector<8x8xf32>
    %cst_344 = arith.constant 0.000000e+00 : f32
    %638 = vector.broadcast %cst_344 : f32 to vector<8x8xf32>
    %639 = arith.subf %638, %637 : vector<8x8xf32>
    %640 = math.exp %639 : vector<8x8xf32>
    %cst_345 = arith.constant 1.000000e+00 : f32
    %641 = vector.broadcast %cst_345 : f32 to vector<8x8xf32>
    %642 = arith.addf %641, %640 : vector<8x8xf32>
    %643 = math.log %642 : vector<8x8xf32>
    %644 = arith.addf %636, %643 : vector<8x8xf32>
    %c0_346 = arith.constant 0 : index
    %c128_347 = arith.constant 128 : index
    %645 = vector.load %arg5[%c0_346, %c128_347] : memref<64x512xf32, #tpu.memory_space<vmem>>, vector<64x384xf32>
    %cst_348 = arith.constant dense<0.000000e+00> : vector<8x384xf32>
    %646 = tpu.matmul %609, %645, %cst_348 {dimension_numbers = #tpu.dot_dimension_numbers<[1], [0], [0], [1], [0, 0, 1, 1], [], []>} : vector<8x64xf32>, vector<64x384xf32>, vector<8x384xf32> -> vector<8x384xf32>
    %647 = arith.addf %539, %646 : vector<8x384xf32>
    %c0_349 = arith.constant 0 : index
    %c0_350 = arith.constant 0 : index
    %648 = vector.load %arg6[%c0_349, %c0_350] : memref<128x384xf32, #tpu.memory_space<vmem>>, vector<128x384xf32>
    %cst_351 = arith.constant dense<0.000000e+00> : vector<8x384xf32>
    %649 = tpu.matmul %501, %648, %cst_351 {dimension_numbers = #tpu.dot_dimension_numbers<[1], [0], [0], [1], [0, 0, 1, 1], [], []>} : vector<8x128xf32>, vector<128x384xf32>, vector<8x384xf32> -> vector<8x384xf32>
    %c0_352 = arith.constant 0 : index
    %c0_353 = arith.constant 0 : index
    %650 = vector.load %arg7[%c0_352, %c0_353] : memref<1x384xf32, #tpu.memory_space<vmem>>, vector<1x384xf32>
    %651 = vector.broadcast %650 : vector<1x384xf32> to vector<8x384xf32>
    %652 = arith.addf %649, %651 : vector<8x384xf32>
    %653 = vector.extract_strided_slice %647 {offsets = [0, 0], sizes = [8, 128], strides = [1, 1]} : vector<8x384xf32> to vector<8x128xf32>
    %654 = vector.extract_strided_slice %652 {offsets = [0, 0], sizes = [8, 128], strides = [1, 1]} : vector<8x384xf32> to vector<8x128xf32>
    %655 = arith.addf %653, %654 : vector<8x128xf32>
    %656 = arith.negf %655 : vector<8x128xf32>
    %657 = math.exp %656 : vector<8x128xf32>
    %cst_354 = arith.constant 1.000000e+00 : f32
    %658 = vector.broadcast %cst_354 : f32 to vector<8x128xf32>
    %659 = arith.addf %658, %657 : vector<8x128xf32>
    %660 = arith.divf %658, %659 : vector<8x128xf32>
    %661 = vector.extract_strided_slice %647 {offsets = [0, 128], sizes = [8, 128], strides = [1, 1]} : vector<8x384xf32> to vector<8x128xf32>
    %662 = vector.extract_strided_slice %652 {offsets = [0, 128], sizes = [8, 128], strides = [1, 1]} : vector<8x384xf32> to vector<8x128xf32>
    %663 = arith.addf %661, %662 : vector<8x128xf32>
    %664 = arith.negf %663 : vector<8x128xf32>
    %665 = math.exp %664 : vector<8x128xf32>
    %cst_355 = arith.constant 1.000000e+00 : f32
    %666 = vector.broadcast %cst_355 : f32 to vector<8x128xf32>
    %667 = arith.addf %666, %665 : vector<8x128xf32>
    %668 = arith.divf %666, %667 : vector<8x128xf32>
    %669 = vector.extract_strided_slice %647 {offsets = [0, 256], sizes = [8, 128], strides = [1, 1]} : vector<8x384xf32> to vector<8x128xf32>
    %670 = vector.extract_strided_slice %652 {offsets = [0, 256], sizes = [8, 128], strides = [1, 1]} : vector<8x384xf32> to vector<8x128xf32>
    %671 = arith.mulf %660, %670 : vector<8x128xf32>
    %672 = arith.addf %669, %671 : vector<8x128xf32>
    %673 = math.tanh %672 : vector<8x128xf32>
    %cst_356 = arith.constant 1.000000e+00 : f32
    %674 = vector.broadcast %cst_356 : f32 to vector<8x128xf32>
    %675 = arith.subf %674, %668 : vector<8x128xf32>
    %676 = arith.mulf %675, %673 : vector<8x128xf32>
    %677 = arith.mulf %668, %501 : vector<8x128xf32>
    %678 = arith.addf %676, %677 : vector<8x128xf32>
    %679 = math.log %607 : vector<8x64xf32>
    %cst_357 = arith.constant 2.000000e+00 : f32
    %680 = vector.broadcast %cst_357 : f32 to vector<8x64xf32>
    %681 = arith.mulf %680, %679 : vector<8x64xf32>
    %682 = math.log %575 : vector<8x64xf32>
    %cst_358 = arith.constant 2.000000e+00 : f32
    %683 = vector.broadcast %cst_358 : f32 to vector<8x64xf32>
    %684 = arith.mulf %683, %682 : vector<8x64xf32>
    %685 = arith.subf %681, %684 : vector<8x64xf32>
    %686 = arith.mulf %575, %575 : vector<8x64xf32>
    %687 = arith.subf %564, %596 : vector<8x64xf32>
    %688 = arith.mulf %687, %687 : vector<8x64xf32>
    %689 = arith.addf %686, %688 : vector<8x64xf32>
    %690 = arith.mulf %607, %607 : vector<8x64xf32>
    %691 = arith.divf %689, %690 : vector<8x64xf32>
    %692 = arith.addf %685, %691 : vector<8x64xf32>
    %cst_359 = arith.constant 1.000000e+00 : f32
    %693 = vector.broadcast %cst_359 : f32 to vector<8x64xf32>
    %694 = arith.subf %692, %693 : vector<8x64xf32>
    %cst_360 = arith.constant 5.000000e-01 : f32
    %695 = vector.broadcast %cst_360 : f32 to vector<8x64xf32>
    %696 = arith.mulf %695, %694 : vector<8x64xf32>
    %697 = arith.addf %520, %696 : vector<8x64xf32>
    %698 = arith.subf %543, %633 : vector<8x8xf32>
    %699 = arith.mulf %698, %698 : vector<8x8xf32>
    %700 = arith.mulf %644, %644 : vector<8x8xf32>
    %701 = arith.divf %699, %700 : vector<8x8xf32>
    %702 = math.log %644 : vector<8x8xf32>
    %cst_361 = arith.constant 2.000000e+00 : f32
    %703 = vector.broadcast %cst_361 : f32 to vector<8x8xf32>
    %704 = arith.mulf %703, %702 : vector<8x8xf32>
    %705 = arith.addf %701, %704 : vector<8x8xf32>
    %cst_362 = arith.constant 1.83787704 : f32
    %706 = vector.broadcast %cst_362 : f32 to vector<8x8xf32>
    %707 = arith.addf %705, %706 : vector<8x8xf32>
    %cst_363 = arith.constant 5.000000e-01 : f32
    %708 = vector.broadcast %cst_363 : f32 to vector<8x8xf32>
    %709 = arith.mulf %708, %707 : vector<8x8xf32>
    %710 = arith.addf %533, %709 : vector<8x8xf32>
    %c4_364 = arith.constant 4 : index
    %c0_365 = arith.constant 0 : index
    %c0_366 = arith.constant 0 : index
    %711 = vector.load %arg0[%c4_364, %c0_365, %c0_366] : memref<7x8x768xf32, #tpu.memory_space<vmem>>, vector<1x8x768xf32>
    %712 = vector.shape_cast %711 : vector<1x8x768xf32> to vector<8x768xf32>
    %713 = vector.extract_strided_slice %712 {offsets = [0, 0], sizes = [8, 128], strides = [1, 1]} : vector<8x768xf32> to vector<8x128xf32>
    %714 = vector.extract_strided_slice %712 {offsets = [0, 128], sizes = [8, 128], strides = [1, 1]} : vector<8x768xf32> to vector<8x128xf32>
    %715 = vector.extract_strided_slice %712 {offsets = [0, 256], sizes = [8, 128], strides = [1, 1]} : vector<8x768xf32> to vector<8x128xf32>
    %716 = vector.extract_strided_slice %712 {offsets = [0, 384], sizes = [8, 384], strides = [1, 1]} : vector<8x768xf32> to vector<8x384xf32>
    %c4_367 = arith.constant 4 : index
    %c0_368 = arith.constant 0 : index
    %c0_369 = arith.constant 0 : index
    %717 = vector.load %arg1[%c4_367, %c0_368, %c0_369] : memref<7x8x64xf32, #tpu.memory_space<vmem>>, vector<1x8x64xf32>
    %718 = vector.shape_cast %717 : vector<1x8x64xf32> to vector<8x64xf32>
    %c4_370 = arith.constant 4 : index
    %c0_371 = arith.constant 0 : index
    %c0_372 = arith.constant 0 : index
    %719 = vector.load %arg2[%c4_370, %c0_371, %c0_372] : memref<7x8x8xf32, #tpu.memory_space<vmem>>, vector<1x8x8xf32>
    %720 = vector.shape_cast %719 : vector<1x8x8xf32> to vector<8x8xf32>
    %c0_373 = arith.constant 0 : index
    %c0_374 = arith.constant 0 : index
    %c0_375 = arith.constant 0 : index
    %721 = vector.load %arg3[%c0_373, %c0_374, %c0_375] : memref<9x128x128xf32, #tpu.memory_space<vmem>>, vector<1x128x128xf32>
    %722 = vector.shape_cast %721 : vector<1x128x128xf32> to vector<128x128xf32>
    %cst_376 = arith.constant dense<0.000000e+00> : vector<8x128xf32>
    %723 = tpu.matmul %678, %722, %cst_376 {dimension_numbers = #tpu.dot_dimension_numbers<[1], [0], [0], [1], [0, 0, 1, 1], [], []>} : vector<8x128xf32>, vector<128x128xf32>, vector<8x128xf32> -> vector<8x128xf32>
    %724 = arith.addf %713, %723 : vector<8x128xf32>
    %cst_377 = arith.constant 0.000000e+00 : f32
    %725 = vector.broadcast %cst_377 : f32 to vector<8x128xf32>
    %726 = arith.maximumf %724, %725 : vector<8x128xf32>
    %c1_378 = arith.constant 1 : index
    %c0_379 = arith.constant 0 : index
    %c0_380 = arith.constant 0 : index
    %727 = vector.load %arg3[%c1_378, %c0_379, %c0_380] : memref<9x128x128xf32, #tpu.memory_space<vmem>>, vector<1x128x128xf32>
    %728 = vector.shape_cast %727 : vector<1x128x128xf32> to vector<128x128xf32>
    %cst_381 = arith.constant dense<0.000000e+00> : vector<8x128xf32>
    %729 = tpu.matmul %726, %728, %cst_381 {dimension_numbers = #tpu.dot_dimension_numbers<[1], [0], [0], [1], [0, 0, 1, 1], [], []>} : vector<8x128xf32>, vector<128x128xf32>, vector<8x128xf32> -> vector<8x128xf32>
    %c0_382 = arith.constant 0 : index
    %c0_383 = arith.constant 0 : index
    %730 = vector.load %arg4[%c0_382, %c0_383] : memref<6x128xf32, #tpu.memory_space<vmem>>, vector<1x128xf32>
    %731 = vector.broadcast %730 : vector<1x128xf32> to vector<8x128xf32>
    %732 = arith.addf %729, %731 : vector<8x128xf32>
    %cst_384 = arith.constant 0.000000e+00 : f32
    %733 = vector.broadcast %cst_384 : f32 to vector<8x128xf32>
    %734 = arith.maximumf %732, %733 : vector<8x128xf32>
    %c2_385 = arith.constant 2 : index
    %c0_386 = arith.constant 0 : index
    %c0_387 = arith.constant 0 : index
    %735 = vector.load %arg3[%c2_385, %c0_386, %c0_387] : memref<9x128x128xf32, #tpu.memory_space<vmem>>, vector<1x128x128xf32>
    %736 = vector.shape_cast %735 : vector<1x128x128xf32> to vector<128x128xf32>
    %cst_388 = arith.constant dense<0.000000e+00> : vector<8x128xf32>
    %737 = tpu.matmul %734, %736, %cst_388 {dimension_numbers = #tpu.dot_dimension_numbers<[1], [0], [0], [1], [0, 0, 1, 1], [], []>} : vector<8x128xf32>, vector<128x128xf32>, vector<8x128xf32> -> vector<8x128xf32>
    %c1_389 = arith.constant 1 : index
    %c0_390 = arith.constant 0 : index
    %738 = vector.load %arg4[%c1_389, %c0_390] : memref<6x128xf32, #tpu.memory_space<vmem>>, vector<1x128xf32>
    %739 = vector.broadcast %738 : vector<1x128xf32> to vector<8x128xf32>
    %740 = arith.addf %737, %739 : vector<8x128xf32>
    %741 = vector.extract_strided_slice %740 {offsets = [0, 0], sizes = [8, 64], strides = [1, 1]} : vector<8x128xf32> to vector<8x64xf32>
    %742 = vector.extract_strided_slice %740 {offsets = [0, 64], sizes = [8, 64], strides = [1, 1]} : vector<8x128xf32> to vector<8x64xf32>
    %cst_391 = arith.constant 0.000000e+00 : f32
    %743 = vector.broadcast %cst_391 : f32 to vector<8x64xf32>
    %744 = arith.maximumf %742, %743 : vector<8x64xf32>
    %745 = math.absf %742 : vector<8x64xf32>
    %cst_392 = arith.constant 0.000000e+00 : f32
    %746 = vector.broadcast %cst_392 : f32 to vector<8x64xf32>
    %747 = arith.subf %746, %745 : vector<8x64xf32>
    %748 = math.exp %747 : vector<8x64xf32>
    %cst_393 = arith.constant 1.000000e+00 : f32
    %749 = vector.broadcast %cst_393 : f32 to vector<8x64xf32>
    %750 = arith.addf %749, %748 : vector<8x64xf32>
    %751 = math.log %750 : vector<8x64xf32>
    %752 = arith.addf %744, %751 : vector<8x64xf32>
    %c3_394 = arith.constant 3 : index
    %c0_395 = arith.constant 0 : index
    %c0_396 = arith.constant 0 : index
    %753 = vector.load %arg3[%c3_394, %c0_395, %c0_396] : memref<9x128x128xf32, #tpu.memory_space<vmem>>, vector<1x128x128xf32>
    %754 = vector.shape_cast %753 : vector<1x128x128xf32> to vector<128x128xf32>
    %cst_397 = arith.constant dense<0.000000e+00> : vector<8x128xf32>
    %755 = tpu.matmul %678, %754, %cst_397 {dimension_numbers = #tpu.dot_dimension_numbers<[1], [0], [0], [1], [0, 0, 1, 1], [], []>} : vector<8x128xf32>, vector<128x128xf32>, vector<8x128xf32> -> vector<8x128xf32>
    %756 = arith.addf %714, %755 : vector<8x128xf32>
    %cst_398 = arith.constant 0.000000e+00 : f32
    %757 = vector.broadcast %cst_398 : f32 to vector<8x128xf32>
    %758 = arith.maximumf %756, %757 : vector<8x128xf32>
    %c4_399 = arith.constant 4 : index
    %c0_400 = arith.constant 0 : index
    %c0_401 = arith.constant 0 : index
    %759 = vector.load %arg3[%c4_399, %c0_400, %c0_401] : memref<9x128x128xf32, #tpu.memory_space<vmem>>, vector<1x128x128xf32>
    %760 = vector.shape_cast %759 : vector<1x128x128xf32> to vector<128x128xf32>
    %cst_402 = arith.constant dense<0.000000e+00> : vector<8x128xf32>
    %761 = tpu.matmul %758, %760, %cst_402 {dimension_numbers = #tpu.dot_dimension_numbers<[1], [0], [0], [1], [0, 0, 1, 1], [], []>} : vector<8x128xf32>, vector<128x128xf32>, vector<8x128xf32> -> vector<8x128xf32>
    %c2_403 = arith.constant 2 : index
    %c0_404 = arith.constant 0 : index
    %762 = vector.load %arg4[%c2_403, %c0_404] : memref<6x128xf32, #tpu.memory_space<vmem>>, vector<1x128xf32>
    %763 = vector.broadcast %762 : vector<1x128xf32> to vector<8x128xf32>
    %764 = arith.addf %761, %763 : vector<8x128xf32>
    %cst_405 = arith.constant 0.000000e+00 : f32
    %765 = vector.broadcast %cst_405 : f32 to vector<8x128xf32>
    %766 = arith.maximumf %764, %765 : vector<8x128xf32>
    %c5_406 = arith.constant 5 : index
    %c0_407 = arith.constant 0 : index
    %c0_408 = arith.constant 0 : index
    %767 = vector.load %arg3[%c5_406, %c0_407, %c0_408] : memref<9x128x128xf32, #tpu.memory_space<vmem>>, vector<1x128x128xf32>
    %768 = vector.shape_cast %767 : vector<1x128x128xf32> to vector<128x128xf32>
    %cst_409 = arith.constant dense<0.000000e+00> : vector<8x128xf32>
    %769 = tpu.matmul %766, %768, %cst_409 {dimension_numbers = #tpu.dot_dimension_numbers<[1], [0], [0], [1], [0, 0, 1, 1], [], []>} : vector<8x128xf32>, vector<128x128xf32>, vector<8x128xf32> -> vector<8x128xf32>
    %c3_410 = arith.constant 3 : index
    %c0_411 = arith.constant 0 : index
    %770 = vector.load %arg4[%c3_410, %c0_411] : memref<6x128xf32, #tpu.memory_space<vmem>>, vector<1x128xf32>
    %771 = vector.broadcast %770 : vector<1x128xf32> to vector<8x128xf32>
    %772 = arith.addf %769, %771 : vector<8x128xf32>
    %773 = vector.extract_strided_slice %772 {offsets = [0, 0], sizes = [8, 64], strides = [1, 1]} : vector<8x128xf32> to vector<8x64xf32>
    %774 = vector.extract_strided_slice %772 {offsets = [0, 64], sizes = [8, 64], strides = [1, 1]} : vector<8x128xf32> to vector<8x64xf32>
    %cst_412 = arith.constant 0.000000e+00 : f32
    %775 = vector.broadcast %cst_412 : f32 to vector<8x64xf32>
    %776 = arith.maximumf %774, %775 : vector<8x64xf32>
    %777 = math.absf %774 : vector<8x64xf32>
    %cst_413 = arith.constant 0.000000e+00 : f32
    %778 = vector.broadcast %cst_413 : f32 to vector<8x64xf32>
    %779 = arith.subf %778, %777 : vector<8x64xf32>
    %780 = math.exp %779 : vector<8x64xf32>
    %cst_414 = arith.constant 1.000000e+00 : f32
    %781 = vector.broadcast %cst_414 : f32 to vector<8x64xf32>
    %782 = arith.addf %781, %780 : vector<8x64xf32>
    %783 = math.log %782 : vector<8x64xf32>
    %784 = arith.addf %776, %783 : vector<8x64xf32>
    %785 = arith.mulf %752, %718 : vector<8x64xf32>
    %786 = arith.addf %741, %785 : vector<8x64xf32>
    %c0_415 = arith.constant 0 : index
    %c0_416 = arith.constant 0 : index
    %787 = vector.load %arg5[%c0_415, %c0_416] : memref<64x512xf32, #tpu.memory_space<vmem>>, vector<64x128xf32>
    %cst_417 = arith.constant dense<0.000000e+00> : vector<8x128xf32>
    %788 = tpu.matmul %786, %787, %cst_417 {dimension_numbers = #tpu.dot_dimension_numbers<[1], [0], [0], [1], [0, 0, 1, 1], [], []>} : vector<8x64xf32>, vector<64x128xf32>, vector<8x128xf32> -> vector<8x128xf32>
    %789 = arith.addf %715, %788 : vector<8x128xf32>
    %c6_418 = arith.constant 6 : index
    %c0_419 = arith.constant 0 : index
    %c0_420 = arith.constant 0 : index
    %790 = vector.load %arg3[%c6_418, %c0_419, %c0_420] : memref<9x128x128xf32, #tpu.memory_space<vmem>>, vector<1x128x128xf32>
    %791 = vector.shape_cast %790 : vector<1x128x128xf32> to vector<128x128xf32>
    %cst_421 = arith.constant dense<0.000000e+00> : vector<8x128xf32>
    %792 = tpu.matmul %678, %791, %cst_421 {dimension_numbers = #tpu.dot_dimension_numbers<[1], [0], [0], [1], [0, 0, 1, 1], [], []>} : vector<8x128xf32>, vector<128x128xf32>, vector<8x128xf32> -> vector<8x128xf32>
    %793 = arith.addf %789, %792 : vector<8x128xf32>
    %cst_422 = arith.constant 0.000000e+00 : f32
    %794 = vector.broadcast %cst_422 : f32 to vector<8x128xf32>
    %795 = arith.maximumf %793, %794 : vector<8x128xf32>
    %c7_423 = arith.constant 7 : index
    %c0_424 = arith.constant 0 : index
    %c0_425 = arith.constant 0 : index
    %796 = vector.load %arg3[%c7_423, %c0_424, %c0_425] : memref<9x128x128xf32, #tpu.memory_space<vmem>>, vector<1x128x128xf32>
    %797 = vector.shape_cast %796 : vector<1x128x128xf32> to vector<128x128xf32>
    %cst_426 = arith.constant dense<0.000000e+00> : vector<8x128xf32>
    %798 = tpu.matmul %795, %797, %cst_426 {dimension_numbers = #tpu.dot_dimension_numbers<[1], [0], [0], [1], [0, 0, 1, 1], [], []>} : vector<8x128xf32>, vector<128x128xf32>, vector<8x128xf32> -> vector<8x128xf32>
    %c4_427 = arith.constant 4 : index
    %c0_428 = arith.constant 0 : index
    %799 = vector.load %arg4[%c4_427, %c0_428] : memref<6x128xf32, #tpu.memory_space<vmem>>, vector<1x128xf32>
    %800 = vector.broadcast %799 : vector<1x128xf32> to vector<8x128xf32>
    %801 = arith.addf %798, %800 : vector<8x128xf32>
    %cst_429 = arith.constant 0.000000e+00 : f32
    %802 = vector.broadcast %cst_429 : f32 to vector<8x128xf32>
    %803 = arith.maximumf %801, %802 : vector<8x128xf32>
    %c8_430 = arith.constant 8 : index
    %c0_431 = arith.constant 0 : index
    %c0_432 = arith.constant 0 : index
    %804 = vector.load %arg3[%c8_430, %c0_431, %c0_432] : memref<9x128x128xf32, #tpu.memory_space<vmem>>, vector<1x128x128xf32>
    %805 = vector.shape_cast %804 : vector<1x128x128xf32> to vector<128x128xf32>
    %cst_433 = arith.constant dense<0.000000e+00> : vector<8x128xf32>
    %806 = tpu.matmul %803, %805, %cst_433 {dimension_numbers = #tpu.dot_dimension_numbers<[1], [0], [0], [1], [0, 0, 1, 1], [], []>} : vector<8x128xf32>, vector<128x128xf32>, vector<8x128xf32> -> vector<8x128xf32>
    %c5_434 = arith.constant 5 : index
    %c0_435 = arith.constant 0 : index
    %807 = vector.load %arg4[%c5_434, %c0_435] : memref<6x128xf32, #tpu.memory_space<vmem>>, vector<1x128xf32>
    %808 = vector.broadcast %807 : vector<1x128xf32> to vector<8x128xf32>
    %809 = arith.addf %806, %808 : vector<8x128xf32>
    %810 = vector.extract_strided_slice %809 {offsets = [0, 0], sizes = [8, 8], strides = [1, 1]} : vector<8x128xf32> to vector<8x8xf32>
    %811 = vector.extract_strided_slice %809 {offsets = [0, 8], sizes = [8, 8], strides = [1, 1]} : vector<8x128xf32> to vector<8x8xf32>
    %cst_436 = arith.constant 0.000000e+00 : f32
    %812 = vector.broadcast %cst_436 : f32 to vector<8x8xf32>
    %813 = arith.maximumf %811, %812 : vector<8x8xf32>
    %814 = math.absf %811 : vector<8x8xf32>
    %cst_437 = arith.constant 0.000000e+00 : f32
    %815 = vector.broadcast %cst_437 : f32 to vector<8x8xf32>
    %816 = arith.subf %815, %814 : vector<8x8xf32>
    %817 = math.exp %816 : vector<8x8xf32>
    %cst_438 = arith.constant 1.000000e+00 : f32
    %818 = vector.broadcast %cst_438 : f32 to vector<8x8xf32>
    %819 = arith.addf %818, %817 : vector<8x8xf32>
    %820 = math.log %819 : vector<8x8xf32>
    %821 = arith.addf %813, %820 : vector<8x8xf32>
    %c0_439 = arith.constant 0 : index
    %c128_440 = arith.constant 128 : index
    %822 = vector.load %arg5[%c0_439, %c128_440] : memref<64x512xf32, #tpu.memory_space<vmem>>, vector<64x384xf32>
    %cst_441 = arith.constant dense<0.000000e+00> : vector<8x384xf32>
    %823 = tpu.matmul %786, %822, %cst_441 {dimension_numbers = #tpu.dot_dimension_numbers<[1], [0], [0], [1], [0, 0, 1, 1], [], []>} : vector<8x64xf32>, vector<64x384xf32>, vector<8x384xf32> -> vector<8x384xf32>
    %824 = arith.addf %716, %823 : vector<8x384xf32>
    %c0_442 = arith.constant 0 : index
    %c0_443 = arith.constant 0 : index
    %825 = vector.load %arg6[%c0_442, %c0_443] : memref<128x384xf32, #tpu.memory_space<vmem>>, vector<128x384xf32>
    %cst_444 = arith.constant dense<0.000000e+00> : vector<8x384xf32>
    %826 = tpu.matmul %678, %825, %cst_444 {dimension_numbers = #tpu.dot_dimension_numbers<[1], [0], [0], [1], [0, 0, 1, 1], [], []>} : vector<8x128xf32>, vector<128x384xf32>, vector<8x384xf32> -> vector<8x384xf32>
    %c0_445 = arith.constant 0 : index
    %c0_446 = arith.constant 0 : index
    %827 = vector.load %arg7[%c0_445, %c0_446] : memref<1x384xf32, #tpu.memory_space<vmem>>, vector<1x384xf32>
    %828 = vector.broadcast %827 : vector<1x384xf32> to vector<8x384xf32>
    %829 = arith.addf %826, %828 : vector<8x384xf32>
    %830 = vector.extract_strided_slice %824 {offsets = [0, 0], sizes = [8, 128], strides = [1, 1]} : vector<8x384xf32> to vector<8x128xf32>
    %831 = vector.extract_strided_slice %829 {offsets = [0, 0], sizes = [8, 128], strides = [1, 1]} : vector<8x384xf32> to vector<8x128xf32>
    %832 = arith.addf %830, %831 : vector<8x128xf32>
    %833 = arith.negf %832 : vector<8x128xf32>
    %834 = math.exp %833 : vector<8x128xf32>
    %cst_447 = arith.constant 1.000000e+00 : f32
    %835 = vector.broadcast %cst_447 : f32 to vector<8x128xf32>
    %836 = arith.addf %835, %834 : vector<8x128xf32>
    %837 = arith.divf %835, %836 : vector<8x128xf32>
    %838 = vector.extract_strided_slice %824 {offsets = [0, 128], sizes = [8, 128], strides = [1, 1]} : vector<8x384xf32> to vector<8x128xf32>
    %839 = vector.extract_strided_slice %829 {offsets = [0, 128], sizes = [8, 128], strides = [1, 1]} : vector<8x384xf32> to vector<8x128xf32>
    %840 = arith.addf %838, %839 : vector<8x128xf32>
    %841 = arith.negf %840 : vector<8x128xf32>
    %842 = math.exp %841 : vector<8x128xf32>
    %cst_448 = arith.constant 1.000000e+00 : f32
    %843 = vector.broadcast %cst_448 : f32 to vector<8x128xf32>
    %844 = arith.addf %843, %842 : vector<8x128xf32>
    %845 = arith.divf %843, %844 : vector<8x128xf32>
    %846 = vector.extract_strided_slice %824 {offsets = [0, 256], sizes = [8, 128], strides = [1, 1]} : vector<8x384xf32> to vector<8x128xf32>
    %847 = vector.extract_strided_slice %829 {offsets = [0, 256], sizes = [8, 128], strides = [1, 1]} : vector<8x384xf32> to vector<8x128xf32>
    %848 = arith.mulf %837, %847 : vector<8x128xf32>
    %849 = arith.addf %846, %848 : vector<8x128xf32>
    %850 = math.tanh %849 : vector<8x128xf32>
    %cst_449 = arith.constant 1.000000e+00 : f32
    %851 = vector.broadcast %cst_449 : f32 to vector<8x128xf32>
    %852 = arith.subf %851, %845 : vector<8x128xf32>
    %853 = arith.mulf %852, %850 : vector<8x128xf32>
    %854 = arith.mulf %845, %678 : vector<8x128xf32>
    %855 = arith.addf %853, %854 : vector<8x128xf32>
    %856 = math.log %784 : vector<8x64xf32>
    %cst_450 = arith.constant 2.000000e+00 : f32
    %857 = vector.broadcast %cst_450 : f32 to vector<8x64xf32>
    %858 = arith.mulf %857, %856 : vector<8x64xf32>
    %859 = math.log %752 : vector<8x64xf32>
    %cst_451 = arith.constant 2.000000e+00 : f32
    %860 = vector.broadcast %cst_451 : f32 to vector<8x64xf32>
    %861 = arith.mulf %860, %859 : vector<8x64xf32>
    %862 = arith.subf %858, %861 : vector<8x64xf32>
    %863 = arith.mulf %752, %752 : vector<8x64xf32>
    %864 = arith.subf %741, %773 : vector<8x64xf32>
    %865 = arith.mulf %864, %864 : vector<8x64xf32>
    %866 = arith.addf %863, %865 : vector<8x64xf32>
    %867 = arith.mulf %784, %784 : vector<8x64xf32>
    %868 = arith.divf %866, %867 : vector<8x64xf32>
    %869 = arith.addf %862, %868 : vector<8x64xf32>
    %cst_452 = arith.constant 1.000000e+00 : f32
    %870 = vector.broadcast %cst_452 : f32 to vector<8x64xf32>
    %871 = arith.subf %869, %870 : vector<8x64xf32>
    %cst_453 = arith.constant 5.000000e-01 : f32
    %872 = vector.broadcast %cst_453 : f32 to vector<8x64xf32>
    %873 = arith.mulf %872, %871 : vector<8x64xf32>
    %874 = arith.addf %697, %873 : vector<8x64xf32>
    %875 = arith.subf %720, %810 : vector<8x8xf32>
    %876 = arith.mulf %875, %875 : vector<8x8xf32>
    %877 = arith.mulf %821, %821 : vector<8x8xf32>
    %878 = arith.divf %876, %877 : vector<8x8xf32>
    %879 = math.log %821 : vector<8x8xf32>
    %cst_454 = arith.constant 2.000000e+00 : f32
    %880 = vector.broadcast %cst_454 : f32 to vector<8x8xf32>
    %881 = arith.mulf %880, %879 : vector<8x8xf32>
    %882 = arith.addf %878, %881 : vector<8x8xf32>
    %cst_455 = arith.constant 1.83787704 : f32
    %883 = vector.broadcast %cst_455 : f32 to vector<8x8xf32>
    %884 = arith.addf %882, %883 : vector<8x8xf32>
    %cst_456 = arith.constant 5.000000e-01 : f32
    %885 = vector.broadcast %cst_456 : f32 to vector<8x8xf32>
    %886 = arith.mulf %885, %884 : vector<8x8xf32>
    %887 = arith.addf %710, %886 : vector<8x8xf32>
    %c5_457 = arith.constant 5 : index
    %c0_458 = arith.constant 0 : index
    %c0_459 = arith.constant 0 : index
    %888 = vector.load %arg0[%c5_457, %c0_458, %c0_459] : memref<7x8x768xf32, #tpu.memory_space<vmem>>, vector<1x8x768xf32>
    %889 = vector.shape_cast %888 : vector<1x8x768xf32> to vector<8x768xf32>
    %890 = vector.extract_strided_slice %889 {offsets = [0, 0], sizes = [8, 128], strides = [1, 1]} : vector<8x768xf32> to vector<8x128xf32>
    %891 = vector.extract_strided_slice %889 {offsets = [0, 128], sizes = [8, 128], strides = [1, 1]} : vector<8x768xf32> to vector<8x128xf32>
    %892 = vector.extract_strided_slice %889 {offsets = [0, 256], sizes = [8, 128], strides = [1, 1]} : vector<8x768xf32> to vector<8x128xf32>
    %893 = vector.extract_strided_slice %889 {offsets = [0, 384], sizes = [8, 384], strides = [1, 1]} : vector<8x768xf32> to vector<8x384xf32>
    %c5_460 = arith.constant 5 : index
    %c0_461 = arith.constant 0 : index
    %c0_462 = arith.constant 0 : index
    %894 = vector.load %arg1[%c5_460, %c0_461, %c0_462] : memref<7x8x64xf32, #tpu.memory_space<vmem>>, vector<1x8x64xf32>
    %895 = vector.shape_cast %894 : vector<1x8x64xf32> to vector<8x64xf32>
    %c5_463 = arith.constant 5 : index
    %c0_464 = arith.constant 0 : index
    %c0_465 = arith.constant 0 : index
    %896 = vector.load %arg2[%c5_463, %c0_464, %c0_465] : memref<7x8x8xf32, #tpu.memory_space<vmem>>, vector<1x8x8xf32>
    %897 = vector.shape_cast %896 : vector<1x8x8xf32> to vector<8x8xf32>
    %c0_466 = arith.constant 0 : index
    %c0_467 = arith.constant 0 : index
    %c0_468 = arith.constant 0 : index
    %898 = vector.load %arg3[%c0_466, %c0_467, %c0_468] : memref<9x128x128xf32, #tpu.memory_space<vmem>>, vector<1x128x128xf32>
    %899 = vector.shape_cast %898 : vector<1x128x128xf32> to vector<128x128xf32>
    %cst_469 = arith.constant dense<0.000000e+00> : vector<8x128xf32>
    %900 = tpu.matmul %855, %899, %cst_469 {dimension_numbers = #tpu.dot_dimension_numbers<[1], [0], [0], [1], [0, 0, 1, 1], [], []>} : vector<8x128xf32>, vector<128x128xf32>, vector<8x128xf32> -> vector<8x128xf32>
    %901 = arith.addf %890, %900 : vector<8x128xf32>
    %cst_470 = arith.constant 0.000000e+00 : f32
    %902 = vector.broadcast %cst_470 : f32 to vector<8x128xf32>
    %903 = arith.maximumf %901, %902 : vector<8x128xf32>
    %c1_471 = arith.constant 1 : index
    %c0_472 = arith.constant 0 : index
    %c0_473 = arith.constant 0 : index
    %904 = vector.load %arg3[%c1_471, %c0_472, %c0_473] : memref<9x128x128xf32, #tpu.memory_space<vmem>>, vector<1x128x128xf32>
    %905 = vector.shape_cast %904 : vector<1x128x128xf32> to vector<128x128xf32>
    %cst_474 = arith.constant dense<0.000000e+00> : vector<8x128xf32>
    %906 = tpu.matmul %903, %905, %cst_474 {dimension_numbers = #tpu.dot_dimension_numbers<[1], [0], [0], [1], [0, 0, 1, 1], [], []>} : vector<8x128xf32>, vector<128x128xf32>, vector<8x128xf32> -> vector<8x128xf32>
    %c0_475 = arith.constant 0 : index
    %c0_476 = arith.constant 0 : index
    %907 = vector.load %arg4[%c0_475, %c0_476] : memref<6x128xf32, #tpu.memory_space<vmem>>, vector<1x128xf32>
    %908 = vector.broadcast %907 : vector<1x128xf32> to vector<8x128xf32>
    %909 = arith.addf %906, %908 : vector<8x128xf32>
    %cst_477 = arith.constant 0.000000e+00 : f32
    %910 = vector.broadcast %cst_477 : f32 to vector<8x128xf32>
    %911 = arith.maximumf %909, %910 : vector<8x128xf32>
    %c2_478 = arith.constant 2 : index
    %c0_479 = arith.constant 0 : index
    %c0_480 = arith.constant 0 : index
    %912 = vector.load %arg3[%c2_478, %c0_479, %c0_480] : memref<9x128x128xf32, #tpu.memory_space<vmem>>, vector<1x128x128xf32>
    %913 = vector.shape_cast %912 : vector<1x128x128xf32> to vector<128x128xf32>
    %cst_481 = arith.constant dense<0.000000e+00> : vector<8x128xf32>
    %914 = tpu.matmul %911, %913, %cst_481 {dimension_numbers = #tpu.dot_dimension_numbers<[1], [0], [0], [1], [0, 0, 1, 1], [], []>} : vector<8x128xf32>, vector<128x128xf32>, vector<8x128xf32> -> vector<8x128xf32>
    %c1_482 = arith.constant 1 : index
    %c0_483 = arith.constant 0 : index
    %915 = vector.load %arg4[%c1_482, %c0_483] : memref<6x128xf32, #tpu.memory_space<vmem>>, vector<1x128xf32>
    %916 = vector.broadcast %915 : vector<1x128xf32> to vector<8x128xf32>
    %917 = arith.addf %914, %916 : vector<8x128xf32>
    %918 = vector.extract_strided_slice %917 {offsets = [0, 0], sizes = [8, 64], strides = [1, 1]} : vector<8x128xf32> to vector<8x64xf32>
    %919 = vector.extract_strided_slice %917 {offsets = [0, 64], sizes = [8, 64], strides = [1, 1]} : vector<8x128xf32> to vector<8x64xf32>
    %cst_484 = arith.constant 0.000000e+00 : f32
    %920 = vector.broadcast %cst_484 : f32 to vector<8x64xf32>
    %921 = arith.maximumf %919, %920 : vector<8x64xf32>
    %922 = math.absf %919 : vector<8x64xf32>
    %cst_485 = arith.constant 0.000000e+00 : f32
    %923 = vector.broadcast %cst_485 : f32 to vector<8x64xf32>
    %924 = arith.subf %923, %922 : vector<8x64xf32>
    %925 = math.exp %924 : vector<8x64xf32>
    %cst_486 = arith.constant 1.000000e+00 : f32
    %926 = vector.broadcast %cst_486 : f32 to vector<8x64xf32>
    %927 = arith.addf %926, %925 : vector<8x64xf32>
    %928 = math.log %927 : vector<8x64xf32>
    %929 = arith.addf %921, %928 : vector<8x64xf32>
    %c3_487 = arith.constant 3 : index
    %c0_488 = arith.constant 0 : index
    %c0_489 = arith.constant 0 : index
    %930 = vector.load %arg3[%c3_487, %c0_488, %c0_489] : memref<9x128x128xf32, #tpu.memory_space<vmem>>, vector<1x128x128xf32>
    %931 = vector.shape_cast %930 : vector<1x128x128xf32> to vector<128x128xf32>
    %cst_490 = arith.constant dense<0.000000e+00> : vector<8x128xf32>
    %932 = tpu.matmul %855, %931, %cst_490 {dimension_numbers = #tpu.dot_dimension_numbers<[1], [0], [0], [1], [0, 0, 1, 1], [], []>} : vector<8x128xf32>, vector<128x128xf32>, vector<8x128xf32> -> vector<8x128xf32>
    %933 = arith.addf %891, %932 : vector<8x128xf32>
    %cst_491 = arith.constant 0.000000e+00 : f32
    %934 = vector.broadcast %cst_491 : f32 to vector<8x128xf32>
    %935 = arith.maximumf %933, %934 : vector<8x128xf32>
    %c4_492 = arith.constant 4 : index
    %c0_493 = arith.constant 0 : index
    %c0_494 = arith.constant 0 : index
    %936 = vector.load %arg3[%c4_492, %c0_493, %c0_494] : memref<9x128x128xf32, #tpu.memory_space<vmem>>, vector<1x128x128xf32>
    %937 = vector.shape_cast %936 : vector<1x128x128xf32> to vector<128x128xf32>
    %cst_495 = arith.constant dense<0.000000e+00> : vector<8x128xf32>
    %938 = tpu.matmul %935, %937, %cst_495 {dimension_numbers = #tpu.dot_dimension_numbers<[1], [0], [0], [1], [0, 0, 1, 1], [], []>} : vector<8x128xf32>, vector<128x128xf32>, vector<8x128xf32> -> vector<8x128xf32>
    %c2_496 = arith.constant 2 : index
    %c0_497 = arith.constant 0 : index
    %939 = vector.load %arg4[%c2_496, %c0_497] : memref<6x128xf32, #tpu.memory_space<vmem>>, vector<1x128xf32>
    %940 = vector.broadcast %939 : vector<1x128xf32> to vector<8x128xf32>
    %941 = arith.addf %938, %940 : vector<8x128xf32>
    %cst_498 = arith.constant 0.000000e+00 : f32
    %942 = vector.broadcast %cst_498 : f32 to vector<8x128xf32>
    %943 = arith.maximumf %941, %942 : vector<8x128xf32>
    %c5_499 = arith.constant 5 : index
    %c0_500 = arith.constant 0 : index
    %c0_501 = arith.constant 0 : index
    %944 = vector.load %arg3[%c5_499, %c0_500, %c0_501] : memref<9x128x128xf32, #tpu.memory_space<vmem>>, vector<1x128x128xf32>
    %945 = vector.shape_cast %944 : vector<1x128x128xf32> to vector<128x128xf32>
    %cst_502 = arith.constant dense<0.000000e+00> : vector<8x128xf32>
    %946 = tpu.matmul %943, %945, %cst_502 {dimension_numbers = #tpu.dot_dimension_numbers<[1], [0], [0], [1], [0, 0, 1, 1], [], []>} : vector<8x128xf32>, vector<128x128xf32>, vector<8x128xf32> -> vector<8x128xf32>
    %c3_503 = arith.constant 3 : index
    %c0_504 = arith.constant 0 : index
    %947 = vector.load %arg4[%c3_503, %c0_504] : memref<6x128xf32, #tpu.memory_space<vmem>>, vector<1x128xf32>
    %948 = vector.broadcast %947 : vector<1x128xf32> to vector<8x128xf32>
    %949 = arith.addf %946, %948 : vector<8x128xf32>
    %950 = vector.extract_strided_slice %949 {offsets = [0, 0], sizes = [8, 64], strides = [1, 1]} : vector<8x128xf32> to vector<8x64xf32>
    %951 = vector.extract_strided_slice %949 {offsets = [0, 64], sizes = [8, 64], strides = [1, 1]} : vector<8x128xf32> to vector<8x64xf32>
    %cst_505 = arith.constant 0.000000e+00 : f32
    %952 = vector.broadcast %cst_505 : f32 to vector<8x64xf32>
    %953 = arith.maximumf %951, %952 : vector<8x64xf32>
    %954 = math.absf %951 : vector<8x64xf32>
    %cst_506 = arith.constant 0.000000e+00 : f32
    %955 = vector.broadcast %cst_506 : f32 to vector<8x64xf32>
    %956 = arith.subf %955, %954 : vector<8x64xf32>
    %957 = math.exp %956 : vector<8x64xf32>
    %cst_507 = arith.constant 1.000000e+00 : f32
    %958 = vector.broadcast %cst_507 : f32 to vector<8x64xf32>
    %959 = arith.addf %958, %957 : vector<8x64xf32>
    %960 = math.log %959 : vector<8x64xf32>
    %961 = arith.addf %953, %960 : vector<8x64xf32>
    %962 = arith.mulf %929, %895 : vector<8x64xf32>
    %963 = arith.addf %918, %962 : vector<8x64xf32>
    %c0_508 = arith.constant 0 : index
    %c0_509 = arith.constant 0 : index
    %964 = vector.load %arg5[%c0_508, %c0_509] : memref<64x512xf32, #tpu.memory_space<vmem>>, vector<64x128xf32>
    %cst_510 = arith.constant dense<0.000000e+00> : vector<8x128xf32>
    %965 = tpu.matmul %963, %964, %cst_510 {dimension_numbers = #tpu.dot_dimension_numbers<[1], [0], [0], [1], [0, 0, 1, 1], [], []>} : vector<8x64xf32>, vector<64x128xf32>, vector<8x128xf32> -> vector<8x128xf32>
    %966 = arith.addf %892, %965 : vector<8x128xf32>
    %c6_511 = arith.constant 6 : index
    %c0_512 = arith.constant 0 : index
    %c0_513 = arith.constant 0 : index
    %967 = vector.load %arg3[%c6_511, %c0_512, %c0_513] : memref<9x128x128xf32, #tpu.memory_space<vmem>>, vector<1x128x128xf32>
    %968 = vector.shape_cast %967 : vector<1x128x128xf32> to vector<128x128xf32>
    %cst_514 = arith.constant dense<0.000000e+00> : vector<8x128xf32>
    %969 = tpu.matmul %855, %968, %cst_514 {dimension_numbers = #tpu.dot_dimension_numbers<[1], [0], [0], [1], [0, 0, 1, 1], [], []>} : vector<8x128xf32>, vector<128x128xf32>, vector<8x128xf32> -> vector<8x128xf32>
    %970 = arith.addf %966, %969 : vector<8x128xf32>
    %cst_515 = arith.constant 0.000000e+00 : f32
    %971 = vector.broadcast %cst_515 : f32 to vector<8x128xf32>
    %972 = arith.maximumf %970, %971 : vector<8x128xf32>
    %c7_516 = arith.constant 7 : index
    %c0_517 = arith.constant 0 : index
    %c0_518 = arith.constant 0 : index
    %973 = vector.load %arg3[%c7_516, %c0_517, %c0_518] : memref<9x128x128xf32, #tpu.memory_space<vmem>>, vector<1x128x128xf32>
    %974 = vector.shape_cast %973 : vector<1x128x128xf32> to vector<128x128xf32>
    %cst_519 = arith.constant dense<0.000000e+00> : vector<8x128xf32>
    %975 = tpu.matmul %972, %974, %cst_519 {dimension_numbers = #tpu.dot_dimension_numbers<[1], [0], [0], [1], [0, 0, 1, 1], [], []>} : vector<8x128xf32>, vector<128x128xf32>, vector<8x128xf32> -> vector<8x128xf32>
    %c4_520 = arith.constant 4 : index
    %c0_521 = arith.constant 0 : index
    %976 = vector.load %arg4[%c4_520, %c0_521] : memref<6x128xf32, #tpu.memory_space<vmem>>, vector<1x128xf32>
    %977 = vector.broadcast %976 : vector<1x128xf32> to vector<8x128xf32>
    %978 = arith.addf %975, %977 : vector<8x128xf32>
    %cst_522 = arith.constant 0.000000e+00 : f32
    %979 = vector.broadcast %cst_522 : f32 to vector<8x128xf32>
    %980 = arith.maximumf %978, %979 : vector<8x128xf32>
    %c8_523 = arith.constant 8 : index
    %c0_524 = arith.constant 0 : index
    %c0_525 = arith.constant 0 : index
    %981 = vector.load %arg3[%c8_523, %c0_524, %c0_525] : memref<9x128x128xf32, #tpu.memory_space<vmem>>, vector<1x128x128xf32>
    %982 = vector.shape_cast %981 : vector<1x128x128xf32> to vector<128x128xf32>
    %cst_526 = arith.constant dense<0.000000e+00> : vector<8x128xf32>
    %983 = tpu.matmul %980, %982, %cst_526 {dimension_numbers = #tpu.dot_dimension_numbers<[1], [0], [0], [1], [0, 0, 1, 1], [], []>} : vector<8x128xf32>, vector<128x128xf32>, vector<8x128xf32> -> vector<8x128xf32>
    %c5_527 = arith.constant 5 : index
    %c0_528 = arith.constant 0 : index
    %984 = vector.load %arg4[%c5_527, %c0_528] : memref<6x128xf32, #tpu.memory_space<vmem>>, vector<1x128xf32>
    %985 = vector.broadcast %984 : vector<1x128xf32> to vector<8x128xf32>
    %986 = arith.addf %983, %985 : vector<8x128xf32>
    %987 = vector.extract_strided_slice %986 {offsets = [0, 0], sizes = [8, 8], strides = [1, 1]} : vector<8x128xf32> to vector<8x8xf32>
    %988 = vector.extract_strided_slice %986 {offsets = [0, 8], sizes = [8, 8], strides = [1, 1]} : vector<8x128xf32> to vector<8x8xf32>
    %cst_529 = arith.constant 0.000000e+00 : f32
    %989 = vector.broadcast %cst_529 : f32 to vector<8x8xf32>
    %990 = arith.maximumf %988, %989 : vector<8x8xf32>
    %991 = math.absf %988 : vector<8x8xf32>
    %cst_530 = arith.constant 0.000000e+00 : f32
    %992 = vector.broadcast %cst_530 : f32 to vector<8x8xf32>
    %993 = arith.subf %992, %991 : vector<8x8xf32>
    %994 = math.exp %993 : vector<8x8xf32>
    %cst_531 = arith.constant 1.000000e+00 : f32
    %995 = vector.broadcast %cst_531 : f32 to vector<8x8xf32>
    %996 = arith.addf %995, %994 : vector<8x8xf32>
    %997 = math.log %996 : vector<8x8xf32>
    %998 = arith.addf %990, %997 : vector<8x8xf32>
    %c0_532 = arith.constant 0 : index
    %c128_533 = arith.constant 128 : index
    %999 = vector.load %arg5[%c0_532, %c128_533] : memref<64x512xf32, #tpu.memory_space<vmem>>, vector<64x384xf32>
    %cst_534 = arith.constant dense<0.000000e+00> : vector<8x384xf32>
    %1000 = tpu.matmul %963, %999, %cst_534 {dimension_numbers = #tpu.dot_dimension_numbers<[1], [0], [0], [1], [0, 0, 1, 1], [], []>} : vector<8x64xf32>, vector<64x384xf32>, vector<8x384xf32> -> vector<8x384xf32>
    %1001 = arith.addf %893, %1000 : vector<8x384xf32>
    %c0_535 = arith.constant 0 : index
    %c0_536 = arith.constant 0 : index
    %1002 = vector.load %arg6[%c0_535, %c0_536] : memref<128x384xf32, #tpu.memory_space<vmem>>, vector<128x384xf32>
    %cst_537 = arith.constant dense<0.000000e+00> : vector<8x384xf32>
    %1003 = tpu.matmul %855, %1002, %cst_537 {dimension_numbers = #tpu.dot_dimension_numbers<[1], [0], [0], [1], [0, 0, 1, 1], [], []>} : vector<8x128xf32>, vector<128x384xf32>, vector<8x384xf32> -> vector<8x384xf32>
    %c0_538 = arith.constant 0 : index
    %c0_539 = arith.constant 0 : index
    %1004 = vector.load %arg7[%c0_538, %c0_539] : memref<1x384xf32, #tpu.memory_space<vmem>>, vector<1x384xf32>
    %1005 = vector.broadcast %1004 : vector<1x384xf32> to vector<8x384xf32>
    %1006 = arith.addf %1003, %1005 : vector<8x384xf32>
    %1007 = vector.extract_strided_slice %1001 {offsets = [0, 0], sizes = [8, 128], strides = [1, 1]} : vector<8x384xf32> to vector<8x128xf32>
    %1008 = vector.extract_strided_slice %1006 {offsets = [0, 0], sizes = [8, 128], strides = [1, 1]} : vector<8x384xf32> to vector<8x128xf32>
    %1009 = arith.addf %1007, %1008 : vector<8x128xf32>
    %1010 = arith.negf %1009 : vector<8x128xf32>
    %1011 = math.exp %1010 : vector<8x128xf32>
    %cst_540 = arith.constant 1.000000e+00 : f32
    %1012 = vector.broadcast %cst_540 : f32 to vector<8x128xf32>
    %1013 = arith.addf %1012, %1011 : vector<8x128xf32>
    %1014 = arith.divf %1012, %1013 : vector<8x128xf32>
    %1015 = vector.extract_strided_slice %1001 {offsets = [0, 128], sizes = [8, 128], strides = [1, 1]} : vector<8x384xf32> to vector<8x128xf32>
    %1016 = vector.extract_strided_slice %1006 {offsets = [0, 128], sizes = [8, 128], strides = [1, 1]} : vector<8x384xf32> to vector<8x128xf32>
    %1017 = arith.addf %1015, %1016 : vector<8x128xf32>
    %1018 = arith.negf %1017 : vector<8x128xf32>
    %1019 = math.exp %1018 : vector<8x128xf32>
    %cst_541 = arith.constant 1.000000e+00 : f32
    %1020 = vector.broadcast %cst_541 : f32 to vector<8x128xf32>
    %1021 = arith.addf %1020, %1019 : vector<8x128xf32>
    %1022 = arith.divf %1020, %1021 : vector<8x128xf32>
    %1023 = vector.extract_strided_slice %1001 {offsets = [0, 256], sizes = [8, 128], strides = [1, 1]} : vector<8x384xf32> to vector<8x128xf32>
    %1024 = vector.extract_strided_slice %1006 {offsets = [0, 256], sizes = [8, 128], strides = [1, 1]} : vector<8x384xf32> to vector<8x128xf32>
    %1025 = arith.mulf %1014, %1024 : vector<8x128xf32>
    %1026 = arith.addf %1023, %1025 : vector<8x128xf32>
    %1027 = math.tanh %1026 : vector<8x128xf32>
    %cst_542 = arith.constant 1.000000e+00 : f32
    %1028 = vector.broadcast %cst_542 : f32 to vector<8x128xf32>
    %1029 = arith.subf %1028, %1022 : vector<8x128xf32>
    %1030 = arith.mulf %1029, %1027 : vector<8x128xf32>
    %1031 = arith.mulf %1022, %855 : vector<8x128xf32>
    %1032 = arith.addf %1030, %1031 : vector<8x128xf32>
    %1033 = math.log %961 : vector<8x64xf32>
    %cst_543 = arith.constant 2.000000e+00 : f32
    %1034 = vector.broadcast %cst_543 : f32 to vector<8x64xf32>
    %1035 = arith.mulf %1034, %1033 : vector<8x64xf32>
    %1036 = math.log %929 : vector<8x64xf32>
    %cst_544 = arith.constant 2.000000e+00 : f32
    %1037 = vector.broadcast %cst_544 : f32 to vector<8x64xf32>
    %1038 = arith.mulf %1037, %1036 : vector<8x64xf32>
    %1039 = arith.subf %1035, %1038 : vector<8x64xf32>
    %1040 = arith.mulf %929, %929 : vector<8x64xf32>
    %1041 = arith.subf %918, %950 : vector<8x64xf32>
    %1042 = arith.mulf %1041, %1041 : vector<8x64xf32>
    %1043 = arith.addf %1040, %1042 : vector<8x64xf32>
    %1044 = arith.mulf %961, %961 : vector<8x64xf32>
    %1045 = arith.divf %1043, %1044 : vector<8x64xf32>
    %1046 = arith.addf %1039, %1045 : vector<8x64xf32>
    %cst_545 = arith.constant 1.000000e+00 : f32
    %1047 = vector.broadcast %cst_545 : f32 to vector<8x64xf32>
    %1048 = arith.subf %1046, %1047 : vector<8x64xf32>
    %cst_546 = arith.constant 5.000000e-01 : f32
    %1049 = vector.broadcast %cst_546 : f32 to vector<8x64xf32>
    %1050 = arith.mulf %1049, %1048 : vector<8x64xf32>
    %1051 = arith.addf %874, %1050 : vector<8x64xf32>
    %1052 = arith.subf %897, %987 : vector<8x8xf32>
    %1053 = arith.mulf %1052, %1052 : vector<8x8xf32>
    %1054 = arith.mulf %998, %998 : vector<8x8xf32>
    %1055 = arith.divf %1053, %1054 : vector<8x8xf32>
    %1056 = math.log %998 : vector<8x8xf32>
    %cst_547 = arith.constant 2.000000e+00 : f32
    %1057 = vector.broadcast %cst_547 : f32 to vector<8x8xf32>
    %1058 = arith.mulf %1057, %1056 : vector<8x8xf32>
    %1059 = arith.addf %1055, %1058 : vector<8x8xf32>
    %cst_548 = arith.constant 1.83787704 : f32
    %1060 = vector.broadcast %cst_548 : f32 to vector<8x8xf32>
    %1061 = arith.addf %1059, %1060 : vector<8x8xf32>
    %cst_549 = arith.constant 5.000000e-01 : f32
    %1062 = vector.broadcast %cst_549 : f32 to vector<8x8xf32>
    %1063 = arith.mulf %1062, %1061 : vector<8x8xf32>
    %1064 = arith.addf %887, %1063 : vector<8x8xf32>
    %c6_550 = arith.constant 6 : index
    %c0_551 = arith.constant 0 : index
    %c0_552 = arith.constant 0 : index
    %1065 = vector.load %arg0[%c6_550, %c0_551, %c0_552] : memref<7x8x768xf32, #tpu.memory_space<vmem>>, vector<1x8x768xf32>
    %1066 = vector.shape_cast %1065 : vector<1x8x768xf32> to vector<8x768xf32>
    %1067 = vector.extract_strided_slice %1066 {offsets = [0, 0], sizes = [8, 128], strides = [1, 1]} : vector<8x768xf32> to vector<8x128xf32>
    %1068 = vector.extract_strided_slice %1066 {offsets = [0, 128], sizes = [8, 128], strides = [1, 1]} : vector<8x768xf32> to vector<8x128xf32>
    %1069 = vector.extract_strided_slice %1066 {offsets = [0, 256], sizes = [8, 128], strides = [1, 1]} : vector<8x768xf32> to vector<8x128xf32>
    %c6_553 = arith.constant 6 : index
    %c0_554 = arith.constant 0 : index
    %c0_555 = arith.constant 0 : index
    %1070 = vector.load %arg1[%c6_553, %c0_554, %c0_555] : memref<7x8x64xf32, #tpu.memory_space<vmem>>, vector<1x8x64xf32>
    %1071 = vector.shape_cast %1070 : vector<1x8x64xf32> to vector<8x64xf32>
    %c6_556 = arith.constant 6 : index
    %c0_557 = arith.constant 0 : index
    %c0_558 = arith.constant 0 : index
    %1072 = vector.load %arg2[%c6_556, %c0_557, %c0_558] : memref<7x8x8xf32, #tpu.memory_space<vmem>>, vector<1x8x8xf32>
    %1073 = vector.shape_cast %1072 : vector<1x8x8xf32> to vector<8x8xf32>
    %c0_559 = arith.constant 0 : index
    %c0_560 = arith.constant 0 : index
    %c0_561 = arith.constant 0 : index
    %1074 = vector.load %arg3[%c0_559, %c0_560, %c0_561] : memref<9x128x128xf32, #tpu.memory_space<vmem>>, vector<1x128x128xf32>
    %1075 = vector.shape_cast %1074 : vector<1x128x128xf32> to vector<128x128xf32>
    %cst_562 = arith.constant dense<0.000000e+00> : vector<8x128xf32>
    %1076 = tpu.matmul %1032, %1075, %cst_562 {dimension_numbers = #tpu.dot_dimension_numbers<[1], [0], [0], [1], [0, 0, 1, 1], [], []>} : vector<8x128xf32>, vector<128x128xf32>, vector<8x128xf32> -> vector<8x128xf32>
    %1077 = arith.addf %1067, %1076 : vector<8x128xf32>
    %cst_563 = arith.constant 0.000000e+00 : f32
    %1078 = vector.broadcast %cst_563 : f32 to vector<8x128xf32>
    %1079 = arith.maximumf %1077, %1078 : vector<8x128xf32>
    %c1_564 = arith.constant 1 : index
    %c0_565 = arith.constant 0 : index
    %c0_566 = arith.constant 0 : index
    %1080 = vector.load %arg3[%c1_564, %c0_565, %c0_566] : memref<9x128x128xf32, #tpu.memory_space<vmem>>, vector<1x128x128xf32>
    %1081 = vector.shape_cast %1080 : vector<1x128x128xf32> to vector<128x128xf32>
    %cst_567 = arith.constant dense<0.000000e+00> : vector<8x128xf32>
    %1082 = tpu.matmul %1079, %1081, %cst_567 {dimension_numbers = #tpu.dot_dimension_numbers<[1], [0], [0], [1], [0, 0, 1, 1], [], []>} : vector<8x128xf32>, vector<128x128xf32>, vector<8x128xf32> -> vector<8x128xf32>
    %c0_568 = arith.constant 0 : index
    %c0_569 = arith.constant 0 : index
    %1083 = vector.load %arg4[%c0_568, %c0_569] : memref<6x128xf32, #tpu.memory_space<vmem>>, vector<1x128xf32>
    %1084 = vector.broadcast %1083 : vector<1x128xf32> to vector<8x128xf32>
    %1085 = arith.addf %1082, %1084 : vector<8x128xf32>
    %cst_570 = arith.constant 0.000000e+00 : f32
    %1086 = vector.broadcast %cst_570 : f32 to vector<8x128xf32>
    %1087 = arith.maximumf %1085, %1086 : vector<8x128xf32>
    %c2_571 = arith.constant 2 : index
    %c0_572 = arith.constant 0 : index
    %c0_573 = arith.constant 0 : index
    %1088 = vector.load %arg3[%c2_571, %c0_572, %c0_573] : memref<9x128x128xf32, #tpu.memory_space<vmem>>, vector<1x128x128xf32>
    %1089 = vector.shape_cast %1088 : vector<1x128x128xf32> to vector<128x128xf32>
    %cst_574 = arith.constant dense<0.000000e+00> : vector<8x128xf32>
    %1090 = tpu.matmul %1087, %1089, %cst_574 {dimension_numbers = #tpu.dot_dimension_numbers<[1], [0], [0], [1], [0, 0, 1, 1], [], []>} : vector<8x128xf32>, vector<128x128xf32>, vector<8x128xf32> -> vector<8x128xf32>
    %c1_575 = arith.constant 1 : index
    %c0_576 = arith.constant 0 : index
    %1091 = vector.load %arg4[%c1_575, %c0_576] : memref<6x128xf32, #tpu.memory_space<vmem>>, vector<1x128xf32>
    %1092 = vector.broadcast %1091 : vector<1x128xf32> to vector<8x128xf32>
    %1093 = arith.addf %1090, %1092 : vector<8x128xf32>
    %1094 = vector.extract_strided_slice %1093 {offsets = [0, 0], sizes = [8, 64], strides = [1, 1]} : vector<8x128xf32> to vector<8x64xf32>
    %1095 = vector.extract_strided_slice %1093 {offsets = [0, 64], sizes = [8, 64], strides = [1, 1]} : vector<8x128xf32> to vector<8x64xf32>
    %cst_577 = arith.constant 0.000000e+00 : f32
    %1096 = vector.broadcast %cst_577 : f32 to vector<8x64xf32>
    %1097 = arith.maximumf %1095, %1096 : vector<8x64xf32>
    %1098 = math.absf %1095 : vector<8x64xf32>
    %cst_578 = arith.constant 0.000000e+00 : f32
    %1099 = vector.broadcast %cst_578 : f32 to vector<8x64xf32>
    %1100 = arith.subf %1099, %1098 : vector<8x64xf32>
    %1101 = math.exp %1100 : vector<8x64xf32>
    %cst_579 = arith.constant 1.000000e+00 : f32
    %1102 = vector.broadcast %cst_579 : f32 to vector<8x64xf32>
    %1103 = arith.addf %1102, %1101 : vector<8x64xf32>
    %1104 = math.log %1103 : vector<8x64xf32>
    %1105 = arith.addf %1097, %1104 : vector<8x64xf32>
    %c3_580 = arith.constant 3 : index
    %c0_581 = arith.constant 0 : index
    %c0_582 = arith.constant 0 : index
    %1106 = vector.load %arg3[%c3_580, %c0_581, %c0_582] : memref<9x128x128xf32, #tpu.memory_space<vmem>>, vector<1x128x128xf32>
    %1107 = vector.shape_cast %1106 : vector<1x128x128xf32> to vector<128x128xf32>
    %cst_583 = arith.constant dense<0.000000e+00> : vector<8x128xf32>
    %1108 = tpu.matmul %1032, %1107, %cst_583 {dimension_numbers = #tpu.dot_dimension_numbers<[1], [0], [0], [1], [0, 0, 1, 1], [], []>} : vector<8x128xf32>, vector<128x128xf32>, vector<8x128xf32> -> vector<8x128xf32>
    %1109 = arith.addf %1068, %1108 : vector<8x128xf32>
    %cst_584 = arith.constant 0.000000e+00 : f32
    %1110 = vector.broadcast %cst_584 : f32 to vector<8x128xf32>
    %1111 = arith.maximumf %1109, %1110 : vector<8x128xf32>
    %c4_585 = arith.constant 4 : index
    %c0_586 = arith.constant 0 : index
    %c0_587 = arith.constant 0 : index
    %1112 = vector.load %arg3[%c4_585, %c0_586, %c0_587] : memref<9x128x128xf32, #tpu.memory_space<vmem>>, vector<1x128x128xf32>
    %1113 = vector.shape_cast %1112 : vector<1x128x128xf32> to vector<128x128xf32>
    %cst_588 = arith.constant dense<0.000000e+00> : vector<8x128xf32>
    %1114 = tpu.matmul %1111, %1113, %cst_588 {dimension_numbers = #tpu.dot_dimension_numbers<[1], [0], [0], [1], [0, 0, 1, 1], [], []>} : vector<8x128xf32>, vector<128x128xf32>, vector<8x128xf32> -> vector<8x128xf32>
    %c2_589 = arith.constant 2 : index
    %c0_590 = arith.constant 0 : index
    %1115 = vector.load %arg4[%c2_589, %c0_590] : memref<6x128xf32, #tpu.memory_space<vmem>>, vector<1x128xf32>
    %1116 = vector.broadcast %1115 : vector<1x128xf32> to vector<8x128xf32>
    %1117 = arith.addf %1114, %1116 : vector<8x128xf32>
    %cst_591 = arith.constant 0.000000e+00 : f32
    %1118 = vector.broadcast %cst_591 : f32 to vector<8x128xf32>
    %1119 = arith.maximumf %1117, %1118 : vector<8x128xf32>
    %c5_592 = arith.constant 5 : index
    %c0_593 = arith.constant 0 : index
    %c0_594 = arith.constant 0 : index
    %1120 = vector.load %arg3[%c5_592, %c0_593, %c0_594] : memref<9x128x128xf32, #tpu.memory_space<vmem>>, vector<1x128x128xf32>
    %1121 = vector.shape_cast %1120 : vector<1x128x128xf32> to vector<128x128xf32>
    %cst_595 = arith.constant dense<0.000000e+00> : vector<8x128xf32>
    %1122 = tpu.matmul %1119, %1121, %cst_595 {dimension_numbers = #tpu.dot_dimension_numbers<[1], [0], [0], [1], [0, 0, 1, 1], [], []>} : vector<8x128xf32>, vector<128x128xf32>, vector<8x128xf32> -> vector<8x128xf32>
    %c3_596 = arith.constant 3 : index
    %c0_597 = arith.constant 0 : index
    %1123 = vector.load %arg4[%c3_596, %c0_597] : memref<6x128xf32, #tpu.memory_space<vmem>>, vector<1x128xf32>
    %1124 = vector.broadcast %1123 : vector<1x128xf32> to vector<8x128xf32>
    %1125 = arith.addf %1122, %1124 : vector<8x128xf32>
    %1126 = vector.extract_strided_slice %1125 {offsets = [0, 0], sizes = [8, 64], strides = [1, 1]} : vector<8x128xf32> to vector<8x64xf32>
    %1127 = vector.extract_strided_slice %1125 {offsets = [0, 64], sizes = [8, 64], strides = [1, 1]} : vector<8x128xf32> to vector<8x64xf32>
    %cst_598 = arith.constant 0.000000e+00 : f32
    %1128 = vector.broadcast %cst_598 : f32 to vector<8x64xf32>
    %1129 = arith.maximumf %1127, %1128 : vector<8x64xf32>
    %1130 = math.absf %1127 : vector<8x64xf32>
    %cst_599 = arith.constant 0.000000e+00 : f32
    %1131 = vector.broadcast %cst_599 : f32 to vector<8x64xf32>
    %1132 = arith.subf %1131, %1130 : vector<8x64xf32>
    %1133 = math.exp %1132 : vector<8x64xf32>
    %cst_600 = arith.constant 1.000000e+00 : f32
    %1134 = vector.broadcast %cst_600 : f32 to vector<8x64xf32>
    %1135 = arith.addf %1134, %1133 : vector<8x64xf32>
    %1136 = math.log %1135 : vector<8x64xf32>
    %1137 = arith.addf %1129, %1136 : vector<8x64xf32>
    %1138 = arith.mulf %1105, %1071 : vector<8x64xf32>
    %1139 = arith.addf %1094, %1138 : vector<8x64xf32>
    %c0_601 = arith.constant 0 : index
    %c0_602 = arith.constant 0 : index
    %1140 = vector.load %arg5[%c0_601, %c0_602] : memref<64x512xf32, #tpu.memory_space<vmem>>, vector<64x128xf32>
    %cst_603 = arith.constant dense<0.000000e+00> : vector<8x128xf32>
    %1141 = tpu.matmul %1139, %1140, %cst_603 {dimension_numbers = #tpu.dot_dimension_numbers<[1], [0], [0], [1], [0, 0, 1, 1], [], []>} : vector<8x64xf32>, vector<64x128xf32>, vector<8x128xf32> -> vector<8x128xf32>
    %1142 = arith.addf %1069, %1141 : vector<8x128xf32>
    %c6_604 = arith.constant 6 : index
    %c0_605 = arith.constant 0 : index
    %c0_606 = arith.constant 0 : index
    %1143 = vector.load %arg3[%c6_604, %c0_605, %c0_606] : memref<9x128x128xf32, #tpu.memory_space<vmem>>, vector<1x128x128xf32>
    %1144 = vector.shape_cast %1143 : vector<1x128x128xf32> to vector<128x128xf32>
    %cst_607 = arith.constant dense<0.000000e+00> : vector<8x128xf32>
    %1145 = tpu.matmul %1032, %1144, %cst_607 {dimension_numbers = #tpu.dot_dimension_numbers<[1], [0], [0], [1], [0, 0, 1, 1], [], []>} : vector<8x128xf32>, vector<128x128xf32>, vector<8x128xf32> -> vector<8x128xf32>
    %1146 = arith.addf %1142, %1145 : vector<8x128xf32>
    %cst_608 = arith.constant 0.000000e+00 : f32
    %1147 = vector.broadcast %cst_608 : f32 to vector<8x128xf32>
    %1148 = arith.maximumf %1146, %1147 : vector<8x128xf32>
    %c7_609 = arith.constant 7 : index
    %c0_610 = arith.constant 0 : index
    %c0_611 = arith.constant 0 : index
    %1149 = vector.load %arg3[%c7_609, %c0_610, %c0_611] : memref<9x128x128xf32, #tpu.memory_space<vmem>>, vector<1x128x128xf32>
    %1150 = vector.shape_cast %1149 : vector<1x128x128xf32> to vector<128x128xf32>
    %cst_612 = arith.constant dense<0.000000e+00> : vector<8x128xf32>
    %1151 = tpu.matmul %1148, %1150, %cst_612 {dimension_numbers = #tpu.dot_dimension_numbers<[1], [0], [0], [1], [0, 0, 1, 1], [], []>} : vector<8x128xf32>, vector<128x128xf32>, vector<8x128xf32> -> vector<8x128xf32>
    %c4_613 = arith.constant 4 : index
    %c0_614 = arith.constant 0 : index
    %1152 = vector.load %arg4[%c4_613, %c0_614] : memref<6x128xf32, #tpu.memory_space<vmem>>, vector<1x128xf32>
    %1153 = vector.broadcast %1152 : vector<1x128xf32> to vector<8x128xf32>
    %1154 = arith.addf %1151, %1153 : vector<8x128xf32>
    %cst_615 = arith.constant 0.000000e+00 : f32
    %1155 = vector.broadcast %cst_615 : f32 to vector<8x128xf32>
    %1156 = arith.maximumf %1154, %1155 : vector<8x128xf32>
    %c8_616 = arith.constant 8 : index
    %c0_617 = arith.constant 0 : index
    %c0_618 = arith.constant 0 : index
    %1157 = vector.load %arg3[%c8_616, %c0_617, %c0_618] : memref<9x128x128xf32, #tpu.memory_space<vmem>>, vector<1x128x128xf32>
    %1158 = vector.shape_cast %1157 : vector<1x128x128xf32> to vector<128x128xf32>
    %cst_619 = arith.constant dense<0.000000e+00> : vector<8x128xf32>
    %1159 = tpu.matmul %1156, %1158, %cst_619 {dimension_numbers = #tpu.dot_dimension_numbers<[1], [0], [0], [1], [0, 0, 1, 1], [], []>} : vector<8x128xf32>, vector<128x128xf32>, vector<8x128xf32> -> vector<8x128xf32>
    %c5_620 = arith.constant 5 : index
    %c0_621 = arith.constant 0 : index
    %1160 = vector.load %arg4[%c5_620, %c0_621] : memref<6x128xf32, #tpu.memory_space<vmem>>, vector<1x128xf32>
    %1161 = vector.broadcast %1160 : vector<1x128xf32> to vector<8x128xf32>
    %1162 = arith.addf %1159, %1161 : vector<8x128xf32>
    %1163 = vector.extract_strided_slice %1162 {offsets = [0, 0], sizes = [8, 8], strides = [1, 1]} : vector<8x128xf32> to vector<8x8xf32>
    %1164 = vector.extract_strided_slice %1162 {offsets = [0, 8], sizes = [8, 8], strides = [1, 1]} : vector<8x128xf32> to vector<8x8xf32>
    %cst_622 = arith.constant 0.000000e+00 : f32
    %1165 = vector.broadcast %cst_622 : f32 to vector<8x8xf32>
    %1166 = arith.maximumf %1164, %1165 : vector<8x8xf32>
    %1167 = math.absf %1164 : vector<8x8xf32>
    %cst_623 = arith.constant 0.000000e+00 : f32
    %1168 = vector.broadcast %cst_623 : f32 to vector<8x8xf32>
    %1169 = arith.subf %1168, %1167 : vector<8x8xf32>
    %1170 = math.exp %1169 : vector<8x8xf32>
    %cst_624 = arith.constant 1.000000e+00 : f32
    %1171 = vector.broadcast %cst_624 : f32 to vector<8x8xf32>
    %1172 = arith.addf %1171, %1170 : vector<8x8xf32>
    %1173 = math.log %1172 : vector<8x8xf32>
    %1174 = arith.addf %1166, %1173 : vector<8x8xf32>
    %1175 = math.log %1137 : vector<8x64xf32>
    %cst_625 = arith.constant 2.000000e+00 : f32
    %1176 = vector.broadcast %cst_625 : f32 to vector<8x64xf32>
    %1177 = arith.mulf %1176, %1175 : vector<8x64xf32>
    %1178 = math.log %1105 : vector<8x64xf32>
    %cst_626 = arith.constant 2.000000e+00 : f32
    %1179 = vector.broadcast %cst_626 : f32 to vector<8x64xf32>
    %1180 = arith.mulf %1179, %1178 : vector<8x64xf32>
    %1181 = arith.subf %1177, %1180 : vector<8x64xf32>
    %1182 = arith.mulf %1105, %1105 : vector<8x64xf32>
    %1183 = arith.subf %1094, %1126 : vector<8x64xf32>
    %1184 = arith.mulf %1183, %1183 : vector<8x64xf32>
    %1185 = arith.addf %1182, %1184 : vector<8x64xf32>
    %1186 = arith.mulf %1137, %1137 : vector<8x64xf32>
    %1187 = arith.divf %1185, %1186 : vector<8x64xf32>
    %1188 = arith.addf %1181, %1187 : vector<8x64xf32>
    %cst_627 = arith.constant 1.000000e+00 : f32
    %1189 = vector.broadcast %cst_627 : f32 to vector<8x64xf32>
    %1190 = arith.subf %1188, %1189 : vector<8x64xf32>
    %cst_628 = arith.constant 5.000000e-01 : f32
    %1191 = vector.broadcast %cst_628 : f32 to vector<8x64xf32>
    %1192 = arith.mulf %1191, %1190 : vector<8x64xf32>
    %1193 = arith.addf %1051, %1192 : vector<8x64xf32>
    %1194 = arith.subf %1073, %1163 : vector<8x8xf32>
    %1195 = arith.mulf %1194, %1194 : vector<8x8xf32>
    %1196 = arith.mulf %1174, %1174 : vector<8x8xf32>
    %1197 = arith.divf %1195, %1196 : vector<8x8xf32>
    %1198 = math.log %1174 : vector<8x8xf32>
    %cst_629 = arith.constant 2.000000e+00 : f32
    %1199 = vector.broadcast %cst_629 : f32 to vector<8x8xf32>
    %1200 = arith.mulf %1199, %1198 : vector<8x8xf32>
    %1201 = arith.addf %1197, %1200 : vector<8x8xf32>
    %cst_630 = arith.constant 1.83787704 : f32
    %1202 = vector.broadcast %cst_630 : f32 to vector<8x8xf32>
    %1203 = arith.addf %1201, %1202 : vector<8x8xf32>
    %cst_631 = arith.constant 5.000000e-01 : f32
    %1204 = vector.broadcast %cst_631 : f32 to vector<8x8xf32>
    %1205 = arith.mulf %1204, %1203 : vector<8x8xf32>
    %1206 = arith.addf %1064, %1205 : vector<8x8xf32>
    %1207 = vector.shape_cast %1193 : vector<8x64xf32> to vector<1x8x64xf32>
    %cst_632 = arith.constant dense<0.000000e+00> : vector<1xf32>
    %1208 = vector.multi_reduction <add>, %1207, %cst_632 [1, 2] : vector<1x8x64xf32> to vector<1xf32>
    %1209 = vector.shape_cast %1208 : vector<1xf32> to vector<1x1x1xf32>
    %1210 = vector.extract %1209[0, 0, 0] : f32 from vector<1x1x1xf32>
    %c0_633 = arith.constant 0 : index
    %c0_634 = arith.constant 0 : index
    %1211 = memref.load %arg8[%c0_633, %c0_634] : memref<1x1xf32, #tpu.memory_space<smem>>
    memref.store %1210, %arg8[%c0_633, %c0_634] : memref<1x1xf32, #tpu.memory_space<smem>>
    %1212 = vector.shape_cast %1206 : vector<8x8xf32> to vector<1x8x8xf32>
    %cst_635 = arith.constant dense<0.000000e+00> : vector<1xf32>
    %1213 = vector.multi_reduction <add>, %1212, %cst_635 [1, 2] : vector<1x8x8xf32> to vector<1xf32>
    %1214 = vector.shape_cast %1213 : vector<1xf32> to vector<1x1x1xf32>
    %1215 = vector.extract %1214[0, 0, 0] : f32 from vector<1x1x1xf32>
    %c0_636 = arith.constant 0 : index
    %c0_637 = arith.constant 0 : index
    %1216 = memref.load %arg9[%c0_636, %c0_637] : memref<1x1xf32, #tpu.memory_space<smem>>
    memref.store %1215, %arg9[%c0_636, %c0_637] : memref<1x1xf32, #tpu.memory_space<smem>>
    return
  }
}

</mosaic_0001>

<bundles_post_ra>
// kernel: squeeze.147
= control target key start
LH: loop header
LB: loop body
LE: loop exit
PB: predicated region body
PF: predicated region fallthrough
CT: control target
= control target key end

     0   :  { %vm7_vm0 = vcmask 261120   ;;  %s37_s8 = smov 32   ;;  %s38_s9 = smov 64   ;;  %vm13_vm1 = vcmask 1048320   ;;  %vm19_vm2 = vcmask 785920   ;;  %vm25_vm3 = vcmask 523520   ;;  %s55_s0 = inlined_call_operand.vmem [shape: f32[4,32], index: 0, kind: input, shape index: {}]   ;;  %s56_s1 = inlined_call_operand.vmem [shape: f32[1,128], index: 1, kind: output, shape index: {}]  }
   0x1   :  { %v4_v0 = vld [vmem:[%s55_s0] sm:$0xf]  ;;  %s36_s0 = smov 96  }
   0x2   :  { %5 = vst [vmem:[#allocation1] sm:$0xf] %v4_v0 }
   0x9   :  { %v10_v1 = vld [vmem:[#allocation1 + $0x3] sm:$0x1]   ;;  %v22_v2 = vld [vmem:[#allocation1 + $0x1] sm:$0x1]   ;;  %v6_v3 = vld [vmem:[#allocation1] sm:$0x1]  }
   0xa   :  { %11 = vrot.lane.b32.xlu0 %v10_v1, %s36_s0  ;;  %23 = vrot.lane.b32.xlu1 %v22_v2, %s37_s8  ;;  %v16_v4 = vld [vmem:[#allocation1 + $0x2] sm:$0x1]   ;;  %8 = vst.msk [vmem:[#allocation0] sm:$0x1] %vm7_vm0, %v6_v3  }
   0xe   :  { %17 = vrot.lane.b32.xlu0 %v16_v4, %s38_s9 }
  0x7c   :  { %v12_v5 = vpop.permute.xlu0 %11   ;;  %v24_v6 = vpop.permute.xlu1 %23  }
  0x7d   :  { %14 = vst.msk [vmem:[#allocation0] sm:$0x1] %vm13_vm1, %v12_v5  }
  0x80   :  { %v18_v7 = vpop.permute.xlu0 %17  }
  0x81   :  { %20 = vst.msk [vmem:[#allocation0] sm:$0x1] %vm19_vm2, %v18_v7  }
  0x82   :  { %26 = vst.msk [vmem:[#allocation0] sm:$0x1] %vm25_vm3, %v24_v6  }
  0x89   :  { %v30_v8 = vld [vmem:[#allocation0] sm:$0x1] }
  0x8a   :  { %32 = vst [vmem:[%s56_s1] sm:$0x1] %v30_v8 }

// kernel: squeeze.155
= control target key start
LH: loop header
LB: loop body
LE: loop exit
PB: predicated region body
PF: predicated region fallthrough
CT: control target
= control target key end

     0   :  { %vm7_vm0 = vcmask 15360   ;;  %s37_s8 = smov 2   ;;  %s38_s9 = smov 4   ;;  %vm13_vm1 = vcmask 64560   ;;  %vm19_vm2 = vcmask 48160   ;;  %vm25_vm3 = vcmask 31760   ;;  %s55_s0 = inlined_call_operand.vmem [shape: f32[4,1,2], index: 0, kind: input, shape index: {}]   ;;  %s56_s1 = inlined_call_operand.vmem [shape: f32[1,8], index: 1, kind: output, shape index: {}]  }
   0x1   :  { %v4_v0 = vld [vmem:[%s55_s0] sm:$0xf]  ;;  %s36_s0 = smov 6  }
   0x2   :  { %5 = vst [vmem:[#allocation1] sm:$0xf] %v4_v0 }
   0x9   :  { %v10_v1 = vld [vmem:[#allocation1 + $0x3] sm:$0x1]   ;;  %v22_v2 = vld [vmem:[#allocation1 + $0x1] sm:$0x1]   ;;  %v6_v3 = vld [vmem:[#allocation1] sm:$0x1]  }
   0xa   :  { %11 = vrot.lane.b32.xlu0 %v10_v1, %s36_s0  ;;  %23 = vrot.lane.b32.xlu1 %v22_v2, %s37_s8  ;;  %v16_v4 = vld [vmem:[#allocation1 + $0x2] sm:$0x1]   ;;  %8 = vst.msk [vmem:[#allocation0] sm:$0x1] %vm7_vm0, %v6_v3  }
   0xe   :  { %17 = vrot.lane.b32.xlu0 %v16_v4, %s38_s9 }
  0x7c   :  { %v12_v5 = vpop.permute.xlu0 %11   ;;  %v24_v6 = vpop.permute.xlu1 %23  }
  0x7d   :  { %14 = vst.msk [vmem:[#allocation0] sm:$0x1] %vm13_vm1, %v12_v5  }
  0x80   :  { %v18_v7 = vpop.permute.xlu0 %17  }
  0x81   :  { %20 = vst.msk [vmem:[#allocation0] sm:$0x1] %vm19_vm2, %v18_v7  }
  0x82   :  { %26 = vst.msk [vmem:[#allocation0] sm:$0x1] %vm25_vm3, %v24_v6  }
  0x89   :  { %v30_v8 = vld [vmem:[#allocation0] sm:$0x1] }
  0x8a   :  { %32 = vst [vmem:[%s56_s1] sm:$0x1] %v30_v8 }

// kernel: squeeze.149
= control target key start
LH: loop header
LB: loop body
LE: loop exit
PB: predicated region body
PF: predicated region fallthrough
CT: control target
= control target key end

     0   :  { %vm7_vm0 = vcmask 130048   ;;  %s37_s8 = smov 16   ;;  %s38_s9 = smov 32   ;;  %vm13_vm1 = vcmask 523648   ;;  %vm19_vm2 = vcmask 392448   ;;  %vm25_vm3 = vcmask 261248   ;;  %s55_s0 = inlined_call_operand.vmem [shape: f32[4,16], index: 0, kind: input, shape index: {}]   ;;  %s56_s1 = inlined_call_operand.vmem [shape: f32[1,64], index: 1, kind: output, shape index: {}]  }
   0x1   :  { %v4_v0 = vld [vmem:[%s55_s0] sm:$0xf]  ;;  %s36_s0 = smov 48  }
   0x2   :  { %5 = vst [vmem:[#allocation1] sm:$0xf] %v4_v0 }
   0x9   :  { %v10_v1 = vld [vmem:[#allocation1 + $0x3] sm:$0x1]   ;;  %v22_v2 = vld [vmem:[#allocation1 + $0x1] sm:$0x1]   ;;  %v6_v3 = vld [vmem:[#allocation1] sm:$0x1]  }
   0xa   :  { %11 = vrot.lane.b32.xlu0 %v10_v1, %s36_s0  ;;  %23 = vrot.lane.b32.xlu1 %v22_v2, %s37_s8  ;;  %v16_v4 = vld [vmem:[#allocation1 + $0x2] sm:$0x1]   ;;  %8 = vst.msk [vmem:[#allocation0] sm:$0x1] %vm7_vm0, %v6_v3  }
   0xe   :  { %17 = vrot.lane.b32.xlu0 %v16_v4, %s38_s9 }
  0x7c   :  { %v12_v5 = vpop.permute.xlu0 %11   ;;  %v24_v6 = vpop.permute.xlu1 %23  }
  0x7d   :  { %14 = vst.msk [vmem:[#allocation0] sm:$0x1] %vm13_vm1, %v12_v5  }
  0x80   :  { %v18_v7 = vpop.permute.xlu0 %17  }
  0x81   :  { %20 = vst.msk [vmem:[#allocation0] sm:$0x1] %vm19_vm2, %v18_v7  }
  0x82   :  { %26 = vst.msk [vmem:[#allocation0] sm:$0x1] %vm25_vm3, %v24_v6  }
  0x89   :  { %v30_v8 = vld [vmem:[#allocation0] sm:$0x1] }
  0x8a   :  { %32 = vst [vmem:[%s56_s1] sm:$0x1] %v30_v8 }

// kernel: vrnn_indep_forward.1
= control target key start
LH: loop header
LB: loop body
LE: loop exit
PB: predicated region body
PF: predicated region fallthrough
CT: control target
= control target key end

     0   :  { %15 = vsyncpa [#allocation3], 0  ;;  %v17635_v3 = vmov 0.0|0.0   ;;  %vm14409_vm0 = vmmov 0   ;;  %v17637_v6 = vmov 0.0   ;;  %s17625_s0 = inlined_call_operand.vmem [shape: f32[7,8,768], index: 0, kind: input, shape index: {}]   ;;  %s17626_s1 = inlined_call_operand.vmem [shape: f32[7,8,64], index: 1, kind: input, shape index: {}]   ;;  %s17627_s2 = inlined_call_operand.vmem [shape: f32[7,8,8], index: 2, kind: input, shape index: {}]   ;;  %s17628_s3 = inlined_call_operand.vmem [shape: f32[9,128,128], index: 3, kind: input, shape index: {}]   ;;  %s17629_s4 = inlined_call_operand.vmem [shape: f32[6,128], index: 4, kind: input, shape index: {}]   ;;  %s17630_s5 = inlined_call_operand.vmem [shape: f32[64,512], index: 5, kind: input, shape index: {}]   ;;  %s17631_s6 = inlined_call_operand.vmem [shape: f32[128,384], index: 6, kind: input, shape index: {}]   ;;  %s17632_s7 = inlined_call_operand.vmem [shape: f32[1,384], index: 7, kind: input, shape index: {}]   ;;  %s17633_s8 = inlined_call_operand.hbm [shape: f32[1,1], index: 8, kind: output, shape index: {0}]   ;;  %s17634_s9 = inlined_call_operand.hbm [shape: f32[1,1], index: 9, kind: output, shape index: {1}]  }
   0x1   :  { %v41_v0 = vld [vmem:[%s17628_s3] sm:$0xff]  ;;  %v42_v1 = vld [vmem:[%s17628_s3 + $0x8] sm:$0xff]  ;;  %v43_v2 = vld [vmem:[%s17628_s3 + $0x10] sm:$0xff]  ;;  %11987 = vmatprep.subr.bf16.mxu0 %v17635_v3  ;;  %9357 = vmatprep.mubr.msk.f32.mxu0 %vm14409_vm0, %v17637_v6 }
   0x2   :  { %v14475_v4 = vpack.c.bf16 %v42_v1, %v41_v0  ;;  %v44_v5 = vld [vmem:[%s17628_s3 + $0x18] sm:$0xff]  ;;  %12011 = vmatprep.subr.bf16.mxu1 %v17635_v3  ;;  %9392 = vmatprep.mubr.msk.f32.mxu1 %vm14409_vm0, %v17637_v6  ;;  %v45_v8 = vld [vmem:[%s17628_s3 + $0x20] sm:$0xff]  ;;  %v46_v9 = vld [vmem:[%s17628_s3 + $0x28] sm:$0xff] }
   0x3   :  { %v14486_v7 = vpack.c.bf16 %v44_v5, %v43_v2  ;;  %v7818_v10 = vld [vmem:[%s17628_s3 + $0x80] sm:$0xff]  ;;  %v7819_v11 = vld [vmem:[%s17628_s3 + $0x88] sm:$0xff]  ;;  %v7820_v13 = vld [vmem:[%s17628_s3 + $0x90] sm:$0xff]  ;;  %v14510_v15 = vpack.c.bf16 %v46_v9, %v45_v8 }
   0x4   :  { %17827 = vst [vmem:[#allocation8_spill] sm:$0xff] %v14475_v4  ;;  %11989 = vmatpush3.bf16.msra.mxu0 %v14475_v4  ;;  %v14501_v12 = vpack.c.bf16 %v7819_v11, %v7818_v10  ;;  %v7821_v14 = vld [vmem:[%s17628_s3 + $0x98] sm:$0xff]  ;;  %v47_v16 = vld [vmem:[%s17628_s3 + $0x30] sm:$0xff]  ;;  %v7822_v19 = vld [vmem:[%s17628_s3 + $0xa0] sm:$0xff] }
   0x5   :  { %17828 = vst [vmem:[#allocation9_spill] sm:$0xff] %v14486_v7  ;;  %11990 = vmatprep.subr.bf16.mxu0 %v17635_v3  ;;  %17830 = vst [vmem:[#allocation11_spill] sm:$0xff] %v14510_v15  ;;  %v48_v17 = vld [vmem:[%s17628_s3 + $0x38] sm:$0xff]  ;;  %v14520_v18 = vpack.c.bf16 %v7821_v14, %v7820_v13  ;;  %v7823_v20 = vld [vmem:[%s17628_s3 + $0xa8] sm:$0xff] }
   0x6   :  { %17829 = vst [vmem:[#allocation10_spill] sm:$0xff] %v14501_v12  ;;  %12013 = vmatpush3.bf16.msra.mxu1 %v14501_v12 }
   0x7   :  { %17831 = vst [vmem:[#allocation12_spill] sm:$0xff] %v14520_v18  ;;  %12014 = vmatprep.subr.bf16.mxu1 %v17635_v3 }
   0x8   :  { %11992 = vmatpush3.bf16.msra.mxu0 %v14486_v7 }
   0x9   :  { %11993 = vmatprep.subr.bf16.mxu0 %v17635_v3 }
   0xa   :  { %16 = vsyncpa [#allocation5], 0  ;;  %v14530_v21 = vpack.c.bf16 %v48_v17, %v47_v16  ;;  %v49_v22 = vld [vmem:[%s17628_s3 + $0x40] sm:$0xff]  ;;  %v50_v23 = vld [vmem:[%s17628_s3 + $0x48] sm:$0xff]  ;;  %12016 = vmatpush3.bf16.msra.mxu1 %v14520_v18  ;;  %v14540_v24 = vpack.c.bf16 %v7823_v20, %v7822_v19  ;;  %s14411_s15 = smov 64   ;;  %vm624_vm1 = vcmask 523264  }
   0xb   :  { %12017 = vmatprep.subr.bf16.mxu1 %v17635_v3  ;;  %v7824_v25 = vld [vmem:[%s17628_s3 + $0xb0] sm:$0xff]  ;;  %v7825_v26 = vld [vmem:[%s17628_s3 + $0xb8] sm:$0xff]  ;;  %v14550_v27 = vpack.c.bf16 %v50_v23, %v49_v22  ;;  %v7826_v31 = vld [vmem:[%s17628_s3 + $0xc0] sm:$0xff]  ;;  %s14412_s10 = smov 120   ;;  %vm7780_vm2 = vcmask 64512   ;;  %s14384_s27 = scalar_lea.hbm %s17633_s8, 16 }
   0xc   :  { %11995 = vmatpush3.bf16.msra.mxu0 %v14510_v15  ;;  %17832 = vst [vmem:[#allocation13_spill] sm:$0xff] %v14530_v21  ;;  %17833 = vst [vmem:[#allocation14_spill] sm:$0xff] %v14540_v24  ;;  %v51_v28 = vld [vmem:[%s17628_s3 + $0x50] sm:$0xff]  ;;  %v52_v29 = vld [vmem:[%s17628_s3 + $0x58] sm:$0xff]  ;;  %v14560_v30 = vpack.c.bf16 %v7825_v26, %v7824_v25  ;;  %p14385_p0 = scmp.ne.s32.totalorder %s17633_s8, %s14384_s27  ;;  %p14388_p1 = scmp.lt.u32.totalorder %s14384_s27, %s17633_s8 }
   0xd   :  { %11996 = vmatprep.subr.bf16.mxu0 %v17635_v3  ;;  %17834 = vst [vmem:[#allocation15_spill] sm:$0xff] %v14550_v27  ;;  %v7827_v32 = vld [vmem:[%s17628_s3 + $0xc8] sm:$0xff]  ;;  %v14570_v33 = vpack.c.bf16 %v52_v29, %v51_v28  ;;  %v53_v34 = vld [vmem:[%s17628_s3 + $0x60] sm:$0xff]  ;;  %v7828_v37 = vld [vmem:[%s17628_s3 + $0xd0] sm:$0xff] }
   0xe   :  { %12019 = vmatpush3.bf16.msra.mxu1 %v14540_v24  ;;  %17835 = vst [vmem:[#allocation16_spill] sm:$0xff] %v14560_v30  ;;  %v54_v35 = vld [vmem:[%s17628_s3 + $0x68] sm:$0xff]  ;;  %v14580_v36 = vpack.c.bf16 %v7827_v32, %v7826_v31  ;;  %v7829_v38 = vld [vmem:[%s17628_s3 + $0xd8] sm:$0xff]  ;;  %v55_v40 = vld [vmem:[%s17628_s3 + $0x70] sm:$0xff]  ;;  %p14390_p2 = pnand %p14388_p1, %p14385_p0 }
   0xf   :  { %12020 = vmatprep.subr.bf16.mxu1 %v17635_v3  ;;  %17836 = vst [vmem:[#allocation17_spill] sm:$0xff] %v14570_v33  ;;  %v14590_v39 = vpack.c.bf16 %v54_v35, %v53_v34  ;;  %v56_v41 = vld [vmem:[%s17628_s3 + $0x78] sm:$0xff]  ;;  %v14600_v42 = vpack.c.bf16 %v7829_v38, %v7828_v37  ;;  %v7830_v43 = vld [vmem:[%s17628_s3 + $0xe0] sm:$0xff]  ;;  %v7831_v44 = vld [vmem:[%s17628_s3 + $0xe8] sm:$0xff] }
  0x10   :  { %11998 = vmatpush3.bf16.msra.mxu0 %v14530_v21  ;;  %17837 = vst [vmem:[#allocation18_spill] sm:$0xff] %v14580_v36  ;;  %v14610_v45 = vpack.c.bf16 %v56_v41, %v55_v40  ;;  %v14614_v46 = vpack.c.bf16 %v7831_v44, %v7830_v43  ;;  %v7832_v47 = vld [vmem:[%s17628_s3 + $0xf0] sm:$0xff]  ;;  %v7833_v48 = vld [vmem:[%s17628_s3 + $0xf8] sm:$0xff]  ;;  %v7835_v50 = vld [vmem:[%s17628_s3 + $0x100] sm:$0xff] }
  0x11   :  { %11999 = vmatprep.subr.bf16.mxu0 %v17635_v3  ;;  %17838 = vst [vmem:[#allocation19_spill] sm:$0xff] %v14590_v39  ;;  %17839 = vst [vmem:[#allocation20_spill] sm:$0xff] %v14600_v42  ;;  %v14630_v49 = vpack.c.bf16 %v7833_v48, %v7832_v47  ;;  %v7836_v51 = vld [vmem:[%s17628_s3 + $0x108] sm:$0xff]  ;;  %v7837_v52 = vld [vmem:[%s17628_s3 + $0x110] sm:$0xff] }
  0x12   :  { %12022 = vmatpush3.bf16.msra.mxu1 %v14560_v30  ;;  %17840 = vst [vmem:[#allocation21_spill] sm:$0xff] %v14610_v45  ;;  %17841 = vst [vmem:[#allocation22_spill] sm:$0xff] %v14614_v46  ;;  %v14643_v53 = vpack.c.bf16 %v7836_v51, %v7835_v50  ;;  %v7838_v54 = vld [vmem:[%s17628_s3 + $0x118] sm:$0xff]  ;;  %v7839_v56 = vld [vmem:[%s17628_s3 + $0x120] sm:$0xff] }
  0x13   :  { %12023 = vmatprep.subr.bf16.mxu1 %v17635_v3  ;;  %17842 = vst [vmem:[#allocation23_spill] sm:$0xff] %v14630_v49  ;;  %v14649_v55 = vpack.c.bf16 %v7838_v54, %v7837_v52  ;;  %v7840_v57 = vld [vmem:[%s17628_s3 + $0x128] sm:$0xff]  ;;  %v7841_v59 = vld [vmem:[%s17628_s3 + $0x130] sm:$0xff]  ;;  %v7842_v60 = vld [vmem:[%s17628_s3 + $0x138] sm:$0xff] }
  0x14   :  { %12001 = vmatpush3.bf16.msra.mxu0 %v14550_v27  ;;  %v14659_v58 = vpack.c.bf16 %v7840_v57, %v7839_v56  ;;  %v14669_v61 = vpack.c.bf16 %v7842_v60, %v7841_v59  ;;  %v7843_v62 = vld [vmem:[%s17628_s3 + $0x140] sm:$0xff]  ;;  %v7844_v63 = vld [vmem:[%s17628_s3 + $0x148] sm:$0xff]  ;;  %v7845_v1 = vld [vmem:[%s17628_s3 + $0x150] sm:$0xff] }
  0x15   :  { %12002 = vmatprep.subr.bf16.mxu0 %v17635_v3  ;;  %v14679_v0 = vpack.c.bf16 %v7844_v63, %v7843_v62  ;;  %v7846_v2 = vld [vmem:[%s17628_s3 + $0x158] sm:$0xff]  ;;  %v7847_v8 = vld [vmem:[%s17628_s3 + $0x160] sm:$0xff]  ;;  %v7848_v9 = vld [vmem:[%s17628_s3 + $0x168] sm:$0xff] }
  0x16   :  { %12025 = vmatpush3.bf16.msra.mxu1 %v14580_v36  ;;  %v14689_v5 = vpack.c.bf16 %v7846_v2, %v7845_v1  ;;  %v14699_v10 = vpack.c.bf16 %v7848_v9, %v7847_v8  ;;  %v33_v11 = vld [vmem:[%s17625_s0] sm:$0xff]  ;;  %v7853_v14 = vld [vmem:[%s17628_s3 + $0x188] sm:$0xff]  ;;  %v7854_v23 = vld [vmem:[%s17628_s3 + $0x190] sm:$0xff] }
  0x17   :  { %12026 = vmatprep.subr.bf16.mxu1 %v17635_v3  ;;  %v7852_v13 = vld [vmem:[%s17628_s3 + $0x180] sm:$0xff]  ;;  %v7855_v25 = vld [vmem:[%s17628_s3 + $0x198] sm:$0xff]  ;;  %v7857_v29 = vld [vmem:[%s17628_s3 + $0x1a8] sm:$0xff] }
  0x18   :  { %12004 = vmatpush3.bf16.msra.mxu0 %v14570_v33  ;;  %v14713_v20 = vpack.c.bf16 %v7853_v14, %v7852_v13  ;;  %v14722_v26 = vpack.c.bf16 %v7855_v25, %v7854_v23  ;;  %v7856_v28 = vld [vmem:[%s17628_s3 + $0x1a0] sm:$0xff]  ;;  %v7858_v32 = vld [vmem:[%s17628_s3 + $0x1b0] sm:$0xff]  ;;  %v7859_v34 = vld [vmem:[%s17628_s3 + $0x1b8] sm:$0xff] }
  0x19   :  { %12005 = vmatprep.subr.bf16.mxu0 %v17635_v3  ;;  %v14734_v31 = vpack.c.bf16 %v7857_v29, %v7856_v28  ;;  %v14744_v35 = vpack.c.bf16 %v7859_v34, %v7858_v32  ;;  %v7860_v37 = vld [vmem:[%s17628_s3 + $0x1c0] sm:$0xff]  ;;  %v7861_v38 = vld [vmem:[%s17628_s3 + $0x1c8] sm:$0xff]  ;;  %v7862_v41 = vld [vmem:[%s17628_s3 + $0x1d0] sm:$0xff] }
  0x1a   :  { %12028 = vmatpush3.bf16.msra.mxu1 %v14600_v42  ;;  %v14754_v40 = vpack.c.bf16 %v7861_v38, %v7860_v37  ;;  %v7863_v43 = vld [vmem:[%s17628_s3 + $0x1d8] sm:$0xff]  ;;  %v7864_v47 = vld [vmem:[%s17628_s3 + $0x1e0] sm:$0xff]  ;;  %v7865_v48 = vld [vmem:[%s17628_s3 + $0x1e8] sm:$0xff] }
  0x1b   :  { %12029 = vmatprep.subr.bf16.mxu1 %v17635_v3  ;;  %v14764_v44 = vpack.c.bf16 %v7863_v43, %v7862_v41  ;;  %v14774_v50 = vpack.c.bf16 %v7865_v48, %v7864_v47  ;;  %v7866_v51 = vld [vmem:[%s17628_s3 + $0x1f0] sm:$0xff]  ;;  %v7867_v52 = vld [vmem:[%s17628_s3 + $0x1f8] sm:$0xff]  ;;  %v39_v60 = vld [vmem:[%s17626_s1] sm:$0xff] }
  0x1c   :  { %12007 = vmatpush3.bf16.msra.mxu0 %v14590_v39  ;;  %v14784_v54 = vpack.c.bf16 %v7867_v52, %v7866_v51  ;;  %v7849_v56 = vld [vmem:[%s17628_s3 + $0x170] sm:$0xff]  ;;  %v7850_v57 = vld [vmem:[%s17628_s3 + $0x178] sm:$0xff]  ;;  %607 = vrot.lane.b32.xlu0 %v39_v60, %s14411_s15  ;;  %v7834_v62 = vld [vmem:[%s17629_s4] ss:$0 sm:$0xff] }
  0x1d   :  { %12008 = vmatprep.subr.bf16.mxu0 %v17635_v3  ;;  %v14798_v59 = vpack.c.bf16 %v7850_v57, %v7849_v56  ;;  %v7868_v63 = vld [vmem:[%s17628_s3 + $0x200] sm:$0xff]  ;;  %v7869_v1 = vld [vmem:[%s17628_s3 + $0x208] sm:$0xff]  ;;  %v7870_v14 = vld [vmem:[%s17628_s3 + $0x210] sm:$0xff] }
  0x1e   :  { %12031 = vmatpush3.bf16.msra.mxu1 %v14614_v46  ;;  %v7874_v25 = vld [vmem:[%s17628_s3 + $0x230] sm:$0xff]  ;;  %v7875_v28 = vld [vmem:[%s17628_s3 + $0x238] sm:$0xff]  ;;  %v7876_v32 = vld [vmem:[%s17628_s3 + $0x240] sm:$0xff] }
  0x1f   :  { %12032 = vmatprep.subr.bf16.mxu1 %v17635_v3  ;;  %v14846_v29 = vpack.c.bf16 %v7875_v28, %v7874_v25  ;;  %v7877_v34 = vld [vmem:[%s17628_s3 + $0x248] sm:$0xff]  ;;  %v7878_v38 = vld [vmem:[%s17628_s3 + $0x250] sm:$0xff]  ;;  %v7879_v41 = vld [vmem:[%s17628_s3 + $0x258] sm:$0xff] }
  0x20   :  { %12010 = vmatpush3.bf16.msra.mxu0 %v14610_v45  ;;  %v14856_v37 = vpack.c.bf16 %v7877_v34, %v7876_v32  ;;  %v14866_v43 = vpack.c.bf16 %v7879_v41, %v7878_v38  ;;  %v7880_v47 = vld [vmem:[%s17628_s3 + $0x260] sm:$0xff]  ;;  %v7881_v48 = vld [vmem:[%s17628_s3 + $0x268] sm:$0xff]  ;;  %v7882_v52 = vld [vmem:[%s17628_s3 + $0x270] sm:$0xff] }
  0x21   :  { %12035 = vmatprep.subr.bf16.mxu0 %v17635_v3  ;;  %v14876_v51 = vpack.c.bf16 %v7881_v48, %v7880_v47  ;;  %v7883_v56 = vld [vmem:[%s17628_s3 + $0x278] sm:$0xff]  ;;  %v34_v57 = vld [vmem:[%s17625_s0 + $0x8] sm:$0xff]  ;;  %v7891_v32 = vld [vmem:[%s17628_s3 + $0x2b0] sm:$0xff] }
  0x22   :  { %12034 = vmatpush3.bf16.msra.mxu1 %v14630_v49  ;;  %v14889_v60 = vpack.c.bf16 %v7883_v56, %v7882_v52  ;;  %v7890_v25 = vld [vmem:[%s17628_s3 + $0x2a8] sm:$0xff]  ;;  %v7892_v34 = vld [vmem:[%s17628_s3 + $0x2b8] sm:$0xff]  ;;  %v7893_v41 = vld [vmem:[%s17628_s3 + $0x2c0] sm:$0xff] }
  0x23   :  { %9358 = vmatmul.mubr.f32.vlgmr.msra.gmra.mrb[0].mxu0 %v17637_v6  ;;  %12059 = vmatprep.subr.bf16.mxu1 %v17635_v3  ;;  %v14931_v38 = vpack.c.bf16 %v7892_v34, %v7891_v32  ;;  %v7894_v47 = vld [vmem:[%s17628_s3 + $0x2c8] sm:$0xff]  ;;  %v7895_v52 = vld [vmem:[%s17628_s3 + $0x2d0] sm:$0xff]  ;;  %v7896_v56 = vld [vmem:[%s17628_s3 + $0x2d8] sm:$0xff] }
  0x24   :  { %9427 = vmatprep.mubr.msk.f32.mxu0 %vm14409_vm0, %v17637_v6  ;;  %12037 = vmatpush3.bf16.msra.mxu0 %v14643_v53  ;;  %v14941_v48 = vpack.c.bf16 %v7894_v47, %v7893_v41  ;;  %v619_v32 = vld [vmem:[%s17630_s5 + $0x60] sm:$0xff] }
  0x25   :  { %12038 = vmatprep.subr.bf16.mxu0 %v17635_v3  ;;  %v620_v41 = vld [vmem:[%s17630_s5 + $0x80] sm:$0xff] }
  0x26   :  { %v621_v47 = vld [vmem:[%s17630_s5 + $0xa0] sm:$0xff] }
  0x28   :  { %12040 = vmatpush3.bf16.msra.mxu0 %v14649_v55 }
  0x29   :  { %12041 = vmatprep.subr.bf16.mxu0 %v17635_v3 }
  0x2c   :  { %12043 = vmatpush3.bf16.msra.mxu0 %v14659_v58 }
  0x2d   :  { %12044 = vmatprep.subr.bf16.mxu0 %v17635_v3 }
  0x30   :  { %12046 = vmatpush3.bf16.msra.mxu0 %v14669_v61 }
  0x31   :  { %12047 = vmatprep.subr.bf16.mxu0 %v17635_v3 }
  0x34   :  { %12049 = vmatpush3.bf16.msra.mxu0 %v14679_v0 }
  0x35   :  { %12050 = vmatprep.subr.bf16.mxu0 %v17635_v3 }
  0x38   :  { %12052 = vmatpush3.bf16.msra.mxu0 %v14689_v5 }
  0x39   :  { %12053 = vmatprep.subr.bf16.mxu0 %v17635_v3 }
  0x3c   :  { %12055 = vmatpush3.bf16.msra.mxu0 %v14699_v10 }
  0x3d   :  { %12056 = vmatprep.subr.bf16.mxu0 %v17635_v3 }
  0x40   :  { %12058 = vmatpush3.bf16.msra.mxu0 %v14798_v59 }
  0x41   :  { %12083 = vmatprep.subr.bf16.mxu0 %v17635_v3 }
  0xf6   :  { %v123_v16 = vpop.f32.mrb[0].mxu0 }
  0xf7   :  { %v127_v17 = vadd.f32 %v123_v16, %v33_v11  ;;  %v9359_v19 = vpop.f32.mrb[1].mxu0  ;;  %v14815_v11 = vpack.c.bf16 %v7869_v1, %v7868_v63  ;;  %v7871_v16 = vld [vmem:[%s17628_s3 + $0x218] sm:$0xff] }
  0xf8   :  { %v7872_v19 = vld [vmem:[%s17628_s3 + $0x220] sm:$0xff] }
  0xf9   :  { %v128_v22 = vmax.f32 %v127_v17, 0.0  ;;  %v14824_v17 = vpack.c.bf16 %v7871_v16, %v7870_v14  ;;  %v7887_v14 = vld [vmem:[%s17628_s3 + $0x290] sm:$0xff]  ;;  %v7888_v16 = vld [vmem:[%s17628_s3 + $0x298] sm:$0xff] }
  0xfb   :  { %9393 = vmatmul.mubr.f32.vlgmr.msra.gmra.mrb[0].mxu1 %v128_v22  ;;  %v7873_v22 = vld [vmem:[%s17628_s3 + $0x228] sm:$0xff] }
  0xfc   :  { %12061 = vmatpush3.bf16.msra.mxu1 %v14713_v20  ;;  %9462 = vmatprep.mubr.msk.f32.mxu1 %vm14409_vm0, %v17637_v6  ;;  %v14836_v23 = vpack.c.bf16 %v7873_v22, %v7872_v19  ;;  %v14912_v19 = vpack.c.bf16 %v7888_v16, %v7887_v14  ;;  %v7889_v22 = vld [vmem:[%s17628_s3 + $0x2a0] sm:$0xff] }
  0xfd   :  { %12062 = vmatprep.subr.bf16.mxu1 %v17635_v3  ;;  %v14921_v28 = vpack.c.bf16 %v7890_v25, %v7889_v22  ;;  %v616_v14 = vld [vmem:[%s17630_s5] sm:$0xff] }
  0xfe   :  { %v617_v16 = vld [vmem:[%s17630_s5 + $0x20] sm:$0xff] }
  0xff   :  { %v618_v22 = vld [vmem:[%s17630_s5 + $0x40] sm:$0xff]  ;;  %v14985_v25 = vpack.c.bf16 %v617_v16, %v616_v14 }
 0x100   :  { %12064 = vmatpush3.bf16.msra.mxu1 %v14722_v26  ;;  %v14991_v34 = vpack.c.bf16 %v619_v32, %v618_v22 }
 0x101   :  { %12065 = vmatprep.subr.bf16.mxu1 %v17635_v3  ;;  %17843 = vst [vmem:[#allocation24_spill] sm:$0xff] %v14985_v25 }
 0x102   :  { %17844 = vst [vmem:[#allocation25_spill] sm:$0xff] %v14991_v34 }
 0x104   :  { %12067 = vmatpush3.bf16.msra.mxu1 %v14734_v31 }
 0x105   :  { %12068 = vmatprep.subr.bf16.mxu1 %v17635_v3 }
 0x108   :  { %12070 = vmatpush3.bf16.msra.mxu1 %v14744_v35 }
 0x109   :  { %12071 = vmatprep.subr.bf16.mxu1 %v17635_v3 }
 0x10c   :  { %12073 = vmatpush3.bf16.msra.mxu1 %v14754_v40 }
 0x10d   :  { %12074 = vmatprep.subr.bf16.mxu1 %v17635_v3 }
 0x110   :  { %12076 = vmatpush3.bf16.msra.mxu1 %v14764_v44 }
 0x111   :  { %12077 = vmatprep.subr.bf16.mxu1 %v17635_v3 }
 0x114   :  { %12079 = vmatpush3.bf16.msra.mxu1 %v14774_v50 }
 0x115   :  { %12080 = vmatprep.subr.bf16.mxu1 %v17635_v3 }
 0x118   :  { %12082 = vmatpush3.bf16.msra.mxu1 %v14784_v54 }
 0x119   :  { %12107 = vmatprep.subr.bf16.mxu1 %v17635_v3 }
 0x11b   :  { %9463 = vmatmul.mubr.f32.vlgmr.msra.gmra.mrb[2].mxu1 %v17637_v6 }
 0x11c   :  { %9532 = vmatprep.mubr.msk.f32.mxu1 %vm14409_vm0, %v17637_v6 }
 0x1ce   :  { %v217_v2 = vpop.f32.mrb[0].mxu1 }
 0x1cf   :  { %v218_v8 = vadd.f32 %v7834_v62, %v217_v2  ;;  %v9394_v9 = vpop.f32.mrb[1].mxu1 }
 0x1d0   :  { %v7886_v9 = vld [vmem:[%s17628_s3 + $0x288] sm:$0xff] }
 0x1d1   :  { %v221_v13 = vmax.f32 %v218_v8, 0.0  ;;  %v7885_v8 = vld [vmem:[%s17628_s3 + $0x280] sm:$0xff] }
 0x1d3   :  { %9428 = vmatmul.mubr.f32.vlgmr.msra.gmra.mrb[2].mxu0 %v221_v13  ;;  %v14902_v13 = vpack.c.bf16 %v7886_v9, %v7885_v8  ;;  %v7900_v8 = vld [vmem:[%s17628_s3 + $0x2f8] sm:$0xff] }
 0x1d4   :  { %12085 = vmatpush3.bf16.msra.mxu0 %v14815_v11  ;;  %9497 = vmatprep.mubr.msk.f32.mxu0 %vm14409_vm0, %v17637_v6 }
 0x1d5   :  { %12086 = vmatprep.subr.bf16.mxu0 %v17635_v3  ;;  %12109 = vmatpush3.bf16.msra.mxu1 %v14902_v13 }
 0x1d6   :  { %12110 = vmatprep.subr.bf16.mxu1 %v17635_v3 }
 0x1d8   :  { %12088 = vmatpush3.bf16.msra.mxu0 %v14824_v17 }
 0x1d9   :  { %12089 = vmatprep.subr.bf16.mxu0 %v17635_v3  ;;  %12112 = vmatpush3.bf16.msra.mxu1 %v14912_v19 }
 0x1da   :  { %12113 = vmatprep.subr.bf16.mxu1 %v17635_v3 }
 0x1dc   :  { %12091 = vmatpush3.bf16.msra.mxu0 %v14836_v23 }
 0x1dd   :  { %12092 = vmatprep.subr.bf16.mxu0 %v17635_v3  ;;  %12115 = vmatpush3.bf16.msra.mxu1 %v14921_v28 }
 0x1de   :  { %12116 = vmatprep.subr.bf16.mxu1 %v17635_v3 }
 0x1e0   :  { %12094 = vmatpush3.bf16.msra.mxu0 %v14846_v29 }
 0x1e1   :  { %12095 = vmatprep.subr.bf16.mxu0 %v17635_v3  ;;  %12118 = vmatpush3.bf16.msra.mxu1 %v14931_v38 }
 0x1e2   :  { %12119 = vmatprep.subr.bf16.mxu1 %v17635_v3 }
 0x1e4   :  { %12097 = vmatpush3.bf16.msra.mxu0 %v14856_v37 }
 0x1e5   :  { %12098 = vmatprep.subr.bf16.mxu0 %v17635_v3  ;;  %12121 = vmatpush3.bf16.msra.mxu1 %v14941_v48 }
 0x1e6   :  { %12122 = vmatprep.subr.bf16.mxu1 %v17635_v3 }
 0x1e8   :  { %12100 = vmatpush3.bf16.msra.mxu0 %v14866_v43 }
 0x1e9   :  { %12101 = vmatprep.subr.bf16.mxu0 %v17635_v3 }
 0x1ec   :  { %12103 = vmatpush3.bf16.msra.mxu0 %v14876_v51 }
 0x1ed   :  { %12104 = vmatprep.subr.bf16.mxu0 %v17635_v3 }
 0x1ee   :  { %v406_v62 = vpop.f32.mrb[2].mxu1 }
 0x1ef   :  { %v410_v63 = vadd.f32 %v406_v62, %v34_v57  ;;  %v9464_v1 = vpop.f32.mrb[3].mxu1  ;;  %v14951_v57 = vpack.c.bf16 %v7896_v56, %v7895_v52  ;;  %v7897_v62 = vld [vmem:[%s17628_s3 + $0x2e0] sm:$0xff]  ;;  %v15001_v52 = vpack.c.bf16 %v621_v47, %v620_v41 }
 0x1f0   :  { %12106 = vmatpush3.bf16.msra.mxu0 %v14889_v60  ;;  %v622_v56 = vld [vmem:[%s17630_s5 + $0xc0] sm:$0xff] }
 0x1f1   :  { %v411_v2 = vmax.f32 %v410_v63, 0.0  ;;  %12131 = vmatprep.subr.bf16.mxu0 %v17635_v3  ;;  %v7898_v63 = vld [vmem:[%s17628_s3 + $0x2e8] sm:$0xff]  ;;  %12124 = vmatpush3.bf16.msra.mxu1 %v14951_v57  ;;  %17845 = vst [vmem:[#allocation26_spill] sm:$0xff] %v15001_v52 }
 0x1f2   :  { %v14961_v1 = vpack.c.bf16 %v7898_v63, %v7897_v62  ;;  %12125 = vmatprep.subr.bf16.mxu1 %v17635_v3  ;;  %v623_v62 = vld [vmem:[%s17630_s5 + $0xe0] sm:$0xff] }
 0x1f3   :  { %9498 = vmatmul.mubr.f32.vlgmr.msra.gmra.mrb[4].mxu0 %v411_v2  ;;  %v7899_v2 = vld [vmem:[%s17628_s3 + $0x2f0] sm:$0xff]  ;;  %v15011_v63 = vpack.c.bf16 %v623_v62, %v622_v56  ;;  %v7884_v62 = vld [vmem:[%s17629_s4 + $0x2] ss:$0 sm:$0xff] }
 0x1f4   :  { %9551 = vmatprep.mubr.msk.f32.mxu0 %vm14409_vm0, %v17637_v6  ;;  %v14972_v9 = vpack.c.bf16 %v7900_v8, %v7899_v2  ;;  %12133 = vmatpush3.bf16.msra.mxu0 %v14985_v25  ;;  %v7851_v2 = vld [vmem:[%s17629_s4 + $0x1] ss:$0 sm:$0xff] }
 0x1f5   :  { %12127 = vmatpush3.bf16.msra.mxu1 %v14961_v1  ;;  %12134 = vmatprep.subr.bf16.mxu0 %v17635_v3  ;;  %17846 = vst [vmem:[#allocation27_spill] sm:$0xff] %v15011_v63 }
 0x1f6   :  { %12128 = vmatprep.subr.bf16.mxu1 %v17635_v3 }
 0x1f8   :  { %12136 = vmatpush3.bf16.msra.mxu0 %v14991_v34 }
 0x1f9   :  { %12130 = vmatpush3.bf16.msra.mxu1 %v14972_v9  ;;  %12137 = vmatprep.subr.bf16.mxu0 %v17635_v3 }
 0x1fa   :  { %12167 = vmatprep.subr.bf16.mxu1 %v17635_v3 }
 0x1fc   :  { %12139 = vmatpush3.bf16.msra.mxu0 %v15001_v52 }
 0x1fd   :  { %12140 = vmatprep.subr.bf16.mxu0 %v17635_v3 }
 0x200   :  { %12142 = vmatpush3.bf16.msra.mxu0 %v15011_v63 }
 0x201   :  { %12143 = vmatprep.subr.bf16.mxu0 %v17635_v3 }
 0x2a6   :  { %v310_v8 = vpop.f32.mrb[2].mxu0 }
 0x2a7   :  { %v15019_v14 = vadd.f32 %v7851_v2, %v310_v8  ;;  %v9429_v16 = vpop.f32.mrb[3].mxu0 }
 0x2a8   :  { %v608_v16 = vpop.permute.xlu0 %607 }
 0x2a9   :  { %v315_v22 = vand.u32 2147483647, %v15019_v14  ;;  %v314_v52 = vmax.f32 %v15019_v14, 0.0 }
 0x2ab   :  { %v316_v32 = vsub.f32 0.0, %v315_v22 }
 0x2ad   :  { %v317_v41 = vmul.f32 1.442695, %v316_v32  ;;  %v17847_v32 = vmov 0.0  }
 0x2af   :  { %14155 = vpow2.f32 %v317_v41  ;;  %v7903_v41 = vld [vmem:[%s17628_s3 + $0x300] sm:$0xff] }
 0x2b9   :  { %v14156_v47 = vpop.eup %14155 }
 0x2ba   :  { %v319_v56 = vadd.f32 1.0, %v14156_v47  ;;  %v7904_v47 = vld [vmem:[%s17628_s3 + $0x308] sm:$0xff] }
 0x2bc   :  { %14157 = vlog2.f32 %v319_v56 }
 0x2c6   :  { %v14158_v3 = vpop.eup %14157  ;;  %v500_v6 = vpop.f32.mrb[4].mxu0 }
 0x2c7   :  { %v501_v63 = vadd.f32 %v7884_v62, %v500_v6  ;;  %v321_v2 = vmul.f32 0.6931472, %v14158_v3  ;;  %v9499_v8 = vpop.f32.mrb[5].mxu0  ;;  %v7978_v6 = vld [vmem:[%s17626_s1 + $0x10] sm:$0xff]  ;;  %v7992_v3 = vld [vmem:[%s17626_s1 + $0x18] sm:$0xff]  ;;  %v15058_v62 = vpack.c.bf16 %v7904_v47, %v7903_v41 }
 0x2c8   :  { %v7905_v8 = vld [vmem:[%s17628_s3 + $0x310] sm:$0xff]  ;;  %v7910_v41 = vld [vmem:[%s17628_s3 + $0x338] sm:$0xff] }
 0x2c9   :  { %v504_v34 = vmax.f32 %v501_v63, 0.0  ;;  %v15026_v25 = vadd.f32 %v321_v2, %v314_v52  ;;  %v8020_v52 = vld [vmem:[%s17626_s1 + $0x28] sm:$0xff]  ;;  %v8031_v63 = vld [vmem:[%s17626_s1 + $0x30] sm:$0xff]  ;;  %17848 = vst [vmem:[#allocation28_spill] sm:$0xff] %v15058_v62 }
 0x2cb   :  { %v610_v22 = vmul.f32 %v608_v16, %v15026_v25  ;;  %9533 = vmatmul.mubr.f32.vlgmr.msra.gmra.mrb[4].mxu1 %v504_v34  ;;  %v8006_v34 = vld [vmem:[%s17626_s1 + $0x20] sm:$0xff]  ;;  %v7906_v16 = vld [vmem:[%s17628_s3 + $0x318] sm:$0xff] }
 0x2cc   :  { %9621 = vmatprep.mubr.msk.f32.mxu1 %vm14409_vm0, %v17847_v32 }
 0x2cd   :  { %612 = vrot.lane.b32.xlu0 %v610_v22, %s14411_s15  ;;  %v15072_v22 = vpack.c.bf16 %v7906_v16, %v7905_v8  ;;  %v7912_v8 = vld [vmem:[%s17628_s3 + $0x348] sm:$0xff] }
 0x2cf   :  { %17849 = vst [vmem:[#allocation29_spill] sm:$0xff] %v15072_v22 }
 0x2d1   :  { %2984 = vrot.lane.b32.xlu0 %v7978_v6, %s14411_s15  ;;  %v17850_v6 = vmov 0.0|0.0  }
 0x2d5   :  { %4093 = vrot.lane.b32.xlu0 %v7992_v3, %s14411_s15  ;;  %v7907_v3 = vld [vmem:[%s17628_s3 + $0x320] sm:$0xff] }
 0x2d9   :  { %5202 = vrot.lane.b32.xlu0 %v8006_v34, %s14411_s15  ;;  %v7908_v34 = vld [vmem:[%s17628_s3 + $0x328] sm:$0xff] }
 0x2dd   :  { %6311 = vrot.lane.b32.xlu0 %v8020_v52, %s14411_s15  ;;  %v15084_v52 = vpack.c.bf16 %v7908_v34, %v7907_v3  ;;  %v7913_v3 = vld [vmem:[%s17628_s3 + $0x350] sm:$0xff]  ;;  %v7914_v34 = vld [vmem:[%s17628_s3 + $0x358] sm:$0xff] }
 0x2df   :  { %17851 = vst [vmem:[#allocation30_spill] sm:$0xff] %v15084_v52 }
 0x2e1   :  { %7417 = vrot.lane.b32.xlu0 %v8031_v63, %s14411_s15  ;;  %v7909_v63 = vld [vmem:[%s17628_s3 + $0x330] sm:$0xff] }
 0x2e2   :  { %v15094_v47 = vpack.c.bf16 %v7910_v41, %v7909_v63  ;;  %v15114_v63 = vpack.c.bf16 %v7914_v34, %v7913_v3  ;;  %v7915_v41 = vld [vmem:[%s17628_s3 + $0x360] sm:$0xff]  ;;  %v7917_v3 = vld [vmem:[%s17628_s3 + $0x370] sm:$0xff]  ;;  %v7918_v34 = vld [vmem:[%s17628_s3 + $0x378] sm:$0xff] }
 0x2e4   :  { %17852 = vst [vmem:[#allocation31_spill] sm:$0xff] %v15094_v47  ;;  %17854 = vst [vmem:[#allocation33_spill] sm:$0xff] %v15114_v63 }
 0x33f   :  { %v613_v56 = vpop.permute.xlu0 %612 }
 0x340   :  { %v15061_v2 = vadd.f32 %v613_v56, %v15019_v14  ;;  %v7911_v56 = vld [vmem:[%s17628_s3 + $0x340] sm:$0xff] }
 0x341   :  { %v15104_v16 = vpack.c.bf16 %v7912_v8, %v7911_v56  ;;  %v7916_v56 = vld [vmem:[%s17628_s3 + $0x368] sm:$0xff] }
 0x342   :  { %9552 = vmatmul.mubr.msk.f32.vlgmr.msra.gmra.mrb[6].mxu0 %vm624_vm1, %v15061_v2  ;;  %v15124_v8 = vpack.c.bf16 %v7916_v56, %v7915_v41  ;;  %v15140_v41 = vpack.c.bf16 %v7918_v34, %v7917_v3  ;;  %v992_v3 = vld [vmem:[%s17630_s5 + $0x70] sm:$0xff]  ;;  %v988_v34 = vld [vmem:[%s17630_s5 + $0x48] sm:$0xff] }
 0x343   :  { %12145 = vmatpush3.bf16.msra.mxu0 %v15058_v62  ;;  %9586 = vmatprep.mubr.msk.f32.mxu0 %vm14409_vm0, %v17847_v32  ;;  %17853 = vst [vmem:[#allocation32_spill] sm:$0xff] %v15104_v16  ;;  %v995_v62 = vld [vmem:[%s17630_s5 + $0x90] sm:$0xff] }
 0x344   :  { %12146 = vmatprep.subr.bf16.mxu0 %v17850_v6  ;;  %17855 = vst [vmem:[#allocation34_spill] sm:$0xff] %v15124_v8  ;;  %17856 = vst [vmem:[#allocation35_spill] sm:$0xff] %v15140_v41 }
 0x347   :  { %12148 = vmatpush3.bf16.msra.mxu0 %v15072_v22  ;;  %v989_v22 = vld [vmem:[%s17630_s5 + $0x50] sm:$0xff] }
 0x348   :  { %12149 = vmatprep.subr.bf16.mxu0 %v17850_v6 }
 0x34b   :  { %12151 = vmatpush3.bf16.msra.mxu0 %v15084_v52  ;;  %v985_v52 = vld [vmem:[%s17630_s5 + $0x28] sm:$0xff] }
 0x34c   :  { %12152 = vmatprep.subr.bf16.mxu0 %v17850_v6 }
 0x34f   :  { %12154 = vmatpush3.bf16.msra.mxu0 %v15094_v47  ;;  %v982_v47 = vld [vmem:[%s17630_s5 + $0x8] sm:$0xff] }
 0x350   :  { %12155 = vmatprep.subr.bf16.mxu0 %v17850_v6 }
 0x353   :  { %12157 = vmatpush3.bf16.msra.mxu0 %v15104_v16  ;;  %v983_v16 = vld [vmem:[%s17630_s5 + $0x10] sm:$0xff] }
 0x354   :  { %12158 = vmatprep.subr.bf16.mxu0 %v17850_v6 }
 0x357   :  { %12160 = vmatpush3.bf16.msra.mxu0 %v15114_v63  ;;  %v986_v63 = vld [vmem:[%s17630_s5 + $0x30] sm:$0xff] }
 0x358   :  { %12161 = vmatprep.subr.bf16.mxu0 %v17850_v6  ;;  %v15143_v56 = vpack.c.bf16 %v986_v63, %v983_v16  ;;  %v15158_v16 = vpack.c.bf16 %v985_v52, %v982_v47  ;;  %v15161_v63 = vpack.c.bf16 %v992_v3, %v989_v22  ;;  %v998_v52 = vld [vmem:[%s17630_s5 + $0xb0] sm:$0xff]  ;;  %v994_v3 = vld [vmem:[%s17630_s5 + $0x88] sm:$0xff] }
 0x359   :  { %v15181_v47 = vpack.c.bf16 %v998_v52, %v995_v62  ;;  %v1000_v52 = vld [vmem:[%s17630_s5 + $0xc8] sm:$0xff] }
 0x35a   :  { %17857 = vst [vmem:[#allocation36_spill] sm:$0xff] %v15143_v56  ;;  %17858 = vst [vmem:[#allocation37_spill] sm:$0xff] %v15158_v16 }
 0x35b   :  { %12163 = vmatpush3.bf16.msra.mxu0 %v15124_v8  ;;  %17859 = vst [vmem:[#allocation38_spill] sm:$0xff] %v15161_v63  ;;  %v991_v8 = vld [vmem:[%s17630_s5 + $0x68] sm:$0xff]  ;;  %17861 = vst [vmem:[#allocation40_spill] sm:$0xff] %v15181_v47 }
 0x35c   :  { %12164 = vmatprep.subr.bf16.mxu0 %v17850_v6  ;;  %v15177_v22 = vpack.c.bf16 %v991_v8, %v988_v34  ;;  %v1004_v8 = vld [vmem:[%s17630_s5 + $0xf0] sm:$0xff] }
 0x35e   :  { %17860 = vst [vmem:[#allocation39_spill] sm:$0xff] %v15177_v22 }
 0x35f   :  { %12166 = vmatpush3.bf16.msra.mxu0 %v15140_v41 }
 0x360   :  { %12216 = vmatprep.subr.bf16.mxu0 %v15143_v56  ;;  %v997_v56 = vld [vmem:[%s17630_s5 + $0xa8] sm:$0xff] }
 0x361   :  { %v15196_v62 = vpack.c.bf16 %v997_v56, %v994_v3  ;;  %v984_v56 = vld [vmem:[%s17630_s5 + $0x18] sm:$0xff] }
 0x362   :  { %9587 = vmatmul.mubr.f32.vlgmr.msra.gmra.mrb[6].mxu0 %v17847_v32 }
 0x363   :  { %12218 = vmatpush1.bf16.msra.mxu0 %v15158_v16  ;;  %1070 = vmatprep.mubr.f32.mxu0 %v17847_v32  ;;  %v1001_v16 = vld [vmem:[%s17630_s5 + $0xd0] sm:$0xff]  ;;  %17862 = vst [vmem:[#allocation41_spill] sm:$0xff] %v15196_v62 }
 0x364   :  { %12220 = vmatprep.subr.bf16.mxu0 %v15161_v63  ;;  %v15199_v34 = vpack.c.bf16 %v1004_v8, %v1001_v16  ;;  %v1003_v63 = vld [vmem:[%s17630_s5 + $0xe8] sm:$0xff]  ;;  %v987_v16 = vld [vmem:[%s17630_s5 + $0x38] sm:$0xff] }
 0x365   :  { %v15208_v41 = vpack.c.bf16 %v1003_v63, %v1000_v52  ;;  %v15218_v3 = vpack.c.bf16 %v987_v16, %v984_v56  ;;  %v990_v63 = vld [vmem:[%s17630_s5 + $0x58] sm:$0xff] }
 0x366   :  { %17863 = vst [vmem:[#allocation42_spill] sm:$0xff] %v15199_v34  ;;  %v993_v8 = vld [vmem:[%s17630_s5 + $0x78] sm:$0xff] }
 0x367   :  { %12222 = vmatpush1.bf16.msra.mxu0 %v15177_v22  ;;  %17864 = vst [vmem:[#allocation43_spill] sm:$0xff] %v15208_v41  ;;  %17865 = vst [vmem:[#allocation44_spill] sm:$0xff] %v15218_v3  ;;  %v15230_v52 = vpack.c.bf16 %v993_v8, %v990_v63  ;;  %v996_v56 = vld [vmem:[%s17630_s5 + $0x98] sm:$0xff]  ;;  %v1163_v22 = vld [vmem:[%s17631_s6 + $0x68] sm:$0xff] }
 0x368   :  { %12224 = vmatprep.subr.bf16.mxu0 %v15181_v47  ;;  %v999_v16 = vld [vmem:[%s17630_s5 + $0xb8] sm:$0xff] }
 0x369   :  { %17866 = vst [vmem:[#allocation45_spill] sm:$0xff] %v15230_v52  ;;  %v1002_v63 = vld [vmem:[%s17630_s5 + $0xd8] sm:$0xff] }
 0x36a   :  { %v1005_v8 = vld [vmem:[%s17630_s5 + $0xf8] sm:$0xff] }
 0x36b   :  { %12226 = vmatpush1.bf16.msra.mxu0 %v15196_v62  ;;  %v1153_v62 = vld [vmem:[%s17631_s6 + $0x18] sm:$0xff] }
 0x36c   :  { %12228 = vmatprep.subr.bf16.mxu0 %v15199_v34  ;;  %v1150_v34 = vld [vmem:[%s17631_s6] sm:$0xff]  ;;  %v1157_v47 = vld [vmem:[%s17631_s6 + $0x38] sm:$0xff] }
 0x36f   :  { %12230 = vmatpush1.bf16.msra.mxu0 %v15208_v41  ;;  %v15242_v41 = vpack.c.bf16 %v999_v16, %v996_v56  ;;  %v15258_v56 = vpack.c.bf16 %v1005_v8, %v1002_v63  ;;  %v1160_v63 = vld [vmem:[%s17631_s6 + $0x50] sm:$0xff] }
 0x370   :  { %12231 = vmatprep.subr.bf16.mxu0 %v17850_v6  ;;  %v1156_v8 = vld [vmem:[%s17631_s6 + $0x30] sm:$0xff] }
 0x371   :  { %17867 = vst [vmem:[#allocation46_spill] sm:$0xff] %v15242_v41  ;;  %17868 = vst [vmem:[#allocation47_spill] sm:$0xff] %v15258_v56 }
 0x372   :  { %7953 = vmatmul.mubr.msk.f32.vlgmr.msra.gmra.mrb[8].mxu0 %vm624_vm1, %v15061_v2 }
 0x373   :  { %12233 = vmatpush3.bf16.msra.mxu0 %v15218_v3  ;;  %9675 = vmatprep.mubr.msk.f32.mxu0 %vm14409_vm0, %v17847_v32  ;;  %v1151_v3 = vld [vmem:[%s17631_s6 + $0x8] sm:$0xff] }
 0x374   :  { %12234 = vmatprep.subr.bf16.mxu0 %v17850_v6 }
 0x377   :  { %12236 = vmatpush3.bf16.msra.mxu0 %v15230_v52  ;;  %v1154_v52 = vld [vmem:[%s17631_s6 + $0x20] sm:$0xff] }
 0x378   :  { %12237 = vmatprep.subr.bf16.mxu0 %v17850_v6  ;;  %v15261_v16 = vpack.c.bf16 %v1154_v52, %v1151_v3  ;;  %v15276_v3 = vpack.c.bf16 %v1153_v62, %v1150_v34  ;;  %v15279_v52 = vpack.c.bf16 %v1160_v63, %v1157_v47  ;;  %v1166_v62 = vld [vmem:[%s17631_s6 + $0x80] sm:$0xff] }
 0x379   :  { %v15300_v34 = vpack.c.bf16 %v1166_v62, %v1163_v22  ;;  %v1162_v63 = vld [vmem:[%s17631_s6 + $0x60] sm:$0xff]  ;;  %v1168_v62 = vld [vmem:[%s17631_s6 + $0x90] sm:$0xff] }
 0x37a   :  { %17869 = vst [vmem:[#allocation48_spill] sm:$0xff] %v15261_v16  ;;  %17870 = vst [vmem:[#allocation49_spill] sm:$0xff] %v15276_v3 }
 0x37b   :  { %12239 = vmatpush3.bf16.msra.mxu0 %v15242_v41  ;;  %17871 = vst [vmem:[#allocation50_spill] sm:$0xff] %v15279_v52  ;;  %v1159_v41 = vld [vmem:[%s17631_s6 + $0x48] sm:$0xff]  ;;  %17873 = vst [vmem:[#allocation52_spill] sm:$0xff] %v15300_v34 }
 0x37c   :  { %12240 = vmatprep.subr.bf16.mxu0 %v17850_v6  ;;  %v15296_v47 = vpack.c.bf16 %v1159_v41, %v1156_v8  ;;  %v1172_v41 = vld [vmem:[%s17631_s6 + $0xb0] sm:$0xff] }
 0x37e   :  { %17872 = vst [vmem:[#allocation51_spill] sm:$0xff] %v15296_v47 }
 0x37f   :  { %12242 = vmatpush3.bf16.msra.mxu0 %v15258_v56 }
 0x380   :  { %12244 = vmatprep.subr.bf16.mxu0 %v15261_v16  ;;  %v1165_v16 = vld [vmem:[%s17631_s6 + $0x78] sm:$0xff] }
 0x381   :  { %v15315_v22 = vpack.c.bf16 %v1165_v16, %v1162_v63  ;;  %v1178_v16 = vld [vmem:[%s17631_s6 + $0xe0] sm:$0xff] }
 0x382   :  { %9676 = vmatmul.mubr.msk.f32.vlgmr.msra.gmra.mrb[10].mxu0 %vm624_vm1, %v15061_v2  ;;  %v1169_v2 = vld [vmem:[%s17631_s6 + $0x98] sm:$0xff] }
 0x383   :  { %12246 = vmatpush1.bf16.msra.mxu0 %v15276_v3  ;;  %1279 = vmatprep.mubr.f32.mxu0 %v17847_v32  ;;  %17874 = vst [vmem:[#allocation53_spill] sm:$0xff] %v15315_v22  ;;  %v15318_v8 = vpack.c.bf16 %v1172_v41, %v1169_v2  ;;  %v1175_v3 = vld [vmem:[%s17631_s6 + $0xc8] sm:$0xff]  ;;  %v1174_v41 = vld [vmem:[%s17631_s6 + $0xc0] sm:$0xff] }
 0x384   :  { %12248 = vmatprep.subr.bf16.mxu0 %v15279_v52  ;;  %v1171_v52 = vld [vmem:[%s17631_s6 + $0xa8] sm:$0xff]  ;;  %v15336_v2 = vpack.c.bf16 %v1178_v16, %v1175_v3  ;;  %v1180_v16 = vld [vmem:[%s17631_s6 + $0xf0] sm:$0xff] }
 0x385   :  { %17875 = vst [vmem:[#allocation54_spill] sm:$0xff] %v15318_v8  ;;  %v15333_v63 = vpack.c.bf16 %v1171_v52, %v1168_v62  ;;  %v1184_v52 = vld [vmem:[%s17631_s6 + $0x110] sm:$0xff] }
 0x386   :  { %17877 = vst [vmem:[#allocation56_spill] sm:$0xff] %v15336_v2 }
 0x387   :  { %12250 = vmatpush1.bf16.msra.mxu0 %v15296_v47  ;;  %17876 = vst [vmem:[#allocation55_spill] sm:$0xff] %v15333_v63  ;;  %v1181_v47 = vld [vmem:[%s17631_s6 + $0xf8] sm:$0xff] }
 0x388   :  { %12252 = vmatprep.subr.bf16.mxu0 %v15300_v34  ;;  %v1177_v34 = vld [vmem:[%s17631_s6 + $0xd8] sm:$0xff]  ;;  %v15354_v62 = vpack.c.bf16 %v1184_v52, %v1181_v47  ;;  %v1186_v52 = vld [vmem:[%s17631_s6 + $0x120] sm:$0xff] }
 0x389   :  { %v15351_v3 = vpack.c.bf16 %v1177_v34, %v1174_v41  ;;  %v1190_v34 = vld [vmem:[%s17631_s6 + $0x140] sm:$0xff] }
 0x38a   :  { %17879 = vst [vmem:[#allocation58_spill] sm:$0xff] %v15354_v62 }
 0x38b   :  { %12254 = vmatpush1.bf16.msra.mxu0 %v15315_v22  ;;  %17878 = vst [vmem:[#allocation57_spill] sm:$0xff] %v15351_v3  ;;  %v1187_v22 = vld [vmem:[%s17631_s6 + $0x128] sm:$0xff] }
 0x38c   :  { %12256 = vmatprep.subr.bf16.mxu0 %v15318_v8  ;;  %v1183_v8 = vld [vmem:[%s17631_s6 + $0x108] sm:$0xff]  ;;  %v15372_v41 = vpack.c.bf16 %v1190_v34, %v1187_v22 }
 0x38d   :  { %v15369_v47 = vpack.c.bf16 %v1183_v8, %v1180_v16  ;;  %v1196_v8 = vld [vmem:[%s17631_s6 + $0x170] sm:$0xff] }
 0x38e   :  { %17881 = vst [vmem:[#allocation60_spill] sm:$0xff] %v15372_v41  ;;  %v1192_v16 = vld [vmem:[%s17631_s6 + $0x150] sm:$0xff] }
 0x38f   :  { %12258 = vmatpush1.bf16.msra.mxu0 %v15333_v63  ;;  %17880 = vst [vmem:[#allocation59_spill] sm:$0xff] %v15369_v47  ;;  %v1193_v63 = vld [vmem:[%s17631_s6 + $0x158] sm:$0xff] }
 0x390   :  { %12260 = vmatprep.subr.bf16.mxu0 %v15336_v2  ;;  %v1189_v2 = vld [vmem:[%s17631_s6 + $0x138] sm:$0xff]  ;;  %v15393_v34 = vpack.c.bf16 %v1196_v8, %v1193_v63  ;;  %v15413_v63 = vld [vmem:[%s17629_s4 + $0x3] ss:$0 sm:$0xff] }
 0x391   :  { %v15387_v22 = vpack.c.bf16 %v1189_v2, %v1186_v52  ;;  %v7920_v2 = vld [vmem:[%s17628_s3 + $0x388] sm:$0xff]  ;;  %17885 = vst [vmem:[#allocation64_spill] sm:$0xff] %v15413_v63 }
 0x392   :  { %17883 = vst [vmem:[#allocation62_spill] sm:$0xff] %v15393_v34 }
 0x393   :  { %12262 = vmatpush1.bf16.msra.mxu0 %v15351_v3  ;;  %17882 = vst [vmem:[#allocation61_spill] sm:$0xff] %v15387_v22  ;;  %v7919_v3 = vld [vmem:[%s17628_s3 + $0x380] sm:$0xff] }
 0x394   :  { %12264 = vmatprep.subr.bf16.mxu0 %v15354_v62  ;;  %v1195_v62 = vld [vmem:[%s17631_s6 + $0x168] sm:$0xff]  ;;  %v15404_v52 = vpack.c.bf16 %v7920_v2, %v7919_v3  ;;  %v7921_v3 = vld [vmem:[%s17628_s3 + $0x390] sm:$0xff] }
 0x396   :  { %12169 = vmatpush3.bf16.msra.mxu1 %v15404_v52 }
 0x397   :  { %12266 = vmatpush1.bf16.msra.mxu0 %v15369_v47  ;;  %v15407_v47 = vpack.c.bf16 %v1195_v62, %v1192_v16  ;;  %12170 = vmatprep.subr.bf16.mxu1 %v17850_v6  ;;  %v7922_v62 = vld [vmem:[%s17628_s3 + $0x398] sm:$0xff] }
 0x398   :  { %12268 = vmatprep.subr.bf16.mxu0 %v15372_v41  ;;  %v15423_v8 = vpack.c.bf16 %v7922_v62, %v7921_v3  ;;  %v7924_v3 = vld [vmem:[%s17628_s3 + $0x3a8] sm:$0xff]  ;;  %v7925_v62 = vld [vmem:[%s17628_s3 + $0x3b0] sm:$0xff] }
 0x399   :  { %17884 = vst [vmem:[#allocation63_spill] sm:$0xff] %v15407_v47 }
 0x39a   :  { %17886 = vst [vmem:[#allocation65_spill] sm:$0xff] %v15423_v8  ;;  %12172 = vmatpush3.bf16.msra.mxu1 %v15423_v8 }
 0x39b   :  { %12270 = vmatpush1.bf16.msra.mxu0 %v15387_v22  ;;  %12173 = vmatprep.subr.bf16.mxu1 %v17850_v6  ;;  %v7923_v22 = vld [vmem:[%s17628_s3 + $0x3a0] sm:$0xff] }
 0x39c   :  { %12272 = vmatprep.subr.bf16.mxu0 %v15393_v34 }
 0x39e   :  { %v593_v16 = vpop.f32.mrb[4].mxu1 }
 0x39f   :  { %v15426_v2 = vadd.f32 %v15413_v63, %v593_v16  ;;  %12274 = vmatpush1.bf16.msra.mxu0 %v15407_v47  ;;  %v9534_v34 = vpop.f32.mrb[5].mxu1  ;;  %v15444_v47 = vpack.c.bf16 %v7924_v3, %v7923_v22  ;;  %v7926_v63 = vld [vmem:[%s17628_s3 + $0x3b8] sm:$0xff]  ;;  %v7928_v22 = vld [vmem:[%s17628_s3 + $0x3c8] sm:$0xff] }
 0x3a0   :  { %12323 = vmatprep.subr.bf16.mxu0 %v17850_v6  ;;  %v15451_v8 = vpack.c.bf16 %v7926_v63, %v7925_v62  ;;  %v7929_v62 = vld [vmem:[%s17628_s3 + $0x3d0] sm:$0xff] }
 0x3a1   :  { %v598_v16 = vand.u32 2147483647, %v15426_v2  ;;  %v1385_v34 = vsub.f32 %v15019_v14, %v15426_v2  ;;  %17887 = vst [vmem:[#allocation66_spill] sm:$0xff] %v15444_v47  ;;  %12175 = vmatpush3.bf16.msra.mxu1 %v15444_v47  ;;  %v7927_v14 = vld [vmem:[%s17628_s3 + $0x3c0] sm:$0xff] }
 0x3a2   :  { %1280 = vmatmul.mubr.f32.vlgmr.msra.gmra.mrb[8].mxu0 %v17847_v32  ;;  %17888 = vst [vmem:[#allocation67_spill] sm:$0xff] %v15451_v8  ;;  %12176 = vmatprep.subr.bf16.mxu1 %v17850_v6  ;;  %v15466_v63 = vpack.c.bf16 %v7928_v22, %v7927_v14 }
 0x3a3   :  { %v599_v41 = vsub.f32 0.0, %v598_v16  ;;  %v1386_v56 = vmul.f32 %v1385_v34, %v1385_v34  ;;  %12325 = vmatpush3.bf16.msra.mxu0 %v14501_v12  ;;  %9780 = vmatprep.mubr.msk.f32.mxu0 %vm14409_vm0, %v17847_v32  ;;  %v7931_v16 = vld [vmem:[%s17628_s3 + $0x3e0] sm:$0xff]  ;;  %v7932_v34 = vld [vmem:[%s17628_s3 + $0x3e8] sm:$0xff]  ;;  %v15517_v12 = vpop.permute.xlu0 %2984 }
 0x3a4   :  { %12326 = vmatprep.subr.bf16.mxu0 %v17850_v6  ;;  %17889 = vst [vmem:[#allocation68_spill] sm:$0xff] %v15466_v63  ;;  %v15490_v14 = vpack.c.bf16 %v7932_v34, %v7931_v16  ;;  %v597_v34 = vmax.f32 %v15426_v2, 0.0  ;;  %17893 = vst [vmem:[#allocation72_spill] sm:$0xff] %v15517_v12 }
 0x3a5   :  { %v600_v3 = vmul.f32 1.442695, %v599_v41  ;;  %1388 = vrot.lane.b32.xlu0 %v1386_v56, %s14411_s15  ;;  %12178 = vmatpush3.bf16.msra.mxu1 %v15451_v8  ;;  %v7930_v56 = vld [vmem:[%s17628_s3 + $0x3d8] sm:$0xff] }
 0x3a6   :  { %12179 = vmatprep.subr.bf16.mxu1 %v17850_v6  ;;  %v15478_v41 = vpack.c.bf16 %v7930_v56, %v7929_v62  ;;  %17891 = vst [vmem:[#allocation70_spill] sm:$0xff] %v15490_v14  ;;  %v7933_v62 = vld [vmem:[%s17628_s3 + $0x3f0] sm:$0xff]  ;;  %v7934_v56 = vld [vmem:[%s17628_s3 + $0x3f8] sm:$0xff] }
 0x3a7   :  { %14159 = vpow2.f32 %v600_v3  ;;  %12328 = vmatpush3.bf16.msra.mxu0 %v14520_v18  ;;  %v15505_v16 = vpack.c.bf16 %v7934_v56, %v7933_v62  ;;  %v15519_v2 = vpop.permute.xlu0 %4093 }
 0x3a8   :  { %12329 = vmatprep.subr.bf16.mxu0 %v17850_v6  ;;  %17890 = vst [vmem:[#allocation69_spill] sm:$0xff] %v15478_v41  ;;  %17894 = vst [vmem:[#allocation73_spill] sm:$0xff] %v15519_v2  ;;  %v1155_v2 = vld [vmem:[%s17631_s6 + $0x28] sm:$0xff] }
 0x3a9   :  { %12181 = vmatpush3.bf16.msra.mxu1 %v15466_v63  ;;  %17892 = vst [vmem:[#allocation71_spill] sm:$0xff] %v15505_v16 }
 0x3aa   :  { %12182 = vmatprep.subr.bf16.mxu1 %v17850_v6 }
 0x3ab   :  { %12331 = vmatpush3.bf16.msra.mxu0 %v14540_v24 }
 0x3ac   :  { %12332 = vmatprep.subr.bf16.mxu0 %v17850_v6 }
 0x3ad   :  { %12184 = vmatpush3.bf16.msra.mxu1 %v15478_v41 }
 0x3ae   :  { %12185 = vmatprep.subr.bf16.mxu1 %v17850_v6 }
 0x3af   :  { %12334 = vmatpush3.bf16.msra.mxu0 %v14560_v30 }
 0x3b0   :  { %12335 = vmatprep.subr.bf16.mxu0 %v17850_v6 }
 0x3b1   :  { %v14160_v22 = vpop.eup %14159  ;;  %12187 = vmatpush3.bf16.msra.mxu1 %v15490_v14 }
 0x3b2   :  { %v602_v3 = vadd.f32 1.0, %v14160_v22  ;;  %12188 = vmatprep.subr.bf16.mxu1 %v17850_v6 }
 0x3b3   :  { %12337 = vmatpush3.bf16.msra.mxu0 %v14580_v36 }
 0x3b4   :  { %14161 = vlog2.f32 %v602_v3  ;;  %12338 = vmatprep.subr.bf16.mxu0 %v17850_v6 }
 0x3b5   :  { %12190 = vmatpush3.bf16.msra.mxu1 %v15505_v16  ;;  %14163 = vlog2.f32 %v15026_v25  ;;  %v15521_v16 = vpop.permute.xlu0 %5202 }
 0x3b6   :  { %12191 = vmatprep.subr.bf16.mxu1 %v17850_v6  ;;  %17895 = vst [vmem:[#allocation74_spill] sm:$0xff] %v15521_v16  ;;  %v1152_v16 = vld [vmem:[%s17631_s6 + $0x10] sm:$0xff] }
 0x3b7   :  { %12340 = vmatpush3.bf16.msra.mxu0 %v14600_v42 }
 0x3b8   :  { %12341 = vmatprep.subr.bf16.mxu0 %v17850_v6 }
 0x3b9   :  { %v15523_v14 = vpop.permute.xlu0 %6311 }
 0x3ba   :  { %17896 = vst [vmem:[#allocation75_spill] sm:$0xff] %v15523_v14 }
 0x3bb   :  { %12343 = vmatpush3.bf16.msra.mxu0 %v14614_v46 }
 0x3bc   :  { %12344 = vmatprep.subr.bf16.mxu0 %v17850_v6 }
 0x3be   :  { %v14162_v22 = vpop.eup %14161 }
 0x3bf   :  { %v604_v3 = vmul.f32 0.6931472, %v14162_v22  ;;  %12346 = vmatpush3.bf16.msra.mxu0 %v14630_v49  ;;  %v14164_v56 = vpop.eup %14163  ;;  %v15525_v49 = vpop.permute.xlu0 %7417 }
 0x3c0   :  { %12371 = vmatprep.subr.bf16.mxu0 %v17850_v6  ;;  %v1381_v42 = vmul.f32 0.6931472, %v14164_v56  ;;  %17897 = vst [vmem:[#allocation76_spill] sm:$0xff] %v15525_v49  ;;  %v7937_v56 = vld [vmem:[%s17628_s3 + $0x408] sm:$0xff] }
 0x3c1   :  { %v605_v62 = vadd.f32 %v604_v3, %v597_v34  ;;  %v1384_v34 = vmul.f32 %v15026_v25, %v15026_v25 }
 0x3c2   :  { %v1382_v24 = vmul.f32 2.0, %v1381_v42 }
 0x3c3   :  { %14165 = vlog2.f32 %v605_v62  ;;  %v1392_v22 = vmul.f32 %v605_v62, %v605_v62  ;;  %v7936_v62 = vld [vmem:[%s17628_s3 + $0x400] sm:$0xff] }
 0x3c4   :  { %v15540_v14 = vpack.c.bf16 %v7937_v56, %v7936_v62  ;;  %v7943_v62 = vld [vmem:[%s17628_s3 + $0x438] sm:$0xff] }
 0x3c5   :  { %14167 = vrcp.f32 %v1392_v22 }
 0x3c6   :  { %17899 = vst [vmem:[#allocation78_spill] sm:$0xff] %v15540_v14 }
 0x3cd   :  { %v14166_v36 = vpop.eup %14165 }
 0x3ce   :  { %v1378_v30 = vmul.f32 0.6931472, %v14166_v36 }
 0x3cf   :  { %v14168_v3 = vpop.eup %14167 }
 0x3d0   :  { %v1379_v46 = vmul.f32 2.0, %v1378_v30 }
 0x3d2   :  { %v1383_v18 = vsub.f32 %v1379_v46, %v1382_v24  ;;  %v35_v46 = vld [vmem:[%s17625_s0 + $0x10] sm:$0xff] }
 0x417   :  { %v1389_v36 = vpop.permute.xlu0 %1388 }
 0x418   :  { %v1391_v42 = vadd.f32 %v1389_v36, %v1384_v34 }
 0x41a   :  { %v1394_v30 = vmul.f32 %v14168_v3, %v1391_v42  ;;  %v7939_v3 = vld [vmem:[%s17628_s3 + $0x418] sm:$0xff]  ;;  %v7941_v42 = vld [vmem:[%s17628_s3 + $0x428] sm:$0xff] }
 0x41c   :  { %v15529_v24 = vadd.f32 %v1394_v30, %v1383_v18  ;;  %v7938_v18 = vld [vmem:[%s17628_s3 + $0x410] sm:$0xff] }
 0x41d   :  { %v15549_v36 = vpack.c.bf16 %v7939_v3, %v7938_v18  ;;  %v7946_v18 = vld [vmem:[%s17628_s3 + $0x450] sm:$0xff]  ;;  %v7947_v3 = vld [vmem:[%s17628_s3 + $0x458] sm:$0xff] }
 0x41e   :  { %17898 = vst [vmem:[#allocation77_spill] sm:$0xff] %v15529_v24  ;;  %v7950_v24 = vld [vmem:[%s17628_s3 + $0x470] sm:$0xff] }
 0x41f   :  { %17900 = vst [vmem:[#allocation79_spill] sm:$0xff] %v15549_v36 }
 0x435   :  { %v782_v22 = vpop.f32.mrb[6].mxu0 }
 0x436   :  { %v14087_v25 = vadd.f32 %v782_v22, %v35_v46  ;;  %v9588_v49 = vpop.f32.mrb[7].mxu0  ;;  %v7942_v46 = vld [vmem:[%s17628_s3 + $0x430] sm:$0xff]  ;;  %v7944_v22 = vld [vmem:[%s17628_s3 + $0x440] sm:$0xff] }
 0x437   :  { %v7940_v49 = vld [vmem:[%s17628_s3 + $0x420] sm:$0xff]  ;;  %v15571_v56 = vpack.c.bf16 %v7943_v62, %v7942_v46  ;;  %v7949_v46 = vld [vmem:[%s17628_s3 + $0x468] sm:$0xff] }
 0x438   :  { %v787_v34 = vmax.f32 %v14087_v25, 0.0  ;;  %v15561_v30 = vpack.c.bf16 %v7941_v42, %v7940_v49  ;;  %v7945_v25 = vld [vmem:[%s17628_s3 + $0x448] sm:$0xff]  ;;  %v15591_v49 = vpack.c.bf16 %v7947_v3, %v7946_v18  ;;  %v7948_v42 = vld [vmem:[%s17628_s3 + $0x460] sm:$0xff] }
 0x439   :  { %17902 = vst [vmem:[#allocation81_spill] sm:$0xff] %v15571_v56  ;;  %v15601_v62 = vpack.c.bf16 %v7949_v46, %v7948_v42  ;;  %v7951_v42 = vld [vmem:[%s17628_s3 + $0x478] sm:$0xff] }
 0x43a   :  { %9622 = vmatmul.mubr.f32.vlgmr.msra.gmra.mrb[6].mxu1 %v787_v34  ;;  %17901 = vst [vmem:[#allocation80_spill] sm:$0xff] %v15561_v30  ;;  %v15581_v34 = vpack.c.bf16 %v7945_v25, %v7944_v22  ;;  %17904 = vst [vmem:[#allocation83_spill] sm:$0xff] %v15591_v49  ;;  %v15618_v46 = vpack.c.bf16 %v7951_v42, %v7950_v24 }
 0x43b   :  { %12193 = vmatpush3.bf16.msra.mxu1 %v15540_v14  ;;  %9656 = vmatprep.mubr.msk.f32.mxu1 %vm14409_vm0, %v17847_v32  ;;  %17905 = vst [vmem:[#allocation84_spill] sm:$0xff] %v15601_v62 }
 0x43c   :  { %12194 = vmatprep.subr.bf16.mxu1 %v17850_v6  ;;  %17903 = vst [vmem:[#allocation82_spill] sm:$0xff] %v15581_v34  ;;  %17906 = vst [vmem:[#allocation85_spill] sm:$0xff] %v15618_v46 }
 0x43f   :  { %12196 = vmatpush3.bf16.msra.mxu1 %v15549_v36 }
 0x440   :  { %12197 = vmatprep.subr.bf16.mxu1 %v17850_v6 }
 0x443   :  { %12199 = vmatpush3.bf16.msra.mxu1 %v15561_v30 }
 0x444   :  { %12200 = vmatprep.subr.bf16.mxu1 %v17850_v6 }
 0x447   :  { %12202 = vmatpush3.bf16.msra.mxu1 %v15571_v56 }
 0x448   :  { %12203 = vmatprep.subr.bf16.mxu1 %v17850_v6 }
 0x44b   :  { %12205 = vmatpush3.bf16.msra.mxu1 %v15581_v34  ;;  %v1161_v34 = vld [vmem:[%s17631_s6 + $0x58] sm:$0xff] }
 0x44c   :  { %12206 = vmatprep.subr.bf16.mxu1 %v17850_v6 }
 0x44f   :  { %12208 = vmatpush3.bf16.msra.mxu1 %v15591_v49  ;;  %v1158_v49 = vld [vmem:[%s17631_s6 + $0x40] sm:$0xff] }
 0x450   :  { %12209 = vmatprep.subr.bf16.mxu1 %v17850_v6  ;;  %v15643_v56 = vpack.c.bf16 %v1161_v34, %v1158_v49  ;;  %v1170_v34 = vld [vmem:[%s17631_s6 + $0xa0] sm:$0xff]  ;;  %v1173_v49 = vld [vmem:[%s17631_s6 + $0xb8] sm:$0xff] }
 0x452   :  { %17908 = vst [vmem:[#allocation87_spill] sm:$0xff] %v15643_v56 }
 0x453   :  { %12211 = vmatpush3.bf16.msra.mxu1 %v15601_v62 }
 0x454   :  { %12212 = vmatprep.subr.bf16.mxu1 %v17850_v6 }
 0x455   :  { %v15606_v22 = vpop.f32.mrb[10].mxu0 }
 0x456   :  { %v9677_v25 = vpop.f32.mrb[11].mxu0 }
 0x457   :  { %12214 = vmatpush3.bf16.msra.mxu1 %v15618_v46  ;;  %v15625_v25 = vld [vmem:[%s17629_s4 + $0x4] ss:$0 sm:$0xff]  ;;  %v15634_v46 = vpack.c.bf16 %v1155_v2, %v1152_v16  ;;  %v1167_v16 = vld [vmem:[%s17631_s6 + $0x88] sm:$0xff] }
 0x458   :  { %12275 = vmatprep.subr.bf16.mxu1 %v17850_v6 }
 0x459   :  { %17907 = vst [vmem:[#allocation86_spill] sm:$0xff] %v15634_v46 }
 0x475   :  { %v15608_v18 = vpop.f32.mrb[8].mxu0 }
 0x476   :  { %v15610_v3 = vpop.f32.mrb[9].mxu0 }
 0x50d   :  { %v876_v12 = vpop.f32.mrb[6].mxu1 }
 0x50e   :  { %v877_v24 = vadd.f32 %v15625_v25, %v876_v12  ;;  %v9623_v42 = vpop.f32.mrb[7].mxu1  ;;  %v1164_v12 = vld [vmem:[%s17631_s6 + $0x70] sm:$0xff] }
 0x50f   :  { %v15655_v2 = vpack.c.bf16 %v1167_v16, %v1164_v12  ;;  %v1179_v42 = vld [vmem:[%s17631_s6 + $0xe8] sm:$0xff]  ;;  %v1182_v16 = vld [vmem:[%s17631_s6 + $0x100] sm:$0xff] }
 0x510   :  { %v880_v62 = vmax.f32 %v877_v24, 0.0  ;;  %v1176_v24 = vld [vmem:[%s17631_s6 + $0xd0] sm:$0xff] }
 0x511   :  { %17909 = vst [vmem:[#allocation88_spill] sm:$0xff] %v15655_v2  ;;  %v15675_v12 = vpack.c.bf16 %v1179_v42, %v1176_v24  ;;  %v1188_v24 = vld [vmem:[%s17631_s6 + $0x130] sm:$0xff]  ;;  %v1191_v42 = vld [vmem:[%s17631_s6 + $0x148] sm:$0xff] }
 0x512   :  { %9657 = vmatmul.mubr.f32.vlgmr.msra.gmra.mrb[8].mxu1 %v880_v62  ;;  %v15665_v62 = vpack.c.bf16 %v1173_v49, %v1170_v34  ;;  %v1185_v34 = vld [vmem:[%s17631_s6 + $0x118] sm:$0xff] }
 0x513   :  { %12277 = vmatpush3.bf16.msra.mxu1 %v15634_v46  ;;  %9710 = vmatprep.mubr.msk.f32.mxu1 %vm14409_vm0, %v17847_v32  ;;  %17911 = vst [vmem:[#allocation90_spill] sm:$0xff] %v15675_v12  ;;  %v15685_v49 = vpack.c.bf16 %v1185_v34, %v1182_v16  ;;  %v1194_v16 = vld [vmem:[%s17631_s6 + $0x160] sm:$0xff]  ;;  %v1197_v34 = vld [vmem:[%s17631_s6 + $0x178] sm:$0xff] }
 0x514   :  { %12278 = vmatprep.subr.bf16.mxu1 %v17850_v6  ;;  %17910 = vst [vmem:[#allocation89_spill] sm:$0xff] %v15665_v62 }
 0x515   :  { %17912 = vst [vmem:[#allocation91_spill] sm:$0xff] %v15685_v49 }
 0x517   :  { %12280 = vmatpush3.bf16.msra.mxu1 %v15643_v56 }
 0x518   :  { %12281 = vmatprep.subr.bf16.mxu1 %v17850_v6 }
 0x51b   :  { %12283 = vmatpush3.bf16.msra.mxu1 %v15655_v2 }
 0x51c   :  { %12284 = vmatprep.subr.bf16.mxu1 %v17850_v6 }
 0x51f   :  { %12286 = vmatpush3.bf16.msra.mxu1 %v15665_v62  ;;  %v15695_v62 = vpack.c.bf16 %v1191_v42, %v1188_v24  ;;  %v1200_v24 = vlaneseq }
 0x520   :  { %12287 = vmatprep.subr.bf16.mxu1 %v17850_v6 }
 0x521   :  { %17913 = vst [vmem:[#allocation92_spill] sm:$0xff] %v15695_v62  ;;  %v1201_v42 = vshrl.u32 %v1200_v24, 7 }
 0x523   :  { %12289 = vmatpush3.bf16.msra.mxu1 %v15675_v12  ;;  %v15705_v12 = vpack.c.bf16 %v1197_v34, %v1194_v16  ;;  %v1202_v16 = vsub.s32 0, %v1201_v42  ;;  %v1198_v34 = vld [vmem:[%s17632_s7] sm:$0x7] }
 0x524   :  { %12290 = vmatprep.subr.bf16.mxu1 %v17850_v6 }
 0x525   :  { %17914 = vst [vmem:[#allocation93_spill] sm:$0xff] %v15705_v12 }
 0x527   :  { %12292 = vmatpush3.bf16.msra.mxu1 %v15685_v49 }
 0x528   :  { %12293 = vmatprep.subr.bf16.mxu1 %v17850_v6 }
 0x52b   :  { %12295 = vmatpush3.bf16.msra.mxu1 %v15695_v62 }
 0x52c   :  { %12296 = vmatprep.subr.bf16.mxu1 %v17850_v6 }
 0x52f   :  { %12298 = vmatpush3.bf16.msra.mxu1 %v15705_v12 }
 0x530   :  { %12299 = vmatprep.subr.bf16.mxu1 %v17850_v6 }
 0x532   :  { %9711 = vmatmul.mubr.f32.vlgmr.msra.gmra.mrb[10].mxu1 %v17847_v32 }
 0x533   :  { %12301 = vmatpush3.bf16.msra.mxu1 %v14475_v4  ;;  %9745 = vmatprep.mubr.msk.f32.mxu1 %vm14409_vm0, %v17847_v32 }
 0x534   :  { %12302 = vmatprep.subr.bf16.mxu1 %v17850_v6 }
 0x537   :  { %12304 = vmatpush3.bf16.msra.mxu1 %v14486_v7 }
 0x538   :  { %12305 = vmatprep.subr.bf16.mxu1 %v17850_v6 }
 0x53b   :  { %12307 = vmatpush3.bf16.msra.mxu1 %v14510_v15 }
 0x53c   :  { %12308 = vmatprep.subr.bf16.mxu1 %v17850_v6 }
 0x53f   :  { %12310 = vmatpush3.bf16.msra.mxu1 %v14530_v21  ;;  %v1206_v21 = vsub.s32 1, %v1201_v42 }
 0x540   :  { %12311 = vmatprep.subr.bf16.mxu1 %v17850_v6 }
 0x541   :  { %v15741_v24 = vrot.slane %v1198_v34, %v1206_v21 }
 0x543   :  { %12313 = vmatpush3.bf16.msra.mxu1 %v14550_v27  ;;  %v15732_v27 = vrot.slane %v1198_v34, %v1202_v16  ;;  %17917 = vst [vmem:[#allocation96_spill] sm:$0xff] %v15741_v24  ;;  %v37_v16 = vld [vmem:[%s17625_s0 + $0x20] sm:$0xff] }
 0x544   :  { %12314 = vmatprep.subr.bf16.mxu1 %v17850_v6  ;;  %v14090_v12 = vadd.f32 %v15741_v24, %v37_v16 }
 0x545   :  { %17915 = vst [vmem:[#allocation94_spill] sm:$0xff] %v15732_v27 }
 0x546   :  { %v14091_v62 = vadd.f32 %v14090_v12, %v15610_v3 }
 0x547   :  { %12316 = vmatpush3.bf16.msra.mxu1 %v14570_v33  ;;  %v36_v33 = vld [vmem:[%s17625_s0 + $0x18] sm:$0xff] }
 0x548   :  { %12317 = vmatprep.subr.bf16.mxu1 %v17850_v6  ;;  %v7956_v49 = vmul.f32 -1.442695, %v14091_v62 }
 0x54b   :  { %12319 = vmatpush3.bf16.msra.mxu1 %v14590_v39  ;;  %v14088_v39 = vadd.f32 %v15732_v27, %v36_v33 }
 0x54c   :  { %12320 = vmatprep.subr.bf16.mxu1 %v17850_v6 }
 0x54f   :  { %12322 = vmatpush3.bf16.msra.mxu1 %v14610_v45  ;;  %v14089_v45 = vadd.f32 %v14088_v39, %v15608_v18  ;;  %v1210_v39 = vsub.s32 2, %v1201_v42 }
 0x550   :  { %12347 = vmatprep.subr.bf16.mxu1 %v17850_v6 }
 0x551   :  { %v7955_v4 = vmul.f32 -1.442695, %v14089_v45  ;;  %v38_v45 = vld [vmem:[%s17625_s0 + $0x28] sm:$0xff] }
 0x552   :  { %v1149_v3 = vadd.f32 %v15606_v22, %v38_v45  ;;  %v7964_v45 = vld [vmem:[%s17626_s1 + $0x8] sm:$0xff] }
 0x553   :  { %14169 = vpow2.f32 %v7955_v4  ;;  %1875 = vrot.lane.b32.xlu1 %v7964_v45, %s14411_s15  ;;  %v15860_v45 = vld [vmem:[%s17629_s4 + $0x1] ss:$0 sm:$0xff] }
 0x554   :  { %14171 = vpow2.f32 %v7956_v49 }
 0x55d   :  { %v14170_v33 = vpop.eup %14169 }
 0x55e   :  { %v1360_v27 = vadd.f32 1.0, %v14170_v33  ;;  %v14172_v18 = vpop.eup %14171 }
 0x55f   :  { %v1367_v21 = vadd.f32 1.0, %v14172_v18 }
 0x560   :  { %14173 = vrcp.f32 %v1360_v27 }
 0x561   :  { %14175 = vrcp.f32 %v1367_v21 }
 0x56a   :  { %v14174_v24 = vpop.eup %14173 }
 0x56b   :  { %v14176_v27 = vpop.eup %14175 }
 0x56c   :  { %v1373_v49 = vsub.f32 1.0, %v14176_v27 }
 0x5e5   :  { %v15739_v15 = vpop.f32.mrb[8].mxu1 }
 0x5e6   :  { %17916 = vst [vmem:[#allocation95_spill] sm:$0xff] %v15739_v15  ;;  %v9658_v7 = vpop.f32.mrb[9].mxu1 }
 0x5e7   :  { %v15748_v7 = vrot.slane %v1198_v34, %v1210_v39  ;;  %v1375_v34 = vmul.f32 0.0, %v14176_v27  ;;  %v7959_v27 = vld [vmem:[%s17625_s0 + $0x38] sm:$0xff] }
 0x605   :  { %v1352_v15 = vpop.f32.mrb[10].mxu1 }
 0x606   :  { %v1353_v16 = vadd.f32 %v1352_v15, %v15748_v7  ;;  %v9712_v4 = vpop.f32.mrb[11].mxu1  ;;  %v7958_v15 = vld [vmem:[%s17625_s0 + $0x30] sm:$0xff] }
 0x607   :  { %v15823_v4 = vld [vmem:[%s17629_s4] ss:$0 sm:$0xff] }
 0x608   :  { %v1370_v62 = vmul.f32 %v14174_v24, %v1353_v16 }
 0x60a   :  { %v1371_v12 = vadd.f32 %v1370_v62, %v1149_v3 }
 0x60c   :  { %14177 = vtanh.f32 %v1371_v12 }
 0x616   :  { %v14178_v42 = vpop.eup %14177 }
 0x617   :  { %v1374_v33 = vmul.f32 %v14178_v42, %v1373_v49 }
 0x619   :  { %v15755_v39 = vadd.f32 %v1375_v34, %v1374_v33 }
 0x61b   :  { %9746 = vmatmul.mubr.f32.vlgmr.msra.gmra.mrb[12].mxu1 %v15755_v39 }
 0x61c   :  { %12349 = vmatpush3.bf16.msra.mxu1 %v14643_v53  ;;  %9815 = vmatprep.mubr.msk.f32.mxu1 %vm14409_vm0, %v17847_v32 }
 0x61d   :  { %12350 = vmatprep.subr.bf16.mxu1 %v17850_v6 }
 0x620   :  { %12352 = vmatpush3.bf16.msra.mxu1 %v14649_v55 }
 0x621   :  { %12353 = vmatprep.subr.bf16.mxu1 %v17850_v6 }
 0x624   :  { %12355 = vmatpush3.bf16.msra.mxu1 %v14659_v58 }
 0x625   :  { %12356 = vmatprep.subr.bf16.mxu1 %v17850_v6 }
 0x628   :  { %12358 = vmatpush3.bf16.msra.mxu1 %v14669_v61 }
 0x629   :  { %12359 = vmatprep.subr.bf16.mxu1 %v17850_v6 }
 0x62c   :  { %12361 = vmatpush3.bf16.msra.mxu1 %v14679_v0 }
 0x62d   :  { %12362 = vmatprep.subr.bf16.mxu1 %v17850_v6 }
 0x630   :  { %12364 = vmatpush3.bf16.msra.mxu1 %v14689_v5 }
 0x631   :  { %12365 = vmatprep.subr.bf16.mxu1 %v17850_v6 }
 0x634   :  { %12367 = vmatpush3.bf16.msra.mxu1 %v14699_v10 }
 0x635   :  { %12368 = vmatprep.subr.bf16.mxu1 %v17850_v6 }
 0x638   :  { %12370 = vmatpush3.bf16.msra.mxu1 %v14798_v59 }
 0x639   :  { %12395 = vmatprep.subr.bf16.mxu1 %v17850_v6 }
 0x6ee   :  { %v1496_v22 = vpop.f32.mrb[12].mxu1 }
 0x6ef   :  { %v1500_v24 = vadd.f32 %v7958_v15, %v1496_v22  ;;  %v9747_v18 = vpop.f32.mrb[13].mxu1  ;;  %v17918_v15 = vld [vmem:[#allocation24_spill] sm:$0xff]  ;;  %v17919_v22 = vld [vmem:[#allocation25_spill] sm:$0xff] }
 0x6f0   :  { %v17921_v18 = vld [vmem:[#allocation27_spill] sm:$0xff]  ;;  %17922 = vst [vmem:[#allocation24_spill] sm:$0xff] %v15860_v45 }
 0x6f1   :  { %v1501_v21 = vmax.f32 %v1500_v24, 0.0  ;;  %v17920_v24 = vld [vmem:[#allocation26_spill] sm:$0xff] }
 0x6f3   :  { %9781 = vmatmul.mubr.f32.vlgmr.msra.gmra.mrb[12].mxu0 %v1501_v21 }
 0x6f4   :  { %12373 = vmatpush3.bf16.msra.mxu0 %v14713_v20  ;;  %9850 = vmatprep.mubr.msk.f32.mxu0 %vm14409_vm0, %v17847_v32 }
 0x6f5   :  { %12374 = vmatprep.subr.bf16.mxu0 %v17850_v6 }
 0x6f8   :  { %12376 = vmatpush3.bf16.msra.mxu0 %v14722_v26 }
 0x6f9   :  { %12377 = vmatprep.subr.bf16.mxu0 %v17850_v6 }
 0x6fc   :  { %12379 = vmatpush3.bf16.msra.mxu0 %v14734_v31 }
 0x6fd   :  { %12380 = vmatprep.subr.bf16.mxu0 %v17850_v6 }
 0x700   :  { %12382 = vmatpush3.bf16.msra.mxu0 %v14744_v35 }
 0x701   :  { %12383 = vmatprep.subr.bf16.mxu0 %v17850_v6 }
 0x704   :  { %12385 = vmatpush3.bf16.msra.mxu0 %v14754_v40 }
 0x705   :  { %12386 = vmatprep.subr.bf16.mxu0 %v17850_v6 }
 0x708   :  { %12388 = vmatpush3.bf16.msra.mxu0 %v14764_v44 }
 0x709   :  { %12389 = vmatprep.subr.bf16.mxu0 %v17850_v6 }
 0x70c   :  { %12391 = vmatpush3.bf16.msra.mxu0 %v14774_v50 }
 0x70d   :  { %12392 = vmatprep.subr.bf16.mxu0 %v17850_v6 }
 0x710   :  { %12394 = vmatpush3.bf16.msra.mxu0 %v14784_v54 }
 0x711   :  { %12419 = vmatprep.subr.bf16.mxu0 %v17850_v6 }
 0x713   :  { %9851 = vmatmul.mubr.f32.vlgmr.msra.gmra.mrb[14].mxu0 %v15755_v39 }
 0x714   :  { %12421 = vmatpush3.bf16.msra.mxu0 %v14902_v13  ;;  %9920 = vmatprep.mubr.msk.f32.mxu0 %vm14409_vm0, %v17847_v32 }
 0x715   :  { %12422 = vmatprep.subr.bf16.mxu0 %v17850_v6 }
 0x718   :  { %12424 = vmatpush3.bf16.msra.mxu0 %v14912_v19 }
 0x719   :  { %12425 = vmatprep.subr.bf16.mxu0 %v17850_v6 }
 0x71c   :  { %12427 = vmatpush3.bf16.msra.mxu0 %v14921_v28 }
 0x71d   :  { %12428 = vmatprep.subr.bf16.mxu0 %v17850_v6 }
 0x720   :  { %12430 = vmatpush3.bf16.msra.mxu0 %v14931_v38 }
 0x721   :  { %12431 = vmatprep.subr.bf16.mxu0 %v17850_v6 }
 0x724   :  { %12433 = vmatpush3.bf16.msra.mxu0 %v14941_v48 }
 0x725   :  { %12434 = vmatprep.subr.bf16.mxu0 %v17850_v6 }
 0x728   :  { %12436 = vmatpush3.bf16.msra.mxu0 %v14951_v57 }
 0x729   :  { %12437 = vmatprep.subr.bf16.mxu0 %v17850_v6 }
 0x72c   :  { %12439 = vmatpush3.bf16.msra.mxu0 %v14961_v1 }
 0x72d   :  { %12440 = vmatprep.subr.bf16.mxu0 %v17850_v6 }
 0x730   :  { %12442 = vmatpush3.bf16.msra.mxu0 %v14972_v9 }
 0x731   :  { %12479 = vmatprep.subr.bf16.mxu0 %v17850_v6 }
 0x7c6   :  { %v1568_v16 = vpop.f32.mrb[12].mxu0 }
 0x7c7   :  { %v1569_v3 = vadd.f32 %v15823_v4, %v1568_v16  ;;  %v9782_v62 = vpop.f32.mrb[13].mxu0 }
 0x7c9   :  { %v1572_v12 = vmax.f32 %v1569_v3, 0.0 }
 0x7cb   :  { %9816 = vmatmul.mubr.f32.vlgmr.msra.gmra.mrb[14].mxu1 %v1572_v12 }
 0x7cc   :  { %12397 = vmatpush3.bf16.msra.mxu1 %v14815_v11  ;;  %9885 = vmatprep.mubr.msk.f32.mxu1 %vm14409_vm0, %v17847_v32 }
 0x7cd   :  { %12398 = vmatprep.subr.bf16.mxu1 %v17850_v6 }
 0x7d0   :  { %12400 = vmatpush3.bf16.msra.mxu1 %v14824_v17 }
 0x7d1   :  { %12401 = vmatprep.subr.bf16.mxu1 %v17850_v6 }
 0x7d4   :  { %12403 = vmatpush3.bf16.msra.mxu1 %v14836_v23 }
 0x7d5   :  { %12404 = vmatprep.subr.bf16.mxu1 %v17850_v6 }
 0x7d8   :  { %12406 = vmatpush3.bf16.msra.mxu1 %v14846_v29 }
 0x7d9   :  { %12407 = vmatprep.subr.bf16.mxu1 %v17850_v6 }
 0x7dc   :  { %12409 = vmatpush3.bf16.msra.mxu1 %v14856_v37 }
 0x7dd   :  { %12410 = vmatprep.subr.bf16.mxu1 %v17850_v6 }
 0x7e0   :  { %12412 = vmatpush3.bf16.msra.mxu1 %v14866_v43 }
 0x7e1   :  { %12413 = vmatprep.subr.bf16.mxu1 %v17850_v6 }
 0x7e4   :  { %12415 = vmatpush3.bf16.msra.mxu1 %v14876_v51 }
 0x7e5   :  { %12416 = vmatprep.subr.bf16.mxu1 %v17850_v6 }
 0x7e6   :  { %v1718_v49 = vpop.f32.mrb[14].mxu0 }
 0x7e7   :  { %v1722_v42 = vadd.f32 %v7959_v27, %v1718_v49  ;;  %v9852_v34 = vpop.f32.mrb[15].mxu0 }
 0x7e8   :  { %12418 = vmatpush3.bf16.msra.mxu1 %v14889_v60 }
 0x7e9   :  { %v1723_v33 = vmax.f32 %v1722_v42, 0.0  ;;  %12443 = vmatprep.subr.bf16.mxu1 %v17850_v6 }
 0x7eb   :  { %9886 = vmatmul.mubr.f32.vlgmr.msra.gmra.mrb[16].mxu1 %v1723_v33 }
 0x7ec   :  { %12445 = vmatpush3.bf16.msra.mxu1 %v17918_v15  ;;  %9939 = vmatprep.mubr.msk.f32.mxu1 %vm14409_vm0, %v17847_v32 }
 0x7ed   :  { %12446 = vmatprep.subr.bf16.mxu1 %v17850_v6 }
 0x7f0   :  { %12448 = vmatpush3.bf16.msra.mxu1 %v17919_v22  ;;  %v1876_v22 = vpop.permute.xlu1 %1875 }
 0x7f1   :  { %12449 = vmatprep.subr.bf16.mxu1 %v17850_v6 }
 0x7f4   :  { %12451 = vmatpush3.bf16.msra.mxu1 %v17920_v24 }
 0x7f5   :  { %12452 = vmatprep.subr.bf16.mxu1 %v17850_v6 }
 0x7f8   :  { %12454 = vmatpush3.bf16.msra.mxu1 %v17921_v18  ;;  %v15869_v18 = vld [vmem:[%s17629_s4 + $0x2] ss:$0 sm:$0xff] }
 0x7f9   :  { %12455 = vmatprep.subr.bf16.mxu1 %v17850_v6 }
 0x89e   :  { %v1639_v21 = vpop.f32.mrb[14].mxu1 }
 0x89f   :  { %v15863_v16 = vadd.f32 %v15860_v45, %v1639_v21  ;;  %v9817_v3 = vpop.f32.mrb[15].mxu1 }
 0x8a1   :  { %17923 = vst [vmem:[#allocation97_spill] sm:$0xff] %v15863_v16  ;;  %v1644_v62 = vand.u32 2147483647, %v15863_v16  ;;  %v1643_v3 = vmax.f32 %v15863_v16, 0.0 }
 0x8a3   :  { %v1645_v12 = vsub.f32 0.0, %v1644_v62 }
 0x8a5   :  { %v1646_v27 = vmul.f32 1.442695, %v1645_v12 }
 0x8a7   :  { %14179 = vpow2.f32 %v1646_v27 }
 0x8b1   :  { %v14180_v49 = vpop.eup %14179 }
 0x8b2   :  { %v1648_v42 = vadd.f32 1.0, %v14180_v49  ;;  %v17925_v49 = vld [vmem:[#allocation65_spill] sm:$0xff] }
 0x8b4   :  { %14181 = vlog2.f32 %v1648_v42 }
 0x8be   :  { %v14182_v34 = vpop.eup %14181  ;;  %v1790_v33 = vpop.f32.mrb[16].mxu1 }
 0x8bf   :  { %v1791_v24 = vadd.f32 %v15869_v18, %v1790_v33  ;;  %v9887_v21 = vpop.f32.mrb[17].mxu1  ;;  %v1650_v45 = vmul.f32 0.6931472, %v14182_v34  ;;  %v17928_v34 = vld [vmem:[#allocation28_spill] sm:$0xff]  ;;  %v17929_v33 = vld [vmem:[#allocation29_spill] sm:$0xff] }
 0x8c0   :  { %v17930_v21 = vld [vmem:[#allocation30_spill] sm:$0xff] }
 0x8c1   :  { %v1794_v62 = vmax.f32 %v1791_v24, 0.0  ;;  %v15873_v12 = vadd.f32 %v1650_v45, %v1643_v3  ;;  %v17927_v24 = vld [vmem:[#allocation71_spill] sm:$0xff] }
 0x8c2   :  { %v17931_v3 = vld [vmem:[#allocation31_spill] sm:$0xff] }
 0x8c3   :  { %17924 = vst [vmem:[#allocation98_spill] sm:$0xff] %v15873_v12  ;;  %v1878_v27 = vmul.f32 %v1876_v22, %v15873_v12  ;;  %9921 = vmatmul.mubr.f32.vlgmr.msra.gmra.mrb[16].mxu0 %v1794_v62  ;;  %v17926_v22 = vld [vmem:[#allocation70_spill] sm:$0xff]  ;;  %v17932_v62 = vld [vmem:[#allocation32_spill] sm:$0xff] }
 0x8c4   :  { %12481 = vmatpush3.bf16.msra.mxu0 %v15404_v52  ;;  %10009 = vmatprep.mubr.msk.f32.mxu0 %vm14409_vm0, %v17847_v32 }
 0x8c5   :  { %1880 = vrot.lane.b32.xlu1 %v1878_v27, %s14411_s15  ;;  %12482 = vmatprep.subr.bf16.mxu0 %v17850_v6  ;;  %v17933_v27 = vld [vmem:[#allocation33_spill] sm:$0xff] }
 0x8c8   :  { %12484 = vmatpush3.bf16.msra.mxu0 %v17925_v49 }
 0x8c9   :  { %12485 = vmatprep.subr.bf16.mxu0 %v17850_v6 }
 0x8cc   :  { %12487 = vmatpush3.bf16.msra.mxu0 %v15444_v47 }
 0x8cd   :  { %12488 = vmatprep.subr.bf16.mxu0 %v17850_v6 }
 0x8d0   :  { %12490 = vmatpush3.bf16.msra.mxu0 %v15451_v8 }
 0x8d1   :  { %12491 = vmatprep.subr.bf16.mxu0 %v17850_v6 }
 0x8d4   :  { %12493 = vmatpush3.bf16.msra.mxu0 %v15466_v63 }
 0x8d5   :  { %12494 = vmatprep.subr.bf16.mxu0 %v17850_v6 }
 0x8d8   :  { %12496 = vmatpush3.bf16.msra.mxu0 %v15478_v41 }
 0x8d9   :  { %12497 = vmatprep.subr.bf16.mxu0 %v17850_v6 }
 0x8dc   :  { %12499 = vmatpush3.bf16.msra.mxu0 %v17926_v22  ;;  %v17960_v22 = vld [vmem:[#allocation60_spill] sm:$0xff] }
 0x8dd   :  { %12500 = vmatprep.subr.bf16.mxu0 %v17850_v6 }
 0x8e0   :  { %12502 = vmatpush3.bf16.msra.mxu0 %v17927_v24  ;;  %v17943_v24 = vld [vmem:[#allocation43_spill] sm:$0xff] }
 0x8e1   :  { %12503 = vmatprep.subr.bf16.mxu0 %v17850_v6 }
 0x937   :  { %v1881_v45 = vpop.permute.xlu1 %1880 }
 0x938   :  { %v1883_v42 = vadd.f32 %v1881_v45, %v15863_v16  ;;  %v17934_v45 = vld [vmem:[#allocation34_spill] sm:$0xff]  ;;  %v17935_v16 = vld [vmem:[#allocation35_spill] sm:$0xff] }
 0x93a   :  { %9940 = vmatmul.mubr.msk.f32.vlgmr.msra.gmra.mrb[18].mxu1 %vm624_vm1, %v1883_v42 }
 0x93b   :  { %12457 = vmatpush3.bf16.msra.mxu1 %v17928_v34  ;;  %9974 = vmatprep.mubr.msk.f32.mxu1 %vm14409_vm0, %v17847_v32  ;;  %v17941_v34 = vld [vmem:[#allocation41_spill] sm:$0xff] }
 0x93c   :  { %12458 = vmatprep.subr.bf16.mxu1 %v17850_v6 }
 0x93f   :  { %12460 = vmatpush3.bf16.msra.mxu1 %v17929_v33  ;;  %v17939_v33 = vld [vmem:[#allocation39_spill] sm:$0xff] }
 0x940   :  { %12461 = vmatprep.subr.bf16.mxu1 %v17850_v6 }
 0x943   :  { %12463 = vmatpush3.bf16.msra.mxu1 %v17930_v21  ;;  %v17936_v21 = vld [vmem:[#allocation36_spill] sm:$0xff] }
 0x944   :  { %12464 = vmatprep.subr.bf16.mxu1 %v17850_v6 }
 0x947   :  { %12466 = vmatpush3.bf16.msra.mxu1 %v17931_v3  ;;  %v17937_v3 = vld [vmem:[#allocation37_spill] sm:$0xff] }
 0x948   :  { %12467 = vmatprep.subr.bf16.mxu1 %v17850_v6 }
 0x94b   :  { %12469 = vmatpush3.bf16.msra.mxu1 %v17932_v62  ;;  %v17938_v62 = vld [vmem:[#allocation38_spill] sm:$0xff] }
 0x94c   :  { %12470 = vmatprep.subr.bf16.mxu1 %v17850_v6 }
 0x94f   :  { %12472 = vmatpush3.bf16.msra.mxu1 %v17933_v27  ;;  %v17940_v27 = vld [vmem:[#allocation40_spill] sm:$0xff] }
 0x950   :  { %12473 = vmatprep.subr.bf16.mxu1 %v17850_v6 }
 0x953   :  { %12475 = vmatpush3.bf16.msra.mxu1 %v17934_v45  ;;  %v17942_v45 = vld [vmem:[#allocation42_spill] sm:$0xff] }
 0x954   :  { %12476 = vmatprep.subr.bf16.mxu1 %v17850_v6 }
 0x957   :  { %12478 = vmatpush3.bf16.msra.mxu1 %v17935_v16  ;;  %v17955_v16 = vld [vmem:[#allocation55_spill] sm:$0xff] }
 0x958   :  { %12528 = vmatprep.subr.bf16.mxu1 %v17936_v21  ;;  %v17944_v21 = vld [vmem:[#allocation44_spill] sm:$0xff] }
 0x95a   :  { %9975 = vmatmul.mubr.f32.vlgmr.msra.gmra.mrb[18].mxu1 %v15755_v39 }
 0x95b   :  { %12530 = vmatpush1.bf16.msra.mxu1 %v17937_v3  ;;  %2244 = vmatprep.mubr.f32.mxu1 %v17847_v32  ;;  %v17953_v3 = vld [vmem:[#allocation53_spill] sm:$0xff] }
 0x95c   :  { %12532 = vmatprep.subr.bf16.mxu1 %v17938_v62  ;;  %v17951_v62 = vld [vmem:[#allocation51_spill] sm:$0xff] }
 0x95f   :  { %12534 = vmatpush1.bf16.msra.mxu1 %v17939_v33  ;;  %v17945_v33 = vld [vmem:[#allocation45_spill] sm:$0xff] }
 0x960   :  { %12536 = vmatprep.subr.bf16.mxu1 %v17940_v27  ;;  %v17950_v27 = vld [vmem:[#allocation50_spill] sm:$0xff] }
 0x963   :  { %12538 = vmatpush1.bf16.msra.mxu1 %v17941_v34  ;;  %v17946_v34 = vld [vmem:[#allocation46_spill] sm:$0xff] }
 0x964   :  { %12540 = vmatprep.subr.bf16.mxu1 %v17942_v45  ;;  %v17948_v45 = vld [vmem:[#allocation48_spill] sm:$0xff] }
 0x967   :  { %12542 = vmatpush1.bf16.msra.mxu1 %v17943_v24  ;;  %v17947_v24 = vld [vmem:[#allocation47_spill] sm:$0xff] }
 0x968   :  { %12543 = vmatprep.subr.bf16.mxu1 %v17850_v6 }
 0x96a   :  { %7967 = vmatmul.mubr.msk.f32.vlgmr.msra.gmra.mrb[20].mxu1 %vm624_vm1, %v1883_v42 }
 0x96b   :  { %12545 = vmatpush3.bf16.msra.mxu1 %v17944_v21  ;;  %10063 = vmatprep.mubr.msk.f32.mxu1 %vm14409_vm0, %v17847_v32  ;;  %v17949_v21 = vld [vmem:[#allocation49_spill] sm:$0xff] }
 0x96c   :  { %12546 = vmatprep.subr.bf16.mxu1 %v17850_v6 }
 0x96f   :  { %12548 = vmatpush3.bf16.msra.mxu1 %v17945_v33  ;;  %v17952_v33 = vld [vmem:[#allocation52_spill] sm:$0xff] }
 0x970   :  { %12549 = vmatprep.subr.bf16.mxu1 %v17850_v6 }
 0x973   :  { %12551 = vmatpush3.bf16.msra.mxu1 %v17946_v34  ;;  %v17954_v34 = vld [vmem:[#allocation54_spill] sm:$0xff] }
 0x974   :  { %12552 = vmatprep.subr.bf16.mxu1 %v17850_v6 }
 0x977   :  { %12554 = vmatpush3.bf16.msra.mxu1 %v17947_v24  ;;  %v17956_v24 = vld [vmem:[#allocation56_spill] sm:$0xff] }
 0x978   :  { %12556 = vmatprep.subr.bf16.mxu1 %v17948_v45  ;;  %v17957_v45 = vld [vmem:[#allocation57_spill] sm:$0xff] }
 0x97a   :  { %10064 = vmatmul.mubr.msk.f32.vlgmr.msra.gmra.mrb[22].mxu1 %vm624_vm1, %v1883_v42  ;;  %v17958_v42 = vld [vmem:[#allocation58_spill] sm:$0xff] }
 0x97b   :  { %12558 = vmatpush1.bf16.msra.mxu1 %v17949_v21  ;;  %2388 = vmatprep.mubr.f32.mxu1 %v17847_v32  ;;  %v17959_v21 = vld [vmem:[#allocation59_spill] sm:$0xff] }
 0x97c   :  { %12560 = vmatprep.subr.bf16.mxu1 %v17950_v27  ;;  %v17961_v27 = vld [vmem:[#allocation61_spill] sm:$0xff] }
 0x97f   :  { %12562 = vmatpush1.bf16.msra.mxu1 %v17951_v62  ;;  %v17962_v62 = vld [vmem:[#allocation62_spill] sm:$0xff] }
 0x980   :  { %12564 = vmatprep.subr.bf16.mxu1 %v17952_v33 }
 0x983   :  { %12566 = vmatpush1.bf16.msra.mxu1 %v17953_v3  ;;  %v17963_v3 = vld [vmem:[#allocation64_spill] sm:$0xff] }
 0x984   :  { %12568 = vmatprep.subr.bf16.mxu1 %v17954_v34 }
 0x987   :  { %12570 = vmatpush1.bf16.msra.mxu1 %v17955_v16  ;;  %v17965_v16 = vld [vmem:[#allocation63_spill] sm:$0xff] }
 0x988   :  { %12572 = vmatprep.subr.bf16.mxu1 %v17956_v24 }
 0x98b   :  { %12574 = vmatpush1.bf16.msra.mxu1 %v17957_v45 }
 0x98c   :  { %12576 = vmatprep.subr.bf16.mxu1 %v17958_v42  ;;  %v17966_v42 = vld [vmem:[#allocation10_spill] sm:$0xff] }
 0x98f   :  { %12578 = vmatpush1.bf16.msra.mxu1 %v17959_v21 }
 0x990   :  { %12580 = vmatprep.subr.bf16.mxu1 %v17960_v22 }
 0x993   :  { %12582 = vmatpush1.bf16.msra.mxu1 %v17961_v27 }
 0x994   :  { %12584 = vmatprep.subr.bf16.mxu1 %v17962_v62 }
 0x996   :  { %v1861_v33 = vpop.f32.mrb[16].mxu0 }
 0x997   :  { %v15953_v41 = vadd.f32 %v17963_v3, %v1861_v33  ;;  %v9922_v34 = vpop.f32.mrb[17].mxu0  ;;  %12586 = vmatpush1.bf16.msra.mxu1 %v17965_v16  ;;  %v17967_v33 = vld [vmem:[#allocation12_spill] sm:$0xff]  ;;  %v17970_v16 = vld [vmem:[#allocation18_spill] sm:$0xff] }
 0x998   :  { %12635 = vmatprep.subr.bf16.mxu1 %v17850_v6  ;;  %v17968_v34 = vld [vmem:[#allocation14_spill] sm:$0xff]  ;;  %v17969_v3 = vld [vmem:[#allocation16_spill] sm:$0xff] }
 0x999   :  { %17964 = vst [vmem:[#allocation65_spill] sm:$0xff] %v15953_v41  ;;  %v1866_v45 = vand.u32 2147483647, %v15953_v41 }
 0x99a   :  { %2389 = vmatmul.mubr.f32.vlgmr.msra.gmra.mrb[20].mxu1 %v15755_v39 }
 0x99b   :  { %v1867_v21 = vsub.f32 0.0, %v1866_v45  ;;  %12637 = vmatpush3.bf16.msra.mxu1 %v17966_v42  ;;  %10168 = vmatprep.mubr.msk.f32.mxu1 %vm14409_vm0, %v17847_v32 }
 0x99c   :  { %12638 = vmatprep.subr.bf16.mxu1 %v17850_v6 }
 0x99d   :  { %v1868_v62 = vmul.f32 1.442695, %v1867_v21  ;;  %v17971_v21 = vld [vmem:[#allocation20_spill] sm:$0xff] }
 0x99f   :  { %14183 = vpow2.f32 %v1868_v62  ;;  %12640 = vmatpush3.bf16.msra.mxu1 %v17967_v33  ;;  %v17972_v62 = vld [vmem:[#allocation22_spill] sm:$0xff] }
 0x9a0   :  { %12641 = vmatprep.subr.bf16.mxu1 %v17850_v6 }
 0x9a3   :  { %12643 = vmatpush3.bf16.msra.mxu1 %v17968_v34 }
 0x9a4   :  { %12644 = vmatprep.subr.bf16.mxu1 %v17850_v6 }
 0x9a7   :  { %12646 = vmatpush3.bf16.msra.mxu1 %v17969_v3  ;;  %v1865_v3 = vmax.f32 %v15953_v41, 0.0 }
 0x9a8   :  { %12647 = vmatprep.subr.bf16.mxu1 %v17850_v6 }
 0x9a9   :  { %v14184_v45 = vpop.eup %14183 }
 0x9aa   :  { %v1870_v42 = vadd.f32 1.0, %v14184_v45  ;;  %v17973_v45 = vld [vmem:[#allocation23_spill] sm:$0xff] }
 0x9ab   :  { %12649 = vmatpush3.bf16.msra.mxu1 %v17970_v16 }
 0x9ac   :  { %14185 = vlog2.f32 %v1870_v42  ;;  %12650 = vmatprep.subr.bf16.mxu1 %v17850_v6 }
 0x9ad   :  { %14187 = vlog2.f32 %v15873_v12 }
 0x9af   :  { %12652 = vmatpush3.bf16.msra.mxu1 %v17971_v21 }
 0x9b0   :  { %12653 = vmatprep.subr.bf16.mxu1 %v17850_v6 }
 0x9b3   :  { %12655 = vmatpush3.bf16.msra.mxu1 %v17972_v62 }
 0x9b4   :  { %12656 = vmatprep.subr.bf16.mxu1 %v17850_v6 }
 0x9b6   :  { %v14186_v34 = vpop.eup %14185 }
 0x9b7   :  { %v1872_v33 = vmul.f32 0.6931472, %v14186_v34  ;;  %12658 = vmatpush3.bf16.msra.mxu1 %v17973_v45  ;;  %v14188_v21 = vpop.eup %14187  ;;  %v7960_v34 = vld [vmem:[%s17625_s0 + $0x40] sm:$0xff] }
 0x9b8   :  { %12683 = vmatprep.subr.bf16.mxu1 %v17850_v6  ;;  %v2490_v16 = vmul.f32 0.6931472, %v14188_v21  ;;  %v17980_v21 = vld [vmem:[#allocation84_spill] sm:$0xff] }
 0x9b9   :  { %v15979_v42 = vadd.f32 %v1872_v33, %v1865_v3 }
 0x9ba   :  { %v15984_v24 = vmul.f32 2.0, %v2490_v16  ;;  %v17977_v16 = vld [vmem:[#allocation81_spill] sm:$0xff] }
 0x9bb   :  { %17974 = vst [vmem:[#allocation64_spill] sm:$0xff] %v15979_v42  ;;  %14189 = vlog2.f32 %v15979_v42 }
 0x9bc   :  { %17976 = vst [vmem:[#allocation100_spill] sm:$0xff] %v15984_v24 }
 0x9c5   :  { %v14190_v27 = vpop.eup %14189 }
 0x9c6   :  { %v2487_v62 = vmul.f32 0.6931472, %v14190_v27  ;;  %v17979_v27 = vld [vmem:[#allocation83_spill] sm:$0xff] }
 0x9c8   :  { %v15982_v22 = vmul.f32 2.0, %v2487_v62 }
 0x9ca   :  { %17975 = vst [vmem:[#allocation99_spill] sm:$0xff] %v15982_v22 }
 0xa2d   :  { %v2024_v41 = vpop.f32.mrb[18].mxu1 }
 0xa2e   :  { %v14092_v33 = vadd.f32 %v7960_v34, %v2024_v41  ;;  %v9976_v3 = vpop.f32.mrb[19].mxu1  ;;  %v17978_v41 = vld [vmem:[#allocation82_spill] sm:$0xff]  ;;  %v17981_v34 = vld [vmem:[#allocation85_spill] sm:$0xff] }
 0xa30   :  { %v2029_v45 = vmax.f32 %v14092_v33, 0.0 }
 0xa32   :  { %10010 = vmatmul.mubr.f32.vlgmr.msra.gmra.mrb[18].mxu0 %v2029_v45 }
 0xa33   :  { %12505 = vmatpush3.bf16.msra.mxu0 %v15540_v14  ;;  %10044 = vmatprep.mubr.msk.f32.mxu0 %vm14409_vm0, %v17847_v32 }
 0xa34   :  { %12506 = vmatprep.subr.bf16.mxu0 %v17850_v6 }
 0xa37   :  { %12508 = vmatpush3.bf16.msra.mxu0 %v15549_v36 }
 0xa38   :  { %12509 = vmatprep.subr.bf16.mxu0 %v17850_v6 }
 0xa3b   :  { %12511 = vmatpush3.bf16.msra.mxu0 %v15561_v30 }
 0xa3c   :  { %12512 = vmatprep.subr.bf16.mxu0 %v17850_v6 }
 0xa3f   :  { %12514 = vmatpush3.bf16.msra.mxu0 %v17977_v16 }
 0xa40   :  { %12515 = vmatprep.subr.bf16.mxu0 %v17850_v6 }
 0xa43   :  { %12517 = vmatpush3.bf16.msra.mxu0 %v17978_v41 }
 0xa44   :  { %12518 = vmatprep.subr.bf16.mxu0 %v17850_v6 }
 0xa47   :  { %12520 = vmatpush3.bf16.msra.mxu0 %v17979_v27 }
 0xa48   :  { %12521 = vmatprep.subr.bf16.mxu0 %v17850_v6 }
 0xa4b   :  { %12523 = vmatpush3.bf16.msra.mxu0 %v17980_v21 }
 0xa4c   :  { %12524 = vmatprep.subr.bf16.mxu0 %v17850_v6 }
 0xa4d   :  { %v16007_v62 = vpop.f32.mrb[22].mxu1 }
 0xa4e   :  { %v10065_v45 = vpop.f32.mrb[23].mxu1 }
 0xa4f   :  { %12526 = vmatpush3.bf16.msra.mxu0 %v17981_v34  ;;  %v17982_v45 = vld [vmem:[#allocation89_spill] sm:$0xff]  ;;  %v17997_v34 = vld [vmem:[#allocation96_spill] sm:$0xff] }
 0xa50   :  { %12587 = vmatprep.subr.bf16.mxu0 %v17850_v6 }
 0xa6d   :  { %v2390_v33 = vpop.f32.mrb[20].mxu1 }
 0xa6e   :  { %v2392_v3 = vpop.f32.mrb[21].mxu1 }
 0xb05   :  { %v2096_v12 = vpop.f32.mrb[18].mxu0 }
 0xb06   :  { %v2097_v24 = vadd.f32 %v15625_v25, %v2096_v12  ;;  %v10011_v22 = vpop.f32.mrb[19].mxu0  ;;  %v17983_v25 = vld [vmem:[#allocation90_spill] sm:$0xff]  ;;  %v17984_v12 = vld [vmem:[#allocation91_spill] sm:$0xff] }
 0xb07   :  { %v17985_v22 = vld [vmem:[#allocation92_spill] sm:$0xff] }
 0xb08   :  { %v2100_v42 = vmax.f32 %v2097_v24, 0.0  ;;  %v17986_v24 = vld [vmem:[#allocation93_spill] sm:$0xff] }
 0xb0a   :  { %10045 = vmatmul.mubr.f32.vlgmr.msra.gmra.mrb[20].mxu0 %v2100_v42  ;;  %v17987_v42 = vld [vmem:[#allocation8_spill] sm:$0xff] }
 0xb0b   :  { %12589 = vmatpush3.bf16.msra.mxu0 %v15634_v46  ;;  %10098 = vmatprep.mubr.msk.f32.mxu0 %vm14409_vm0, %v17847_v32 }
 0xb0c   :  { %12590 = vmatprep.subr.bf16.mxu0 %v17850_v6 }
 0xb0f   :  { %12592 = vmatpush3.bf16.msra.mxu0 %v15643_v56 }
 0xb10   :  { %12593 = vmatprep.subr.bf16.mxu0 %v17850_v6 }
 0xb13   :  { %12595 = vmatpush3.bf16.msra.mxu0 %v15655_v2 }
 0xb14   :  { %12596 = vmatprep.subr.bf16.mxu0 %v17850_v6 }
 0xb17   :  { %12598 = vmatpush3.bf16.msra.mxu0 %v17982_v45  ;;  %v17993_v45 = vld [vmem:[#allocation19_spill] sm:$0xff] }
 0xb18   :  { %12599 = vmatprep.subr.bf16.mxu0 %v17850_v6 }
 0xb1b   :  { %12601 = vmatpush3.bf16.msra.mxu0 %v17983_v25  ;;  %v17991_v25 = vld [vmem:[#allocation15_spill] sm:$0xff] }
 0xb1c   :  { %12602 = vmatprep.subr.bf16.mxu0 %v17850_v6 }
 0xb1f   :  { %12604 = vmatpush3.bf16.msra.mxu0 %v17984_v12  ;;  %v17988_v12 = vld [vmem:[#allocation9_spill] sm:$0xff] }
 0xb20   :  { %12605 = vmatprep.subr.bf16.mxu0 %v17850_v6 }
 0xb23   :  { %12607 = vmatpush3.bf16.msra.mxu0 %v17985_v22  ;;  %v17989_v22 = vld [vmem:[#allocation11_spill] sm:$0xff] }
 0xb24   :  { %12608 = vmatprep.subr.bf16.mxu0 %v17850_v6 }
 0xb27   :  { %12610 = vmatpush3.bf16.msra.mxu0 %v17986_v24  ;;  %v17990_v24 = vld [vmem:[#allocation13_spill] sm:$0xff] }
 0xb28   :  { %12611 = vmatprep.subr.bf16.mxu0 %v17850_v6 }
 0xb2a   :  { %10099 = vmatmul.mubr.f32.vlgmr.msra.gmra.mrb[22].mxu0 %v15755_v39 }
 0xb2b   :  { %12613 = vmatpush3.bf16.msra.mxu0 %v17987_v42  ;;  %10133 = vmatprep.mubr.msk.f32.mxu0 %vm14409_vm0, %v17847_v32  ;;  %v17992_v42 = vld [vmem:[#allocation17_spill] sm:$0xff] }
 0xb2c   :  { %12614 = vmatprep.subr.bf16.mxu0 %v17850_v6 }
 0xb2f   :  { %12616 = vmatpush3.bf16.msra.mxu0 %v17988_v12  ;;  %v17994_v12 = vld [vmem:[#allocation21_spill] sm:$0xff] }
 0xb30   :  { %12617 = vmatprep.subr.bf16.mxu0 %v17850_v6 }
 0xb33   :  { %12619 = vmatpush3.bf16.msra.mxu0 %v17989_v22  ;;  %v17995_v22 = vld [vmem:[#allocation94_spill] sm:$0xff] }
 0xb34   :  { %12620 = vmatprep.subr.bf16.mxu0 %v17850_v6 }
 0xb37   :  { %12622 = vmatpush3.bf16.msra.mxu0 %v17990_v24  ;;  %v7961_v24 = vld [vmem:[%s17625_s0 + $0x48] sm:$0xff] }
 0xb38   :  { %12623 = vmatprep.subr.bf16.mxu0 %v17850_v6 }
 0xb3b   :  { %12625 = vmatpush3.bf16.msra.mxu0 %v17991_v25  ;;  %v14093_v25 = vadd.f32 %v7961_v24, %v17995_v22 }
 0xb3c   :  { %12626 = vmatprep.subr.bf16.mxu0 %v17850_v6 }
 0xb3d   :  { %v14094_v2 = vadd.f32 %v14093_v25, %v2390_v33  ;;  %v7963_v33 = vld [vmem:[%s17625_s0 + $0x58] sm:$0xff] }
 0xb3f   :  { %12628 = vmatpush3.bf16.msra.mxu0 %v17992_v42  ;;  %v7969_v46 = vmul.f32 -1.442695, %v14094_v2 }
 0xb40   :  { %12629 = vmatprep.subr.bf16.mxu0 %v17850_v6 }
 0xb41   :  { %14191 = vpow2.f32 %v7969_v46 }
 0xb43   :  { %12631 = vmatpush3.bf16.msra.mxu0 %v17993_v45  ;;  %v7962_v45 = vld [vmem:[%s17625_s0 + $0x50] sm:$0xff] }
 0xb44   :  { %12632 = vmatprep.subr.bf16.mxu0 %v17850_v6  ;;  %v14095_v21 = vadd.f32 %v7962_v45, %v17997_v34  ;;  %v2323_v45 = vadd.f32 %v7963_v33, %v16007_v62 }
 0xb47   :  { %12634 = vmatpush3.bf16.msra.mxu0 %v17994_v12  ;;  %v14096_v12 = vadd.f32 %v14095_v21, %v2392_v3 }
 0xb48   :  { %12659 = vmatprep.subr.bf16.mxu0 %v17850_v6 }
 0xb49   :  { %v7970_v27 = vmul.f32 -1.442695, %v14096_v12 }
 0xb4b   :  { %v14192_v41 = vpop.eup %14191  ;;  %14193 = vpow2.f32 %v7970_v27 }
 0xb4c   :  { %v2469_v16 = vadd.f32 1.0, %v14192_v41 }
 0xb4e   :  { %14195 = vrcp.f32 %v2469_v16 }
 0xb55   :  { %v14194_v30 = vpop.eup %14193 }
 0xb56   :  { %v2476_v24 = vadd.f32 1.0, %v14194_v30 }
 0xb58   :  { %14197 = vrcp.f32 %v2476_v24 }
 0xbdd   :  { %v16053_v56 = vpop.f32.mrb[20].mxu0 }
 0xbde   :  { %17996 = vst [vmem:[#allocation94_spill] sm:$0xff] %v16053_v56  ;;  %v10046_v42 = vpop.f32.mrb[21].mxu0  ;;  %v14196_v56 = vpop.eup %14195 }
 0xbdf   :  { %v14198_v27 = vpop.eup %14197 }
 0xbe0   :  { %v2482_v41 = vsub.f32 1.0, %v14198_v27  ;;  %v2484_v30 = vmul.f32 %v14198_v27, %v15755_v39 }
 0xbfd   :  { %v2461_v2 = vpop.f32.mrb[22].mxu0 }
 0xbfe   :  { %v2462_v25 = vadd.f32 %v2461_v2, %v15748_v7  ;;  %v10100_v42 = vpop.f32.mrb[23].mxu0 }
 0xc00   :  { %v2479_v46 = vmul.f32 %v14196_v56, %v2462_v25  ;;  %v7972_v56 = vld [vmem:[%s17625_s0 + $0x60] sm:$0xff] }
 0xc02   :  { %v2480_v21 = vadd.f32 %v2479_v46, %v2323_v45 }
 0xc04   :  { %14199 = vtanh.f32 %v2480_v21 }
 0xc0e   :  { %v14200_v16 = vpop.eup %14199 }
 0xc0f   :  { %v2483_v3 = vmul.f32 %v14200_v16, %v2482_v41  ;;  %v17998_v16 = vld [vmem:[#allocation25_spill] sm:$0xff] }
 0xc11   :  { %v16065_v12 = vadd.f32 %v2484_v30, %v2483_v3  ;;  %v17999_v30 = vld [vmem:[#allocation26_spill] sm:$0xff]  ;;  %v18000_v3 = vld [vmem:[#allocation27_spill] sm:$0xff] }
 0xc13   :  { %10134 = vmatmul.mubr.f32.vlgmr.msra.gmra.mrb[24].mxu0 %v16065_v12 }
 0xc14   :  { %12661 = vmatpush3.bf16.msra.mxu0 %v14643_v53  ;;  %10203 = vmatprep.mubr.msk.f32.mxu0 %vm14409_vm0, %v17847_v32 }
 0xc15   :  { %12662 = vmatprep.subr.bf16.mxu0 %v17850_v6 }
 0xc18   :  { %12664 = vmatpush3.bf16.msra.mxu0 %v14649_v55 }
 0xc19   :  { %12665 = vmatprep.subr.bf16.mxu0 %v17850_v6 }
 0xc1c   :  { %12667 = vmatpush3.bf16.msra.mxu0 %v14659_v58 }
 0xc1d   :  { %12668 = vmatprep.subr.bf16.mxu0 %v17850_v6 }
 0xc20   :  { %12670 = vmatpush3.bf16.msra.mxu0 %v14669_v61 }
 0xc21   :  { %12671 = vmatprep.subr.bf16.mxu0 %v17850_v6 }
 0xc24   :  { %12673 = vmatpush3.bf16.msra.mxu0 %v14679_v0 }
 0xc25   :  { %12674 = vmatprep.subr.bf16.mxu0 %v17850_v6 }
 0xc28   :  { %12676 = vmatpush3.bf16.msra.mxu0 %v14689_v5 }
 0xc29   :  { %12677 = vmatprep.subr.bf16.mxu0 %v17850_v6 }
 0xc2c   :  { %12679 = vmatpush3.bf16.msra.mxu0 %v14699_v10 }
 0xc2d   :  { %12680 = vmatprep.subr.bf16.mxu0 %v17850_v6 }
 0xc30   :  { %12682 = vmatpush3.bf16.msra.mxu0 %v14798_v59 }
 0xc31   :  { %12707 = vmatprep.subr.bf16.mxu0 %v17850_v6 }
 0xce6   :  { %v2605_v39 = vpop.f32.mrb[24].mxu0 }
 0xce7   :  { %v2609_v62 = vadd.f32 %v7972_v56, %v2605_v39  ;;  %v10135_v24 = vpop.f32.mrb[25].mxu0  ;;  %v18001_v39 = vld [vmem:[#allocation24_spill] sm:$0xff] }
 0xce9   :  { %v2610_v33 = vmax.f32 %v2609_v62, 0.0 }
 0xceb   :  { %10169 = vmatmul.mubr.f32.vlgmr.msra.gmra.mrb[24].mxu1 %v2610_v33 }
 0xcec   :  { %12685 = vmatpush3.bf16.msra.mxu1 %v14713_v20  ;;  %10238 = vmatprep.mubr.msk.f32.mxu1 %vm14409_vm0, %v17847_v32 }
 0xced   :  { %12686 = vmatprep.subr.bf16.mxu1 %v17850_v6 }
 0xcf0   :  { %12688 = vmatpush3.bf16.msra.mxu1 %v14722_v26 }
 0xcf1   :  { %12689 = vmatprep.subr.bf16.mxu1 %v17850_v6 }
 0xcf4   :  { %12691 = vmatpush3.bf16.msra.mxu1 %v14734_v31 }
 0xcf5   :  { %12692 = vmatprep.subr.bf16.mxu1 %v17850_v6 }
 0xcf8   :  { %12694 = vmatpush3.bf16.msra.mxu1 %v14744_v35 }
 0xcf9   :  { %12695 = vmatprep.subr.bf16.mxu1 %v17850_v6 }
 0xcfc   :  { %12697 = vmatpush3.bf16.msra.mxu1 %v14754_v40 }
 0xcfd   :  { %12698 = vmatprep.subr.bf16.mxu1 %v17850_v6 }
 0xd00   :  { %12700 = vmatpush3.bf16.msra.mxu1 %v14764_v44 }
 0xd01   :  { %12701 = vmatprep.subr.bf16.mxu1 %v17850_v6 }
 0xd04   :  { %12703 = vmatpush3.bf16.msra.mxu1 %v14774_v50 }
 0xd05   :  { %12704 = vmatprep.subr.bf16.mxu1 %v17850_v6 }
 0xd08   :  { %12706 = vmatpush3.bf16.msra.mxu1 %v14784_v54 }
 0xd09   :  { %12731 = vmatprep.subr.bf16.mxu1 %v17850_v6 }
 0xd0b   :  { %10239 = vmatmul.mubr.f32.vlgmr.msra.gmra.mrb[26].mxu1 %v16065_v12 }
 0xd0c   :  { %12733 = vmatpush3.bf16.msra.mxu1 %v14902_v13  ;;  %10308 = vmatprep.mubr.msk.f32.mxu1 %vm14409_vm0, %v17847_v32 }
 0xd0d   :  { %12734 = vmatprep.subr.bf16.mxu1 %v17850_v6 }
 0xd10   :  { %12736 = vmatpush3.bf16.msra.mxu1 %v14912_v19 }
 0xd11   :  { %12737 = vmatprep.subr.bf16.mxu1 %v17850_v6 }
 0xd14   :  { %12739 = vmatpush3.bf16.msra.mxu1 %v14921_v28 }
 0xd15   :  { %12740 = vmatprep.subr.bf16.mxu1 %v17850_v6 }
 0xd18   :  { %12742 = vmatpush3.bf16.msra.mxu1 %v14931_v38 }
 0xd19   :  { %12743 = vmatprep.subr.bf16.mxu1 %v17850_v6 }
 0xd1c   :  { %12745 = vmatpush3.bf16.msra.mxu1 %v14941_v48 }
 0xd1d   :  { %12746 = vmatprep.subr.bf16.mxu1 %v17850_v6 }
 0xd20   :  { %12748 = vmatpush3.bf16.msra.mxu1 %v14951_v57 }
 0xd21   :  { %12749 = vmatprep.subr.bf16.mxu1 %v17850_v6 }
 0xd24   :  { %12751 = vmatpush3.bf16.msra.mxu1 %v14961_v1 }
 0xd25   :  { %12752 = vmatprep.subr.bf16.mxu1 %v17850_v6 }
 0xd28   :  { %12754 = vmatpush3.bf16.msra.mxu1 %v14972_v9 }
 0xd29   :  { %12791 = vmatprep.subr.bf16.mxu1 %v17850_v6 }
 0xdbe   :  { %v2677_v2 = vpop.f32.mrb[24].mxu1 }
 0xdbf   :  { %v2678_v25 = vadd.f32 %v15823_v4, %v2677_v2  ;;  %v10170_v42 = vpop.f32.mrb[25].mxu1  ;;  %v7973_v4 = vld [vmem:[%s17625_s0 + $0x68] sm:$0xff] }
 0xdc1   :  { %v2681_v45 = vmax.f32 %v2678_v25, 0.0 }
 0xdc3   :  { %10204 = vmatmul.mubr.f32.vlgmr.msra.gmra.mrb[26].mxu0 %v2681_v45 }
 0xdc4   :  { %12709 = vmatpush3.bf16.msra.mxu0 %v14815_v11  ;;  %10273 = vmatprep.mubr.msk.f32.mxu0 %vm14409_vm0, %v17847_v32 }
 0xdc5   :  { %12710 = vmatprep.subr.bf16.mxu0 %v17850_v6 }
 0xdc8   :  { %12712 = vmatpush3.bf16.msra.mxu0 %v14824_v17 }
 0xdc9   :  { %12713 = vmatprep.subr.bf16.mxu0 %v17850_v6 }
 0xdcc   :  { %12715 = vmatpush3.bf16.msra.mxu0 %v14836_v23 }
 0xdcd   :  { %12716 = vmatprep.subr.bf16.mxu0 %v17850_v6 }
 0xdd0   :  { %12718 = vmatpush3.bf16.msra.mxu0 %v14846_v29 }
 0xdd1   :  { %12719 = vmatprep.subr.bf16.mxu0 %v17850_v6 }
 0xdd4   :  { %12721 = vmatpush3.bf16.msra.mxu0 %v14856_v37 }
 0xdd5   :  { %12722 = vmatprep.subr.bf16.mxu0 %v17850_v6 }
 0xdd8   :  { %12724 = vmatpush3.bf16.msra.mxu0 %v14866_v43 }
 0xdd9   :  { %12725 = vmatprep.subr.bf16.mxu0 %v17850_v6 }
 0xddc   :  { %12727 = vmatpush3.bf16.msra.mxu0 %v14876_v51 }
 0xddd   :  { %12728 = vmatprep.subr.bf16.mxu0 %v17850_v6 }
 0xdde   :  { %v2827_v46 = vpop.f32.mrb[26].mxu1 }
 0xddf   :  { %v2831_v21 = vadd.f32 %v7973_v4, %v2827_v46  ;;  %v10240_v27 = vpop.f32.mrb[27].mxu1 }
 0xde0   :  { %12730 = vmatpush3.bf16.msra.mxu0 %v14889_v60 }
 0xde1   :  { %v2832_v41 = vmax.f32 %v2831_v21, 0.0  ;;  %12755 = vmatprep.subr.bf16.mxu0 %v17850_v6 }
 0xde3   :  { %10274 = vmatmul.mubr.f32.vlgmr.msra.gmra.mrb[28].mxu0 %v2832_v41 }
 0xde4   :  { %12757 = vmatpush3.bf16.msra.mxu0 %v17918_v15  ;;  %10327 = vmatprep.mubr.msk.f32.mxu0 %vm14409_vm0, %v17847_v32 }
 0xde5   :  { %12758 = vmatprep.subr.bf16.mxu0 %v17850_v6 }
 0xde8   :  { %12760 = vmatpush3.bf16.msra.mxu0 %v17998_v16 }
 0xde9   :  { %12761 = vmatprep.subr.bf16.mxu0 %v17850_v6 }
 0xdec   :  { %12763 = vmatpush3.bf16.msra.mxu0 %v17999_v30 }
 0xded   :  { %12764 = vmatprep.subr.bf16.mxu0 %v17850_v6 }
 0xdf0   :  { %12766 = vmatpush3.bf16.msra.mxu0 %v18000_v3 }
 0xdf1   :  { %12767 = vmatprep.subr.bf16.mxu0 %v17850_v6 }
 0xe96   :  { %v2748_v56 = vpop.f32.mrb[26].mxu0 }
 0xe97   :  { %v16159_v62 = vadd.f32 %v18001_v39, %v2748_v56  ;;  %v10205_v24 = vpop.f32.mrb[27].mxu0  ;;  %v18002_v39 = vld [vmem:[#allocation72_spill] sm:$0xff] }
 0xe99   :  { %v2753_v33 = vand.u32 2147483647, %v16159_v62  ;;  %v2752_v21 = vmax.f32 %v16159_v62, 0.0 }
 0xe9b   :  { %v2754_v2 = vsub.f32 0.0, %v2753_v33 }
 0xe9d   :  { %v2755_v25 = vmul.f32 1.442695, %v2754_v2 }
 0xe9f   :  { %14201 = vpow2.f32 %v2755_v25  ;;  %v18006_v25 = vld [vmem:[#allocation28_spill] sm:$0xff] }
 0xea9   :  { %v14202_v42 = vpop.eup %14201 }
 0xeaa   :  { %v2757_v45 = vadd.f32 1.0, %v14202_v42  ;;  %v18007_v42 = vld [vmem:[#allocation29_spill] sm:$0xff] }
 0xeac   :  { %14203 = vlog2.f32 %v2757_v45  ;;  %v18008_v45 = vld [vmem:[#allocation30_spill] sm:$0xff] }
 0xeb6   :  { %v14204_v4 = vpop.eup %14203  ;;  %v2899_v46 = vpop.f32.mrb[28].mxu0 }
 0xeb7   :  { %v2900_v27 = vadd.f32 %v15869_v18, %v2899_v46  ;;  %v10275_v41 = vpop.f32.mrb[29].mxu0  ;;  %v2759_v3 = vmul.f32 0.6931472, %v14204_v4  ;;  %v18003_v18 = vld [vmem:[#allocation69_spill] sm:$0xff]  ;;  %v18009_v4 = vld [vmem:[#allocation31_spill] sm:$0xff]  ;;  %v18010_v46 = vld [vmem:[#allocation32_spill] sm:$0xff] }
 0xeb8   :  { %v18013_v41 = vld [vmem:[#allocation35_spill] sm:$0xff] }
 0xeb9   :  { %v2903_v30 = vmax.f32 %v2900_v27, 0.0  ;;  %v16164_v56 = vadd.f32 %v2759_v3, %v2752_v21  ;;  %v18005_v3 = vld [vmem:[#allocation71_spill] sm:$0xff]  ;;  %v18011_v21 = vld [vmem:[#allocation33_spill] sm:$0xff]  ;;  %v18012_v27 = vld [vmem:[#allocation34_spill] sm:$0xff] }
 0xebb   :  { %10309 = vmatmul.mubr.f32.vlgmr.msra.gmra.mrb[28].mxu1 %v2903_v30  ;;  %v2987_v24 = vmul.f32 %v18002_v39, %v16164_v56  ;;  %v18004_v30 = vld [vmem:[#allocation70_spill] sm:$0xff]  ;;  %v18014_v39 = vld [vmem:[#allocation36_spill] sm:$0xff] }
 0xebc   :  { %12793 = vmatpush3.bf16.msra.mxu1 %v15404_v52  ;;  %10397 = vmatprep.mubr.msk.f32.mxu1 %vm14409_vm0, %v17847_v32 }
 0xebd   :  { %2989 = vrot.lane.b32.xlu1 %v2987_v24, %s14411_s15  ;;  %12794 = vmatprep.subr.bf16.mxu1 %v17850_v6  ;;  %v18015_v24 = vld [vmem:[#allocation37_spill] sm:$0xff] }
 0xec0   :  { %12796 = vmatpush3.bf16.msra.mxu1 %v17925_v49 }
 0xec1   :  { %12797 = vmatprep.subr.bf16.mxu1 %v17850_v6 }
 0xec4   :  { %12799 = vmatpush3.bf16.msra.mxu1 %v15444_v47 }
 0xec5   :  { %12800 = vmatprep.subr.bf16.mxu1 %v17850_v6 }
 0xec8   :  { %12802 = vmatpush3.bf16.msra.mxu1 %v15451_v8 }
 0xec9   :  { %12803 = vmatprep.subr.bf16.mxu1 %v17850_v6 }
 0xecc   :  { %12805 = vmatpush3.bf16.msra.mxu1 %v15466_v63 }
 0xecd   :  { %12806 = vmatprep.subr.bf16.mxu1 %v17850_v6 }
 0xed0   :  { %12808 = vmatpush3.bf16.msra.mxu1 %v18003_v18 }
 0xed1   :  { %12809 = vmatprep.subr.bf16.mxu1 %v17850_v6 }
 0xed4   :  { %12811 = vmatpush3.bf16.msra.mxu1 %v18004_v30 }
 0xed5   :  { %12812 = vmatprep.subr.bf16.mxu1 %v17850_v6 }
 0xed8   :  { %12814 = vmatpush3.bf16.msra.mxu1 %v18005_v3 }
 0xed9   :  { %12815 = vmatprep.subr.bf16.mxu1 %v17850_v6 }
 0xf2f   :  { %v2990_v33 = vpop.permute.xlu1 %2989 }
 0xf30   :  { %v2992_v2 = vadd.f32 %v2990_v33, %v16159_v62  ;;  %v18016_v33 = vld [vmem:[#allocation38_spill] sm:$0xff] }
 0xf32   :  { %10328 = vmatmul.mubr.msk.f32.vlgmr.msra.gmra.mrb[30].mxu0 %vm624_vm1, %v2992_v2 }
 0xf33   :  { %12769 = vmatpush3.bf16.msra.mxu0 %v18006_v25  ;;  %10362 = vmatprep.mubr.msk.f32.mxu0 %vm14409_vm0, %v17847_v32 }
 0xf34   :  { %12770 = vmatprep.subr.bf16.mxu0 %v17850_v6 }
 0xf37   :  { %12772 = vmatpush3.bf16.msra.mxu0 %v18007_v42  ;;  %v18038_v42 = vld [vmem:[#allocation60_spill] sm:$0xff] }
 0xf38   :  { %12773 = vmatprep.subr.bf16.mxu0 %v17850_v6 }
 0xf3b   :  { %12775 = vmatpush3.bf16.msra.mxu0 %v18008_v45  ;;  %v18021_v45 = vld [vmem:[#allocation43_spill] sm:$0xff] }
 0xf3c   :  { %12776 = vmatprep.subr.bf16.mxu0 %v17850_v6 }
 0xf3f   :  { %12778 = vmatpush3.bf16.msra.mxu0 %v18009_v4  ;;  %v18019_v4 = vld [vmem:[#allocation41_spill] sm:$0xff] }
 0xf40   :  { %12779 = vmatprep.subr.bf16.mxu0 %v17850_v6 }
 0xf43   :  { %12781 = vmatpush3.bf16.msra.mxu0 %v18010_v46  ;;  %v18017_v46 = vld [vmem:[#allocation39_spill] sm:$0xff] }
 0xf44   :  { %12782 = vmatprep.subr.bf16.mxu0 %v17850_v6 }
 0xf47   :  { %12784 = vmatpush3.bf16.msra.mxu0 %v18011_v21  ;;  %v18018_v21 = vld [vmem:[#allocation40_spill] sm:$0xff] }
 0xf48   :  { %12785 = vmatprep.subr.bf16.mxu0 %v17850_v6 }
 0xf4b   :  { %12787 = vmatpush3.bf16.msra.mxu0 %v18012_v27  ;;  %v18020_v27 = vld [vmem:[#allocation42_spill] sm:$0xff] }
 0xf4c   :  { %12788 = vmatprep.subr.bf16.mxu0 %v17850_v6 }
 0xf4f   :  { %12790 = vmatpush3.bf16.msra.mxu0 %v18013_v41  ;;  %v18033_v41 = vld [vmem:[#allocation55_spill] sm:$0xff] }
 0xf50   :  { %12840 = vmatprep.subr.bf16.mxu0 %v18014_v39  ;;  %v18022_v39 = vld [vmem:[#allocation44_spill] sm:$0xff] }
 0xf52   :  { %10363 = vmatmul.mubr.f32.vlgmr.msra.gmra.mrb[30].mxu0 %v16065_v12 }
 0xf53   :  { %12842 = vmatpush1.bf16.msra.mxu0 %v18015_v24  ;;  %3353 = vmatprep.mubr.f32.mxu0 %v17847_v32  ;;  %v18031_v24 = vld [vmem:[#allocation53_spill] sm:$0xff] }
 0xf54   :  { %12844 = vmatprep.subr.bf16.mxu0 %v18016_v33  ;;  %v18029_v33 = vld [vmem:[#allocation51_spill] sm:$0xff] }
 0xf57   :  { %12846 = vmatpush1.bf16.msra.mxu0 %v18017_v46  ;;  %v18023_v46 = vld [vmem:[#allocation45_spill] sm:$0xff] }
 0xf58   :  { %12848 = vmatprep.subr.bf16.mxu0 %v18018_v21  ;;  %v18028_v21 = vld [vmem:[#allocation50_spill] sm:$0xff] }
 0xf5b   :  { %12850 = vmatpush1.bf16.msra.mxu0 %v18019_v4  ;;  %v18024_v4 = vld [vmem:[#allocation46_spill] sm:$0xff] }
 0xf5c   :  { %12852 = vmatprep.subr.bf16.mxu0 %v18020_v27  ;;  %v18026_v27 = vld [vmem:[#allocation48_spill] sm:$0xff] }
 0xf5f   :  { %12854 = vmatpush1.bf16.msra.mxu0 %v18021_v45  ;;  %v18025_v45 = vld [vmem:[#allocation47_spill] sm:$0xff] }
 0xf60   :  { %12855 = vmatprep.subr.bf16.mxu0 %v17850_v6 }
 0xf62   :  { %7981 = vmatmul.mubr.msk.f32.vlgmr.msra.gmra.mrb[32].mxu0 %vm624_vm1, %v2992_v2 }
 0xf63   :  { %12857 = vmatpush3.bf16.msra.mxu0 %v18022_v39  ;;  %10451 = vmatprep.mubr.msk.f32.mxu0 %vm14409_vm0, %v17847_v32  ;;  %v18027_v39 = vld [vmem:[#allocation49_spill] sm:$0xff] }
 0xf64   :  { %12858 = vmatprep.subr.bf16.mxu0 %v17850_v6 }
 0xf67   :  { %12860 = vmatpush3.bf16.msra.mxu0 %v18023_v46  ;;  %v18030_v46 = vld [vmem:[#allocation52_spill] sm:$0xff] }
 0xf68   :  { %12861 = vmatprep.subr.bf16.mxu0 %v17850_v6 }
 0xf6b   :  { %12863 = vmatpush3.bf16.msra.mxu0 %v18024_v4  ;;  %v18032_v4 = vld [vmem:[#allocation54_spill] sm:$0xff] }
 0xf6c   :  { %12864 = vmatprep.subr.bf16.mxu0 %v17850_v6 }
 0xf6f   :  { %12866 = vmatpush3.bf16.msra.mxu0 %v18025_v45  ;;  %v18034_v45 = vld [vmem:[#allocation56_spill] sm:$0xff] }
 0xf70   :  { %12868 = vmatprep.subr.bf16.mxu0 %v18026_v27  ;;  %v18035_v27 = vld [vmem:[#allocation57_spill] sm:$0xff] }
 0xf72   :  { %10452 = vmatmul.mubr.msk.f32.vlgmr.msra.gmra.mrb[34].mxu0 %vm624_vm1, %v2992_v2  ;;  %v18036_v2 = vld [vmem:[#allocation58_spill] sm:$0xff] }
 0xf73   :  { %12870 = vmatpush1.bf16.msra.mxu0 %v18027_v39  ;;  %3497 = vmatprep.mubr.f32.mxu0 %v17847_v32  ;;  %v18037_v39 = vld [vmem:[#allocation59_spill] sm:$0xff] }
 0xf74   :  { %12872 = vmatprep.subr.bf16.mxu0 %v18028_v21  ;;  %v18039_v21 = vld [vmem:[#allocation61_spill] sm:$0xff] }
 0xf77   :  { %12874 = vmatpush1.bf16.msra.mxu0 %v18029_v33  ;;  %v18040_v33 = vld [vmem:[#allocation62_spill] sm:$0xff] }
 0xf78   :  { %12876 = vmatprep.subr.bf16.mxu0 %v18030_v46 }
 0xf7b   :  { %12878 = vmatpush1.bf16.msra.mxu0 %v18031_v24 }
 0xf7c   :  { %12880 = vmatprep.subr.bf16.mxu0 %v18032_v4  ;;  %v16247_v4 = vld [vmem:[%s17629_s4 + $0x3] ss:$0 sm:$0xff] }
 0xf7d   :  { %18041 = vst [vmem:[#allocation96_spill] sm:$0xff] %v16247_v4 }
 0xf7f   :  { %12882 = vmatpush1.bf16.msra.mxu0 %v18033_v41 }
 0xf80   :  { %12884 = vmatprep.subr.bf16.mxu0 %v18034_v45 }
 0xf83   :  { %12886 = vmatpush1.bf16.msra.mxu0 %v18035_v27  ;;  %v18042_v27 = vld [vmem:[#allocation63_spill] sm:$0xff] }
 0xf84   :  { %12888 = vmatprep.subr.bf16.mxu0 %v18036_v2  ;;  %v18043_v2 = vld [vmem:[#allocation10_spill] sm:$0xff] }
 0xf87   :  { %12890 = vmatpush1.bf16.msra.mxu0 %v18037_v39 }
 0xf88   :  { %12892 = vmatprep.subr.bf16.mxu0 %v18038_v42 }
 0xf8b   :  { %12894 = vmatpush1.bf16.msra.mxu0 %v18039_v21 }
 0xf8c   :  { %12896 = vmatprep.subr.bf16.mxu0 %v18040_v33 }
 0xf8e   :  { %v2970_v46 = vpop.f32.mrb[28].mxu1 }
 0xf8f   :  { %v2971_v45 = vadd.f32 %v16247_v4, %v2970_v46  ;;  %v10310_v41 = vpop.f32.mrb[29].mxu1  ;;  %12898 = vmatpush1.bf16.msra.mxu0 %v18042_v27  ;;  %v18047_v27 = vld [vmem:[#allocation18_spill] sm:$0xff] }
 0xf90   :  { %12947 = vmatprep.subr.bf16.mxu0 %v17850_v6  ;;  %v18044_v41 = vld [vmem:[#allocation12_spill] sm:$0xff] }
 0xf91   :  { %v2975_v39 = vand.u32 2147483647, %v2971_v45  ;;  %v3603_v42 = vsub.f32 %v16159_v62, %v2971_v45  ;;  %v18045_v62 = vld [vmem:[#allocation14_spill] sm:$0xff] }
 0xf92   :  { %3498 = vmatmul.mubr.f32.vlgmr.msra.gmra.mrb[32].mxu0 %v16065_v12 }
 0xf93   :  { %v2976_v21 = vsub.f32 0.0, %v2975_v39  ;;  %v3604_v33 = vmul.f32 %v3603_v42, %v3603_v42  ;;  %12949 = vmatpush3.bf16.msra.mxu0 %v18043_v2  ;;  %10556 = vmatprep.mubr.msk.f32.mxu0 %vm14409_vm0, %v17847_v32  ;;  %v18046_v42 = vld [vmem:[#allocation16_spill] sm:$0xff] }
 0xf94   :  { %12950 = vmatprep.subr.bf16.mxu0 %v17850_v6 }
 0xf95   :  { %v2977_v46 = vmul.f32 1.442695, %v2976_v21  ;;  %3606 = vrot.lane.b32.xlu0 %v3604_v33, %s14411_s15  ;;  %v18048_v21 = vld [vmem:[#allocation20_spill] sm:$0xff]  ;;  %v18049_v33 = vld [vmem:[#allocation22_spill] sm:$0xff] }
 0xf97   :  { %14205 = vpow2.f32 %v2977_v46  ;;  %12952 = vmatpush3.bf16.msra.mxu0 %v18044_v41  ;;  %v18050_v41 = vld [vmem:[#allocation23_spill] sm:$0xff] }
 0xf98   :  { %12953 = vmatprep.subr.bf16.mxu0 %v17850_v6 }
 0xf9b   :  { %12955 = vmatpush3.bf16.msra.mxu0 %v18045_v62  ;;  %v2974_v62 = vmax.f32 %v2971_v45, 0.0  ;;  %v3602_v45 = vmul.f32 %v16164_v56, %v16164_v56 }
 0xf9c   :  { %12956 = vmatprep.subr.bf16.mxu0 %v17850_v6 }
 0xf9f   :  { %12958 = vmatpush3.bf16.msra.mxu0 %v18046_v42 }
 0xfa0   :  { %12959 = vmatprep.subr.bf16.mxu0 %v17850_v6 }
 0xfa1   :  { %v14206_v39 = vpop.eup %14205 }
 0xfa2   :  { %v2979_v2 = vadd.f32 1.0, %v14206_v39 }
 0xfa3   :  { %12961 = vmatpush3.bf16.msra.mxu0 %v18047_v27 }
 0xfa4   :  { %14207 = vlog2.f32 %v2979_v2  ;;  %12962 = vmatprep.subr.bf16.mxu0 %v17850_v6 }
 0xfa5   :  { %14209 = vlog2.f32 %v16164_v56  ;;  %v18052_v56 = vld [vmem:[#allocation80_spill] sm:$0xff] }
 0xfa7   :  { %12964 = vmatpush3.bf16.msra.mxu0 %v18048_v21 }
 0xfa8   :  { %12965 = vmatprep.subr.bf16.mxu0 %v17850_v6 }
 0xfab   :  { %12967 = vmatpush3.bf16.msra.mxu0 %v18049_v33 }
 0xfac   :  { %12968 = vmatprep.subr.bf16.mxu0 %v17850_v6 }
 0xfae   :  { %v14208_v46 = vpop.eup %14207 }
 0xfaf   :  { %v2981_v42 = vmul.f32 0.6931472, %v14208_v46  ;;  %12970 = vmatpush3.bf16.msra.mxu0 %v18050_v41  ;;  %v14210_v39 = vpop.eup %14209 }
 0xfb0   :  { %12995 = vmatprep.subr.bf16.mxu0 %v17850_v6  ;;  %v3599_v27 = vmul.f32 0.6931472, %v14210_v39 }
 0xfb1   :  { %v2982_v2 = vadd.f32 %v2981_v42, %v2974_v62  ;;  %v7974_v62 = vld [vmem:[%s17625_s0 + $0x70] sm:$0xff] }
 0xfb2   :  { %v3600_v24 = vmul.f32 2.0, %v3599_v27 }
 0xfb3   :  { %14211 = vlog2.f32 %v2982_v2  ;;  %v3610_v3 = vmul.f32 %v2982_v2, %v2982_v2 }
 0xfb5   :  { %14213 = vrcp.f32 %v3610_v3  ;;  %v18055_v3 = vld [vmem:[#allocation83_spill] sm:$0xff] }
 0xfbd   :  { %v14212_v21 = vpop.eup %14211 }
 0xfbe   :  { %v3596_v4 = vmul.f32 0.6931472, %v14212_v21 }
 0xfbf   :  { %v14214_v18 = vpop.eup %14213 }
 0xfc0   :  { %v3597_v25 = vmul.f32 2.0, %v3596_v4 }
 0xfc2   :  { %v3601_v33 = vsub.f32 %v3597_v25, %v3600_v24  ;;  %v18056_v25 = vld [vmem:[#allocation84_spill] sm:$0xff] }
0x1007   :  { %v3607_v46 = vpop.permute.xlu0 %3606 }
0x1008   :  { %v3609_v30 = vadd.f32 %v3607_v46, %v3602_v45  ;;  %v16304_v46 = vld [vmem:[%s17629_s4 + $0x4] ss:$0 sm:$0xff] }
0x1009   :  { %18058 = vst [vmem:[#allocation24_spill] sm:$0xff] %v16304_v46 }
0x100a   :  { %v3612_v41 = vmul.f32 %v14214_v18, %v3609_v30  ;;  %v18053_v18 = vld [vmem:[#allocation81_spill] sm:$0xff]  ;;  %v18054_v30 = vld [vmem:[#allocation82_spill] sm:$0xff] }
0x100c   :  { %v16276_v63 = vadd.f32 %v3612_v41, %v3601_v33  ;;  %v18057_v33 = vld [vmem:[#allocation85_spill] sm:$0xff] }
0x100e   :  { %18051 = vst [vmem:[#allocation25_spill] sm:$0xff] %v16276_v63  ;;  %v18062_v63 = vld [vmem:[#allocation89_spill] sm:$0xff] }
0x1025   :  { %v3133_v42 = vpop.f32.mrb[30].mxu0 }
0x1026   :  { %v14097_v21 = vadd.f32 %v7974_v62, %v3133_v42  ;;  %v10364_v27 = vpop.f32.mrb[31].mxu0 }
0x1027   :  { %v18059_v27 = vld [vmem:[#allocation86_spill] sm:$0xff] }
0x1028   :  { %v3138_v4 = vmax.f32 %v14097_v21, 0.0 }
0x102a   :  { %10398 = vmatmul.mubr.f32.vlgmr.msra.gmra.mrb[30].mxu1 %v3138_v4  ;;  %v18060_v4 = vld [vmem:[#allocation87_spill] sm:$0xff] }
0x102b   :  { %12817 = vmatpush3.bf16.msra.mxu1 %v15540_v14  ;;  %10432 = vmatprep.mubr.msk.f32.mxu1 %vm14409_vm0, %v17847_v32 }
0x102c   :  { %12818 = vmatprep.subr.bf16.mxu1 %v17850_v6 }
0x102f   :  { %12820 = vmatpush3.bf16.msra.mxu1 %v15549_v36 }
0x1030   :  { %12821 = vmatprep.subr.bf16.mxu1 %v17850_v6 }
0x1033   :  { %12823 = vmatpush3.bf16.msra.mxu1 %v18052_v56 }
0x1034   :  { %12824 = vmatprep.subr.bf16.mxu1 %v17850_v6 }
0x1037   :  { %12826 = vmatpush3.bf16.msra.mxu1 %v18053_v18 }
0x1038   :  { %12827 = vmatprep.subr.bf16.mxu1 %v17850_v6 }
0x103b   :  { %12829 = vmatpush3.bf16.msra.mxu1 %v18054_v30 }
0x103c   :  { %12830 = vmatprep.subr.bf16.mxu1 %v17850_v6 }
0x103f   :  { %12832 = vmatpush3.bf16.msra.mxu1 %v18055_v3 }
0x1040   :  { %12833 = vmatprep.subr.bf16.mxu1 %v17850_v6 }
0x1043   :  { %12835 = vmatpush3.bf16.msra.mxu1 %v18056_v25 }
0x1044   :  { %12836 = vmatprep.subr.bf16.mxu1 %v17850_v6 }
0x1045   :  { %v16297_v24 = vpop.f32.mrb[34].mxu0 }
0x1046   :  { %v10453_v41 = vpop.f32.mrb[35].mxu0 }
0x1047   :  { %12838 = vmatpush3.bf16.msra.mxu1 %v18057_v33  ;;  %v18061_v41 = vld [vmem:[#allocation88_spill] sm:$0xff] }
0x1048   :  { %12899 = vmatprep.subr.bf16.mxu1 %v17850_v6 }
0x1065   :  { %v3499_v2 = vpop.f32.mrb[32].mxu0 }
0x1066   :  { %v3501_v39 = vpop.f32.mrb[33].mxu0 }
0x10fd   :  { %v3205_v45 = vpop.f32.mrb[30].mxu1 }
0x10fe   :  { %v3206_v62 = vadd.f32 %v16304_v46, %v3205_v45  ;;  %v10399_v42 = vpop.f32.mrb[31].mxu1  ;;  %v18063_v45 = vld [vmem:[#allocation90_spill] sm:$0xff] }
0x10ff   :  { %v18065_v42 = vld [vmem:[#allocation92_spill] sm:$0xff] }
0x1100   :  { %v3209_v21 = vmax.f32 %v3206_v62, 0.0  ;;  %v18064_v62 = vld [vmem:[#allocation91_spill] sm:$0xff] }
0x1102   :  { %10433 = vmatmul.mubr.f32.vlgmr.msra.gmra.mrb[32].mxu1 %v3209_v21  ;;  %v18066_v21 = vld [vmem:[#allocation93_spill] sm:$0xff] }
0x1103   :  { %12901 = vmatpush3.bf16.msra.mxu1 %v18059_v27  ;;  %10486 = vmatprep.mubr.msk.f32.mxu1 %vm14409_vm0, %v17847_v32 }
0x1104   :  { %12902 = vmatprep.subr.bf16.mxu1 %v17850_v6 }
0x1107   :  { %12904 = vmatpush3.bf16.msra.mxu1 %v18060_v4 }
0x1108   :  { %12905 = vmatprep.subr.bf16.mxu1 %v17850_v6 }
0x110b   :  { %12907 = vmatpush3.bf16.msra.mxu1 %v18061_v41  ;;  %v18073_v41 = vld [vmem:[#allocation19_spill] sm:$0xff] }
0x110c   :  { %12908 = vmatprep.subr.bf16.mxu1 %v17850_v6 }
0x110f   :  { %12910 = vmatpush3.bf16.msra.mxu1 %v18062_v63  ;;  %v18067_v63 = vld [vmem:[#allocation8_spill] sm:$0xff] }
0x1110   :  { %12911 = vmatprep.subr.bf16.mxu1 %v17850_v6 }
0x1113   :  { %12913 = vmatpush3.bf16.msra.mxu1 %v18063_v45  ;;  %v18071_v45 = vld [vmem:[#allocation15_spill] sm:$0xff] }
0x1114   :  { %12914 = vmatprep.subr.bf16.mxu1 %v17850_v6 }
0x1117   :  { %12916 = vmatpush3.bf16.msra.mxu1 %v18064_v62  ;;  %v18068_v62 = vld [vmem:[#allocation9_spill] sm:$0xff] }
0x1118   :  { %12917 = vmatprep.subr.bf16.mxu1 %v17850_v6 }
0x111b   :  { %12919 = vmatpush3.bf16.msra.mxu1 %v18065_v42  ;;  %v18069_v42 = vld [vmem:[#allocation11_spill] sm:$0xff] }
0x111c   :  { %12920 = vmatprep.subr.bf16.mxu1 %v17850_v6 }
0x111f   :  { %12922 = vmatpush3.bf16.msra.mxu1 %v18066_v21  ;;  %v18070_v21 = vld [vmem:[#allocation13_spill] sm:$0xff] }
0x1120   :  { %12923 = vmatprep.subr.bf16.mxu1 %v17850_v6 }
0x1122   :  { %10487 = vmatmul.mubr.f32.vlgmr.msra.gmra.mrb[34].mxu1 %v16065_v12 }
0x1123   :  { %12925 = vmatpush3.bf16.msra.mxu1 %v18067_v63  ;;  %10521 = vmatprep.mubr.msk.f32.mxu1 %vm14409_vm0, %v17847_v32  ;;  %v18072_v63 = vld [vmem:[#allocation17_spill] sm:$0xff] }
0x1124   :  { %12926 = vmatprep.subr.bf16.mxu1 %v17850_v6 }
0x1127   :  { %12928 = vmatpush3.bf16.msra.mxu1 %v18068_v62  ;;  %v18074_v62 = vld [vmem:[#allocation21_spill] sm:$0xff] }
0x1128   :  { %12929 = vmatprep.subr.bf16.mxu1 %v17850_v6 }
0x112b   :  { %12931 = vmatpush3.bf16.msra.mxu1 %v18069_v42 }
0x112c   :  { %12932 = vmatprep.subr.bf16.mxu1 %v17850_v6 }
0x112f   :  { %12934 = vmatpush3.bf16.msra.mxu1 %v18070_v21  ;;  %v7975_v21 = vld [vmem:[%s17625_s0 + $0x78] sm:$0xff] }
0x1130   :  { %12935 = vmatprep.subr.bf16.mxu1 %v17850_v6 }
0x1133   :  { %12937 = vmatpush3.bf16.msra.mxu1 %v18071_v45  ;;  %v14098_v45 = vadd.f32 %v7975_v21, %v17995_v22 }
0x1134   :  { %12938 = vmatprep.subr.bf16.mxu1 %v17850_v6 }
0x1135   :  { %v14099_v42 = vadd.f32 %v14098_v45, %v3499_v2 }
0x1137   :  { %12940 = vmatpush3.bf16.msra.mxu1 %v18072_v63  ;;  %v7983_v27 = vmul.f32 -1.442695, %v14099_v42 }
0x1138   :  { %12941 = vmatprep.subr.bf16.mxu1 %v17850_v6 }
0x1139   :  { %14215 = vpow2.f32 %v7983_v27 }
0x113b   :  { %12943 = vmatpush3.bf16.msra.mxu1 %v18073_v41  ;;  %v7976_v41 = vld [vmem:[%s17625_s0 + $0x80] sm:$0xff] }
0x113c   :  { %12944 = vmatprep.subr.bf16.mxu1 %v17850_v6  ;;  %v14100_v46 = vadd.f32 %v7976_v41, %v17997_v34 }
0x113f   :  { %12946 = vmatpush3.bf16.msra.mxu1 %v18074_v62  ;;  %v14101_v62 = vadd.f32 %v14100_v46, %v3501_v39 }
0x1140   :  { %12971 = vmatprep.subr.bf16.mxu1 %v17850_v6 }
0x1141   :  { %v7984_v33 = vmul.f32 -1.442695, %v14101_v62 }
0x1143   :  { %v14216_v25 = vpop.eup %14215  ;;  %14217 = vpow2.f32 %v7984_v33 }
0x1144   :  { %v3578_v3 = vadd.f32 1.0, %v14216_v25 }
0x1146   :  { %14219 = vrcp.f32 %v3578_v3 }
0x114d   :  { %v14218_v30 = vpop.eup %14217 }
0x114e   :  { %v3585_v21 = vadd.f32 1.0, %v14218_v30 }
0x1150   :  { %14221 = vrcp.f32 %v3585_v21 }
0x11d5   :  { %v16348_v4 = vpop.f32.mrb[32].mxu1 }
0x11d6   :  { %18075 = vst [vmem:[#allocation72_spill] sm:$0xff] %v16348_v4  ;;  %v10434_v63 = vpop.f32.mrb[33].mxu1  ;;  %v14220_v4 = vpop.eup %14219 }
0x11d7   :  { %v7977_v63 = vld [vmem:[%s17625_s0 + $0x88] sm:$0xff]  ;;  %v14222_v33 = vpop.eup %14221 }
0x11d8   :  { %v3432_v41 = vadd.f32 %v7977_v63, %v16297_v24  ;;  %v3591_v25 = vsub.f32 1.0, %v14222_v33  ;;  %v3593_v30 = vmul.f32 %v14222_v33, %v16065_v12  ;;  %v7986_v12 = vld [vmem:[%s17625_s0 + $0x90] sm:$0xff] }
0x11f5   :  { %v3570_v2 = vpop.f32.mrb[34].mxu1 }
0x11f6   :  { %v3571_v45 = vadd.f32 %v3570_v2, %v15748_v7  ;;  %v10488_v42 = vpop.f32.mrb[35].mxu1 }
0x11f8   :  { %v3588_v39 = vmul.f32 %v14220_v4, %v3571_v45  ;;  %v16424_v45 = vld [vmem:[%s17629_s4] ss:$0 sm:$0xff] }
0x11fa   :  { %v3589_v46 = vadd.f32 %v3588_v39, %v3432_v41 }
0x11fc   :  { %14223 = vtanh.f32 %v3589_v46  ;;  %v7987_v46 = vld [vmem:[%s17625_s0 + $0x98] sm:$0xff] }
0x1206   :  { %v14224_v3 = vpop.eup %14223 }
0x1207   :  { %v3592_v27 = vmul.f32 %v14224_v3, %v3591_v25 }
0x1209   :  { %v16360_v62 = vadd.f32 %v3593_v30, %v3592_v27  ;;  %v18076_v27 = vld [vmem:[#allocation26_spill] sm:$0xff] }
0x120b   :  { %10522 = vmatmul.mubr.f32.vlgmr.msra.gmra.mrb[36].mxu1 %v16360_v62 }
0x120c   :  { %12973 = vmatpush3.bf16.msra.mxu1 %v14643_v53  ;;  %10591 = vmatprep.mubr.msk.f32.mxu1 %vm14409_vm0, %v17847_v32 }
0x120d   :  { %12974 = vmatprep.subr.bf16.mxu1 %v17850_v6 }
0x1210   :  { %12976 = vmatpush3.bf16.msra.mxu1 %v14649_v55 }
0x1211   :  { %12977 = vmatprep.subr.bf16.mxu1 %v17850_v6 }
0x1214   :  { %12979 = vmatpush3.bf16.msra.mxu1 %v14659_v58 }
0x1215   :  { %12980 = vmatprep.subr.bf16.mxu1 %v17850_v6 }
0x1218   :  { %12982 = vmatpush3.bf16.msra.mxu1 %v14669_v61 }
0x1219   :  { %12983 = vmatprep.subr.bf16.mxu1 %v17850_v6 }
0x121c   :  { %12985 = vmatpush3.bf16.msra.mxu1 %v14679_v0 }
0x121d   :  { %12986 = vmatprep.subr.bf16.mxu1 %v17850_v6 }
0x1220   :  { %12988 = vmatpush3.bf16.msra.mxu1 %v14689_v5 }
0x1221   :  { %12989 = vmatprep.subr.bf16.mxu1 %v17850_v6 }
0x1224   :  { %12991 = vmatpush3.bf16.msra.mxu1 %v14699_v10 }
0x1225   :  { %12992 = vmatprep.subr.bf16.mxu1 %v17850_v6 }
0x1228   :  { %12994 = vmatpush3.bf16.msra.mxu1 %v14798_v59 }
0x1229   :  { %13019 = vmatprep.subr.bf16.mxu1 %v17850_v6 }
0x12de   :  { %v3714_v24 = vpop.f32.mrb[36].mxu1 }
0x12df   :  { %v3718_v4 = vadd.f32 %v7986_v12, %v3714_v24  ;;  %v10523_v21 = vpop.f32.mrb[37].mxu1  ;;  %v18077_v12 = vld [vmem:[#allocation27_spill] sm:$0xff] }
0x12e1   :  { %v3719_v63 = vmax.f32 %v3718_v4, 0.0  ;;  %v16461_v4 = vld [vmem:[%s17629_s4 + $0x1] ss:$0 sm:$0xff] }
0x12e2   :  { %18078 = vst [vmem:[#allocation26_spill] sm:$0xff] %v16461_v4 }
0x12e3   :  { %10557 = vmatmul.mubr.f32.vlgmr.msra.gmra.mrb[36].mxu0 %v3719_v63 }
0x12e4   :  { %12997 = vmatpush3.bf16.msra.mxu0 %v14713_v20  ;;  %10626 = vmatprep.mubr.msk.f32.mxu0 %vm14409_vm0, %v17847_v32 }
0x12e5   :  { %12998 = vmatprep.subr.bf16.mxu0 %v17850_v6 }
0x12e8   :  { %13000 = vmatpush3.bf16.msra.mxu0 %v14722_v26 }
0x12e9   :  { %13001 = vmatprep.subr.bf16.mxu0 %v17850_v6 }
0x12ec   :  { %13003 = vmatpush3.bf16.msra.mxu0 %v14734_v31 }
0x12ed   :  { %13004 = vmatprep.subr.bf16.mxu0 %v17850_v6 }
0x12f0   :  { %13006 = vmatpush3.bf16.msra.mxu0 %v14744_v35 }
0x12f1   :  { %13007 = vmatprep.subr.bf16.mxu0 %v17850_v6 }
0x12f4   :  { %13009 = vmatpush3.bf16.msra.mxu0 %v14754_v40 }
0x12f5   :  { %13010 = vmatprep.subr.bf16.mxu0 %v17850_v6 }
0x12f8   :  { %13012 = vmatpush3.bf16.msra.mxu0 %v14764_v44 }
0x12f9   :  { %13013 = vmatprep.subr.bf16.mxu0 %v17850_v6 }
0x12fc   :  { %13015 = vmatpush3.bf16.msra.mxu0 %v14774_v50 }
0x12fd   :  { %13016 = vmatprep.subr.bf16.mxu0 %v17850_v6 }
0x1300   :  { %13018 = vmatpush3.bf16.msra.mxu0 %v14784_v54 }
0x1301   :  { %13043 = vmatprep.subr.bf16.mxu0 %v17850_v6 }
0x1303   :  { %10627 = vmatmul.mubr.f32.vlgmr.msra.gmra.mrb[38].mxu0 %v16360_v62 }
0x1304   :  { %13045 = vmatpush3.bf16.msra.mxu0 %v14902_v13  ;;  %10696 = vmatprep.mubr.msk.f32.mxu0 %vm14409_vm0, %v17847_v32 }
0x1305   :  { %13046 = vmatprep.subr.bf16.mxu0 %v17850_v6 }
0x1308   :  { %13048 = vmatpush3.bf16.msra.mxu0 %v14912_v19 }
0x1309   :  { %13049 = vmatprep.subr.bf16.mxu0 %v17850_v6 }
0x130c   :  { %13051 = vmatpush3.bf16.msra.mxu0 %v14921_v28 }
0x130d   :  { %13052 = vmatprep.subr.bf16.mxu0 %v17850_v6 }
0x1310   :  { %13054 = vmatpush3.bf16.msra.mxu0 %v14931_v38 }
0x1311   :  { %13055 = vmatprep.subr.bf16.mxu0 %v17850_v6 }
0x1314   :  { %13057 = vmatpush3.bf16.msra.mxu0 %v14941_v48 }
0x1315   :  { %13058 = vmatprep.subr.bf16.mxu0 %v17850_v6 }
0x1318   :  { %13060 = vmatpush3.bf16.msra.mxu0 %v14951_v57 }
0x1319   :  { %13061 = vmatprep.subr.bf16.mxu0 %v17850_v6 }
0x131c   :  { %13063 = vmatpush3.bf16.msra.mxu0 %v14961_v1 }
0x131d   :  { %13064 = vmatprep.subr.bf16.mxu0 %v17850_v6 }
0x1320   :  { %13066 = vmatpush3.bf16.msra.mxu0 %v14972_v9 }
0x1321   :  { %13103 = vmatprep.subr.bf16.mxu0 %v17850_v6 }
0x13b6   :  { %v3786_v2 = vpop.f32.mrb[36].mxu0 }
0x13b7   :  { %v3787_v42 = vadd.f32 %v16424_v45, %v3786_v2  ;;  %v10558_v41 = vpop.f32.mrb[37].mxu0 }
0x13b9   :  { %v3790_v39 = vmax.f32 %v3787_v42, 0.0 }
0x13bb   :  { %10592 = vmatmul.mubr.f32.vlgmr.msra.gmra.mrb[38].mxu1 %v3790_v39 }
0x13bc   :  { %13021 = vmatpush3.bf16.msra.mxu1 %v14815_v11  ;;  %10661 = vmatprep.mubr.msk.f32.mxu1 %vm14409_vm0, %v17847_v32 }
0x13bd   :  { %13022 = vmatprep.subr.bf16.mxu1 %v17850_v6 }
0x13c0   :  { %13024 = vmatpush3.bf16.msra.mxu1 %v14824_v17 }
0x13c1   :  { %13025 = vmatprep.subr.bf16.mxu1 %v17850_v6 }
0x13c4   :  { %13027 = vmatpush3.bf16.msra.mxu1 %v14836_v23 }
0x13c5   :  { %13028 = vmatprep.subr.bf16.mxu1 %v17850_v6 }
0x13c8   :  { %13030 = vmatpush3.bf16.msra.mxu1 %v14846_v29 }
0x13c9   :  { %13031 = vmatprep.subr.bf16.mxu1 %v17850_v6 }
0x13cc   :  { %13033 = vmatpush3.bf16.msra.mxu1 %v14856_v37 }
0x13cd   :  { %13034 = vmatprep.subr.bf16.mxu1 %v17850_v6 }
0x13d0   :  { %13036 = vmatpush3.bf16.msra.mxu1 %v14866_v43 }
0x13d1   :  { %13037 = vmatprep.subr.bf16.mxu1 %v17850_v6 }
0x13d4   :  { %13039 = vmatpush3.bf16.msra.mxu1 %v14876_v51 }
0x13d5   :  { %13040 = vmatprep.subr.bf16.mxu1 %v17850_v6 }
0x13d6   :  { %v3936_v33 = vpop.f32.mrb[38].mxu0 }
0x13d7   :  { %v3940_v25 = vadd.f32 %v7987_v46, %v3936_v33  ;;  %v10628_v3 = vpop.f32.mrb[39].mxu0 }
0x13d8   :  { %13042 = vmatpush3.bf16.msra.mxu1 %v14889_v60 }
0x13d9   :  { %v3941_v30 = vmax.f32 %v3940_v25, 0.0  ;;  %13067 = vmatprep.subr.bf16.mxu1 %v17850_v6 }
0x13db   :  { %10662 = vmatmul.mubr.f32.vlgmr.msra.gmra.mrb[40].mxu1 %v3941_v30  ;;  %v16471_v30 = vld [vmem:[%s17629_s4 + $0x2] ss:$0 sm:$0xff] }
0x13dc   :  { %13069 = vmatpush3.bf16.msra.mxu1 %v17918_v15  ;;  %10715 = vmatprep.mubr.msk.f32.mxu1 %vm14409_vm0, %v17847_v32 }
0x13dd   :  { %13070 = vmatprep.subr.bf16.mxu1 %v17850_v6 }
0x13e0   :  { %13072 = vmatpush3.bf16.msra.mxu1 %v17998_v16 }
0x13e1   :  { %13073 = vmatprep.subr.bf16.mxu1 %v17850_v6 }
0x13e4   :  { %13075 = vmatpush3.bf16.msra.mxu1 %v18076_v27 }
0x13e5   :  { %13076 = vmatprep.subr.bf16.mxu1 %v17850_v6 }
0x13e8   :  { %13078 = vmatpush3.bf16.msra.mxu1 %v18077_v12 }
0x13e9   :  { %13079 = vmatprep.subr.bf16.mxu1 %v17850_v6 }
0x148e   :  { %v3857_v24 = vpop.f32.mrb[38].mxu1 }
0x148f   :  { %v16464_v21 = vadd.f32 %v16461_v4, %v3857_v24  ;;  %v10593_v63 = vpop.f32.mrb[39].mxu1 }
0x1491   :  { %18079 = vst [vmem:[#allocation101_spill] sm:$0xff] %v16464_v21  ;;  %v3862_v2 = vand.u32 2147483647, %v16464_v21  ;;  %v3861_v3 = vmax.f32 %v16464_v21, 0.0 }
0x1493   :  { %v3863_v42 = vsub.f32 0.0, %v3862_v2 }
0x1495   :  { %v3864_v41 = vmul.f32 1.442695, %v3863_v42  ;;  %v18081_v42 = vld [vmem:[#allocation73_spill] sm:$0xff] }
0x1497   :  { %14225 = vpow2.f32 %v3864_v41 }
0x14a1   :  { %v14226_v39 = vpop.eup %14225 }
0x14a2   :  { %v3866_v46 = vadd.f32 1.0, %v14226_v39  ;;  %v18084_v39 = vld [vmem:[#allocation70_spill] sm:$0xff] }
0x14a4   :  { %14227 = vlog2.f32 %v3866_v46  ;;  %v18085_v46 = vld [vmem:[#allocation71_spill] sm:$0xff] }
0x14ae   :  { %v14228_v33 = vpop.eup %14227  ;;  %v4008_v25 = vpop.f32.mrb[40].mxu1 }
0x14af   :  { %v4009_v24 = vadd.f32 %v16471_v30, %v4008_v25  ;;  %v10663_v63 = vpop.f32.mrb[41].mxu1  ;;  %v3868_v4 = vmul.f32 0.6931472, %v14228_v33 }
0x14b0   :  { %v18088_v63 = vld [vmem:[#allocation30_spill] sm:$0xff] }
0x14b1   :  { %v4012_v12 = vmax.f32 %v4009_v24, 0.0  ;;  %v16474_v2 = vadd.f32 %v3868_v4, %v3861_v3  ;;  %v18083_v4 = vld [vmem:[#allocation69_spill] sm:$0xff]  ;;  %v18086_v3 = vld [vmem:[#allocation28_spill] sm:$0xff] }
0x14b2   :  { %v18087_v24 = vld [vmem:[#allocation29_spill] sm:$0xff] }
0x14b3   :  { %18080 = vst [vmem:[#allocation102_spill] sm:$0xff] %v16474_v2  ;;  %10697 = vmatmul.mubr.f32.vlgmr.msra.gmra.mrb[40].mxu0 %v4012_v12  ;;  %v4096_v41 = vmul.f32 %v18081_v42, %v16474_v2  ;;  %v18082_v12 = vld [vmem:[#allocation68_spill] sm:$0xff]  ;;  %v18089_v42 = vld [vmem:[#allocation31_spill] sm:$0xff] }
0x14b4   :  { %13105 = vmatpush3.bf16.msra.mxu0 %v15404_v52  ;;  %10785 = vmatprep.mubr.msk.f32.mxu0 %vm14409_vm0, %v17847_v32 }
0x14b5   :  { %4098 = vrot.lane.b32.xlu1 %v4096_v41, %s14411_s15  ;;  %13106 = vmatprep.subr.bf16.mxu0 %v17850_v6  ;;  %v18090_v41 = vld [vmem:[#allocation32_spill] sm:$0xff] }
0x14b8   :  { %13108 = vmatpush3.bf16.msra.mxu0 %v17925_v49 }
0x14b9   :  { %13109 = vmatprep.subr.bf16.mxu0 %v17850_v6 }
0x14bc   :  { %13111 = vmatpush3.bf16.msra.mxu0 %v15444_v47 }
0x14bd   :  { %13112 = vmatprep.subr.bf16.mxu0 %v17850_v6 }
0x14c0   :  { %13114 = vmatpush3.bf16.msra.mxu0 %v15451_v8 }
0x14c1   :  { %13115 = vmatprep.subr.bf16.mxu0 %v17850_v6 }
0x14c4   :  { %13117 = vmatpush3.bf16.msra.mxu0 %v18082_v12 }
0x14c5   :  { %13118 = vmatprep.subr.bf16.mxu0 %v17850_v6 }
0x14c8   :  { %13120 = vmatpush3.bf16.msra.mxu0 %v18083_v4  ;;  %v18118_v4 = vld [vmem:[#allocation60_spill] sm:$0xff] }
0x14c9   :  { %13121 = vmatprep.subr.bf16.mxu0 %v17850_v6 }
0x14cc   :  { %13123 = vmatpush3.bf16.msra.mxu0 %v18084_v39  ;;  %v18101_v39 = vld [vmem:[#allocation43_spill] sm:$0xff] }
0x14cd   :  { %13124 = vmatprep.subr.bf16.mxu0 %v17850_v6 }
0x14d0   :  { %13126 = vmatpush3.bf16.msra.mxu0 %v18085_v46  ;;  %v18099_v46 = vld [vmem:[#allocation41_spill] sm:$0xff] }
0x14d1   :  { %13127 = vmatprep.subr.bf16.mxu0 %v17850_v6 }
0x1527   :  { %v4099_v33 = vpop.permute.xlu1 %4098 }
0x1528   :  { %v4101_v25 = vadd.f32 %v4099_v33, %v16464_v21  ;;  %v18091_v33 = vld [vmem:[#allocation33_spill] sm:$0xff]  ;;  %v18092_v21 = vld [vmem:[#allocation34_spill] sm:$0xff] }
0x152a   :  { %10716 = vmatmul.mubr.msk.f32.vlgmr.msra.gmra.mrb[42].mxu1 %vm624_vm1, %v4101_v25 }
0x152b   :  { %13081 = vmatpush3.bf16.msra.mxu1 %v18086_v3  ;;  %10750 = vmatprep.mubr.msk.f32.mxu1 %vm14409_vm0, %v17847_v32  ;;  %v18097_v3 = vld [vmem:[#allocation39_spill] sm:$0xff] }
0x152c   :  { %13082 = vmatprep.subr.bf16.mxu1 %v17850_v6 }
0x152f   :  { %13084 = vmatpush3.bf16.msra.mxu1 %v18087_v24  ;;  %v18093_v24 = vld [vmem:[#allocation35_spill] sm:$0xff] }
0x1530   :  { %13085 = vmatprep.subr.bf16.mxu1 %v17850_v6 }
0x1533   :  { %13087 = vmatpush3.bf16.msra.mxu1 %v18088_v63  ;;  %v18094_v63 = vld [vmem:[#allocation36_spill] sm:$0xff] }
0x1534   :  { %13088 = vmatprep.subr.bf16.mxu1 %v17850_v6 }
0x1537   :  { %13090 = vmatpush3.bf16.msra.mxu1 %v18089_v42  ;;  %v18095_v42 = vld [vmem:[#allocation37_spill] sm:$0xff] }
0x1538   :  { %13091 = vmatprep.subr.bf16.mxu1 %v17850_v6 }
0x153b   :  { %13093 = vmatpush3.bf16.msra.mxu1 %v18090_v41  ;;  %v18096_v41 = vld [vmem:[#allocation38_spill] sm:$0xff] }
0x153c   :  { %13094 = vmatprep.subr.bf16.mxu1 %v17850_v6 }
0x153f   :  { %13096 = vmatpush3.bf16.msra.mxu1 %v18091_v33  ;;  %v18098_v33 = vld [vmem:[#allocation40_spill] sm:$0xff] }
0x1540   :  { %13097 = vmatprep.subr.bf16.mxu1 %v17850_v6 }
0x1543   :  { %13099 = vmatpush3.bf16.msra.mxu1 %v18092_v21  ;;  %v18100_v21 = vld [vmem:[#allocation42_spill] sm:$0xff] }
0x1544   :  { %13100 = vmatprep.subr.bf16.mxu1 %v17850_v6 }
0x1547   :  { %13102 = vmatpush3.bf16.msra.mxu1 %v18093_v24  ;;  %v18113_v24 = vld [vmem:[#allocation55_spill] sm:$0xff] }
0x1548   :  { %13152 = vmatprep.subr.bf16.mxu1 %v18094_v63  ;;  %v18102_v63 = vld [vmem:[#allocation44_spill] sm:$0xff] }
0x154a   :  { %10751 = vmatmul.mubr.f32.vlgmr.msra.gmra.mrb[42].mxu1 %v16360_v62 }
0x154b   :  { %13154 = vmatpush1.bf16.msra.mxu1 %v18095_v42  ;;  %4462 = vmatprep.mubr.f32.mxu1 %v17847_v32  ;;  %v18111_v42 = vld [vmem:[#allocation53_spill] sm:$0xff] }
0x154c   :  { %13156 = vmatprep.subr.bf16.mxu1 %v18096_v41  ;;  %v18109_v41 = vld [vmem:[#allocation51_spill] sm:$0xff] }
0x154f   :  { %13158 = vmatpush1.bf16.msra.mxu1 %v18097_v3  ;;  %v18103_v3 = vld [vmem:[#allocation45_spill] sm:$0xff] }
0x1550   :  { %13160 = vmatprep.subr.bf16.mxu1 %v18098_v33  ;;  %v18108_v33 = vld [vmem:[#allocation50_spill] sm:$0xff] }
0x1553   :  { %13162 = vmatpush1.bf16.msra.mxu1 %v18099_v46  ;;  %v18104_v46 = vld [vmem:[#allocation46_spill] sm:$0xff] }
0x1554   :  { %13164 = vmatprep.subr.bf16.mxu1 %v18100_v21  ;;  %v18106_v21 = vld [vmem:[#allocation48_spill] sm:$0xff] }
0x1557   :  { %13166 = vmatpush1.bf16.msra.mxu1 %v18101_v39  ;;  %v18105_v39 = vld [vmem:[#allocation47_spill] sm:$0xff] }
0x1558   :  { %13167 = vmatprep.subr.bf16.mxu1 %v17850_v6 }
0x155a   :  { %7995 = vmatmul.mubr.msk.f32.vlgmr.msra.gmra.mrb[44].mxu1 %vm624_vm1, %v4101_v25 }
0x155b   :  { %13169 = vmatpush3.bf16.msra.mxu1 %v18102_v63  ;;  %10839 = vmatprep.mubr.msk.f32.mxu1 %vm14409_vm0, %v17847_v32  ;;  %v18107_v63 = vld [vmem:[#allocation49_spill] sm:$0xff] }
0x155c   :  { %13170 = vmatprep.subr.bf16.mxu1 %v17850_v6 }
0x155f   :  { %13172 = vmatpush3.bf16.msra.mxu1 %v18103_v3  ;;  %v18110_v3 = vld [vmem:[#allocation52_spill] sm:$0xff] }
0x1560   :  { %13173 = vmatprep.subr.bf16.mxu1 %v17850_v6 }
0x1563   :  { %13175 = vmatpush3.bf16.msra.mxu1 %v18104_v46  ;;  %v18112_v46 = vld [vmem:[#allocation54_spill] sm:$0xff] }
0x1564   :  { %13176 = vmatprep.subr.bf16.mxu1 %v17850_v6 }
0x1567   :  { %13178 = vmatpush3.bf16.msra.mxu1 %v18105_v39  ;;  %v18114_v39 = vld [vmem:[#allocation56_spill] sm:$0xff] }
0x1568   :  { %13180 = vmatprep.subr.bf16.mxu1 %v18106_v21  ;;  %v18115_v21 = vld [vmem:[#allocation57_spill] sm:$0xff] }
0x156a   :  { %10840 = vmatmul.mubr.msk.f32.vlgmr.msra.gmra.mrb[46].mxu1 %vm624_vm1, %v4101_v25  ;;  %v18116_v25 = vld [vmem:[#allocation58_spill] sm:$0xff] }
0x156b   :  { %13182 = vmatpush1.bf16.msra.mxu1 %v18107_v63  ;;  %4606 = vmatprep.mubr.f32.mxu1 %v17847_v32  ;;  %v18117_v63 = vld [vmem:[#allocation59_spill] sm:$0xff] }
0x156c   :  { %13184 = vmatprep.subr.bf16.mxu1 %v18108_v33  ;;  %v18119_v33 = vld [vmem:[#allocation61_spill] sm:$0xff] }
0x156f   :  { %13186 = vmatpush1.bf16.msra.mxu1 %v18109_v41  ;;  %v18120_v41 = vld [vmem:[#allocation62_spill] sm:$0xff] }
0x1570   :  { %13188 = vmatprep.subr.bf16.mxu1 %v18110_v3 }
0x1573   :  { %13190 = vmatpush1.bf16.msra.mxu1 %v18111_v42  ;;  %v18121_v42 = vld [vmem:[#allocation96_spill] sm:$0xff] }
0x1574   :  { %13192 = vmatprep.subr.bf16.mxu1 %v18112_v46 }
0x1577   :  { %13194 = vmatpush1.bf16.msra.mxu1 %v18113_v24  ;;  %v18123_v24 = vld [vmem:[#allocation63_spill] sm:$0xff] }
0x1578   :  { %13196 = vmatprep.subr.bf16.mxu1 %v18114_v39 }
0x157b   :  { %13198 = vmatpush1.bf16.msra.mxu1 %v18115_v21 }
0x157c   :  { %13200 = vmatprep.subr.bf16.mxu1 %v18116_v25  ;;  %v18124_v25 = vld [vmem:[#allocation10_spill] sm:$0xff] }
0x157f   :  { %13202 = vmatpush1.bf16.msra.mxu1 %v18117_v63 }
0x1580   :  { %13204 = vmatprep.subr.bf16.mxu1 %v18118_v4 }
0x1583   :  { %13206 = vmatpush1.bf16.msra.mxu1 %v18119_v33  ;;  %v18131_v33 = vld [vmem:[#allocation23_spill] sm:$0xff] }
0x1584   :  { %13208 = vmatprep.subr.bf16.mxu1 %v18120_v41 }
0x1586   :  { %v4079_v3 = vpop.f32.mrb[40].mxu0 }
0x1587   :  { %v16555_v12 = vadd.f32 %v18121_v42, %v4079_v3  ;;  %v10698_v46 = vpop.f32.mrb[41].mxu0  ;;  %13210 = vmatpush1.bf16.msra.mxu1 %v18123_v24  ;;  %v18125_v3 = vld [vmem:[#allocation12_spill] sm:$0xff]  ;;  %v18128_v24 = vld [vmem:[#allocation18_spill] sm:$0xff] }
0x1588   :  { %13259 = vmatprep.subr.bf16.mxu1 %v17850_v6  ;;  %v18126_v46 = vld [vmem:[#allocation14_spill] sm:$0xff]  ;;  %v18127_v42 = vld [vmem:[#allocation16_spill] sm:$0xff] }
0x1589   :  { %18122 = vst [vmem:[#allocation73_spill] sm:$0xff] %v16555_v12  ;;  %v4084_v21 = vand.u32 2147483647, %v16555_v12 }
0x158a   :  { %4607 = vmatmul.mubr.f32.vlgmr.msra.gmra.mrb[44].mxu1 %v16360_v62 }
0x158b   :  { %v4085_v63 = vsub.f32 0.0, %v4084_v21  ;;  %13261 = vmatpush3.bf16.msra.mxu1 %v18124_v25  ;;  %10944 = vmatprep.mubr.msk.f32.mxu1 %vm14409_vm0, %v17847_v32 }
0x158c   :  { %13262 = vmatprep.subr.bf16.mxu1 %v17850_v6 }
0x158d   :  { %v4086_v41 = vmul.f32 1.442695, %v4085_v63  ;;  %v18129_v63 = vld [vmem:[#allocation20_spill] sm:$0xff] }
0x158f   :  { %14229 = vpow2.f32 %v4086_v41  ;;  %13264 = vmatpush3.bf16.msra.mxu1 %v18125_v3  ;;  %v18130_v41 = vld [vmem:[#allocation22_spill] sm:$0xff] }
0x1590   :  { %13265 = vmatprep.subr.bf16.mxu1 %v17850_v6 }
0x1593   :  { %13267 = vmatpush3.bf16.msra.mxu1 %v18126_v46 }
0x1594   :  { %13268 = vmatprep.subr.bf16.mxu1 %v17850_v6 }
0x1597   :  { %13270 = vmatpush3.bf16.msra.mxu1 %v18127_v42  ;;  %v4083_v42 = vmax.f32 %v16555_v12, 0.0 }
0x1598   :  { %13271 = vmatprep.subr.bf16.mxu1 %v17850_v6 }
0x1599   :  { %v14230_v21 = vpop.eup %14229 }
0x159a   :  { %v4088_v25 = vadd.f32 1.0, %v14230_v21 }
0x159b   :  { %13273 = vmatpush3.bf16.msra.mxu1 %v18128_v24 }
0x159c   :  { %14231 = vlog2.f32 %v4088_v25  ;;  %13274 = vmatprep.subr.bf16.mxu1 %v17850_v6 }
0x159d   :  { %14233 = vlog2.f32 %v16474_v2  ;;  %v7988_v2 = vld [vmem:[%s17625_s0 + $0xa0] sm:$0xff] }
0x159f   :  { %13276 = vmatpush3.bf16.msra.mxu1 %v18129_v63 }
0x15a0   :  { %13277 = vmatprep.subr.bf16.mxu1 %v17850_v6 }
0x15a3   :  { %13279 = vmatpush3.bf16.msra.mxu1 %v18130_v41 }
0x15a4   :  { %13280 = vmatprep.subr.bf16.mxu1 %v17850_v6 }
0x15a6   :  { %v14232_v46 = vpop.eup %14231 }
0x15a7   :  { %v4090_v3 = vmul.f32 0.6931472, %v14232_v46  ;;  %13282 = vmatpush3.bf16.msra.mxu1 %v18131_v33  ;;  %v14234_v21 = vpop.eup %14233  ;;  %v18139_v46 = vld [vmem:[#allocation24_spill] sm:$0xff] }
0x15a8   :  { %13307 = vmatprep.subr.bf16.mxu1 %v17850_v6  ;;  %v4708_v63 = vmul.f32 0.6931472, %v14234_v21 }
0x15a9   :  { %v16581_v25 = vadd.f32 %v4090_v3, %v4083_v42 }
0x15aa   :  { %v16586_v39 = vmul.f32 2.0, %v4708_v63 }
0x15ab   :  { %18132 = vst [vmem:[#allocation96_spill] sm:$0xff] %v16581_v25  ;;  %14235 = vlog2.f32 %v16581_v25 }
0x15ac   :  { %18134 = vst [vmem:[#allocation104_spill] sm:$0xff] %v16586_v39 }
0x15b5   :  { %v14236_v24 = vpop.eup %14235 }
0x15b6   :  { %v4705_v41 = vmul.f32 0.6931472, %v14236_v24  ;;  %v18137_v24 = vld [vmem:[#allocation84_spill] sm:$0xff] }
0x15b8   :  { %v16584_v4 = vmul.f32 2.0, %v4705_v41  ;;  %v18138_v41 = vld [vmem:[#allocation85_spill] sm:$0xff] }
0x15ba   :  { %18133 = vst [vmem:[#allocation103_spill] sm:$0xff] %v16584_v4 }
0x161d   :  { %v4242_v12 = vpop.f32.mrb[42].mxu1 }
0x161e   :  { %v14102_v3 = vadd.f32 %v7988_v2, %v4242_v12  ;;  %v10752_v42 = vpop.f32.mrb[43].mxu1  ;;  %v18135_v2 = vld [vmem:[#allocation82_spill] sm:$0xff]  ;;  %v18136_v12 = vld [vmem:[#allocation83_spill] sm:$0xff] }
0x1620   :  { %v4247_v33 = vmax.f32 %v14102_v3, 0.0 }
0x1622   :  { %10786 = vmatmul.mubr.f32.vlgmr.msra.gmra.mrb[42].mxu0 %v4247_v33 }
0x1623   :  { %13129 = vmatpush3.bf16.msra.mxu0 %v15540_v14  ;;  %10820 = vmatprep.mubr.msk.f32.mxu0 %vm14409_vm0, %v17847_v32 }
0x1624   :  { %13130 = vmatprep.subr.bf16.mxu0 %v17850_v6 }
0x1627   :  { %13132 = vmatpush3.bf16.msra.mxu0 %v15549_v36 }
0x1628   :  { %13133 = vmatprep.subr.bf16.mxu0 %v17850_v6 }
0x162b   :  { %13135 = vmatpush3.bf16.msra.mxu0 %v18052_v56 }
0x162c   :  { %13136 = vmatprep.subr.bf16.mxu0 %v17850_v6 }
0x162f   :  { %13138 = vmatpush3.bf16.msra.mxu0 %v18053_v18 }
0x1630   :  { %13139 = vmatprep.subr.bf16.mxu0 %v17850_v6 }
0x1633   :  { %13141 = vmatpush3.bf16.msra.mxu0 %v18135_v2 }
0x1634   :  { %13142 = vmatprep.subr.bf16.mxu0 %v17850_v6 }
0x1637   :  { %13144 = vmatpush3.bf16.msra.mxu0 %v18136_v12  ;;  %v18140_v12 = vld [vmem:[#allocation86_spill] sm:$0xff] }
0x1638   :  { %13145 = vmatprep.subr.bf16.mxu0 %v17850_v6 }
0x163b   :  { %13147 = vmatpush3.bf16.msra.mxu0 %v18137_v24  ;;  %v18143_v24 = vld [vmem:[#allocation89_spill] sm:$0xff] }
0x163c   :  { %13148 = vmatprep.subr.bf16.mxu0 %v17850_v6 }
0x163d   :  { %v16609_v33 = vpop.f32.mrb[46].mxu1 }
0x163e   :  { %v10841_v63 = vpop.f32.mrb[47].mxu1 }
0x163f   :  { %13150 = vmatpush3.bf16.msra.mxu0 %v18138_v41  ;;  %v18141_v63 = vld [vmem:[#allocation87_spill] sm:$0xff]  ;;  %v18142_v41 = vld [vmem:[#allocation88_spill] sm:$0xff] }
0x1640   :  { %13211 = vmatprep.subr.bf16.mxu0 %v17850_v6 }
0x165d   :  { %v4608_v21 = vpop.f32.mrb[44].mxu1 }
0x165e   :  { %v4610_v3 = vpop.f32.mrb[45].mxu1 }
0x16f5   :  { %v4314_v42 = vpop.f32.mrb[42].mxu0 }
0x16f6   :  { %v4315_v39 = vadd.f32 %v18139_v46, %v4314_v42  ;;  %v10787_v4 = vpop.f32.mrb[43].mxu0  ;;  %v18147_v46 = vld [vmem:[#allocation93_spill] sm:$0xff]  ;;  %v18148_v42 = vld [vmem:[#allocation8_spill] sm:$0xff] }
0x16f7   :  { %v18144_v4 = vld [vmem:[#allocation90_spill] sm:$0xff] }
0x16f8   :  { %v4318_v25 = vmax.f32 %v4315_v39, 0.0  ;;  %v18145_v39 = vld [vmem:[#allocation91_spill] sm:$0xff] }
0x16fa   :  { %10821 = vmatmul.mubr.f32.vlgmr.msra.gmra.mrb[44].mxu0 %v4318_v25  ;;  %v18146_v25 = vld [vmem:[#allocation92_spill] sm:$0xff] }
0x16fb   :  { %13213 = vmatpush3.bf16.msra.mxu0 %v18140_v12  ;;  %10874 = vmatprep.mubr.msk.f32.mxu0 %vm14409_vm0, %v17847_v32 }
0x16fc   :  { %13214 = vmatprep.subr.bf16.mxu0 %v17850_v6 }
0x16ff   :  { %13216 = vmatpush3.bf16.msra.mxu0 %v18141_v63 }
0x1700   :  { %13217 = vmatprep.subr.bf16.mxu0 %v17850_v6 }
0x1703   :  { %13219 = vmatpush3.bf16.msra.mxu0 %v18142_v41 }
0x1704   :  { %13220 = vmatprep.subr.bf16.mxu0 %v17850_v6 }
0x1707   :  { %13222 = vmatpush3.bf16.msra.mxu0 %v18143_v24  ;;  %v18154_v24 = vld [vmem:[#allocation19_spill] sm:$0xff] }
0x1708   :  { %13223 = vmatprep.subr.bf16.mxu0 %v17850_v6 }
0x170b   :  { %13225 = vmatpush3.bf16.msra.mxu0 %v18144_v4  ;;  %v18152_v4 = vld [vmem:[#allocation15_spill] sm:$0xff] }
0x170c   :  { %13226 = vmatprep.subr.bf16.mxu0 %v17850_v6 }
0x170f   :  { %13228 = vmatpush3.bf16.msra.mxu0 %v18145_v39  ;;  %v18149_v39 = vld [vmem:[#allocation9_spill] sm:$0xff] }
0x1710   :  { %13229 = vmatprep.subr.bf16.mxu0 %v17850_v6 }
0x1713   :  { %13231 = vmatpush3.bf16.msra.mxu0 %v18146_v25  ;;  %v18150_v25 = vld [vmem:[#allocation11_spill] sm:$0xff] }
0x1714   :  { %13232 = vmatprep.subr.bf16.mxu0 %v17850_v6 }
0x1717   :  { %13234 = vmatpush3.bf16.msra.mxu0 %v18147_v46  ;;  %v18151_v46 = vld [vmem:[#allocation13_spill] sm:$0xff] }
0x1718   :  { %13235 = vmatprep.subr.bf16.mxu0 %v17850_v6 }
0x171a   :  { %10875 = vmatmul.mubr.f32.vlgmr.msra.gmra.mrb[46].mxu0 %v16360_v62 }
0x171b   :  { %13237 = vmatpush3.bf16.msra.mxu0 %v18148_v42  ;;  %10909 = vmatprep.mubr.msk.f32.mxu0 %vm14409_vm0, %v17847_v32  ;;  %v18153_v42 = vld [vmem:[#allocation17_spill] sm:$0xff] }
0x171c   :  { %13238 = vmatprep.subr.bf16.mxu0 %v17850_v6 }
0x171f   :  { %13240 = vmatpush3.bf16.msra.mxu0 %v18149_v39  ;;  %v18155_v39 = vld [vmem:[#allocation21_spill] sm:$0xff] }
0x1720   :  { %13241 = vmatprep.subr.bf16.mxu0 %v17850_v6 }
0x1723   :  { %13243 = vmatpush3.bf16.msra.mxu0 %v18150_v25 }
0x1724   :  { %13244 = vmatprep.subr.bf16.mxu0 %v17850_v6 }
0x1727   :  { %13246 = vmatpush3.bf16.msra.mxu0 %v18151_v46  ;;  %v7989_v46 = vld [vmem:[%s17625_s0 + $0xa8] sm:$0xff] }
0x1728   :  { %13247 = vmatprep.subr.bf16.mxu0 %v17850_v6 }
0x172b   :  { %13249 = vmatpush3.bf16.msra.mxu0 %v18152_v4  ;;  %v14103_v4 = vadd.f32 %v7989_v46, %v17995_v22 }
0x172c   :  { %13250 = vmatprep.subr.bf16.mxu0 %v17850_v6 }
0x172d   :  { %v14104_v25 = vadd.f32 %v14103_v4, %v4608_v21  ;;  %v7991_v21 = vld [vmem:[%s17625_s0 + $0xb8] sm:$0xff] }
0x172f   :  { %13252 = vmatpush3.bf16.msra.mxu0 %v18153_v42  ;;  %v7997_v63 = vmul.f32 -1.442695, %v14104_v25 }
0x1730   :  { %13253 = vmatprep.subr.bf16.mxu0 %v17850_v6 }
0x1731   :  { %14237 = vpow2.f32 %v7997_v63 }
0x1733   :  { %13255 = vmatpush3.bf16.msra.mxu0 %v18154_v24  ;;  %v7990_v24 = vld [vmem:[%s17625_s0 + $0xb0] sm:$0xff] }
0x1734   :  { %13256 = vmatprep.subr.bf16.mxu0 %v17850_v6  ;;  %v14105_v12 = vadd.f32 %v7990_v24, %v17997_v34  ;;  %v4541_v24 = vadd.f32 %v7991_v21, %v16609_v33 }
0x1737   :  { %13258 = vmatpush3.bf16.msra.mxu0 %v18155_v39  ;;  %v14106_v39 = vadd.f32 %v14105_v12, %v4610_v3 }
0x1738   :  { %13283 = vmatprep.subr.bf16.mxu0 %v17850_v6 }
0x1739   :  { %v7998_v2 = vmul.f32 -1.442695, %v14106_v39 }
0x173b   :  { %v14238_v18 = vpop.eup %14237  ;;  %14239 = vpow2.f32 %v7998_v2 }
0x173c   :  { %v4687_v56 = vadd.f32 1.0, %v14238_v18 }
0x173e   :  { %14241 = vrcp.f32 %v4687_v56 }
0x1745   :  { %v14240_v36 = vpop.eup %14239 }
0x1746   :  { %v4694_v46 = vadd.f32 1.0, %v14240_v36 }
0x1748   :  { %14243 = vrcp.f32 %v4694_v46 }
0x17cd   :  { %v16655_v41 = vpop.f32.mrb[44].mxu0 }
0x17ce   :  { %18156 = vst [vmem:[#allocation24_spill] sm:$0xff] %v16655_v41  ;;  %v10822_v42 = vpop.f32.mrb[45].mxu0  ;;  %v14242_v41 = vpop.eup %14241 }
0x17cf   :  { %v14244_v2 = vpop.eup %14243 }
0x17d0   :  { %v4700_v18 = vsub.f32 1.0, %v14244_v2  ;;  %v4702_v36 = vmul.f32 %v14244_v2, %v16360_v62  ;;  %v8000_v62 = vld [vmem:[%s17625_s0 + $0xc0] sm:$0xff] }
0x17ed   :  { %v4679_v4 = vpop.f32.mrb[46].mxu0 }
0x17ee   :  { %v4680_v25 = vadd.f32 %v4679_v4, %v15748_v7  ;;  %v10876_v42 = vpop.f32.mrb[47].mxu0 }
0x17f0   :  { %v4697_v12 = vmul.f32 %v14242_v41, %v4680_v25 }
0x17f2   :  { %v4698_v3 = vadd.f32 %v4697_v12, %v4541_v24 }
0x17f4   :  { %14245 = vtanh.f32 %v4698_v3 }
0x17fe   :  { %v14246_v56 = vpop.eup %14245 }
0x17ff   :  { %v4701_v63 = vmul.f32 %v14246_v56, %v4700_v18  ;;  %v18157_v56 = vld [vmem:[#allocation27_spill] sm:$0xff] }
0x1801   :  { %v16667_v39 = vadd.f32 %v4702_v36, %v4701_v63  ;;  %v18158_v63 = vld [vmem:[#allocation26_spill] sm:$0xff] }
0x1803   :  { %10910 = vmatmul.mubr.f32.vlgmr.msra.gmra.mrb[48].mxu0 %v16667_v39 }
0x1804   :  { %13285 = vmatpush3.bf16.msra.mxu0 %v14643_v53  ;;  %10979 = vmatprep.mubr.msk.f32.mxu0 %vm14409_vm0, %v17847_v32 }
0x1805   :  { %13286 = vmatprep.subr.bf16.mxu0 %v17850_v6 }
0x1808   :  { %13288 = vmatpush3.bf16.msra.mxu0 %v14649_v55 }
0x1809   :  { %13289 = vmatprep.subr.bf16.mxu0 %v17850_v6 }
0x180c   :  { %13291 = vmatpush3.bf16.msra.mxu0 %v14659_v58 }
0x180d   :  { %13292 = vmatprep.subr.bf16.mxu0 %v17850_v6 }
0x1810   :  { %13294 = vmatpush3.bf16.msra.mxu0 %v14669_v61 }
0x1811   :  { %13295 = vmatprep.subr.bf16.mxu0 %v17850_v6 }
0x1814   :  { %13297 = vmatpush3.bf16.msra.mxu0 %v14679_v0 }
0x1815   :  { %13298 = vmatprep.subr.bf16.mxu0 %v17850_v6 }
0x1818   :  { %13300 = vmatpush3.bf16.msra.mxu0 %v14689_v5 }
0x1819   :  { %13301 = vmatprep.subr.bf16.mxu0 %v17850_v6 }
0x181c   :  { %13303 = vmatpush3.bf16.msra.mxu0 %v14699_v10 }
0x181d   :  { %13304 = vmatprep.subr.bf16.mxu0 %v17850_v6 }
0x1820   :  { %13306 = vmatpush3.bf16.msra.mxu0 %v14798_v59 }
0x1821   :  { %13331 = vmatprep.subr.bf16.mxu0 %v17850_v6 }
0x18d6   :  { %v4823_v33 = vpop.f32.mrb[48].mxu0 }
0x18d7   :  { %v4827_v41 = vadd.f32 %v8000_v62, %v4823_v33  ;;  %v10911_v46 = vpop.f32.mrb[49].mxu0 }
0x18d9   :  { %v4828_v21 = vmax.f32 %v4827_v41, 0.0 }
0x18db   :  { %10945 = vmatmul.mubr.f32.vlgmr.msra.gmra.mrb[48].mxu1 %v4828_v21 }
0x18dc   :  { %13309 = vmatpush3.bf16.msra.mxu1 %v14713_v20  ;;  %11014 = vmatprep.mubr.msk.f32.mxu1 %vm14409_vm0, %v17847_v32 }
0x18dd   :  { %13310 = vmatprep.subr.bf16.mxu1 %v17850_v6 }
0x18e0   :  { %13312 = vmatpush3.bf16.msra.mxu1 %v14722_v26 }
0x18e1   :  { %13313 = vmatprep.subr.bf16.mxu1 %v17850_v6 }
0x18e4   :  { %13315 = vmatpush3.bf16.msra.mxu1 %v14734_v31 }
0x18e5   :  { %13316 = vmatprep.subr.bf16.mxu1 %v17850_v6 }
0x18e8   :  { %13318 = vmatpush3.bf16.msra.mxu1 %v14744_v35 }
0x18e9   :  { %13319 = vmatprep.subr.bf16.mxu1 %v17850_v6 }
0x18ec   :  { %13321 = vmatpush3.bf16.msra.mxu1 %v14754_v40 }
0x18ed   :  { %13322 = vmatprep.subr.bf16.mxu1 %v17850_v6 }
0x18f0   :  { %13324 = vmatpush3.bf16.msra.mxu1 %v14764_v44 }
0x18f1   :  { %13325 = vmatprep.subr.bf16.mxu1 %v17850_v6 }
0x18f4   :  { %13327 = vmatpush3.bf16.msra.mxu1 %v14774_v50 }
0x18f5   :  { %13328 = vmatprep.subr.bf16.mxu1 %v17850_v6 }
0x18f8   :  { %13330 = vmatpush3.bf16.msra.mxu1 %v14784_v54 }
0x18f9   :  { %13355 = vmatprep.subr.bf16.mxu1 %v17850_v6 }
0x18fb   :  { %11015 = vmatmul.mubr.f32.vlgmr.msra.gmra.mrb[50].mxu1 %v16667_v39 }
0x18fc   :  { %13357 = vmatpush3.bf16.msra.mxu1 %v14902_v13  ;;  %11084 = vmatprep.mubr.msk.f32.mxu1 %vm14409_vm0, %v17847_v32 }
0x18fd   :  { %13358 = vmatprep.subr.bf16.mxu1 %v17850_v6 }
0x1900   :  { %13360 = vmatpush3.bf16.msra.mxu1 %v14912_v19 }
0x1901   :  { %13361 = vmatprep.subr.bf16.mxu1 %v17850_v6 }
0x1904   :  { %13363 = vmatpush3.bf16.msra.mxu1 %v14921_v28 }
0x1905   :  { %13364 = vmatprep.subr.bf16.mxu1 %v17850_v6 }
0x1908   :  { %13366 = vmatpush3.bf16.msra.mxu1 %v14931_v38 }
0x1909   :  { %13367 = vmatprep.subr.bf16.mxu1 %v17850_v6 }
0x190c   :  { %13369 = vmatpush3.bf16.msra.mxu1 %v14941_v48 }
0x190d   :  { %13370 = vmatprep.subr.bf16.mxu1 %v17850_v6 }
0x1910   :  { %13372 = vmatpush3.bf16.msra.mxu1 %v14951_v57 }
0x1911   :  { %13373 = vmatprep.subr.bf16.mxu1 %v17850_v6 }
0x1914   :  { %13375 = vmatpush3.bf16.msra.mxu1 %v14961_v1 }
0x1915   :  { %13376 = vmatprep.subr.bf16.mxu1 %v17850_v6 }
0x1918   :  { %13378 = vmatpush3.bf16.msra.mxu1 %v14972_v9 }
0x1919   :  { %13415 = vmatprep.subr.bf16.mxu1 %v17850_v6 }
0x19ae   :  { %v4895_v4 = vpop.f32.mrb[48].mxu1 }
0x19af   :  { %v4896_v25 = vadd.f32 %v16424_v45, %v4895_v4  ;;  %v10946_v42 = vpop.f32.mrb[49].mxu1  ;;  %v8001_v45 = vld [vmem:[%s17625_s0 + $0xc8] sm:$0xff] }
0x19b1   :  { %v4899_v24 = vmax.f32 %v4896_v25, 0.0 }
0x19b3   :  { %10980 = vmatmul.mubr.f32.vlgmr.msra.gmra.mrb[50].mxu0 %v4899_v24 }
0x19b4   :  { %13333 = vmatpush3.bf16.msra.mxu0 %v14815_v11  ;;  %11049 = vmatprep.mubr.msk.f32.mxu0 %vm14409_vm0, %v17847_v32 }
0x19b5   :  { %13334 = vmatprep.subr.bf16.mxu0 %v17850_v6 }
0x19b8   :  { %13336 = vmatpush3.bf16.msra.mxu0 %v14824_v17 }
0x19b9   :  { %13337 = vmatprep.subr.bf16.mxu0 %v17850_v6 }
0x19bc   :  { %13339 = vmatpush3.bf16.msra.mxu0 %v14836_v23 }
0x19bd   :  { %13340 = vmatprep.subr.bf16.mxu0 %v17850_v6 }
0x19c0   :  { %13342 = vmatpush3.bf16.msra.mxu0 %v14846_v29 }
0x19c1   :  { %13343 = vmatprep.subr.bf16.mxu0 %v17850_v6 }
0x19c4   :  { %13345 = vmatpush3.bf16.msra.mxu0 %v14856_v37 }
0x19c5   :  { %13346 = vmatprep.subr.bf16.mxu0 %v17850_v6 }
0x19c8   :  { %13348 = vmatpush3.bf16.msra.mxu0 %v14866_v43 }
0x19c9   :  { %13349 = vmatprep.subr.bf16.mxu0 %v17850_v6 }
0x19cc   :  { %13351 = vmatpush3.bf16.msra.mxu0 %v14876_v51 }
0x19cd   :  { %13352 = vmatprep.subr.bf16.mxu0 %v17850_v6 }
0x19ce   :  { %v5045_v12 = vpop.f32.mrb[50].mxu1 }
0x19cf   :  { %v5049_v3 = vadd.f32 %v8001_v45, %v5045_v12  ;;  %v11016_v2 = vpop.f32.mrb[51].mxu1 }
0x19d0   :  { %13354 = vmatpush3.bf16.msra.mxu0 %v14889_v60 }
0x19d1   :  { %v5050_v18 = vmax.f32 %v5049_v3, 0.0  ;;  %13379 = vmatprep.subr.bf16.mxu0 %v17850_v6 }
0x19d3   :  { %11050 = vmatmul.mubr.f32.vlgmr.msra.gmra.mrb[52].mxu0 %v5050_v18 }
0x19d4   :  { %13381 = vmatpush3.bf16.msra.mxu0 %v17918_v15  ;;  %11103 = vmatprep.mubr.msk.f32.mxu0 %vm14409_vm0, %v17847_v32 }
0x19d5   :  { %13382 = vmatprep.subr.bf16.mxu0 %v17850_v6 }
0x19d8   :  { %13384 = vmatpush3.bf16.msra.mxu0 %v17998_v16 }
0x19d9   :  { %13385 = vmatprep.subr.bf16.mxu0 %v17850_v6 }
0x19dc   :  { %13387 = vmatpush3.bf16.msra.mxu0 %v18076_v27 }
0x19dd   :  { %13388 = vmatprep.subr.bf16.mxu0 %v17850_v6 }
0x19e0   :  { %13390 = vmatpush3.bf16.msra.mxu0 %v18157_v56 }
0x19e1   :  { %13391 = vmatprep.subr.bf16.mxu0 %v17850_v6 }
0x1a86   :  { %v4966_v36 = vpop.f32.mrb[50].mxu0 }
0x1a87   :  { %v16761_v62 = vadd.f32 %v18158_v63, %v4966_v36  ;;  %v10981_v33 = vpop.f32.mrb[51].mxu0  ;;  %v18159_v63 = vld [vmem:[#allocation74_spill] sm:$0xff] }
0x1a89   :  { %v4971_v41 = vand.u32 2147483647, %v16761_v62  ;;  %v4970_v45 = vmax.f32 %v16761_v62, 0.0 }
0x1a8b   :  { %v4972_v46 = vsub.f32 0.0, %v4971_v41  ;;  %v18161_v41 = vld [vmem:[#allocation69_spill] sm:$0xff] }
0x1a8d   :  { %v4973_v21 = vmul.f32 1.442695, %v4972_v46  ;;  %v18162_v46 = vld [vmem:[#allocation70_spill] sm:$0xff] }
0x1a8f   :  { %14247 = vpow2.f32 %v4973_v21  ;;  %v18163_v21 = vld [vmem:[#allocation71_spill] sm:$0xff] }
0x1a99   :  { %v14248_v4 = vpop.eup %14247 }
0x1a9a   :  { %v4975_v25 = vadd.f32 1.0, %v14248_v4 }
0x1a9c   :  { %14249 = vlog2.f32 %v4975_v25 }
0x1aa6   :  { %v14250_v42 = vpop.eup %14249  ;;  %v5117_v24 = vpop.f32.mrb[52].mxu0 }
0x1aa7   :  { %v5118_v12 = vadd.f32 %v16471_v30, %v5117_v24  ;;  %v11051_v3 = vpop.f32.mrb[53].mxu0  ;;  %v4977_v2 = vmul.f32 0.6931472, %v14250_v42  ;;  %v18160_v30 = vld [vmem:[#allocation68_spill] sm:$0xff]  ;;  %v18165_v24 = vld [vmem:[#allocation29_spill] sm:$0xff] }
0x1aa8   :  { %v18164_v42 = vld [vmem:[#allocation28_spill] sm:$0xff] }
0x1aa9   :  { %v5121_v18 = vmax.f32 %v5118_v12, 0.0  ;;  %v16766_v36 = vadd.f32 %v4977_v2, %v4970_v45  ;;  %v18166_v45 = vld [vmem:[#allocation30_spill] sm:$0xff]  ;;  %v18167_v12 = vld [vmem:[#allocation31_spill] sm:$0xff]  ;;  %v18168_v3 = vld [vmem:[#allocation32_spill] sm:$0xff] }
0x1aaa   :  { %v18169_v2 = vld [vmem:[#allocation33_spill] sm:$0xff] }
0x1aab   :  { %11085 = vmatmul.mubr.f32.vlgmr.msra.gmra.mrb[52].mxu1 %v5121_v18  ;;  %v5205_v33 = vmul.f32 %v18159_v63, %v16766_v36  ;;  %v18170_v18 = vld [vmem:[#allocation34_spill] sm:$0xff]  ;;  %v18171_v63 = vld [vmem:[#allocation35_spill] sm:$0xff] }
0x1aac   :  { %13417 = vmatpush3.bf16.msra.mxu1 %v15404_v52  ;;  %11173 = vmatprep.mubr.msk.f32.mxu1 %vm14409_vm0, %v17847_v32 }
0x1aad   :  { %5207 = vrot.lane.b32.xlu1 %v5205_v33, %s14411_s15  ;;  %13418 = vmatprep.subr.bf16.mxu1 %v17850_v6  ;;  %v18172_v33 = vld [vmem:[#allocation36_spill] sm:$0xff] }
0x1ab0   :  { %13420 = vmatpush3.bf16.msra.mxu1 %v17925_v49 }
0x1ab1   :  { %13421 = vmatprep.subr.bf16.mxu1 %v17850_v6 }
0x1ab4   :  { %13423 = vmatpush3.bf16.msra.mxu1 %v15444_v47 }
0x1ab5   :  { %13424 = vmatprep.subr.bf16.mxu1 %v17850_v6 }
0x1ab8   :  { %13426 = vmatpush3.bf16.msra.mxu1 %v15451_v8 }
0x1ab9   :  { %13427 = vmatprep.subr.bf16.mxu1 %v17850_v6 }
0x1abc   :  { %13429 = vmatpush3.bf16.msra.mxu1 %v18160_v30 }
0x1abd   :  { %13430 = vmatprep.subr.bf16.mxu1 %v17850_v6 }
0x1ac0   :  { %13432 = vmatpush3.bf16.msra.mxu1 %v18161_v41 }
0x1ac1   :  { %13433 = vmatprep.subr.bf16.mxu1 %v17850_v6 }
0x1ac4   :  { %13435 = vmatpush3.bf16.msra.mxu1 %v18162_v46 }
0x1ac5   :  { %13436 = vmatprep.subr.bf16.mxu1 %v17850_v6 }
0x1ac8   :  { %13438 = vmatpush3.bf16.msra.mxu1 %v18163_v21 }
0x1ac9   :  { %13439 = vmatprep.subr.bf16.mxu1 %v17850_v6 }
0x1b1f   :  { %v5208_v4 = vpop.permute.xlu1 %5207 }
0x1b20   :  { %v5210_v25 = vadd.f32 %v5208_v4, %v16761_v62  ;;  %v18173_v4 = vld [vmem:[#allocation37_spill] sm:$0xff] }
0x1b22   :  { %11104 = vmatmul.mubr.msk.f32.vlgmr.msra.gmra.mrb[54].mxu0 %vm624_vm1, %v5210_v25 }
0x1b23   :  { %13393 = vmatpush3.bf16.msra.mxu0 %v18164_v42  ;;  %11138 = vmatprep.mubr.msk.f32.mxu0 %vm14409_vm0, %v17847_v32  ;;  %v18196_v42 = vld [vmem:[#allocation60_spill] sm:$0xff] }
0x1b24   :  { %13394 = vmatprep.subr.bf16.mxu0 %v17850_v6 }
0x1b27   :  { %13396 = vmatpush3.bf16.msra.mxu0 %v18165_v24  ;;  %v18179_v24 = vld [vmem:[#allocation43_spill] sm:$0xff] }
0x1b28   :  { %13397 = vmatprep.subr.bf16.mxu0 %v17850_v6 }
0x1b2b   :  { %13399 = vmatpush3.bf16.msra.mxu0 %v18166_v45  ;;  %v18177_v45 = vld [vmem:[#allocation41_spill] sm:$0xff] }
0x1b2c   :  { %13400 = vmatprep.subr.bf16.mxu0 %v17850_v6 }
0x1b2f   :  { %13402 = vmatpush3.bf16.msra.mxu0 %v18167_v12  ;;  %v18175_v12 = vld [vmem:[#allocation39_spill] sm:$0xff] }
0x1b30   :  { %13403 = vmatprep.subr.bf16.mxu0 %v17850_v6 }
0x1b33   :  { %13405 = vmatpush3.bf16.msra.mxu0 %v18168_v3  ;;  %v18174_v3 = vld [vmem:[#allocation38_spill] sm:$0xff] }
0x1b34   :  { %13406 = vmatprep.subr.bf16.mxu0 %v17850_v6 }
0x1b37   :  { %13408 = vmatpush3.bf16.msra.mxu0 %v18169_v2  ;;  %v18176_v2 = vld [vmem:[#allocation40_spill] sm:$0xff] }
0x1b38   :  { %13409 = vmatprep.subr.bf16.mxu0 %v17850_v6 }
0x1b3b   :  { %13411 = vmatpush3.bf16.msra.mxu0 %v18170_v18  ;;  %v18178_v18 = vld [vmem:[#allocation42_spill] sm:$0xff] }
0x1b3c   :  { %13412 = vmatprep.subr.bf16.mxu0 %v17850_v6 }
0x1b3f   :  { %13414 = vmatpush3.bf16.msra.mxu0 %v18171_v63  ;;  %v18191_v63 = vld [vmem:[#allocation55_spill] sm:$0xff] }
0x1b40   :  { %13464 = vmatprep.subr.bf16.mxu0 %v18172_v33  ;;  %v18180_v33 = vld [vmem:[#allocation44_spill] sm:$0xff] }
0x1b42   :  { %11139 = vmatmul.mubr.f32.vlgmr.msra.gmra.mrb[54].mxu0 %v16667_v39 }
0x1b43   :  { %13466 = vmatpush1.bf16.msra.mxu0 %v18173_v4  ;;  %5571 = vmatprep.mubr.f32.mxu0 %v17847_v32  ;;  %v18189_v4 = vld [vmem:[#allocation53_spill] sm:$0xff] }
0x1b44   :  { %13468 = vmatprep.subr.bf16.mxu0 %v18174_v3  ;;  %v18187_v3 = vld [vmem:[#allocation51_spill] sm:$0xff] }
0x1b47   :  { %13470 = vmatpush1.bf16.msra.mxu0 %v18175_v12  ;;  %v18181_v12 = vld [vmem:[#allocation45_spill] sm:$0xff] }
0x1b48   :  { %13472 = vmatprep.subr.bf16.mxu0 %v18176_v2  ;;  %v18186_v2 = vld [vmem:[#allocation50_spill] sm:$0xff] }
0x1b4b   :  { %13474 = vmatpush1.bf16.msra.mxu0 %v18177_v45  ;;  %v18182_v45 = vld [vmem:[#allocation46_spill] sm:$0xff] }
0x1b4c   :  { %13476 = vmatprep.subr.bf16.mxu0 %v18178_v18  ;;  %v18184_v18 = vld [vmem:[#allocation48_spill] sm:$0xff] }
0x1b4f   :  { %13478 = vmatpush1.bf16.msra.mxu0 %v18179_v24  ;;  %v18183_v24 = vld [vmem:[#allocation47_spill] sm:$0xff] }
0x1b50   :  { %13479 = vmatprep.subr.bf16.mxu0 %v17850_v6 }
0x1b52   :  { %8009 = vmatmul.mubr.msk.f32.vlgmr.msra.gmra.mrb[56].mxu0 %vm624_vm1, %v5210_v25 }
0x1b53   :  { %13481 = vmatpush3.bf16.msra.mxu0 %v18180_v33  ;;  %11227 = vmatprep.mubr.msk.f32.mxu0 %vm14409_vm0, %v17847_v32  ;;  %v18185_v33 = vld [vmem:[#allocation49_spill] sm:$0xff] }
0x1b54   :  { %13482 = vmatprep.subr.bf16.mxu0 %v17850_v6 }
0x1b57   :  { %13484 = vmatpush3.bf16.msra.mxu0 %v18181_v12  ;;  %v18188_v12 = vld [vmem:[#allocation52_spill] sm:$0xff] }
0x1b58   :  { %13485 = vmatprep.subr.bf16.mxu0 %v17850_v6 }
0x1b5b   :  { %13487 = vmatpush3.bf16.msra.mxu0 %v18182_v45  ;;  %v18190_v45 = vld [vmem:[#allocation54_spill] sm:$0xff] }
0x1b5c   :  { %13488 = vmatprep.subr.bf16.mxu0 %v17850_v6 }
0x1b5f   :  { %13490 = vmatpush3.bf16.msra.mxu0 %v18183_v24  ;;  %v18192_v24 = vld [vmem:[#allocation56_spill] sm:$0xff] }
0x1b60   :  { %13492 = vmatprep.subr.bf16.mxu0 %v18184_v18  ;;  %v18193_v18 = vld [vmem:[#allocation57_spill] sm:$0xff] }
0x1b62   :  { %11228 = vmatmul.mubr.msk.f32.vlgmr.msra.gmra.mrb[58].mxu0 %vm624_vm1, %v5210_v25  ;;  %v18194_v25 = vld [vmem:[#allocation58_spill] sm:$0xff] }
0x1b63   :  { %13494 = vmatpush1.bf16.msra.mxu0 %v18185_v33  ;;  %5715 = vmatprep.mubr.f32.mxu0 %v17847_v32  ;;  %v18195_v33 = vld [vmem:[#allocation59_spill] sm:$0xff] }
0x1b64   :  { %13496 = vmatprep.subr.bf16.mxu0 %v18186_v2  ;;  %v18197_v2 = vld [vmem:[#allocation61_spill] sm:$0xff] }
0x1b67   :  { %13498 = vmatpush1.bf16.msra.mxu0 %v18187_v3  ;;  %v18198_v3 = vld [vmem:[#allocation62_spill] sm:$0xff] }
0x1b68   :  { %13500 = vmatprep.subr.bf16.mxu0 %v18188_v12 }
0x1b6b   :  { %13502 = vmatpush1.bf16.msra.mxu0 %v18189_v4 }
0x1b6c   :  { %13504 = vmatprep.subr.bf16.mxu0 %v18190_v45  ;;  %v16849_v45 = vld [vmem:[%s17629_s4 + $0x3] ss:$0 sm:$0xff] }
0x1b6d   :  { %18199 = vst [vmem:[#allocation27_spill] sm:$0xff] %v16849_v45 }
0x1b6f   :  { %13506 = vmatpush1.bf16.msra.mxu0 %v18191_v63 }
0x1b70   :  { %13508 = vmatprep.subr.bf16.mxu0 %v18192_v24 }
0x1b73   :  { %13510 = vmatpush1.bf16.msra.mxu0 %v18193_v18  ;;  %v18200_v18 = vld [vmem:[#allocation63_spill] sm:$0xff] }
0x1b74   :  { %13512 = vmatprep.subr.bf16.mxu0 %v18194_v25  ;;  %v18201_v25 = vld [vmem:[#allocation10_spill] sm:$0xff] }
0x1b77   :  { %13514 = vmatpush1.bf16.msra.mxu0 %v18195_v33 }
0x1b78   :  { %13516 = vmatprep.subr.bf16.mxu0 %v18196_v42 }
0x1b7b   :  { %13518 = vmatpush1.bf16.msra.mxu0 %v18197_v2 }
0x1b7c   :  { %13520 = vmatprep.subr.bf16.mxu0 %v18198_v3 }
0x1b7e   :  { %v5188_v12 = vpop.f32.mrb[52].mxu1 }
0x1b7f   :  { %v5189_v24 = vadd.f32 %v16849_v45, %v5188_v12  ;;  %v11086_v63 = vpop.f32.mrb[53].mxu1  ;;  %13522 = vmatpush1.bf16.msra.mxu0 %v18200_v18  ;;  %v18205_v18 = vld [vmem:[#allocation18_spill] sm:$0xff] }
0x1b80   :  { %13571 = vmatprep.subr.bf16.mxu0 %v17850_v6  ;;  %v18202_v63 = vld [vmem:[#allocation12_spill] sm:$0xff] }
0x1b81   :  { %v5193_v33 = vand.u32 2147483647, %v5189_v24  ;;  %v5821_v42 = vsub.f32 %v16761_v62, %v5189_v24  ;;  %v18203_v62 = vld [vmem:[#allocation14_spill] sm:$0xff] }
0x1b82   :  { %5716 = vmatmul.mubr.f32.vlgmr.msra.gmra.mrb[56].mxu0 %v16667_v39 }
0x1b83   :  { %v5194_v2 = vsub.f32 0.0, %v5193_v33  ;;  %v5822_v3 = vmul.f32 %v5821_v42, %v5821_v42  ;;  %13573 = vmatpush3.bf16.msra.mxu0 %v18201_v25  ;;  %11332 = vmatprep.mubr.msk.f32.mxu0 %vm14409_vm0, %v17847_v32  ;;  %v18204_v42 = vld [vmem:[#allocation16_spill] sm:$0xff] }
0x1b84   :  { %13574 = vmatprep.subr.bf16.mxu0 %v17850_v6 }
0x1b85   :  { %v5195_v12 = vmul.f32 1.442695, %v5194_v2  ;;  %5824 = vrot.lane.b32.xlu0 %v5822_v3, %s14411_s15  ;;  %v18206_v3 = vld [vmem:[#allocation20_spill] sm:$0xff]  ;;  %v18207_v2 = vld [vmem:[#allocation22_spill] sm:$0xff] }
0x1b87   :  { %14251 = vpow2.f32 %v5195_v12  ;;  %13576 = vmatpush3.bf16.msra.mxu0 %v18202_v63  ;;  %v18208_v63 = vld [vmem:[#allocation23_spill] sm:$0xff] }
0x1b88   :  { %13577 = vmatprep.subr.bf16.mxu0 %v17850_v6 }
0x1b8b   :  { %13579 = vmatpush3.bf16.msra.mxu0 %v18203_v62  ;;  %v5192_v62 = vmax.f32 %v5189_v24, 0.0  ;;  %v5820_v24 = vmul.f32 %v16766_v36, %v16766_v36 }
0x1b8c   :  { %13580 = vmatprep.subr.bf16.mxu0 %v17850_v6 }
0x1b8f   :  { %13582 = vmatpush3.bf16.msra.mxu0 %v18204_v42 }
0x1b90   :  { %13583 = vmatprep.subr.bf16.mxu0 %v17850_v6 }
0x1b91   :  { %v14252_v33 = vpop.eup %14251 }
0x1b92   :  { %v5197_v25 = vadd.f32 1.0, %v14252_v33 }
0x1b93   :  { %13585 = vmatpush3.bf16.msra.mxu0 %v18205_v18 }
0x1b94   :  { %14253 = vlog2.f32 %v5197_v25  ;;  %13586 = vmatprep.subr.bf16.mxu0 %v17850_v6 }
0x1b95   :  { %14255 = vlog2.f32 %v16766_v36  ;;  %v18210_v36 = vld [vmem:[#allocation79_spill] sm:$0xff] }
0x1b97   :  { %13588 = vmatpush3.bf16.msra.mxu0 %v18206_v3 }
0x1b98   :  { %13589 = vmatprep.subr.bf16.mxu0 %v17850_v6 }
0x1b9b   :  { %13591 = vmatpush3.bf16.msra.mxu0 %v18207_v2 }
0x1b9c   :  { %13592 = vmatprep.subr.bf16.mxu0 %v17850_v6 }
0x1b9e   :  { %v14254_v12 = vpop.eup %14253 }
0x1b9f   :  { %v5199_v42 = vmul.f32 0.6931472, %v14254_v12  ;;  %13594 = vmatpush3.bf16.msra.mxu0 %v18208_v63  ;;  %v14256_v33 = vpop.eup %14255 }
0x1ba0   :  { %13619 = vmatprep.subr.bf16.mxu0 %v17850_v6  ;;  %v5817_v18 = vmul.f32 0.6931472, %v14256_v33 }
0x1ba1   :  { %v5200_v25 = vadd.f32 %v5199_v42, %v5192_v62  ;;  %v8002_v62 = vld [vmem:[%s17625_s0 + $0xd0] sm:$0xff] }
0x1ba2   :  { %v5818_v4 = vmul.f32 2.0, %v5817_v18 }
0x1ba3   :  { %14257 = vlog2.f32 %v5200_v25  ;;  %v5828_v46 = vmul.f32 %v5200_v25, %v5200_v25  ;;  %v18216_v25 = vld [vmem:[#allocation85_spill] sm:$0xff] }
0x1ba5   :  { %14259 = vrcp.f32 %v5828_v46  ;;  %v18213_v46 = vld [vmem:[#allocation82_spill] sm:$0xff] }
0x1bad   :  { %v14258_v3 = vpop.eup %14257 }
0x1bae   :  { %v5814_v45 = vmul.f32 0.6931472, %v14258_v3 }
0x1baf   :  { %v14260_v30 = vpop.eup %14259 }
0x1bb0   :  { %v5815_v21 = vmul.f32 2.0, %v5814_v45 }
0x1bb2   :  { %v5819_v2 = vsub.f32 %v5815_v21, %v5818_v4  ;;  %v18214_v21 = vld [vmem:[#allocation83_spill] sm:$0xff]  ;;  %v18215_v4 = vld [vmem:[#allocation84_spill] sm:$0xff] }
0x1bf7   :  { %v5825_v12 = vpop.permute.xlu0 %5824 }
0x1bf8   :  { %v5827_v41 = vadd.f32 %v5825_v12, %v5820_v24 }
0x1bfa   :  { %v5830_v63 = vmul.f32 %v14260_v30, %v5827_v41  ;;  %v18211_v30 = vld [vmem:[#allocation80_spill] sm:$0xff]  ;;  %v18212_v41 = vld [vmem:[#allocation81_spill] sm:$0xff] }
0x1bfc   :  { %v16878_v8 = vadd.f32 %v5830_v63, %v5819_v2 }
0x1bfe   :  { %18209 = vst [vmem:[#allocation26_spill] sm:$0xff] %v16878_v8  ;;  %v18220_v8 = vld [vmem:[#allocation88_spill] sm:$0xff] }
0x1c15   :  { %v5351_v42 = vpop.f32.mrb[54].mxu0 }
0x1c16   :  { %v14107_v3 = vadd.f32 %v8002_v62, %v5351_v42  ;;  %v11140_v18 = vpop.f32.mrb[55].mxu0  ;;  %v16906_v62 = vld [vmem:[%s17629_s4 + $0x4] ss:$0 sm:$0xff] }
0x1c17   :  { %18217 = vst [vmem:[#allocation74_spill] sm:$0xff] %v16906_v62 }
0x1c18   :  { %v5356_v45 = vmax.f32 %v14107_v3, 0.0 }
0x1c1a   :  { %11174 = vmatmul.mubr.f32.vlgmr.msra.gmra.mrb[54].mxu1 %v5356_v45  ;;  %v18218_v45 = vld [vmem:[#allocation86_spill] sm:$0xff] }
0x1c1b   :  { %13441 = vmatpush3.bf16.msra.mxu1 %v15540_v14  ;;  %11208 = vmatprep.mubr.msk.f32.mxu1 %vm14409_vm0, %v17847_v32 }
0x1c1c   :  { %13442 = vmatprep.subr.bf16.mxu1 %v17850_v6 }
0x1c1f   :  { %13444 = vmatpush3.bf16.msra.mxu1 %v18210_v36 }
0x1c20   :  { %13445 = vmatprep.subr.bf16.mxu1 %v17850_v6 }
0x1c23   :  { %13447 = vmatpush3.bf16.msra.mxu1 %v18211_v30 }
0x1c24   :  { %13448 = vmatprep.subr.bf16.mxu1 %v17850_v6 }
0x1c27   :  { %13450 = vmatpush3.bf16.msra.mxu1 %v18212_v41 }
0x1c28   :  { %13451 = vmatprep.subr.bf16.mxu1 %v17850_v6 }
0x1c2b   :  { %13453 = vmatpush3.bf16.msra.mxu1 %v18213_v46 }
0x1c2c   :  { %13454 = vmatprep.subr.bf16.mxu1 %v17850_v6 }
0x1c2f   :  { %13456 = vmatpush3.bf16.msra.mxu1 %v18214_v21 }
0x1c30   :  { %13457 = vmatprep.subr.bf16.mxu1 %v17850_v6 }
0x1c33   :  { %13459 = vmatpush3.bf16.msra.mxu1 %v18215_v4 }
0x1c34   :  { %13460 = vmatprep.subr.bf16.mxu1 %v17850_v6 }
0x1c35   :  { %v16899_v63 = vpop.f32.mrb[58].mxu0 }
0x1c36   :  { %v11229_v2 = vpop.f32.mrb[59].mxu0 }
0x1c37   :  { %13462 = vmatpush3.bf16.msra.mxu1 %v18216_v25  ;;  %v18219_v2 = vld [vmem:[#allocation87_spill] sm:$0xff]  ;;  %v18221_v25 = vld [vmem:[#allocation89_spill] sm:$0xff] }
0x1c38   :  { %13523 = vmatprep.subr.bf16.mxu1 %v17850_v6 }
0x1c55   :  { %v5717_v33 = vpop.f32.mrb[56].mxu0 }
0x1c56   :  { %v5719_v24 = vpop.f32.mrb[57].mxu0 }
0x1ced   :  { %v5423_v12 = vpop.f32.mrb[54].mxu1 }
0x1cee   :  { %v5424_v42 = vadd.f32 %v16906_v62, %v5423_v12  ;;  %v11175_v3 = vpop.f32.mrb[55].mxu1  ;;  %v18222_v12 = vld [vmem:[#allocation90_spill] sm:$0xff] }
0x1cef   :  { %v18224_v3 = vld [vmem:[#allocation92_spill] sm:$0xff] }
0x1cf0   :  { %v5427_v18 = vmax.f32 %v5424_v42, 0.0  ;;  %v18223_v42 = vld [vmem:[#allocation91_spill] sm:$0xff] }
0x1cf2   :  { %11209 = vmatmul.mubr.f32.vlgmr.msra.gmra.mrb[56].mxu1 %v5427_v18  ;;  %v18225_v18 = vld [vmem:[#allocation93_spill] sm:$0xff] }
0x1cf3   :  { %13525 = vmatpush3.bf16.msra.mxu1 %v18218_v45  ;;  %11262 = vmatprep.mubr.msk.f32.mxu1 %vm14409_vm0, %v17847_v32 }
0x1cf4   :  { %13526 = vmatprep.subr.bf16.mxu1 %v17850_v6 }
0x1cf7   :  { %13528 = vmatpush3.bf16.msra.mxu1 %v18219_v2 }
0x1cf8   :  { %13529 = vmatprep.subr.bf16.mxu1 %v17850_v6 }
0x1cfb   :  { %13531 = vmatpush3.bf16.msra.mxu1 %v18220_v8  ;;  %v18232_v8 = vld [vmem:[#allocation19_spill] sm:$0xff] }
0x1cfc   :  { %13532 = vmatprep.subr.bf16.mxu1 %v17850_v6 }
0x1cff   :  { %13534 = vmatpush3.bf16.msra.mxu1 %v18221_v25  ;;  %v18226_v25 = vld [vmem:[#allocation8_spill] sm:$0xff] }
0x1d00   :  { %13535 = vmatprep.subr.bf16.mxu1 %v17850_v6 }
0x1d03   :  { %13537 = vmatpush3.bf16.msra.mxu1 %v18222_v12  ;;  %v18230_v12 = vld [vmem:[#allocation15_spill] sm:$0xff] }
0x1d04   :  { %13538 = vmatprep.subr.bf16.mxu1 %v17850_v6 }
0x1d07   :  { %13540 = vmatpush3.bf16.msra.mxu1 %v18223_v42  ;;  %v18227_v42 = vld [vmem:[#allocation9_spill] sm:$0xff] }
0x1d08   :  { %13541 = vmatprep.subr.bf16.mxu1 %v17850_v6 }
0x1d0b   :  { %13543 = vmatpush3.bf16.msra.mxu1 %v18224_v3  ;;  %v18228_v3 = vld [vmem:[#allocation11_spill] sm:$0xff] }
0x1d0c   :  { %13544 = vmatprep.subr.bf16.mxu1 %v17850_v6 }
0x1d0f   :  { %13546 = vmatpush3.bf16.msra.mxu1 %v18225_v18  ;;  %v18229_v18 = vld [vmem:[#allocation13_spill] sm:$0xff] }
0x1d10   :  { %13547 = vmatprep.subr.bf16.mxu1 %v17850_v6 }
0x1d12   :  { %11263 = vmatmul.mubr.f32.vlgmr.msra.gmra.mrb[58].mxu1 %v16667_v39 }
0x1d13   :  { %13549 = vmatpush3.bf16.msra.mxu1 %v18226_v25  ;;  %11297 = vmatprep.mubr.msk.f32.mxu1 %vm14409_vm0, %v17847_v32  ;;  %v18231_v25 = vld [vmem:[#allocation17_spill] sm:$0xff] }
0x1d14   :  { %13550 = vmatprep.subr.bf16.mxu1 %v17850_v6 }
0x1d17   :  { %13552 = vmatpush3.bf16.msra.mxu1 %v18227_v42  ;;  %v18233_v42 = vld [vmem:[#allocation21_spill] sm:$0xff] }
0x1d18   :  { %13553 = vmatprep.subr.bf16.mxu1 %v17850_v6 }
0x1d1b   :  { %13555 = vmatpush3.bf16.msra.mxu1 %v18228_v3 }
0x1d1c   :  { %13556 = vmatprep.subr.bf16.mxu1 %v17850_v6 }
0x1d1f   :  { %13558 = vmatpush3.bf16.msra.mxu1 %v18229_v18  ;;  %v8003_v18 = vld [vmem:[%s17625_s0 + $0xd8] sm:$0xff] }
0x1d20   :  { %13559 = vmatprep.subr.bf16.mxu1 %v17850_v6 }
0x1d23   :  { %13561 = vmatpush3.bf16.msra.mxu1 %v18230_v12  ;;  %v14108_v12 = vadd.f32 %v8003_v18, %v17995_v22 }
0x1d24   :  { %13562 = vmatprep.subr.bf16.mxu1 %v17850_v6 }
0x1d25   :  { %v14109_v3 = vadd.f32 %v14108_v12, %v5717_v33 }
0x1d27   :  { %13564 = vmatpush3.bf16.msra.mxu1 %v18231_v25  ;;  %v8011_v45 = vmul.f32 -1.442695, %v14109_v3 }
0x1d28   :  { %13565 = vmatprep.subr.bf16.mxu1 %v17850_v6 }
0x1d29   :  { %14261 = vpow2.f32 %v8011_v45 }
0x1d2b   :  { %13567 = vmatpush3.bf16.msra.mxu1 %v18232_v8  ;;  %v8004_v8 = vld [vmem:[%s17625_s0 + $0xe0] sm:$0xff] }
0x1d2c   :  { %13568 = vmatprep.subr.bf16.mxu1 %v17850_v6  ;;  %v14110_v62 = vadd.f32 %v8004_v8, %v17997_v34 }
0x1d2f   :  { %13570 = vmatpush3.bf16.msra.mxu1 %v18233_v42  ;;  %v14111_v42 = vadd.f32 %v14110_v62, %v5719_v24 }
0x1d30   :  { %13595 = vmatprep.subr.bf16.mxu1 %v17850_v6 }
0x1d31   :  { %v8012_v4 = vmul.f32 -1.442695, %v14111_v42 }
0x1d33   :  { %v14262_v21 = vpop.eup %14261  ;;  %14263 = vpow2.f32 %v8012_v4 }
0x1d34   :  { %v5796_v46 = vadd.f32 1.0, %v14262_v21 }
0x1d36   :  { %14265 = vrcp.f32 %v5796_v46 }
0x1d3d   :  { %v14264_v41 = vpop.eup %14263 }
0x1d3e   :  { %v5803_v18 = vadd.f32 1.0, %v14264_v41 }
0x1d40   :  { %14267 = vrcp.f32 %v5803_v18 }
0x1dc5   :  { %v16950_v2 = vpop.f32.mrb[56].mxu1 }
0x1dc6   :  { %18234 = vst [vmem:[#allocation105_spill] sm:$0xff] %v16950_v2  ;;  %v11210_v25 = vpop.f32.mrb[57].mxu1  ;;  %v14266_v2 = vpop.eup %14265 }
0x1dc7   :  { %v8005_v25 = vld [vmem:[%s17625_s0 + $0xe8] sm:$0xff]  ;;  %v14268_v4 = vpop.eup %14267 }
0x1dc8   :  { %v5650_v8 = vadd.f32 %v8005_v25, %v16899_v63  ;;  %v5809_v21 = vsub.f32 1.0, %v14268_v4  ;;  %v5811_v41 = vmul.f32 %v14268_v4, %v16667_v39  ;;  %v8014_v39 = vld [vmem:[%s17625_s0 + $0xf0] sm:$0xff] }
0x1de5   :  { %v5788_v33 = vpop.f32.mrb[58].mxu1 }
0x1de6   :  { %v5789_v12 = vadd.f32 %v5788_v33, %v15748_v7  ;;  %v11264_v3 = vpop.f32.mrb[59].mxu1 }
0x1de8   :  { %v5806_v24 = vmul.f32 %v14266_v2, %v5789_v12  ;;  %v17026_v12 = vld [vmem:[%s17629_s4] ss:$0 sm:$0xff] }
0x1dea   :  { %v5807_v62 = vadd.f32 %v5806_v24, %v5650_v8 }
0x1dec   :  { %14269 = vtanh.f32 %v5807_v62  ;;  %v8015_v62 = vld [vmem:[%s17625_s0 + $0xf8] sm:$0xff] }
0x1df6   :  { %v14270_v46 = vpop.eup %14269 }
0x1df7   :  { %v5810_v45 = vmul.f32 %v14270_v46, %v5809_v21 }
0x1df9   :  { %v16962_v42 = vadd.f32 %v5811_v41, %v5810_v45 }
0x1dfb   :  { %11298 = vmatmul.mubr.f32.vlgmr.msra.gmra.mrb[60].mxu1 %v16962_v42 }
0x1dfc   :  { %13597 = vmatpush3.bf16.msra.mxu1 %v14643_v53  ;;  %11367 = vmatprep.mubr.msk.f32.mxu1 %vm14409_vm0, %v17847_v32 }
0x1dfd   :  { %13598 = vmatprep.subr.bf16.mxu1 %v17850_v6 }
0x1e00   :  { %13600 = vmatpush3.bf16.msra.mxu1 %v14649_v55 }
0x1e01   :  { %13601 = vmatprep.subr.bf16.mxu1 %v17850_v6 }
0x1e04   :  { %13603 = vmatpush3.bf16.msra.mxu1 %v14659_v58 }
0x1e05   :  { %13604 = vmatprep.subr.bf16.mxu1 %v17850_v6 }
0x1e08   :  { %13606 = vmatpush3.bf16.msra.mxu1 %v14669_v61 }
0x1e09   :  { %13607 = vmatprep.subr.bf16.mxu1 %v17850_v6 }
0x1e0c   :  { %13609 = vmatpush3.bf16.msra.mxu1 %v14679_v0 }
0x1e0d   :  { %13610 = vmatprep.subr.bf16.mxu1 %v17850_v6 }
0x1e10   :  { %13612 = vmatpush3.bf16.msra.mxu1 %v14689_v5 }
0x1e11   :  { %13613 = vmatprep.subr.bf16.mxu1 %v17850_v6 }
0x1e14   :  { %13615 = vmatpush3.bf16.msra.mxu1 %v14699_v10 }
0x1e15   :  { %13616 = vmatprep.subr.bf16.mxu1 %v17850_v6 }
0x1e18   :  { %13618 = vmatpush3.bf16.msra.mxu1 %v14798_v59 }
0x1e19   :  { %13643 = vmatprep.subr.bf16.mxu1 %v17850_v6 }
0x1ece   :  { %v5932_v63 = vpop.f32.mrb[60].mxu1 }
0x1ecf   :  { %v5936_v2 = vadd.f32 %v8014_v39, %v5932_v63  ;;  %v11299_v18 = vpop.f32.mrb[61].mxu1  ;;  %v17063_v39 = vld [vmem:[%s17629_s4 + $0x1] ss:$0 sm:$0xff] }
0x1ed1   :  { %v5937_v25 = vmax.f32 %v5936_v2, 0.0 }
0x1ed3   :  { %11333 = vmatmul.mubr.f32.vlgmr.msra.gmra.mrb[60].mxu0 %v5937_v25 }
0x1ed4   :  { %13621 = vmatpush3.bf16.msra.mxu0 %v14713_v20  ;;  %11402 = vmatprep.mubr.msk.f32.mxu0 %vm14409_vm0, %v17847_v32 }
0x1ed5   :  { %13622 = vmatprep.subr.bf16.mxu0 %v17850_v6 }
0x1ed8   :  { %13624 = vmatpush3.bf16.msra.mxu0 %v14722_v26 }
0x1ed9   :  { %13625 = vmatprep.subr.bf16.mxu0 %v17850_v6 }
0x1edc   :  { %13627 = vmatpush3.bf16.msra.mxu0 %v14734_v31 }
0x1edd   :  { %13628 = vmatprep.subr.bf16.mxu0 %v17850_v6 }
0x1ee0   :  { %13630 = vmatpush3.bf16.msra.mxu0 %v14744_v35 }
0x1ee1   :  { %13631 = vmatprep.subr.bf16.mxu0 %v17850_v6 }
0x1ee4   :  { %13633 = vmatpush3.bf16.msra.mxu0 %v14754_v40 }
0x1ee5   :  { %13634 = vmatprep.subr.bf16.mxu0 %v17850_v6 }
0x1ee8   :  { %13636 = vmatpush3.bf16.msra.mxu0 %v14764_v44 }
0x1ee9   :  { %13637 = vmatprep.subr.bf16.mxu0 %v17850_v6 }
0x1eec   :  { %13639 = vmatpush3.bf16.msra.mxu0 %v14774_v50 }
0x1eed   :  { %13640 = vmatprep.subr.bf16.mxu0 %v17850_v6 }
0x1ef0   :  { %13642 = vmatpush3.bf16.msra.mxu0 %v14784_v54 }
0x1ef1   :  { %13667 = vmatprep.subr.bf16.mxu0 %v17850_v6 }
0x1ef3   :  { %11403 = vmatmul.mubr.f32.vlgmr.msra.gmra.mrb[62].mxu0 %v16962_v42 }
0x1ef4   :  { %13669 = vmatpush3.bf16.msra.mxu0 %v14902_v13  ;;  %11472 = vmatprep.mubr.msk.f32.mxu0 %vm14409_vm0, %v17847_v32 }
0x1ef5   :  { %13670 = vmatprep.subr.bf16.mxu0 %v17850_v6 }
0x1ef8   :  { %13672 = vmatpush3.bf16.msra.mxu0 %v14912_v19 }
0x1ef9   :  { %13673 = vmatprep.subr.bf16.mxu0 %v17850_v6 }
0x1efc   :  { %13675 = vmatpush3.bf16.msra.mxu0 %v14921_v28 }
0x1efd   :  { %13676 = vmatprep.subr.bf16.mxu0 %v17850_v6 }
0x1f00   :  { %13678 = vmatpush3.bf16.msra.mxu0 %v14931_v38 }
0x1f01   :  { %13679 = vmatprep.subr.bf16.mxu0 %v17850_v6 }
0x1f04   :  { %13681 = vmatpush3.bf16.msra.mxu0 %v14941_v48 }
0x1f05   :  { %13682 = vmatprep.subr.bf16.mxu0 %v17850_v6 }
0x1f08   :  { %13684 = vmatpush3.bf16.msra.mxu0 %v14951_v57 }
0x1f09   :  { %13685 = vmatprep.subr.bf16.mxu0 %v17850_v6 }
0x1f0c   :  { %13687 = vmatpush3.bf16.msra.mxu0 %v14961_v1 }
0x1f0d   :  { %13688 = vmatprep.subr.bf16.mxu0 %v17850_v6 }
0x1f10   :  { %13690 = vmatpush3.bf16.msra.mxu0 %v14972_v9 }
0x1f11   :  { %13727 = vmatprep.subr.bf16.mxu0 %v17850_v6 }
0x1fa6   :  { %v6004_v33 = vpop.f32.mrb[60].mxu0 }
0x1fa7   :  { %v6005_v3 = vadd.f32 %v17026_v12, %v6004_v33  ;;  %v11334_v8 = vpop.f32.mrb[61].mxu0 }
0x1fa9   :  { %v6008_v24 = vmax.f32 %v6005_v3, 0.0 }
0x1fab   :  { %11368 = vmatmul.mubr.f32.vlgmr.msra.gmra.mrb[62].mxu1 %v6008_v24 }
0x1fac   :  { %13645 = vmatpush3.bf16.msra.mxu1 %v14815_v11  ;;  %11437 = vmatprep.mubr.msk.f32.mxu1 %vm14409_vm0, %v17847_v32 }
0x1fad   :  { %13646 = vmatprep.subr.bf16.mxu1 %v17850_v6 }
0x1fb0   :  { %13648 = vmatpush3.bf16.msra.mxu1 %v14824_v17 }
0x1fb1   :  { %13649 = vmatprep.subr.bf16.mxu1 %v17850_v6 }
0x1fb4   :  { %13651 = vmatpush3.bf16.msra.mxu1 %v14836_v23 }
0x1fb5   :  { %13652 = vmatprep.subr.bf16.mxu1 %v17850_v6 }
0x1fb8   :  { %13654 = vmatpush3.bf16.msra.mxu1 %v14846_v29 }
0x1fb9   :  { %13655 = vmatprep.subr.bf16.mxu1 %v17850_v6 }
0x1fbc   :  { %13657 = vmatpush3.bf16.msra.mxu1 %v14856_v37 }
0x1fbd   :  { %13658 = vmatprep.subr.bf16.mxu1 %v17850_v6 }
0x1fc0   :  { %13660 = vmatpush3.bf16.msra.mxu1 %v14866_v43 }
0x1fc1   :  { %13661 = vmatprep.subr.bf16.mxu1 %v17850_v6 }
0x1fc4   :  { %13663 = vmatpush3.bf16.msra.mxu1 %v14876_v51 }
0x1fc5   :  { %13664 = vmatprep.subr.bf16.mxu1 %v17850_v6 }
0x1fc6   :  { %v6154_v4 = vpop.f32.mrb[62].mxu0 }
0x1fc7   :  { %v6158_v21 = vadd.f32 %v8015_v62, %v6154_v4  ;;  %v11404_v46 = vpop.f32.mrb[63].mxu0 }
0x1fc8   :  { %13666 = vmatpush3.bf16.msra.mxu1 %v14889_v60 }
0x1fc9   :  { %v6159_v41 = vmax.f32 %v6158_v21, 0.0  ;;  %13691 = vmatprep.subr.bf16.mxu1 %v17850_v6  ;;  %v17073_v21 = vld [vmem:[%s17629_s4 + $0x2] ss:$0 sm:$0xff] }
0x1fcb   :  { %11438 = vmatmul.mubr.f32.vlgmr.msra.gmra.mrb[64].mxu1 %v6159_v41 }
0x1fcc   :  { %13693 = vmatpush3.bf16.msra.mxu1 %v17918_v15  ;;  %11491 = vmatprep.mubr.msk.f32.mxu1 %vm14409_vm0, %v17847_v32 }
0x1fcd   :  { %13694 = vmatprep.subr.bf16.mxu1 %v17850_v6 }
0x1fd0   :  { %13696 = vmatpush3.bf16.msra.mxu1 %v17998_v16 }
0x1fd1   :  { %13697 = vmatprep.subr.bf16.mxu1 %v17850_v6 }
0x1fd4   :  { %13699 = vmatpush3.bf16.msra.mxu1 %v18076_v27 }
0x1fd5   :  { %13700 = vmatprep.subr.bf16.mxu1 %v17850_v6 }
0x1fd8   :  { %13702 = vmatpush3.bf16.msra.mxu1 %v18157_v56 }
0x1fd9   :  { %13703 = vmatprep.subr.bf16.mxu1 %v17850_v6 }
0x207e   :  { %v6075_v45 = vpop.f32.mrb[62].mxu1 }
0x207f   :  { %v17066_v63 = vadd.f32 %v17063_v39, %v6075_v45  ;;  %v11369_v2 = vpop.f32.mrb[63].mxu1 }
0x2081   :  { %18235 = vst [vmem:[#allocation106_spill] sm:$0xff] %v17066_v63  ;;  %v6080_v18 = vand.u32 2147483647, %v17066_v63  ;;  %v6079_v4 = vmax.f32 %v17066_v63, 0.0 }
0x2083   :  { %v6081_v25 = vsub.f32 0.0, %v6080_v18 }
0x2085   :  { %v6082_v33 = vmul.f32 1.442695, %v6081_v25  ;;  %v18237_v25 = vld [vmem:[#allocation75_spill] sm:$0xff] }
0x2087   :  { %14271 = vpow2.f32 %v6082_v33 }
0x2091   :  { %v14272_v3 = vpop.eup %14271 }
0x2092   :  { %v6084_v8 = vadd.f32 1.0, %v14272_v3  ;;  %v18238_v3 = vld [vmem:[#allocation67_spill] sm:$0xff] }
0x2094   :  { %14273 = vlog2.f32 %v6084_v8  ;;  %v18239_v8 = vld [vmem:[#allocation68_spill] sm:$0xff] }
0x209e   :  { %v14274_v24 = vpop.eup %14273  ;;  %v6226_v62 = vpop.f32.mrb[64].mxu1 }
0x209f   :  { %v6227_v46 = vadd.f32 %v17073_v21, %v6226_v62  ;;  %v11439_v41 = vpop.f32.mrb[65].mxu1  ;;  %v6086_v45 = vmul.f32 0.6931472, %v14274_v24  ;;  %v18240_v24 = vld [vmem:[#allocation69_spill] sm:$0xff]  ;;  %v18241_v62 = vld [vmem:[#allocation70_spill] sm:$0xff] }
0x20a1   :  { %v6230_v2 = vmax.f32 %v6227_v46, 0.0  ;;  %v17076_v18 = vadd.f32 %v6086_v45, %v6079_v4  ;;  %v18242_v4 = vld [vmem:[#allocation71_spill] sm:$0xff]  ;;  %v18243_v45 = vld [vmem:[#allocation28_spill] sm:$0xff] }
0x20a3   :  { %18236 = vst [vmem:[#allocation107_spill] sm:$0xff] %v17076_v18  ;;  %11473 = vmatmul.mubr.f32.vlgmr.msra.gmra.mrb[64].mxu0 %v6230_v2  ;;  %v6314_v33 = vmul.f32 %v18237_v25, %v17076_v18  ;;  %v18244_v2 = vld [vmem:[#allocation29_spill] sm:$0xff]  ;;  %v18245_v25 = vld [vmem:[#allocation30_spill] sm:$0xff] }
0x20a4   :  { %13729 = vmatpush3.bf16.msra.mxu0 %v15404_v52  ;;  %11561 = vmatprep.mubr.msk.f32.mxu0 %vm14409_vm0, %v17847_v32 }
0x20a5   :  { %6316 = vrot.lane.b32.xlu1 %v6314_v33, %s14411_s15  ;;  %13730 = vmatprep.subr.bf16.mxu0 %v17850_v6  ;;  %v18246_v33 = vld [vmem:[#allocation31_spill] sm:$0xff] }
0x20a8   :  { %13732 = vmatpush3.bf16.msra.mxu0 %v17925_v49 }
0x20a9   :  { %13733 = vmatprep.subr.bf16.mxu0 %v17850_v6 }
0x20ac   :  { %13735 = vmatpush3.bf16.msra.mxu0 %v15444_v47 }
0x20ad   :  { %13736 = vmatprep.subr.bf16.mxu0 %v17850_v6 }
0x20b0   :  { %13738 = vmatpush3.bf16.msra.mxu0 %v18238_v3  ;;  %v18275_v3 = vld [vmem:[#allocation60_spill] sm:$0xff] }
0x20b1   :  { %13739 = vmatprep.subr.bf16.mxu0 %v17850_v6 }
0x20b4   :  { %13741 = vmatpush3.bf16.msra.mxu0 %v18239_v8  ;;  %v18258_v8 = vld [vmem:[#allocation43_spill] sm:$0xff] }
0x20b5   :  { %13742 = vmatprep.subr.bf16.mxu0 %v17850_v6 }
0x20b8   :  { %13744 = vmatpush3.bf16.msra.mxu0 %v18240_v24  ;;  %v18256_v24 = vld [vmem:[#allocation41_spill] sm:$0xff] }
0x20b9   :  { %13745 = vmatprep.subr.bf16.mxu0 %v17850_v6 }
0x20bc   :  { %13747 = vmatpush3.bf16.msra.mxu0 %v18241_v62  ;;  %v18254_v62 = vld [vmem:[#allocation39_spill] sm:$0xff] }
0x20bd   :  { %13748 = vmatprep.subr.bf16.mxu0 %v17850_v6 }
0x20c0   :  { %13750 = vmatpush3.bf16.msra.mxu0 %v18242_v4  ;;  %v18249_v4 = vld [vmem:[#allocation34_spill] sm:$0xff] }
0x20c1   :  { %13751 = vmatprep.subr.bf16.mxu0 %v17850_v6 }
0x2117   :  { %v6317_v46 = vpop.permute.xlu1 %6316 }
0x2118   :  { %v6319_v41 = vadd.f32 %v6317_v46, %v17066_v63  ;;  %v18247_v46 = vld [vmem:[#allocation32_spill] sm:$0xff] }
0x211a   :  { %11492 = vmatmul.mubr.msk.f32.vlgmr.msra.gmra.mrb[66].mxu1 %vm624_vm1, %v6319_v41 }
0x211b   :  { %13705 = vmatpush3.bf16.msra.mxu1 %v18243_v45  ;;  %11526 = vmatprep.mubr.msk.f32.mxu1 %vm14409_vm0, %v17847_v32  ;;  %v18248_v45 = vld [vmem:[#allocation33_spill] sm:$0xff] }
0x211c   :  { %13706 = vmatprep.subr.bf16.mxu1 %v17850_v6 }
0x211f   :  { %13708 = vmatpush3.bf16.msra.mxu1 %v18244_v2  ;;  %v18250_v2 = vld [vmem:[#allocation35_spill] sm:$0xff] }
0x2120   :  { %13709 = vmatprep.subr.bf16.mxu1 %v17850_v6 }
0x2123   :  { %13711 = vmatpush3.bf16.msra.mxu1 %v18245_v25  ;;  %v18251_v25 = vld [vmem:[#allocation36_spill] sm:$0xff] }
0x2124   :  { %13712 = vmatprep.subr.bf16.mxu1 %v17850_v6 }
0x2127   :  { %13714 = vmatpush3.bf16.msra.mxu1 %v18246_v33  ;;  %v18252_v33 = vld [vmem:[#allocation37_spill] sm:$0xff] }
0x2128   :  { %13715 = vmatprep.subr.bf16.mxu1 %v17850_v6 }
0x212b   :  { %13717 = vmatpush3.bf16.msra.mxu1 %v18247_v46  ;;  %v18253_v46 = vld [vmem:[#allocation38_spill] sm:$0xff] }
0x212c   :  { %13718 = vmatprep.subr.bf16.mxu1 %v17850_v6 }
0x212f   :  { %13720 = vmatpush3.bf16.msra.mxu1 %v18248_v45  ;;  %v18255_v45 = vld [vmem:[#allocation40_spill] sm:$0xff] }
0x2130   :  { %13721 = vmatprep.subr.bf16.mxu1 %v17850_v6 }
0x2133   :  { %13723 = vmatpush3.bf16.msra.mxu1 %v18249_v4  ;;  %v18257_v4 = vld [vmem:[#allocation42_spill] sm:$0xff] }
0x2134   :  { %13724 = vmatprep.subr.bf16.mxu1 %v17850_v6 }
0x2137   :  { %13726 = vmatpush3.bf16.msra.mxu1 %v18250_v2  ;;  %v18270_v2 = vld [vmem:[#allocation55_spill] sm:$0xff] }
0x2138   :  { %13776 = vmatprep.subr.bf16.mxu1 %v18251_v25  ;;  %v18259_v25 = vld [vmem:[#allocation44_spill] sm:$0xff] }
0x213a   :  { %11527 = vmatmul.mubr.f32.vlgmr.msra.gmra.mrb[66].mxu1 %v16962_v42 }
0x213b   :  { %13778 = vmatpush1.bf16.msra.mxu1 %v18252_v33  ;;  %6680 = vmatprep.mubr.f32.mxu1 %v17847_v32  ;;  %v18265_v33 = vld [vmem:[#allocation50_spill] sm:$0xff] }
0x213c   :  { %13780 = vmatprep.subr.bf16.mxu1 %v18253_v46  ;;  %v18266_v46 = vld [vmem:[#allocation51_spill] sm:$0xff] }
0x213f   :  { %13782 = vmatpush1.bf16.msra.mxu1 %v18254_v62  ;;  %v18260_v62 = vld [vmem:[#allocation45_spill] sm:$0xff] }
0x2140   :  { %13784 = vmatprep.subr.bf16.mxu1 %v18255_v45  ;;  %v18264_v45 = vld [vmem:[#allocation49_spill] sm:$0xff] }
0x2143   :  { %13786 = vmatpush1.bf16.msra.mxu1 %v18256_v24  ;;  %v18261_v24 = vld [vmem:[#allocation46_spill] sm:$0xff] }
0x2144   :  { %13788 = vmatprep.subr.bf16.mxu1 %v18257_v4  ;;  %v18263_v4 = vld [vmem:[#allocation48_spill] sm:$0xff] }
0x2147   :  { %13790 = vmatpush1.bf16.msra.mxu1 %v18258_v8  ;;  %v18262_v8 = vld [vmem:[#allocation47_spill] sm:$0xff] }
0x2148   :  { %13791 = vmatprep.subr.bf16.mxu1 %v17850_v6 }
0x214a   :  { %8023 = vmatmul.mubr.msk.f32.vlgmr.msra.gmra.mrb[68].mxu1 %vm624_vm1, %v6319_v41 }
0x214b   :  { %13793 = vmatpush3.bf16.msra.mxu1 %v18259_v25  ;;  %11615 = vmatprep.mubr.msk.f32.mxu1 %vm14409_vm0, %v17847_v32  ;;  %v18267_v25 = vld [vmem:[#allocation52_spill] sm:$0xff] }
0x214c   :  { %13794 = vmatprep.subr.bf16.mxu1 %v17850_v6 }
0x214f   :  { %13796 = vmatpush3.bf16.msra.mxu1 %v18260_v62  ;;  %v18268_v62 = vld [vmem:[#allocation53_spill] sm:$0xff] }
0x2150   :  { %13797 = vmatprep.subr.bf16.mxu1 %v17850_v6 }
0x2153   :  { %13799 = vmatpush3.bf16.msra.mxu1 %v18261_v24  ;;  %v18269_v24 = vld [vmem:[#allocation54_spill] sm:$0xff] }
0x2154   :  { %13800 = vmatprep.subr.bf16.mxu1 %v17850_v6 }
0x2157   :  { %13802 = vmatpush3.bf16.msra.mxu1 %v18262_v8  ;;  %v18271_v8 = vld [vmem:[#allocation56_spill] sm:$0xff] }
0x2158   :  { %13804 = vmatprep.subr.bf16.mxu1 %v18263_v4  ;;  %v18272_v4 = vld [vmem:[#allocation57_spill] sm:$0xff] }
0x215a   :  { %11616 = vmatmul.mubr.msk.f32.vlgmr.msra.gmra.mrb[70].mxu1 %vm624_vm1, %v6319_v41  ;;  %v18273_v41 = vld [vmem:[#allocation58_spill] sm:$0xff] }
0x215b   :  { %13806 = vmatpush1.bf16.msra.mxu1 %v18264_v45  ;;  %6824 = vmatprep.mubr.f32.mxu1 %v17847_v32  ;;  %v18274_v45 = vld [vmem:[#allocation59_spill] sm:$0xff] }
0x215c   :  { %13808 = vmatprep.subr.bf16.mxu1 %v18265_v33  ;;  %v18276_v33 = vld [vmem:[#allocation61_spill] sm:$0xff] }
0x215f   :  { %13810 = vmatpush1.bf16.msra.mxu1 %v18266_v46  ;;  %v18277_v46 = vld [vmem:[#allocation62_spill] sm:$0xff] }
0x2160   :  { %13812 = vmatprep.subr.bf16.mxu1 %v18267_v25 }
0x2163   :  { %13814 = vmatpush1.bf16.msra.mxu1 %v18268_v62  ;;  %v18278_v62 = vld [vmem:[#allocation27_spill] sm:$0xff] }
0x2164   :  { %13816 = vmatprep.subr.bf16.mxu1 %v18269_v24 }
0x2167   :  { %13818 = vmatpush1.bf16.msra.mxu1 %v18270_v2  ;;  %v18279_v2 = vld [vmem:[#allocation63_spill] sm:$0xff] }
0x2168   :  { %13820 = vmatprep.subr.bf16.mxu1 %v18271_v8 }
0x216b   :  { %13822 = vmatpush1.bf16.msra.mxu1 %v18272_v4 }
0x216c   :  { %13824 = vmatprep.subr.bf16.mxu1 %v18273_v41  ;;  %v18280_v41 = vld [vmem:[#allocation10_spill] sm:$0xff] }
0x216f   :  { %13826 = vmatpush1.bf16.msra.mxu1 %v18274_v45  ;;  %v18281_v45 = vld [vmem:[#allocation12_spill] sm:$0xff] }
0x2170   :  { %13828 = vmatprep.subr.bf16.mxu1 %v18275_v3 }
0x2173   :  { %13830 = vmatpush1.bf16.msra.mxu1 %v18276_v33  ;;  %v18282_v33 = vld [vmem:[#allocation14_spill] sm:$0xff] }
0x2174   :  { %13832 = vmatprep.subr.bf16.mxu1 %v18277_v46  ;;  %v18283_v46 = vld [vmem:[#allocation16_spill] sm:$0xff] }
0x2176   :  { %v6297_v25 = vpop.f32.mrb[64].mxu0 }
0x2177   :  { %v17157_v47 = vadd.f32 %v18278_v62, %v6297_v25  ;;  %v11474_v24 = vpop.f32.mrb[65].mxu0  ;;  %13834 = vmatpush1.bf16.msra.mxu1 %v18279_v2  ;;  %v18285_v2 = vld [vmem:[#allocation20_spill] sm:$0xff] }
0x2178   :  { %13883 = vmatprep.subr.bf16.mxu1 %v17850_v6  ;;  %v18284_v24 = vld [vmem:[#allocation18_spill] sm:$0xff] }
0x2179   :  { %v6302_v8 = vand.u32 2147483647, %v17157_v47 }
0x217a   :  { %6825 = vmatmul.mubr.f32.vlgmr.msra.gmra.mrb[68].mxu1 %v16962_v42 }
0x217b   :  { %v6303_v4 = vsub.f32 0.0, %v6302_v8  ;;  %13885 = vmatpush3.bf16.msra.mxu1 %v18280_v41  ;;  %11720 = vmatprep.mubr.msk.f32.mxu1 %vm14409_vm0, %v17847_v32  ;;  %v18286_v8 = vld [vmem:[#allocation22_spill] sm:$0xff]  ;;  %v6301_v41 = vmax.f32 %v17157_v47, 0.0 }
0x217c   :  { %13886 = vmatprep.subr.bf16.mxu1 %v17850_v6 }
0x217d   :  { %v6304_v3 = vmul.f32 1.442695, %v6303_v4 }
0x217f   :  { %14275 = vpow2.f32 %v6304_v3  ;;  %13888 = vmatpush3.bf16.msra.mxu1 %v18281_v45  ;;  %v18287_v45 = vld [vmem:[#allocation23_spill] sm:$0xff] }
0x2180   :  { %13889 = vmatprep.subr.bf16.mxu1 %v17850_v6 }
0x2183   :  { %13891 = vmatpush3.bf16.msra.mxu1 %v18282_v33 }
0x2184   :  { %13892 = vmatprep.subr.bf16.mxu1 %v17850_v6 }
0x2187   :  { %13894 = vmatpush3.bf16.msra.mxu1 %v18283_v46 }
0x2188   :  { %13895 = vmatprep.subr.bf16.mxu1 %v17850_v6 }
0x2189   :  { %v14276_v25 = vpop.eup %14275 }
0x218a   :  { %v6306_v62 = vadd.f32 1.0, %v14276_v25 }
0x218b   :  { %13897 = vmatpush3.bf16.msra.mxu1 %v18284_v24 }
0x218c   :  { %14277 = vlog2.f32 %v6306_v62  ;;  %13898 = vmatprep.subr.bf16.mxu1 %v17850_v6 }
0x218d   :  { %14279 = vlog2.f32 %v17076_v18 }
0x218f   :  { %13900 = vmatpush3.bf16.msra.mxu1 %v18285_v2 }
0x2190   :  { %13901 = vmatprep.subr.bf16.mxu1 %v17850_v6 }
0x2193   :  { %13903 = vmatpush3.bf16.msra.mxu1 %v18286_v8 }
0x2194   :  { %13904 = vmatprep.subr.bf16.mxu1 %v17850_v6 }
0x2196   :  { %v14278_v4 = vpop.eup %14277 }
0x2197   :  { %v6308_v3 = vmul.f32 0.6931472, %v14278_v4  ;;  %13906 = vmatpush3.bf16.msra.mxu1 %v18287_v45  ;;  %v14280_v46 = vpop.eup %14279  ;;  %v8016_v45 = vld [vmem:[%s17625_s0 + $0x100] sm:$0xff] }
0x2198   :  { %13931 = vmatprep.subr.bf16.mxu1 %v17850_v6  ;;  %v6926_v25 = vmul.f32 0.6931472, %v14280_v46  ;;  %v18291_v46 = vld [vmem:[#allocation81_spill] sm:$0xff] }
0x2199   :  { %v17183_v33 = vadd.f32 %v6308_v3, %v6301_v41 }
0x219a   :  { %v17188_v8 = vmul.f32 2.0, %v6926_v25  ;;  %v18294_v25 = vld [vmem:[#allocation84_spill] sm:$0xff] }
0x219b   :  { %18288 = vst [vmem:[#allocation75_spill] sm:$0xff] %v17183_v33  ;;  %14281 = vlog2.f32 %v17183_v33 }
0x219c   :  { %18290 = vst [vmem:[#allocation37_spill] sm:$0xff] %v17188_v8 }
0x21a5   :  { %v14282_v62 = vpop.eup %14281 }
0x21a6   :  { %v6923_v24 = vmul.f32 0.6931472, %v14282_v62 }
0x21a8   :  { %v17186_v2 = vmul.f32 2.0, %v6923_v24 }
0x21aa   :  { %18289 = vst [vmem:[#allocation36_spill] sm:$0xff] %v17186_v2 }
0x220d   :  { %v6460_v18 = vpop.f32.mrb[66].mxu1 }
0x220e   :  { %v14112_v41 = vadd.f32 %v8016_v45, %v6460_v18  ;;  %v11528_v3 = vpop.f32.mrb[67].mxu1  ;;  %v18293_v18 = vld [vmem:[#allocation83_spill] sm:$0xff]  ;;  %v18295_v45 = vld [vmem:[#allocation85_spill] sm:$0xff] }
0x2210   :  { %v6465_v63 = vmax.f32 %v14112_v41, 0.0 }
0x2212   :  { %11562 = vmatmul.mubr.f32.vlgmr.msra.gmra.mrb[66].mxu0 %v6465_v63  ;;  %v18292_v63 = vld [vmem:[#allocation82_spill] sm:$0xff] }
0x2213   :  { %13753 = vmatpush3.bf16.msra.mxu0 %v15540_v14  ;;  %11596 = vmatprep.mubr.msk.f32.mxu0 %vm14409_vm0, %v17847_v32 }
0x2214   :  { %13754 = vmatprep.subr.bf16.mxu0 %v17850_v6 }
0x2217   :  { %13756 = vmatpush3.bf16.msra.mxu0 %v18210_v36  ;;  %v18297_v36 = vld [vmem:[#allocation86_spill] sm:$0xff] }
0x2218   :  { %13757 = vmatprep.subr.bf16.mxu0 %v17850_v6 }
0x221b   :  { %13759 = vmatpush3.bf16.msra.mxu0 %v18211_v30 }
0x221c   :  { %13760 = vmatprep.subr.bf16.mxu0 %v17850_v6 }
0x221f   :  { %13762 = vmatpush3.bf16.msra.mxu0 %v18291_v46 }
0x2220   :  { %13763 = vmatprep.subr.bf16.mxu0 %v17850_v6 }
0x2223   :  { %13765 = vmatpush3.bf16.msra.mxu0 %v18292_v63  ;;  %v18296_v63 = vld [vmem:[#allocation74_spill] sm:$0xff] }
0x2224   :  { %13766 = vmatprep.subr.bf16.mxu0 %v17850_v6 }
0x2227   :  { %13768 = vmatpush3.bf16.msra.mxu0 %v18293_v18 }
0x2228   :  { %13769 = vmatprep.subr.bf16.mxu0 %v17850_v6 }
0x222b   :  { %13771 = vmatpush3.bf16.msra.mxu0 %v18294_v25  ;;  %v18300_v25 = vld [vmem:[#allocation89_spill] sm:$0xff] }
0x222c   :  { %13772 = vmatprep.subr.bf16.mxu0 %v17850_v6 }
0x222d   :  { %v17211_v62 = vpop.f32.mrb[70].mxu1 }
0x222e   :  { %v11617_v24 = vpop.f32.mrb[71].mxu1 }
0x222f   :  { %13774 = vmatpush3.bf16.msra.mxu0 %v18295_v45  ;;  %v18298_v24 = vld [vmem:[#allocation87_spill] sm:$0xff]  ;;  %v18299_v45 = vld [vmem:[#allocation88_spill] sm:$0xff] }
0x2230   :  { %13835 = vmatprep.subr.bf16.mxu0 %v17850_v6 }
0x224d   :  { %v6826_v41 = vpop.f32.mrb[68].mxu1 }
0x224e   :  { %v6828_v3 = vpop.f32.mrb[69].mxu1 }
0x22e5   :  { %v6532_v4 = vpop.f32.mrb[66].mxu0 }
0x22e6   :  { %v6533_v46 = vadd.f32 %v18296_v63, %v6532_v4  ;;  %v11563_v30 = vpop.f32.mrb[67].mxu0  ;;  %v18303_v4 = vld [vmem:[#allocation92_spill] sm:$0xff] }
0x22e7   :  { %v18301_v30 = vld [vmem:[#allocation90_spill] sm:$0xff]  ;;  %v18305_v63 = vld [vmem:[#allocation8_spill] sm:$0xff] }
0x22e8   :  { %v6536_v18 = vmax.f32 %v6533_v46, 0.0  ;;  %v18304_v46 = vld [vmem:[#allocation93_spill] sm:$0xff] }
0x22ea   :  { %11597 = vmatmul.mubr.f32.vlgmr.msra.gmra.mrb[68].mxu0 %v6536_v18  ;;  %v18306_v18 = vld [vmem:[#allocation9_spill] sm:$0xff] }
0x22eb   :  { %13837 = vmatpush3.bf16.msra.mxu0 %v18297_v36  ;;  %11650 = vmatprep.mubr.msk.f32.mxu0 %vm14409_vm0, %v17847_v32  ;;  %v18302_v36 = vld [vmem:[#allocation91_spill] sm:$0xff] }
0x22ec   :  { %13838 = vmatprep.subr.bf16.mxu0 %v17850_v6 }
0x22ef   :  { %13840 = vmatpush3.bf16.msra.mxu0 %v18298_v24  ;;  %v18309_v24 = vld [vmem:[#allocation15_spill] sm:$0xff] }
0x22f0   :  { %13841 = vmatprep.subr.bf16.mxu0 %v17850_v6 }
0x22f3   :  { %13843 = vmatpush3.bf16.msra.mxu0 %v18299_v45  ;;  %v18308_v45 = vld [vmem:[#allocation13_spill] sm:$0xff] }
0x22f4   :  { %13844 = vmatprep.subr.bf16.mxu0 %v17850_v6 }
0x22f7   :  { %13846 = vmatpush3.bf16.msra.mxu0 %v18300_v25  ;;  %v18307_v25 = vld [vmem:[#allocation11_spill] sm:$0xff] }
0x22f8   :  { %13847 = vmatprep.subr.bf16.mxu0 %v17850_v6 }
0x22fb   :  { %13849 = vmatpush3.bf16.msra.mxu0 %v18301_v30  ;;  %v18310_v30 = vld [vmem:[#allocation17_spill] sm:$0xff] }
0x22fc   :  { %13850 = vmatprep.subr.bf16.mxu0 %v17850_v6 }
0x22ff   :  { %13852 = vmatpush3.bf16.msra.mxu0 %v18302_v36  ;;  %v18311_v36 = vld [vmem:[#allocation19_spill] sm:$0xff] }
0x2300   :  { %13853 = vmatprep.subr.bf16.mxu0 %v17850_v6 }
0x2303   :  { %13855 = vmatpush3.bf16.msra.mxu0 %v18303_v4  ;;  %v18312_v4 = vld [vmem:[#allocation21_spill] sm:$0xff] }
0x2304   :  { %13856 = vmatprep.subr.bf16.mxu0 %v17850_v6 }
0x2307   :  { %13858 = vmatpush3.bf16.msra.mxu0 %v18304_v46  ;;  %v8017_v46 = vld [vmem:[%s17625_s0 + $0x108] sm:$0xff] }
0x2308   :  { %13859 = vmatprep.subr.bf16.mxu0 %v17850_v6 }
0x230a   :  { %11651 = vmatmul.mubr.f32.vlgmr.msra.gmra.mrb[70].mxu0 %v16962_v42 }
0x230b   :  { %13861 = vmatpush3.bf16.msra.mxu0 %v18305_v63  ;;  %11685 = vmatprep.mubr.msk.f32.mxu0 %vm14409_vm0, %v17847_v32  ;;  %v14113_v63 = vadd.f32 %v8017_v46, %v17995_v22 }
0x230c   :  { %13862 = vmatprep.subr.bf16.mxu0 %v17850_v6 }
0x230f   :  { %13864 = vmatpush3.bf16.msra.mxu0 %v18306_v18  ;;  %v14114_v18 = vadd.f32 %v14113_v63, %v6826_v41  ;;  %v8019_v41 = vld [vmem:[%s17625_s0 + $0x118] sm:$0xff] }
0x2310   :  { %13865 = vmatprep.subr.bf16.mxu0 %v17850_v6 }
0x2313   :  { %13867 = vmatpush3.bf16.msra.mxu0 %v18307_v25 }
0x2314   :  { %13868 = vmatprep.subr.bf16.mxu0 %v17850_v6 }
0x2317   :  { %13870 = vmatpush3.bf16.msra.mxu0 %v18308_v45 }
0x2318   :  { %13871 = vmatprep.subr.bf16.mxu0 %v17850_v6 }
0x231b   :  { %13873 = vmatpush3.bf16.msra.mxu0 %v18309_v24  ;;  %v8025_v24 = vmul.f32 -1.442695, %v14114_v18 }
0x231c   :  { %13874 = vmatprep.subr.bf16.mxu0 %v17850_v6 }
0x231d   :  { %14283 = vpow2.f32 %v8025_v24 }
0x231f   :  { %13876 = vmatpush3.bf16.msra.mxu0 %v18310_v30  ;;  %v8018_v30 = vld [vmem:[%s17625_s0 + $0x110] sm:$0xff] }
0x2320   :  { %13877 = vmatprep.subr.bf16.mxu0 %v17850_v6 }
0x2323   :  { %13879 = vmatpush3.bf16.msra.mxu0 %v18311_v36  ;;  %v14115_v36 = vadd.f32 %v8018_v30, %v17997_v34  ;;  %v6759_v34 = vadd.f32 %v8019_v41, %v17211_v62 }
0x2324   :  { %13880 = vmatprep.subr.bf16.mxu0 %v17850_v6 }
0x2327   :  { %13882 = vmatpush3.bf16.msra.mxu0 %v18312_v4  ;;  %v14116_v4 = vadd.f32 %v14115_v36, %v6828_v3  ;;  %v14284_v8 = vpop.eup %14283 }
0x2328   :  { %13907 = vmatprep.subr.bf16.mxu0 %v17850_v6  ;;  %v6905_v2 = vadd.f32 1.0, %v14284_v8 }
0x2329   :  { %v8026_v14 = vmul.f32 -1.442695, %v14116_v4 }
0x232b   :  { %14285 = vpow2.f32 %v8026_v14 }
0x232c   :  { %14287 = vrcp.f32 %v6905_v2 }
0x2335   :  { %v14286_v33 = vpop.eup %14285 }
0x2336   :  { %v6912_v22 = vadd.f32 1.0, %v14286_v33 }
0x2338   :  { %14289 = vrcp.f32 %v6912_v22 }
0x23bd   :  { %v17257_v25 = vpop.f32.mrb[68].mxu0 }
0x23be   :  { %v11598_v45 = vpop.f32.mrb[69].mxu0 }
0x23bf   :  { %v14288_v45 = vpop.eup %14287 }
0x23c0   :  { %v14290_v14 = vpop.eup %14289 }
0x23c1   :  { %v6918_v8 = vsub.f32 1.0, %v14290_v14  ;;  %v6920_v33 = vmul.f32 %v14290_v14, %v16962_v42 }
0x23dd   :  { %v6897_v46 = vpop.f32.mrb[70].mxu0 }
0x23de   :  { %v6898_v63 = vadd.f32 %v6897_v46, %v15748_v7  ;;  %v11652_v18 = vpop.f32.mrb[71].mxu0 }
0x23e0   :  { %v6915_v3 = vmul.f32 %v14288_v45, %v6898_v63 }
0x23e2   :  { %v6916_v24 = vadd.f32 %v6915_v3, %v6759_v34 }
0x23e4   :  { %14291 = vtanh.f32 %v6916_v24 }
0x23ee   :  { %v14292_v2 = vpop.eup %14291 }
0x23ef   :  { %v6919_v30 = vmul.f32 %v14292_v2, %v6918_v8  ;;  %v18316_v8 = vld [vmem:[#allocation76_spill] sm:$0xff] }
0x23f1   :  { %v17269_v36 = vadd.f32 %v6920_v33, %v6919_v30  ;;  %v18317_v30 = vld [vmem:[#allocation65_spill] sm:$0xff] }
0x23f2   :  { %v18318_v33 = vld [vmem:[#allocation97_spill] sm:$0xff] }
0x23f3   :  { %11686 = vmatmul.mubr.f32.vlgmr.msra.gmra.mrb[72].mxu0 %v17269_v36 }
0x23f4   :  { %13909 = vmatpush3.bf16.msra.mxu0 %v14643_v53  ;;  %11755 = vmatprep.mubr.msk.f32.mxu0 %vm14409_vm0, %v17847_v32  ;;  %v8028_v53 = vld [vmem:[%s17625_s0 + $0x120] sm:$0xff] }
0x23f5   :  { %13910 = vmatprep.subr.bf16.mxu0 %v17850_v6 }
0x23f8   :  { %13912 = vmatpush3.bf16.msra.mxu0 %v14649_v55 }
0x23f9   :  { %13913 = vmatprep.subr.bf16.mxu0 %v17850_v6 }
0x23fc   :  { %13915 = vmatpush3.bf16.msra.mxu0 %v14659_v58 }
0x23fd   :  { %13916 = vmatprep.subr.bf16.mxu0 %v17850_v6 }
0x2400   :  { %13918 = vmatpush3.bf16.msra.mxu0 %v14669_v61 }
0x2401   :  { %13919 = vmatprep.subr.bf16.mxu0 %v17850_v6 }
0x2404   :  { %13921 = vmatpush3.bf16.msra.mxu0 %v14679_v0 }
0x2405   :  { %13922 = vmatprep.subr.bf16.mxu0 %v17850_v6 }
0x2408   :  { %13924 = vmatpush3.bf16.msra.mxu0 %v14689_v5 }
0x2409   :  { %13925 = vmatprep.subr.bf16.mxu0 %v17850_v6 }
0x240c   :  { %13927 = vmatpush3.bf16.msra.mxu0 %v14699_v10 }
0x240d   :  { %13928 = vmatprep.subr.bf16.mxu0 %v17850_v6 }
0x2410   :  { %13930 = vmatpush3.bf16.msra.mxu0 %v14798_v59  ;;  %v18313_v59 = vld [vmem:[#allocation95_spill] sm:$0xff] }
0x2411   :  { %13955 = vmatprep.subr.bf16.mxu0 %v17850_v6 }
0x24c6   :  { %v7038_v55 = vpop.f32.mrb[72].mxu0 }
0x24c7   :  { %v7042_v58 = vadd.f32 %v8028_v53, %v7038_v55  ;;  %v11687_v61 = vpop.f32.mrb[73].mxu0  ;;  %v2494_v53 = vsub.f32 %v18318_v33, %v18317_v30  ;;  %v18319_v55 = vld [vmem:[#allocation73_spill] sm:$0xff]  ;;  %v18337_v30 = vld [vmem:[#allocation100_spill] sm:$0xff] }
0x24c9   :  { %v7043_v0 = vmax.f32 %v7042_v58, 0.0  ;;  %v18320_v58 = vld [vmem:[#allocation101_spill] sm:$0xff] }
0x24ca   :  { %v4712_v61 = vsub.f32 %v18320_v58, %v18319_v55  ;;  %v18339_v58 = vld [vmem:[#allocation25_spill] sm:$0xff] }
0x24cb   :  { %11721 = vmatmul.mubr.f32.vlgmr.msra.gmra.mrb[72].mxu1 %v7043_v0 }
0x24cc   :  { %13933 = vmatpush3.bf16.msra.mxu1 %v14713_v20  ;;  %11790 = vmatprep.mubr.msk.f32.mxu1 %vm14409_vm0, %v17847_v32 }
0x24cd   :  { %13934 = vmatprep.subr.bf16.mxu1 %v17850_v6 }
0x24d0   :  { %13936 = vmatpush3.bf16.msra.mxu1 %v14722_v26 }
0x24d1   :  { %13937 = vmatprep.subr.bf16.mxu1 %v17850_v6 }
0x24d4   :  { %13939 = vmatpush3.bf16.msra.mxu1 %v14734_v31  ;;  %v8029_v31 = vld [vmem:[%s17625_s0 + $0x128] sm:$0xff] }
0x24d5   :  { %13940 = vmatprep.subr.bf16.mxu1 %v17850_v6 }
0x24d8   :  { %13942 = vmatpush3.bf16.msra.mxu1 %v14744_v35 }
0x24d9   :  { %13943 = vmatprep.subr.bf16.mxu1 %v17850_v6 }
0x24dc   :  { %13945 = vmatpush3.bf16.msra.mxu1 %v14754_v40 }
0x24dd   :  { %13946 = vmatprep.subr.bf16.mxu1 %v17850_v6 }
0x24e0   :  { %13948 = vmatpush3.bf16.msra.mxu1 %v14764_v44 }
0x24e1   :  { %13949 = vmatprep.subr.bf16.mxu1 %v17850_v6 }
0x24e4   :  { %13951 = vmatpush3.bf16.msra.mxu1 %v14774_v50 }
0x24e5   :  { %13952 = vmatprep.subr.bf16.mxu1 %v17850_v6 }
0x24e8   :  { %13954 = vmatpush3.bf16.msra.mxu1 %v14784_v54  ;;  %v17365_v54 = vld [vmem:[%s17629_s4 + $0x5] ss:$0 sm:$0xff] }
0x24e9   :  { %13979 = vmatprep.subr.bf16.mxu1 %v17850_v6 }
0x24eb   :  { %11791 = vmatmul.mubr.f32.vlgmr.msra.gmra.mrb[74].mxu1 %v17269_v36 }
0x24ec   :  { %13981 = vmatpush3.bf16.msra.mxu1 %v14902_v13  ;;  %11860 = vmatprep.mubr.msk.f32.mxu1 %vm14409_vm0, %v17847_v32 }
0x24ed   :  { %13982 = vmatprep.subr.bf16.mxu1 %v17850_v6 }
0x24f0   :  { %13984 = vmatpush3.bf16.msra.mxu1 %v14912_v19 }
0x24f1   :  { %13985 = vmatprep.subr.bf16.mxu1 %v17850_v6 }
0x24f4   :  { %13987 = vmatpush3.bf16.msra.mxu1 %v14921_v28 }
0x24f5   :  { %13988 = vmatprep.subr.bf16.mxu1 %v17850_v6 }
0x24f8   :  { %13990 = vmatpush3.bf16.msra.mxu1 %v14931_v38  ;;  %v18315_v38 = vld [vmem:[#allocation105_spill] sm:$0xff] }
0x24f9   :  { %13991 = vmatprep.subr.bf16.mxu1 %v17850_v6 }
0x24fc   :  { %13993 = vmatpush3.bf16.msra.mxu1 %v14941_v48  ;;  %v17383_v48 = vadd.f32 %v17365_v54, %v18315_v38 }
0x24fd   :  { %13994 = vmatprep.subr.bf16.mxu1 %v17850_v6 }
0x24fe   :  { %v5499_v7 = vand.u32 2147483647, %v17383_v48 }
0x2500   :  { %13996 = vmatpush3.bf16.msra.mxu1 %v14951_v57 }
0x2501   :  { %13997 = vmatprep.subr.bf16.mxu1 %v17850_v6 }
0x2504   :  { %13999 = vmatpush3.bf16.msra.mxu1 %v14961_v1 }
0x2505   :  { %14000 = vmatprep.subr.bf16.mxu1 %v17850_v6 }
0x2508   :  { %14002 = vmatpush3.bf16.msra.mxu1 %v14972_v9 }
0x2509   :  { %14039 = vmatprep.subr.bf16.mxu1 %v17850_v6 }
0x259e   :  { %v7110_v5 = vpop.f32.mrb[72].mxu1 }
0x259f   :  { %v7111_v10 = vadd.f32 %v17026_v12, %v7110_v5  ;;  %v11722_v20 = vpop.f32.mrb[73].mxu1  ;;  %v18321_v5 = vld [vmem:[#allocation106_spill] sm:$0xff] }
0x25a1   :  { %v7114_v26 = vmax.f32 %v7111_v10, 0.0  ;;  %v6930_v10 = vsub.f32 %v18321_v5, %v17157_v47  ;;  %v18340_v5 = vld [vmem:[#allocation107_spill] sm:$0xff] }
0x25a3   :  { %11756 = vmatmul.mubr.f32.vlgmr.msra.gmra.mrb[74].mxu0 %v7114_v26 }
0x25a4   :  { %13957 = vmatpush3.bf16.msra.mxu0 %v14815_v11  ;;  %11825 = vmatprep.mubr.msk.f32.mxu0 %vm14409_vm0, %v17847_v32  ;;  %v17369_v11 = vadd.f32 %v17365_v54, %v18313_v59  ;;  %v18323_v59 = vld [vmem:[#allocation67_spill] sm:$0xff] }
0x25a5   :  { %13958 = vmatprep.subr.bf16.mxu0 %v17850_v6 }
0x25a8   :  { %13960 = vmatpush3.bf16.msra.mxu0 %v14824_v17 }
0x25a9   :  { %13961 = vmatprep.subr.bf16.mxu0 %v17850_v6 }
0x25ac   :  { %13963 = vmatpush3.bf16.msra.mxu0 %v14836_v23 }
0x25ad   :  { %13964 = vmatprep.subr.bf16.mxu0 %v17850_v6 }
0x25b0   :  { %13966 = vmatpush3.bf16.msra.mxu0 %v14846_v29 }
0x25b1   :  { %13967 = vmatprep.subr.bf16.mxu0 %v17850_v6 }
0x25b4   :  { %13969 = vmatpush3.bf16.msra.mxu0 %v14856_v37  ;;  %v974_v37 = vand.u32 2147483647, %v17369_v11 }
0x25b5   :  { %13970 = vmatprep.subr.bf16.mxu0 %v17850_v6 }
0x25b6   :  { %v975_v19 = vsub.f32 0.0, %v974_v37 }
0x25b8   :  { %13972 = vmatpush3.bf16.msra.mxu0 %v14866_v43  ;;  %v18314_v43 = vld [vmem:[#allocation72_spill] sm:$0xff]  ;;  %v976_v1 = vmul.f32 1.442695, %v975_v19 }
0x25b9   :  { %13973 = vmatprep.subr.bf16.mxu0 %v17850_v6 }
0x25bc   :  { %13975 = vmatpush3.bf16.msra.mxu0 %v14876_v51  ;;  %v17377_v51 = vadd.f32 %v17365_v54, %v18314_v43  ;;  %v18324_v43 = vld [vmem:[#allocation68_spill] sm:$0xff] }
0x25bd   :  { %13976 = vmatprep.subr.bf16.mxu0 %v17850_v6 }
0x25be   :  { %v7260_v35 = vpop.f32.mrb[74].mxu1  ;;  %v3281_v28 = vand.u32 2147483647, %v17377_v51 }
0x25bf   :  { %v7264_v40 = vadd.f32 %v8029_v31, %v7260_v35  ;;  %v11792_v44 = vpop.f32.mrb[75].mxu1  ;;  %v18322_v31 = vld [vmem:[#allocation66_spill] sm:$0xff]  ;;  %v973_v35 = vmax.f32 %v17369_v11, 0.0 }
0x25c0   :  { %13978 = vmatpush3.bf16.msra.mxu0 %v14889_v60  ;;  %v3282_v9 = vsub.f32 0.0, %v3281_v28  ;;  %v18325_v28 = vld [vmem:[#allocation69_spill] sm:$0xff] }
0x25c1   :  { %v7265_v50 = vmax.f32 %v7264_v40, 0.0  ;;  %14003 = vmatprep.subr.bf16.mxu0 %v17850_v6  ;;  %v6931_v40 = vmul.f32 %v6930_v10, %v6930_v10  ;;  %v6929_v10 = vmul.f32 %v18340_v5, %v18340_v5 }
0x25c3   :  { %11826 = vmatmul.mubr.f32.vlgmr.msra.gmra.mrb[76].mxu0 %v7265_v50 }
0x25c4   :  { %14005 = vmatpush3.bf16.msra.mxu0 %v17918_v15  ;;  %11879 = vmatprep.mubr.msk.f32.mxu0 %vm14409_vm0, %v17847_v32  ;;  %v3283_v15 = vmul.f32 1.442695, %v3282_v9  ;;  %v18328_v9 = vld [vmem:[#allocation64_spill] sm:$0xff] }
0x25c5   :  { %14006 = vmatprep.subr.bf16.mxu0 %v17850_v6 }
0x25c8   :  { %14008 = vmatpush3.bf16.msra.mxu0 %v17998_v16  ;;  %v5500_v16 = vsub.f32 0.0, %v5499_v7  ;;  %v2501_v7 = vmul.f32 %v18328_v9, %v18328_v9 }
0x25c9   :  { %14009 = vmatprep.subr.bf16.mxu0 %v17850_v6 }
0x25cc   :  { %14011 = vmatpush3.bf16.msra.mxu0 %v18076_v27 }
0x25cd   :  { %14012 = vmatprep.subr.bf16.mxu0 %v17850_v6 }
0x25d0   :  { %14014 = vmatpush3.bf16.msra.mxu0 %v18157_v56  ;;  %v5501_v56 = vmul.f32 1.442695, %v5500_v16 }
0x25d1   :  { %14015 = vmatprep.subr.bf16.mxu0 %v17850_v6 }
0x2676   :  { %v7181_v17 = vpop.f32.mrb[74].mxu0 }
0x2677   :  { %v17372_v23 = vadd.f32 %v17063_v39, %v7181_v17  ;;  %v11757_v29 = vpop.f32.mrb[75].mxu0  ;;  %v3280_v17 = vmax.f32 %v17377_v51, 0.0 }
0x2679   :  { %v7186_v60 = vand.u32 2147483647, %v17372_v23  ;;  %v7185_v63 = vmax.f32 %v17372_v23, 0.0 }
0x267b   :  { %v7187_v13 = vsub.f32 0.0, %v7186_v60  ;;  %v5498_v60 = vmax.f32 %v17383_v48, 0.0 }
0x267d   :  { %v7188_v57 = vmul.f32 1.442695, %v7187_v13 }
0x267f   :  { %14293 = vpow2.f32 %v7188_v57  ;;  %v18326_v57 = vld [vmem:[#allocation70_spill] sm:$0xff] }
0x2680   :  { %14295 = vpow2.f32 %v976_v1  ;;  %v18327_v1 = vld [vmem:[#allocation71_spill] sm:$0xff] }
0x2681   :  { %14297 = vpow2.f32 %v3283_v15  ;;  %v18329_v15 = vld [vmem:[#allocation96_spill] sm:$0xff] }
0x2682   :  { %v4719_v16 = vmul.f32 %v18329_v15, %v18329_v15  ;;  %v18348_v15 = vld [vmem:[#allocation37_spill] sm:$0xff] }
0x2689   :  { %v14294_v27 = vpop.eup %14293 }
0x268a   :  { %v7190_v42 = vadd.f32 1.0, %v14294_v27  ;;  %v14296_v12 = vpop.eup %14295  ;;  %v18330_v27 = vld [vmem:[#allocation75_spill] sm:$0xff] }
0x268b   :  { %v978_v39 = vadd.f32 1.0, %v14296_v12  ;;  %v14298_v62 = vpop.eup %14297 }
0x268c   :  { %14299 = vlog2.f32 %v7190_v42  ;;  %v3285_v22 = vadd.f32 1.0, %v14298_v62 }
0x268d   :  { %14301 = vpow2.f32 %v5501_v56  ;;  %v6937_v56 = vmul.f32 %v18330_v27, %v18330_v27 }
0x268e   :  { %14303 = vlog2.f32 %v978_v39  ;;  %v18331_v39 = vld [vmem:[#allocation98_spill] sm:$0xff] }
0x268f   :  { %14305 = vlog2.f32 %v3285_v22  ;;  %v2493_v62 = vmul.f32 %v18331_v39, %v18331_v39  ;;  %v18350_v39 = vld [vmem:[#allocation32_spill] sm:$0xff] }
0x2696   :  { %v14300_v4 = vpop.eup %14299  ;;  %v7332_v41 = vpop.f32.mrb[76].mxu0 }
0x2697   :  { %v14302_v46 = vpop.eup %14301  ;;  %v7333_v18 = vadd.f32 %v17073_v21, %v7332_v41  ;;  %v11827_v45 = vpop.f32.mrb[77].mxu0  ;;  %v7192_v34 = vmul.f32 0.6931472, %v14300_v4  ;;  %v2495_v21 = vmul.f32 %v2494_v53, %v2494_v53  ;;  %v18332_v4 = vld [vmem:[#allocation28_spill] sm:$0xff] }
0x2698   :  { %v5503_v14 = vadd.f32 1.0, %v14302_v46  ;;  %v14304_v0 = vpop.eup %14303 }
0x2699   :  { %v7336_v3 = vmax.f32 %v7333_v18, 0.0  ;;  %v17388_v24 = vadd.f32 %v7192_v34, %v7185_v63  ;;  %v980_v20 = vmul.f32 0.6931472, %v14304_v0  ;;  %v14306_v26 = vpop.eup %14305  ;;  %v18333_v18 = vld [vmem:[#allocation102_spill] sm:$0xff]  ;;  %v18334_v34 = vld [vmem:[#allocation29_spill] sm:$0xff] }
0x269a   :  { %14307 = vlog2.f32 %v5503_v14  ;;  %v3287_v44 = vmul.f32 0.6931472, %v14306_v26  ;;  %v4711_v45 = vmul.f32 %v18333_v18, %v18333_v18  ;;  %v18335_v14 = vld [vmem:[#allocation77_spill] sm:$0xff]  ;;  %v18354_v18 = vld [vmem:[#allocation94_spill] sm:$0xff] }
0x269b   :  { %11861 = vmatmul.mubr.f32.vlgmr.msra.gmra.mrb[76].mxu1 %v7336_v3  ;;  %v7420_v2 = vmul.f32 %v18316_v8, %v17388_v24  ;;  %14309 = vrcp.f32 %v2501_v7  ;;  %v7957_v8 = vadd.f32 -1.0, %v18335_v14  ;;  %v18347_v7 = vld [vmem:[#allocation36_spill] sm:$0xff] }
0x269c   :  { %14041 = vmatpush3.bf16.msra.mxu1 %v15404_v52  ;;  %11949 = vmatprep.mubr.msk.f32.mxu1 %vm14409_vm0, %v17847_v32  ;;  %v4713_v52 = vmul.f32 %v4712_v61, %v4712_v61  ;;  %v17418_v29 = vadd.f32 %v3287_v44, %v3280_v17  ;;  %14311 = vrcp.f32 %v4719_v16  ;;  %v7985_v61 = vadd.f32 -1.0, %v18339_v58  ;;  %v18343_v44 = vld [vmem:[#allocation104_spill] sm:$0xff] }
0x269d   :  { %7422 = vrot.lane.b32.xlu1 %v7420_v2, %s14411_s15  ;;  %14042 = vmatprep.subr.bf16.mxu1 %v17850_v6  ;;  %14313 = vrcp.f32 %v6937_v56  ;;  %v18336_v2 = vld [vmem:[#allocation99_spill] sm:$0xff]  ;;  %v18349_v16 = vsub.f32 %v18347_v7, %v18348_v15 }
0x269e   :  { %v3619_v13 = vmul.f32 %v17418_v29, %v17418_v29  ;;  %v18338_v33 = vsub.f32 %v18336_v2, %v18337_v30  ;;  %v17496_v30 = vadd.f32 %v17365_v54, %v17257_v25 }
0x26a0   :  { %14044 = vmatpush3.bf16.msra.mxu1 %v17925_v49  ;;  %v17410_v49 = vadd.f32 %v980_v20, %v973_v35  ;;  %v18341_v20 = vld [vmem:[#allocation30_spill] sm:$0xff] }
0x26a1   :  { %2497 = vrot.lane.b32.xlu1 %v2495_v21, %s14411_s15  ;;  %14045 = vmatprep.subr.bf16.mxu1 %v17850_v6 }
0x26a2   :  { %v1401_v47 = vmul.f32 %v17410_v49, %v17410_v49 }
0x26a4   :  { %14047 = vmatpush3.bf16.msra.mxu1 %v18322_v31  ;;  %v14308_v50 = vpop.eup %14307  ;;  %v1397_v31 = vmul.f32 0.5, %v7957_v8 }
0x26a5   :  { %4715 = vrot.lane.b32.xlu1 %v4713_v52, %s14411_s15  ;;  %14048 = vmatprep.subr.bf16.mxu1 %v17850_v6  ;;  %v5505_v37 = vmul.f32 0.6931472, %v14308_v50  ;;  %v14310_v46 = vpop.eup %14309 }
0x26a6   :  { %v14312_v55 = vpop.eup %14311 }
0x26a7   :  { %v17426_v19 = vadd.f32 %v5505_v37, %v5498_v60  ;;  %v3615_v37 = vmul.f32 0.5, %v7985_v61 }
0x26a8   :  { %14050 = vmatpush3.bf16.msra.mxu1 %v18323_v59 }
0x26a9   :  { %6933 = vrot.lane.b32.xlu1 %v6931_v40, %s14411_s15  ;;  %14051 = vmatprep.subr.bf16.mxu1 %v17850_v6  ;;  %v5837_v38 = vmul.f32 %v17426_v19, %v17426_v19  ;;  %v18342_v40 = vld [vmem:[#allocation103_spill] sm:$0xff] }
0x26aa   :  { %v18344_v50 = vsub.f32 %v18342_v40, %v18343_v44 }
0x26ac   :  { %14053 = vmatpush3.bf16.msra.mxu1 %v18324_v43  ;;  %v18345_v43 = vld [vmem:[#allocation26_spill] sm:$0xff] }
0x26ad   :  { %1403 = vrot.lane.b32.xlu1 %v1401_v47, %s14412_s10  ;;  %14054 = vmatprep.subr.bf16.mxu1 %v17850_v6  ;;  %v14314_v47 = vpop.eup %14313  ;;  %v8013_v60 = vadd.f32 -1.0, %v18345_v43 }
0x26af   :  { %v5833_v56 = vmul.f32 0.5, %v8013_v60 }
0x26b0   :  { %14056 = vmatpush3.bf16.msra.mxu1 %v18325_v28 }
0x26b1   :  { %3621 = vrot.lane.b32.xlu1 %v3619_v13, %s14412_s10  ;;  %14057 = vmatprep.subr.bf16.mxu1 %v17850_v6 }
0x26b4   :  { %14059 = vmatpush3.bf16.msra.mxu1 %v18326_v57  ;;  %v18346_v57 = vld [vmem:[#allocation31_spill] sm:$0xff] }
0x26b5   :  { %5839 = vrot.lane.b32.xlu1 %v5837_v38, %s14412_s10  ;;  %14060 = vmatprep.subr.bf16.mxu1 %v17850_v6 }
0x26b8   :  { %14062 = vmatpush3.bf16.msra.mxu1 %v18327_v1 }
0x26b9   :  { %14063 = vmatprep.subr.bf16.mxu1 %v17850_v6 }
0x270f   :  { %v7423_v42 = vpop.permute.xlu1 %7422 }
0x2710   :  { %v7425_v12 = vadd.f32 %v7423_v42, %v17372_v23 }
0x2712   :  { %11880 = vmatmul.mubr.msk.f32.vlgmr.msra.gmra.mrb[78].mxu0 %vm624_vm1, %v7425_v12 }
0x2713   :  { %14017 = vmatpush3.bf16.msra.mxu0 %v18332_v4  ;;  %v2498_v22 = vpop.permute.xlu1 %2497  ;;  %11914 = vmatprep.mubr.msk.f32.mxu0 %vm14409_vm0, %v17847_v32 }
0x2714   :  { %v2500_v41 = vadd.f32 %v2498_v22, %v2493_v62  ;;  %14018 = vmatprep.subr.bf16.mxu0 %v17850_v6 }
0x2716   :  { %v2503_v63 = vmul.f32 %v14310_v46, %v2500_v41  ;;  %v18351_v41 = vld [vmem:[#allocation33_spill] sm:$0xff]  ;;  %v18352_v46 = vld [vmem:[#allocation34_spill] sm:$0xff] }
0x2717   :  { %14020 = vmatpush3.bf16.msra.mxu0 %v18334_v34  ;;  %v4716_v3 = vpop.permute.xlu1 %4715 }
0x2718   :  { %v2504_v53 = vadd.f32 %v2503_v63, %v18338_v33  ;;  %v4718_v21 = vadd.f32 %v4716_v3, %v4711_v45  ;;  %14021 = vmatprep.subr.bf16.mxu0 %v17850_v6  ;;  %v18353_v63 = vld [vmem:[#allocation35_spill] sm:$0xff]  ;;  %v17486_v45 = vadd.f32 %v17365_v54, %v18354_v18  ;;  %v18355_v3 = vld [vmem:[#allocation24_spill] sm:$0xff] }
0x2719   :  { %v17491_v14 = vadd.f32 %v17365_v54, %v18355_v3 }
0x271a   :  { %v7971_v0 = vadd.f32 -1.0, %v2504_v53  ;;  %v4721_v52 = vmul.f32 %v14312_v55, %v4718_v21  ;;  %v2172_v34 = vand.u32 2147483647, %v17486_v45 }
0x271b   :  { %14023 = vmatpush3.bf16.msra.mxu0 %v18341_v20  ;;  %v6934_v26 = vpop.permute.xlu1 %6933  ;;  %v4390_v2 = vand.u32 2147483647, %v17491_v14 }
0x271c   :  { %v2506_v35 = vmul.f32 0.5, %v7971_v0  ;;  %v4722_v59 = vadd.f32 %v4721_v52, %v18344_v50  ;;  %v6936_v17 = vadd.f32 %v6934_v26, %v6929_v10  ;;  %14024 = vmatprep.subr.bf16.mxu0 %v17850_v6  ;;  %v2173_v8 = vsub.f32 0.0, %v2172_v34 }
0x271d   :  { %v4391_v53 = vsub.f32 0.0, %v4390_v2 }
0x271e   :  { %v2507_v13 = vadd.f32 %v2506_v35, %v1397_v31  ;;  %v7999_v28 = vadd.f32 -1.0, %v4722_v59  ;;  %v6939_v38 = vmul.f32 %v14314_v47, %v6936_v17  ;;  %v2174_v33 = vmul.f32 1.442695, %v2173_v8  ;;  %v14382_v31 = vld [vmem:[%s17629_s4 + $0x3] ss:$0 sm:$0xff] }
0x271f   :  { %14026 = vmatpush3.bf16.msra.mxu0 %v18346_v57  ;;  %v4392_v21 = vmul.f32 1.442695, %v4391_v53  ;;  %v2171_v59 = vmax.f32 %v17486_v45, 0.0 }
0x2720   :  { %v3616_v1 = vadd.f32 %v3615_v37, %v2507_v13  ;;  %v4724_v9 = vmul.f32 0.5, %v7999_v28  ;;  %v6940_v27 = vadd.f32 %v6939_v38, %v18349_v16  ;;  %14027 = vmatprep.subr.bf16.mxu0 %v17850_v6  ;;  %14315 = vpow2.f32 %v2174_v33 }
0x2721   :  { %14317 = vpow2.f32 %v4392_v21  ;;  %v4389_v38 = vmax.f32 %v17491_v14, 0.0 }
0x2722   :  { %v4725_v42 = vadd.f32 %v4724_v9, %v3616_v1  ;;  %v8027_v12 = vadd.f32 -1.0, %v6940_v27  ;;  %v6607_v9 = vmax.f32 %v17496_v30, 0.0 }
0x2723   :  { %14029 = vmatpush3.bf16.msra.mxu0 %v18350_v39 }
0x2724   :  { %v6942_v62 = vmul.f32 0.5, %v8027_v12  ;;  %14030 = vmatprep.subr.bf16.mxu0 %v17850_v6  ;;  %v5834_v4 = vadd.f32 %v5833_v56, %v4725_v42 }
0x2726   :  { %v17476_v22 = vadd.f32 %v6942_v62, %v5834_v4 }
0x2727   :  { %14032 = vmatpush3.bf16.msra.mxu0 %v18351_v41 }
0x2728   :  { %14033 = vmatprep.subr.bf16.mxu0 %v17850_v6 }
0x272a   :  { %v14316_v61 = vpop.eup %14315 }
0x272b   :  { %14035 = vmatpush3.bf16.msra.mxu0 %v18352_v46  ;;  %v2176_v0 = vadd.f32 1.0, %v14316_v61  ;;  %v14318_v52 = vpop.eup %14317  ;;  %v7729_v61 = vmul.f32 %v17388_v24, %v17388_v24 }
0x272c   :  { %14036 = vmatprep.subr.bf16.mxu0 %v17850_v6  ;;  %v4394_v5 = vadd.f32 1.0, %v14318_v52 }
0x272f   :  { %14038 = vmatpush3.bf16.msra.mxu0 %v18353_v63 }
0x2732   :  { %11915 = vmatmul.mubr.f32.vlgmr.msra.gmra.mrb[78].mxu0 %v17269_v36  ;;  %v6608_v36 = vand.u32 2147483647, %v17496_v30 }
0x2734   :  { %v6609_v55 = vsub.f32 0.0, %v6608_v36 }
0x2736   :  { %v6610_v58 = vmul.f32 1.442695, %v6609_v55 }
0x2738   :  { %14319 = vpow2.f32 %v6610_v58 }
0x2739   :  { %14321 = vlog2.f32 %v2176_v0 }
0x273a   :  { %14323 = vlog2.f32 %v4394_v5 }
0x2742   :  { %v14320_v10 = vpop.eup %14319 }
0x2743   :  { %v6612_v20 = vadd.f32 1.0, %v14320_v10  ;;  %v14322_v25 = vpop.eup %14321 }
0x2744   :  { %v2178_v44 = vmul.f32 0.6931472, %v14322_v25  ;;  %v14324_v50 = vpop.eup %14323 }
0x2745   :  { %14325 = vlog2.f32 %v6612_v20  ;;  %v4396_v13 = vmul.f32 0.6931472, %v14324_v50 }
0x2746   :  { %14327 = vlog2.f32 %v17410_v49  ;;  %v17505_v60 = vadd.f32 %v2178_v44, %v2171_v59 }
0x2747   :  { %14329 = vlog2.f32 %v17418_v29 }
0x2748   :  { %v2510_v1 = vmul.f32 %v17505_v60, %v17505_v60 }
0x274f   :  { %v14326_v28 = vpop.eup %14325 }
0x2750   :  { %v6614_v49 = vmul.f32 0.6931472, %v14326_v28  ;;  %v14328_v16 = vpop.eup %14327 }
0x2751   :  { %v1409_v27 = vmul.f32 0.6931472, %v14328_v16  ;;  %v14330_v56 = vpop.eup %14329 }
0x2752   :  { %v17519_v15 = vadd.f32 %v6614_v49, %v6607_v9  ;;  %v3627_v62 = vmul.f32 0.6931472, %v14330_v56 }
0x2753   :  { %v1410_v39 = vmul.f32 2.0, %v1409_v27 }
0x2754   :  { %v6946_v29 = vmul.f32 %v17519_v15, %v17519_v15  ;;  %v3628_v4 = vmul.f32 2.0, %v3627_v62 }
0x276e   :  { %v7403_v26 = vpop.f32.mrb[76].mxu1 }
0x276f   :  { %v7404_v35 = vadd.f32 %v14382_v31, %v7403_v26  ;;  %v11862_v40 = vpop.f32.mrb[77].mxu1 }
0x2771   :  { %v7408_v17 = vand.u32 2147483647, %v7404_v35  ;;  %v7730_v47 = vsub.f32 %v17372_v23, %v7404_v35  ;;  %v17512_v23 = vadd.f32 %v4396_v13, %v4389_v38  ;;  %v7407_v18 = vmax.f32 %v7404_v35, 0.0  ;;  %v8030_v35 = vld [vmem:[%s17625_s0 + $0x130] sm:$0xff]  ;;  %v18363_v13 = vld [vmem:[#allocation85_spill] sm:$0xff] }
0x2772   :  { %v14383_v38 = vld [vmem:[%s17629_s4 + $0x4] ss:$0 sm:$0xff] }
0x2773   :  { %v7409_v37 = vsub.f32 0.0, %v7408_v17  ;;  %v7731_v43 = vmul.f32 %v7730_v47, %v7730_v47  ;;  %v4728_v7 = vmul.f32 %v17512_v23, %v17512_v23  ;;  %v18357_v17 = vld [vmem:[#allocation79_spill] sm:$0xff]  ;;  %v18359_v47 = vld [vmem:[#allocation81_spill] sm:$0xff] }
0x2775   :  { %v7410_v57 = vmul.f32 1.442695, %v7409_v37  ;;  %7733 = vrot.lane.b32.xlu0 %v7731_v43, %s14411_s15  ;;  %v18360_v37 = vld [vmem:[#allocation82_spill] sm:$0xff]  ;;  %v18361_v43 = vld [vmem:[#allocation83_spill] sm:$0xff] }
0x2777   :  { %14331 = vpow2.f32 %v7410_v57 }
0x2778   :  { %14333 = vlog2.f32 %v17426_v19 }
0x2779   :  { %2512 = vrot.lane.b32.xlu0 %v2510_v1, %s14412_s10 }
0x277d   :  { %4730 = vrot.lane.b32.xlu0 %v4728_v7, %s14412_s10 }
0x2781   :  { %v14332_v42 = vpop.eup %14331  ;;  %6948 = vrot.lane.b32.xlu0 %v6946_v29, %s14412_s10 }
0x2782   :  { %v7412_v12 = vadd.f32 1.0, %v14332_v42  ;;  %v14334_v19 = vpop.eup %14333 }
0x2783   :  { %v5845_v41 = vmul.f32 0.6931472, %v14334_v19 }
0x2784   :  { %14335 = vlog2.f32 %v7412_v12 }
0x2785   :  { %1412 = vrot.lane.b32.xlu0 %v1410_v39, %s14412_s10  ;;  %v5846_v46 = vmul.f32 2.0, %v5845_v41  ;;  %14337 = vlog2.f32 %v17388_v24  ;;  %v18356_v24 = vld [vmem:[#allocation78_spill] sm:$0xff] }
0x2789   :  { %3630 = vrot.lane.b32.xlu0 %v3628_v4, %s14412_s10 }
0x278d   :  { %5848 = vrot.lane.b32.xlu0 %v5846_v46, %s14412_s10 }
0x278e   :  { %v14336_v63 = vpop.eup %14335 }
0x278f   :  { %v7414_v34 = vmul.f32 0.6931472, %v14336_v63  ;;  %v14338_v8 = vpop.eup %14337 }
0x2790   :  { %v7726_v2 = vmul.f32 0.6931472, %v14338_v8 }
0x2791   :  { %v7415_v3 = vadd.f32 %v7414_v34, %v7407_v18 }
0x2792   :  { %v7727_v36 = vmul.f32 2.0, %v7726_v2 }
0x2793   :  { %14339 = vlog2.f32 %v7415_v3  ;;  %v7737_v58 = vmul.f32 %v7415_v3, %v7415_v3 }
0x2795   :  { %14341 = vrcp.f32 %v7737_v58 }
0x279d   :  { %v14340_v33 = vpop.eup %14339 }
0x279e   :  { %v7723_v53 = vmul.f32 0.6931472, %v14340_v33 }
0x279f   :  { %v14342_v5 = vpop.eup %14341 }
0x27a0   :  { %v7724_v21 = vmul.f32 2.0, %v7723_v53  ;;  %v1404_v53 = vpop.permute.xlu1 %1403 }
0x27a2   :  { %v7728_v55 = vsub.f32 %v7724_v21, %v7727_v36 }
0x27a4   :  { %v3622_v21 = vpop.permute.xlu1 %3621 }
0x27a8   :  { %v5840_v58 = vpop.permute.xlu1 %5839 }
0x27e7   :  { %v7734_v0 = vpop.permute.xlu0 %7733 }
0x27e8   :  { %v7736_v52 = vadd.f32 %v7734_v0, %v7729_v61  ;;  %v40_v61 = vld [vmem:[%s17627_s2] sm:$0xff] }
0x27ea   :  { %v7739_v10 = vmul.f32 %v14342_v5, %v7736_v52  ;;  %v7979_v52 = vld [vmem:[%s17627_s2 + $0x10] sm:$0xff]  ;;  %v1399_v5 = vsub.f32 %v40_v61, %v17369_v11  ;;  %v7993_v11 = vld [vmem:[%s17627_s2 + $0x18] sm:$0xff] }
0x27eb   :  { %v2513_v33 = vpop.permute.xlu0 %2512 }
0x27ec   :  { %v7740_v20 = vadd.f32 %v7739_v10, %v7728_v55  ;;  %v7965_v10 = vld [vmem:[%s17627_s2 + $0x8] sm:$0xff] }
0x27ee   :  { %v8034_v25 = vadd.f32 -1.0, %v7740_v20  ;;  %v3617_v20 = vsub.f32 %v7979_v52, %v17377_v51 }
0x27ef   :  { %v4731_v36 = vpop.permute.xlu0 %4730 }
0x27f0   :  { %v7742_v26 = vmul.f32 0.5, %v8034_v25 }
0x27f2   :  { %v17532_v31 = vadd.f32 %v7742_v26, %v17476_v22  ;;  %v18358_v22 = vld [vmem:[#allocation80_spill] sm:$0xff] }
0x27f3   :  { %v6949_v55 = vpop.permute.xlu0 %6948  ;;  %v8007_v26 = vld [vmem:[%s17627_s2 + $0x20] sm:$0xff] }
0x27f7   :  { %v1413_v0 = vpop.permute.xlu0 %1412 }
0x2805   :  { %v7566_v40 = vpop.f32.mrb[78].mxu0 }
0x2806   :  { %v14117_v44 = vadd.f32 %v8030_v35, %v7566_v40  ;;  %v11916_v50 = vpop.f32.mrb[79].mxu0  ;;  %v1400_v35 = vmul.f32 %v1399_v5, %v1399_v5 }
0x2808   :  { %v7571_v59 = vmax.f32 %v14117_v44, 0.0  ;;  %v3631_v44 = vpop.permute.xlu0 %3630 }
0x280a   :  { %11950 = vmatmul.mubr.f32.vlgmr.msra.gmra.mrb[78].mxu1 %v7571_v59  ;;  %v3618_v59 = vmul.f32 %v3617_v20, %v3617_v20 }
0x280b   :  { %14065 = vmatpush3.bf16.msra.mxu1 %v18356_v24  ;;  %11984 = vmatprep.mubr.msk.f32.mxu1 %vm14409_vm0, %v17847_v32  ;;  %v18362_v32 = vld [vmem:[#allocation84_spill] sm:$0xff]  ;;  %v5835_v24 = vsub.f32 %v8007_v26, %v17383_v48  ;;  %v8032_v48 = vld [vmem:[%s17627_s2 + $0x30] sm:$0xff] }
0x280c   :  { %14066 = vmatprep.subr.bf16.mxu1 %v17850_v6 }
0x280f   :  { %14068 = vmatpush3.bf16.msra.mxu1 %v18357_v17 }
0x2810   :  { %14069 = vmatprep.subr.bf16.mxu1 %v17850_v6 }
0x2813   :  { %14071 = vmatpush3.bf16.msra.mxu1 %v18358_v22 }
0x2814   :  { %14072 = vmatprep.subr.bf16.mxu1 %v17850_v6 }
0x2817   :  { %14074 = vmatpush3.bf16.msra.mxu1 %v18359_v47 }
0x2818   :  { %14075 = vmatprep.subr.bf16.mxu1 %v17850_v6 }
0x281b   :  { %14077 = vmatpush3.bf16.msra.mxu1 %v18360_v37 }
0x281c   :  { %14078 = vmatprep.subr.bf16.mxu1 %v17850_v6 }
0x281f   :  { %14080 = vmatpush3.bf16.msra.mxu1 %v18361_v43  ;;  %v8021_v43 = vld [vmem:[%s17627_s2 + $0x28] sm:$0xff] }
0x2820   :  { %14081 = vmatprep.subr.bf16.mxu1 %v17850_v6 }
0x2823   :  { %14083 = vmatpush3.bf16.msra.mxu1 %v18362_v32 }
0x2824   :  { %14084 = vmatprep.subr.bf16.mxu1 %v17850_v6 }
0x2827   :  { %14086 = vmatpush3.bf16.msra.mxu1 %v18363_v13 }
0x28dd   :  { %v7638_v28 = vpop.f32.mrb[78].mxu1 }
0x28de   :  { %v7639_v57 = vadd.f32 %v14383_v38, %v7638_v28  ;;  %v11951_v1 = vpop.f32.mrb[79].mxu1  ;;  %v5836_v28 = vmul.f32 %v5835_v24, %v5835_v24 }
0x28df   :  { %v5849_v1 = vpop.permute.xlu0 %5848 }
0x28e0   :  { %v7642_v49 = vmax.f32 %v7639_v57, 0.0 }
0x28e2   :  { %11985 = vmatmul.mubr.f32.vlgmr.msra.gmra.mrb[80].mxu1 %v7642_v49 }
0x29b5   :  { %v7709_v9 = vpop.f32.mrb[80].mxu1 }
0x29b6   :  { %v17558_v7 = vadd.f32 %v17365_v54, %v7709_v9  ;;  %v11986_v16 = vpop.f32.mrb[81].mxu1  ;;  %v6944_v9 = vsub.f32 %v8021_v43, %v17496_v30 }
0x29b8   :  { %v7714_v29 = vand.u32 2147483647, %v17558_v7  ;;  %v7713_v39 = vmax.f32 %v17558_v7, 0.0 }
0x29ba   :  { %v7715_v27 = vsub.f32 0.0, %v7714_v29 }
0x29bc   :  { %v7716_v6 = vmul.f32 1.442695, %v7715_v27 }
0x29be   :  { %14343 = vpow2.f32 %v7716_v6  ;;  %v7744_v6 = vsub.f32 %v8032_v48, %v17558_v7 }
0x29c8   :  { %v14344_v56 = vpop.eup %14343 }
0x29c9   :  { %v7718_v42 = vadd.f32 1.0, %v14344_v56 }
0x29cb   :  { %14345 = vlog2.f32 %v7718_v42 }
0x29cc   :  { %14347 = vlog2.f32 %v17505_v60 }
0x29cd   :  { %14349 = vlog2.f32 %v17512_v23 }
0x29ce   :  { %14351 = vlog2.f32 %v17519_v15 }
0x29d5   :  { %v14346_v12 = vpop.eup %14345 }
0x29d6   :  { %v7720_v54 = vmul.f32 0.6931472, %v14346_v12  ;;  %v14348_v62 = vpop.eup %14347 }
0x29d7   :  { %v2518_v41 = vmul.f32 0.6931472, %v14348_v62  ;;  %v14350_v46 = vpop.eup %14349 }
0x29d8   :  { %v7721_v19 = vadd.f32 %v7720_v54, %v7713_v39  ;;  %v4736_v18 = vmul.f32 0.6931472, %v14350_v46  ;;  %v14352_v34 = vpop.eup %14351 }
0x29d9   :  { %v2519_v63 = vmul.f32 2.0, %v2518_v41  ;;  %v6954_v23 = vmul.f32 0.6931472, %v14352_v34 }
0x29da   :  { %v7746_v4 = vmul.f32 %v7721_v19, %v7721_v19  ;;  %14353 = vlog2.f32 %v7721_v19  ;;  %v4737_v60 = vmul.f32 2.0, %v4736_v18  ;;  %v6945_v19 = vmul.f32 %v6944_v9, %v6944_v9 }
0x29db   :  { %v6955_v8 = vmul.f32 2.0, %v6954_v23  ;;  %14355 = vrcp.f32 %v1404_v53  ;;  %v7745_v18 = vmul.f32 %v7744_v6, %v7744_v6 }
0x29dc   :  { %7748 = vrot.lane.b32.xlu1 %v7746_v4, %s14412_s10  ;;  %14357 = vrcp.f32 %v3622_v21 }
0x29dd   :  { %14359 = vrcp.f32 %v2513_v33 }
0x29de   :  { %14361 = vrcp.f32 %v5840_v58 }
0x29df   :  { %14363 = vrcp.f32 %v4731_v36 }
0x29e0   :  { %2521 = vrot.lane.b32.xlu1 %v2519_v63, %s14412_s10  ;;  %14365 = vrcp.f32 %v6949_v55 }
0x29e4   :  { %v14354_v3 = vpop.eup %14353  ;;  %4739 = vrot.lane.b32.xlu1 %v4737_v60, %s14412_s10 }
0x29e5   :  { %v7754_v15 = vmul.f32 0.6931472, %v14354_v3  ;;  %v14356_v25 = vpop.eup %14355 }
0x29e6   :  { %v14358_v40 = vpop.eup %14357  ;;  %v1407_v50 = vmul.f32 %v14356_v25, %v1400_v35 }
0x29e7   :  { %v7755_v2 = vmul.f32 2.0, %v7754_v15  ;;  %v14360_v51 = vpop.eup %14359  ;;  %v3625_v37 = vmul.f32 %v14358_v40, %v3618_v59 }
0x29e8   :  { %6957 = vrot.lane.b32.xlu1 %v6955_v8, %s14412_s10  ;;  %v1415_v47 = vadd.f32 %v1413_v0, %v1407_v50  ;;  %v14362_v32 = vpop.eup %14361 }
0x29e9   :  { %7757 = vrot.lane.b32.xlu0 %v7755_v2, %s14412_s10  ;;  %v3633_v13 = vadd.f32 %v3631_v44, %v3625_v37  ;;  %v14364_v57 = vpop.eup %14363  ;;  %v5843_v29 = vmul.f32 %v14362_v32, %v5836_v28 }
0x29ea   :  { %v1416_v16 = vadd.f32 1.837877, %v1415_v47  ;;  %v14366_v56 = vpop.eup %14365 }
0x29eb   :  { %v3634_v42 = vadd.f32 1.837877, %v3633_v13  ;;  %v5851_v12 = vadd.f32 %v5849_v1, %v5843_v29  ;;  %v6952_v63 = vmul.f32 %v14366_v56, %v6945_v19 }
0x29ec   :  { %7765 = vrot.lane.b32.xlu1 %v17532_v31, %s14411_s15  ;;  %v2508_v31 = vsub.f32 %v7965_v10, %v17486_v45  ;;  %v4726_v45 = vsub.f32 %v7993_v11, %v17491_v14  ;;  %v1417_v4 = vmul.f32 0.5, %v1416_v16 }
0x29ed   :  { %v3635_v30 = vmul.f32 0.5, %v3634_v42  ;;  %v5852_v60 = vadd.f32 1.837877, %v5851_v12 }
0x29ee   :  { %v2509_v22 = vmul.f32 %v2508_v31, %v2508_v31  ;;  %v4727_v27 = vmul.f32 %v4726_v45, %v4726_v45 }
0x29ef   :  { %v5853_v21 = vmul.f32 0.5, %v5852_v60 }
0x29f0   :  { %v2516_v38 = vmul.f32 %v14360_v51, %v2509_v22  ;;  %v4734_v54 = vmul.f32 %v14364_v57, %v4727_v27 }
0x2a4e   :  { %v7749_v17 = vpop.permute.xlu1 %7748 }
0x2a4f   :  { %14367 = vrcp.f32 %v7749_v17 }
0x2a52   :  { %v2522_v49 = vpop.permute.xlu1 %2521 }
0x2a53   :  { %v2524_v14 = vadd.f32 %v2522_v49, %v2516_v38 }
0x2a55   :  { %v2525_v39 = vadd.f32 1.837877, %v2524_v14 }
0x2a56   :  { %v4740_v62 = vpop.permute.xlu1 %4739 }
0x2a57   :  { %v2526_v41 = vmul.f32 0.5, %v2525_v39  ;;  %v4742_v46 = vadd.f32 %v4740_v62, %v4734_v54 }
0x2a59   :  { %v14368_v34 = vpop.eup %14367  ;;  %v2527_v23 = vadd.f32 %v2526_v41, %v1417_v4  ;;  %v4743_v3 = vadd.f32 1.837877, %v4742_v46 }
0x2a5a   :  { %v6958_v15 = vpop.permute.xlu1 %6957  ;;  %v7752_v8 = vmul.f32 %v14368_v34, %v7745_v18 }
0x2a5b   :  { %v3636_v7 = vadd.f32 %v3635_v30, %v2527_v23  ;;  %v4744_v2 = vmul.f32 0.5, %v4743_v3  ;;  %v6960_v33 = vadd.f32 %v6958_v15, %v6952_v63  ;;  %v7758_v53 = vpop.permute.xlu0 %7757 }
0x2a5c   :  { %v7760_v36 = vadd.f32 %v7758_v53, %v7752_v8 }
0x2a5d   :  { %v4745_v55 = vadd.f32 %v4744_v2, %v3636_v7  ;;  %v6961_v58 = vadd.f32 1.837877, %v6960_v33 }
0x2a5e   :  { %v7761_v61 = vadd.f32 1.837877, %v7760_v36  ;;  %v7766_v0 = vpop.permute.xlu1 %7765 }
0x2a5f   :  { %v5854_v52 = vadd.f32 %v5853_v21, %v4745_v55  ;;  %v6962_v5 = vmul.f32 0.5, %v6961_v58  ;;  %v7768_v10 = vsel %vm624_vm1, %v7766_v0, 0.0 }
0x2a60   :  { %v7762_v20 = vmul.f32 0.5, %v7761_v61  ;;  %7769 = vadd.xlane.f32.xlu0 %v7768_v10 }
0x2a61   :  { %v6963_v25 = vadd.f32 %v6962_v5, %v5854_v52 }
0x2a63   :  { %v7763_v26 = vadd.f32 %v7762_v20, %v6963_v25 }
0x2a65   :  { %v7781_v31 = vsel %vm7780_vm2, %v7763_v26, 0.0 }
0x2a66   :  { %7782 = vadd.xlane.f32.xlu1 %v7781_v31 }
0x2aed   :  { %v7770_v35 = vpop.xlane.xlu0 %7769 }
0x2aee   :  { %v7771_v40 = vrot.slane %v7770_v35, 4 }
0x2af0   :  { %v7772_v44 = vadd.f32 %v7771_v40, %v7770_v35 }
0x2af2   :  { %v7773_v11 = vrot.slane %v7772_v44, 2 }
0x2af3   :  { %v7783_v50 = vpop.xlane.xlu1 %7782 }
0x2af4   :  { %v7784_v59 = vrot.slane %v7783_v50, 4  ;;  %v7774_v24 = vadd.f32 %v7773_v11, %v7772_v44 }
0x2af6   :  { %v7785_v51 = vadd.f32 %v7784_v59, %v7783_v50  ;;  %v7775_v17 = vrot.slane %v7774_v24, 1 }
0x2af8   :  { %v7786_v22 = vrot.slane %v7785_v51, 2  ;;  %v7776_v47 = vadd.f32 %v7775_v17, %v7774_v24 }
0x2afa   :  { %v7787_v37 = vadd.f32 %v7786_v22, %v7785_v51  ;;  %14144 = vpush %v7776_v47 }
0x2afc   :  { %v7788_v45 = vrot.slane %v7787_v37, 1 }
0x2afe   :  { %v7789_v43 = vadd.f32 %v7788_v45, %v7787_v37 }
0x2b00   :  { %14146 = vpush %v7789_v43 }
0x2b2b   :  { %s14145_s2 = spop %14144 }
0x2b2c   :  { %7779 = sst [smem:[#allocation2]] %s14145_s2 }
0x2b2d   :  { %14393 = shalt.err (!%p14390_p2)
}
0x2b2e   :  { %s14413_s10 = smov [#allocation2]   ;;  %s14394_s14 = scalar_lea.hbm %s17634_s9, 16 }
0x2b2f   :  { %7800 = dma.smem_to_hbm %s14413_s10, 16, %s17633_s8, [#allocation3]  }
0x2b30   :  { %p14395_p3 = scmp.ne.s32.totalorder %s17634_s9, %s14394_s14  ;;  %p14398_p4 = scmp.lt.u32.totalorder %s14394_s14, %s17634_s9 }
0x2b31   :  { %s14147_s13 = spop %14146 }
0x2b32   :  { %7792 = sst [smem:[#allocation4]] %s14147_s13  ;;  %p14400_p5 = pnand %p14398_p4, %p14395_p3 }
0x2b34   :  { %14403 = shalt.err (!%p14400_p5)
}
0x2b35   :  { %s14414_s15 = smov [#allocation4]  }
0x2b36   :  { %7808 = dma.smem_to_hbm %s14414_s15, 16, %s17634_s9, [#allocation5]  }
0x2b37   :  { %14404 = dma.done.wait [#allocation3], 16  }
0x2b38   :  { %14405 = vsyncadd [#allocation3], 4294967280 }
0x2b39   :  { %14406 = dma.done.wait [#allocation5], 16  }
0x2b3a   :  { %14407 = vsyncadd [#allocation5], 4294967280 }
0x2b3b   :  { %7815 = sfence }
0x2b3c   :  { %7816 = vsyncpa [#allocation3], 1 }
0x2b3d   :  { %7817 = vsyncpa [#allocation5], 1 }

</bundles_post_ra>
